<compile_context>
chip_gen: v6e
topology: v6e:2x2x1
jax: 0.10.0
libtpu: 0.0.40
codegen_flags: <defaults>
</compile_context>

<pallas_src>
import jax
import jax.numpy as jnp
from jax.experimental import pallas as pl
from jax.experimental.pallas import tpu as pltpu

_LANE = 128


def _dsconv_kernel(x_ref, wdw_ref, bdw_ref, wpw_ref, bpw_ref, out_ref, xpad_ref):
    """One (batch-block, row-tile) grid step.

    x_ref    : (NB, H, W, Cin)   raw (unpadded) input images of this batch block
    wdw_ref  : (KH, KW, Cp)      depthwise weights, BN1 scale folded in (f32)
    bdw_ref  : (1, 1, Cp)        BN1 shift (depthwise bias folded in, f32)
    wpw_ref  : (Cp, Cop)         pointwise weights, BN2 scale folded in
    bpw_ref  : (1, 1, Cop)       BN2 shift (pointwise bias folded in, f32)
    out_ref  : (NB, TH, W, Cop)  output row tile (lane-dense channels)
    xpad_ref : (NB, Hp, Wp, Cp)  VMEM scratch: spatial halo + channel expansion,
                                 persists across the row-tile axis of a batch
    """
    NB, TH, W, Cop = out_ref.shape
    KH, KW, Cp = wdw_ref.shape
    _, H, _, Cin = x_ref.shape
    pad = (KH - 1) // 2

    # Build the zero-padded, lane-dense image in VMEM once per batch block.
    @pl.when(pl.program_id(1) == 0)
    def _():
        xpad_ref[...] = jnp.zeros_like(xpad_ref)
        xpad_ref[:, pad:pad + H, pad:pad + W, 0:Cin] = x_ref[...]

    row0 = pl.multiple_of(pl.program_id(1) * TH, TH)
    w_all = wdw_ref[...]                         # hoist: one (KH, KW, Cp) load

    # ---- depthwise 3x3: KH aligned slab loads, KW shifts as value slices ----
    acc = None
    for kh in range(KH):                         # static unroll
        slab = xpad_ref[:, pl.ds(row0 + kh, TH), :, :]       # (NB, TH, Wp, Cp)
        for kw in range(KW):
            t = slab[:, :, kw:kw + W, :] * w_all[kh, kw]      # f32 accumulate
            acc = t if acc is None else acc + t

    y = jnp.maximum(acc + bdw_ref[0, 0, :], 0.0)              # BN1 shift + ReLU
    y = y.astype(wpw_ref.dtype)

    # ---- pointwise 1x1: (NB*TH*W, Cp) @ (Cp, Cop) on the MXU ----------------
    mm = jnp.dot(y.reshape(NB * TH * W, Cp), wpw_ref[...],
                 preferred_element_type=jnp.float32)
    mm = jnp.maximum(mm + bpw_ref[0, 0, :], 0.0)              # BN2 shift + ReLU
    out_ref[...] = mm.reshape(NB, TH, W, Cop).astype(out_ref.dtype)


def _round_up(v, m):
    return (v + m - 1) // m * m


def _pick_tiles(n, h, w, target_m=512):
    """Pick row tile TH (divides H) and batch fold NB (divides N) so the
    pointwise-matmul M dim (NB*TH*W) is large enough to fill the MXU."""
    th = h
    for d in range(1, h + 1):
        if h % d == 0 and d * w >= target_m:
            th = d
            break
    nb = 1
    if h * w < target_m:             # tiny feature maps (late MobileNet stages)
        nb = n
        for d in range(1, n + 1):
            if n % d == 0 and d * h * w >= target_m:
                nb = d
                break
    return nb, th


def depth_separable_conv2d(x_nchw, params, *, padding=1, eps=1e-5):
    """Forward pass equivalent to DepthSeperabelConv2d (stride=1, 'same' conv)."""
    (w_dw, b_dw, g1, be1, rm1, rv1,
     w_pw, b_pw, g2, be2, rm2, rv2) = params

    N, Cin, H, W = x_nchw.shape
    Cout = w_pw.shape[0]
    KH, KW = w_dw.shape[2], w_dw.shape[3]
    assert KH == KW and 2 * padding == KH - 1, "stride-1 'same' depthwise only"

    Cp = _round_up(Cin, _LANE)                   # lane-dense channel padding
    Cop = _round_up(Cout, _LANE)
    NB, TH = _pick_tiles(N, H, W)
    Hp, Wp = H + 2 * padding, W + 2 * padding

    # --- layout glue + BN folding (plain JAX, eval-mode running stats) -------
    x = jnp.transpose(x_nchw, (0, 2, 3, 1))                      # NCHW -> NHWC

    s1 = g1 / jnp.sqrt(rv1 + eps)
    sh1 = (b_dw - rm1) * s1 + be1
    s2 = g2 / jnp.sqrt(rv2 + eps)
    sh2 = (b_pw - rm2) * s2 + be2

    # Depthwise weights/shift kept f32 -> f32 tap accumulation even for a bf16
    # activation feed.  Pointwise weights follow the activation dtype (bf16
    # feed on v6e/v7x halves MXU passes); shift stays f32 (f32 MXU accumulator).
    wdw = jnp.transpose(w_dw[:, 0, :, :], (1, 2, 0)) * s1        # fold BN1 scale
    wdw = jnp.pad(wdw, ((0, 0), (0, 0), (0, Cp - Cin))).astype(jnp.float32)
    bdw = jnp.pad(sh1, (0, Cp - Cin)).reshape(1, 1, Cp).astype(jnp.float32)
    wpw = jnp.transpose(w_pw[:, :, 0, 0], (1, 0)) * s2[None, :]  # fold BN2 scale
    wpw = jnp.pad(wpw, ((0, Cp - Cin), (0, Cop - Cout))).astype(x.dtype)
    bpw = jnp.pad(sh2, (0, Cop - Cout)).reshape(1, 1, Cop).astype(jnp.float32)

    in_isz = jnp.dtype(x.dtype).itemsize

    # VMEM budget: scratch + double-buffered in/out blocks + single-buffered
    # weights + headroom for live depthwise intermediates.
    est = (NB * Hp * Wp * Cp * in_isz
           + 2 * NB * H * W * Cin * in_isz
           + 2 * NB * TH * W * Cop * in_isz
           + (KH * KW * Cp + Cp + Cop) * 4 + Cp * Cop * in_isz
           + 3 * NB * TH * Wp * Cp * 4)
    vmem_limit = max(32 << 20, min(96 << 20, int(est * 3 // 2) + (4 << 20)))

    cost = pl.CostEstimate(
        flops=2 * N * H * W * (KH * KW * Cin + Cin * Cout),
        transcendentals=0,
        bytes_accessed=int(N * H * W * Cin * in_isz
                           + (KH * KW * Cp + Cp + Cop) * 4 + Cp * Cop * in_isz
                           + N * H * W * Cop * in_isz))

    def _build(const_single_buffered):
        def _const_spec(shape, index_map):
            if const_single_buffered:
                # Constant-index operands: one buffer is enough (the block is
                # only ever DMA'd once); frees VMEM at zero DMA cost.
                return pl.BlockSpec(shape, index_map,
                                    pipeline_mode=pl.Buffered(1))
            return pl.BlockSpec(shape, index_map)

        return pl.pallas_call(
            _dsconv_kernel,
            out_shape=jax.ShapeDtypeStruct((N, H, W, Cop), x.dtype),
            grid_spec=pltpu.PrefetchScalarGridSpec(
                num_scalar_prefetch=0,
                grid=(N // NB, H // TH),
                in_specs=[
                    # Raw image block: index depends only on n -> one DMA per
                    # batch block, reused across all of its row tiles.
                    pl.BlockSpec((NB, H, W, Cin), lambda n, h: (n, 0, 0, 0)),
                    _const_spec((KH, KW, Cp), lambda n, h: (0, 0, 0)),
                    _const_spec((1, 1, Cp), lambda n, h: (0, 0, 0)),
                    _const_spec((Cp, Cop), lambda n, h: (0, 0)),
                    _const_spec((1, 1, Cop), lambda n, h: (0, 0, 0)),
                ],
                out_specs=pl.BlockSpec((NB, TH, W, Cop),
                                       lambda n, h: (n, h, 0, 0)),
                scratch_shapes=[pltpu.VMEM((NB, Hp, Wp, Cp), x.dtype)],
            ),
            compiler_params=pltpu.CompilerParams(
                # Shard the batch axis across cores (never duplicates the
                # per-batch image DMA); keep the row-tile axis sequential (it
                # reuses the per-batch scratch filled at h == 0).
                dimension_semantics=("parallel", "arbitrary"),
                vmem_limit_bytes=vmem_limit),
            cost_estimate=cost,
        )

    try:
        out_nhwc = _build(True)(x, wdw, bdw, wpw, bpw)
    except Exception:
        # Fallback if this JAX build rejects pipeline_mode=pl.Buffered(1).
        out_nhwc = _build(False)(x, wdw, bdw, wpw, bpw)

    out = out_nhwc[:, :, :, :Cout]                               # drop channel pad
    return jnp.transpose(out, (0, 3, 1, 2))                      # NHWC -> NCHW


def _reference(x_nchw, params, *, padding=1, eps=1e-5):
    """Pure-JAX reference (lax conv), mirrors eval-mode PyTorch forward."""
    (w_dw, b_dw, g1, be1, rm1, rv1,
     w_pw, b_pw, g2, be2, rm2, rv2) = params
    Cin = x_nchw.shape[1]

    y = jax.lax.conv_general_dilated(
        x_nchw, w_dw, window_strides=(1, 1),
        padding=[(padding, padding), (padding, padding)],
        feature_group_count=Cin,
        dimension_numbers=("NCHW", "OIHW", "NCHW"),
        precision=jax.lax.Precision.HIGHEST)
    y = y + b_dw[None, :, None, None]
    y = (y - rm1[None, :, None, None]) / jnp.sqrt(rv1[None, :, None, None] + eps)
    y = y * g1[None, :, None, None] + be1[None, :, None, None]
    y = jnp.maximum(y, 0.0)

    z = jax.lax.conv_general_dilated(
        y, w_pw, window_strides=(1, 1), padding=[(0, 0), (0, 0)],
        dimension_numbers=("NCHW", "OIHW", "NCHW"),
        precision=jax.lax.Precision.HIGHEST)
    z = z + b_pw[None, :, None, None]
    z = (z - rm2[None, :, None, None]) / jnp.sqrt(rv2[None, :, None, None] + eps)
    z = z * g2[None, :, None, None] + be2[None, :, None, None]
    return jnp.maximum(z, 0.0)


def _init_params(key, cin, cout, k):
    ks = jax.random.split(key, 4)
    w_dw = 0.1 * jax.random.normal(ks[0], (cin, 1, k, k), jnp.float32)
    b_dw = 0.05 * jax.random.normal(ks[1], (cin,), jnp.float32)
    g1 = jnp.linspace(0.8, 1.2, cin, dtype=jnp.float32)
    be1 = jnp.linspace(-0.1, 0.1, cin, dtype=jnp.float32)
    rm1 = 0.02 * jnp.arange(cin, dtype=jnp.float32)
    rv1 = jnp.ones((cin,), jnp.float32) + 0.01 * jnp.arange(cin, dtype=jnp.float32)

    w_pw = 0.1 * jax.random.normal(ks[2], (cout, cin, 1, 1), jnp.float32)
    b_pw = 0.05 * jax.random.normal(ks[3], (cout,), jnp.float32)
    g2 = jnp.linspace(0.9, 1.1, cout, dtype=jnp.float32)
    be2 = jnp.linspace(-0.05, 0.05, cout, dtype=jnp.float32)
    rm2 = 0.01 * jnp.arange(cout, dtype=jnp.float32)
    rv2 = jnp.ones((cout,), jnp.float32) + 0.02 * jnp.arange(cout, dtype=jnp.float32)

    return (w_dw, b_dw, g1, be1, rm1, rv1,
            w_pw, b_pw, g2, be2, rm2, rv2)


if __name__ == "__main__":
    key = jax.random.PRNGKey(0)
    k_x, k_p = jax.random.split(key)

    N, Cin, H, W = 2, 4, 16, 16
    Cout, K = 8, 3

    x = jax.random.normal(k_x, (N, Cin, H, W), jnp.float32)
    params = _init_params(k_p, Cin, Cout, K)

    out = depth_separable_conv2d(x, params)
    out = jax.block_until_ready(out)

    ref = _reference(x, params)
    assert out.shape == (N, Cout, H, W), out.shape
    max_err = float(jnp.max(jnp.abs(out - ref)))
    assert jnp.allclose(out, ref, atol=1e-3, rtol=1e-2), max_err

    print("KERNEL_OK")
</pallas_src>

<mosaic_0001>
module attributes {stable_mosaic.version = 11 : i64} {
  func.func @_dsconv_kernel(%arg0: i32, %arg1: i32, %arg2: memref<2x16x16x4xf32, #tpu.memory_space<vmem>>, %arg3: memref<3x3x128xf32, #tpu.memory_space<vmem>>, %arg4: memref<1x1x128xf32, #tpu.memory_space<vmem>>, %arg5: memref<128x128xf32, #tpu.memory_space<vmem>>, %arg6: memref<1x1x128xf32, #tpu.memory_space<vmem>>, %arg7: memref<2x16x16x128xf32, #tpu.memory_space<vmem>>, %arg8: memref<2x18x18x128xf32, #tpu.memory_space<vmem>>) attributes {dimension_semantics = [#tpu.dimension_semantics<parallel>, #tpu.dimension_semantics<arbitrary>], iteration_bounds = array<i64: 1, 1>, scalar_prefetch = 0 : i64, scratch_operands = 1 : i64, tpu.core_type = #tpu.core_type<tc>, window_params = [{transform_indices = @transform_0, window_bounds = array<i64: 2, 16, 16, 4>}, {pipeline_mode = #tpu.pipeline_mode<synchronous>, transform_indices = @transform_1, window_bounds = array<i64: 3, 3, 128>}, {pipeline_mode = #tpu.pipeline_mode<synchronous>, transform_indices = @transform_2, window_bounds = array<i64: 1, 1, 128>}, {pipeline_mode = #tpu.pipeline_mode<synchronous>, transform_indices = @transform_3, window_bounds = array<i64: 128, 128>}, {pipeline_mode = #tpu.pipeline_mode<synchronous>, transform_indices = @transform_4, window_bounds = array<i64: 1, 1, 128>}, {transform_indices = @transform_5, window_bounds = array<i64: 2, 16, 16, 128>}]} {
    %c0_i32 = arith.constant 0 : i32
    %0 = arith.cmpi eq, %arg1, %c0_i32 : i32
    %1 = arith.extui %0 : i1 to i32
    %c0_i32_0 = arith.constant 0 : i32
    %2 = arith.cmpi ne, %1, %c0_i32_0 : i32
    scf.if %2 {
      %cst_27 = arith.constant 0.000000e+00 : f32
      %96 = vector.broadcast %cst_27 : f32 to vector<2x18x18x128xf32>
      %c0_28 = arith.constant 0 : index
      %c0_29 = arith.constant 0 : index
      %c0_30 = arith.constant 0 : index
      %c0_31 = arith.constant 0 : index
      %97 = vector.load %arg8[%c0_28, %c0_29, %c0_30, %c0_31] : memref<2x18x18x128xf32, #tpu.memory_space<vmem>>, vector<2x18x18x128xf32>
      tpu.vector_store %arg8[%c0_28, %c0_29, %c0_30, %c0_31], %96 {strides = array<i32>} : memref<2x18x18x128xf32, #tpu.memory_space<vmem>>, vector<2x18x18x128xf32>,
      %c0_32 = arith.constant 0 : index
      %c0_33 = arith.constant 0 : index
      %c0_34 = arith.constant 0 : index
      %c0_35 = arith.constant 0 : index
      %98 = vector.load %arg2[%c0_32, %c0_33, %c0_34, %c0_35] : memref<2x16x16x4xf32, #tpu.memory_space<vmem>>, vector<2x16x16x4xf32>
      %c0_36 = arith.constant 0 : index
      %c1 = arith.constant 1 : index
      %c1_37 = arith.constant 1 : index
      %c0_38 = arith.constant 0 : index
      %99 = vector.load %arg8[%c0_36, %c1, %c1_37, %c0_38] : memref<2x18x18x128xf32, #tpu.memory_space<vmem>>, vector<2x16x16x4xf32>
      tpu.vector_store %arg8[%c0_36, %c1, %c1_37, %c0_38], %98 {strides = array<i32>} : memref<2x18x18x128xf32, #tpu.memory_space<vmem>>, vector<2x16x16x4xf32>,
    } else {
    }
    %c16_i32 = arith.constant 16 : i32
    %3 = arith.muli %arg1, %c16_i32 : i32
    %4 = tpu.assume_multiple %3, 16 : i32
    %c0 = arith.constant 0 : index
    %c0_1 = arith.constant 0 : index
    %c0_2 = arith.constant 0 : index
    %5 = vector.load %arg3[%c0, %c0_1, %c0_2] : memref<3x3x128xf32, #tpu.memory_space<vmem>>, vector<3x3x128xf32>
    %c0_i32_3 = arith.constant 0 : i32
    %6 = arith.addi %4, %c0_i32_3 : i32
    %c0_4 = arith.constant 0 : index
    %7 = arith.index_cast %6 : i32 to index
    %c0_5 = arith.constant 0 : index
    %c0_6 = arith.constant 0 : index
    %8 = vector.load %arg8[%c0_4, %7, %c0_5, %c0_6] : memref<2x18x18x128xf32, #tpu.memory_space<vmem>>, vector<2x16x18x128xf32>
    %9 = vector.extract_strided_slice %8 {offsets = [0, 0, 0, 0], sizes = [2, 16, 16, 128], strides = [1, 1, 1, 1]} : vector<2x16x18x128xf32> to vector<2x16x16x128xf32>
    %10 = vector.extract_strided_slice %5 {offsets = [0, 0, 0], sizes = [1, 1, 128], strides = [1, 1, 1]} : vector<3x3x128xf32> to vector<1x1x128xf32>
    %11 = vector.shape_cast %10 : vector<1x1x128xf32> to vector<128xf32>
    %12 = vector.shape_cast %11 : vector<128xf32> to vector<1x1x1x128xf32>
    %13 = vector.broadcast %12 : vector<1x1x1x128xf32> to vector<2x16x16x128xf32>
    %14 = arith.mulf %9, %13 : vector<2x16x16x128xf32>
    %15 = vector.extract_strided_slice %8 {offsets = [0, 0, 1, 0], sizes = [2, 16, 16, 128], strides = [1, 1, 1, 1]} : vector<2x16x18x128xf32> to vector<2x16x16x128xf32>
    %16 = vector.extract_strided_slice %5 {offsets = [0, 1, 0], sizes = [1, 1, 128], strides = [1, 1, 1]} : vector<3x3x128xf32> to vector<1x1x128xf32>
    %17 = vector.shape_cast %16 : vector<1x1x128xf32> to vector<128xf32>
    %18 = vector.shape_cast %17 : vector<128xf32> to vector<1x1x1x128xf32>
    %19 = vector.broadcast %18 : vector<1x1x1x128xf32> to vector<2x16x16x128xf32>
    %20 = arith.mulf %15, %19 : vector<2x16x16x128xf32>
    %21 = arith.addf %14, %20 : vector<2x16x16x128xf32>
    %22 = vector.extract_strided_slice %8 {offsets = [0, 0, 2, 0], sizes = [2, 16, 16, 128], strides = [1, 1, 1, 1]} : vector<2x16x18x128xf32> to vector<2x16x16x128xf32>
    %23 = vector.extract_strided_slice %5 {offsets = [0, 2, 0], sizes = [1, 1, 128], strides = [1, 1, 1]} : vector<3x3x128xf32> to vector<1x1x128xf32>
    %24 = vector.shape_cast %23 : vector<1x1x128xf32> to vector<128xf32>
    %25 = vector.shape_cast %24 : vector<128xf32> to vector<1x1x1x128xf32>
    %26 = vector.broadcast %25 : vector<1x1x1x128xf32> to vector<2x16x16x128xf32>
    %27 = arith.mulf %22, %26 : vector<2x16x16x128xf32>
    %28 = arith.addf %21, %27 : vector<2x16x16x128xf32>
    %c1_i32 = arith.constant 1 : i32
    %29 = arith.addi %4, %c1_i32 : i32
    %c0_7 = arith.constant 0 : index
    %30 = arith.index_cast %29 : i32 to index
    %c0_8 = arith.constant 0 : index
    %c0_9 = arith.constant 0 : index
    %31 = vector.load %arg8[%c0_7, %30, %c0_8, %c0_9] : memref<2x18x18x128xf32, #tpu.memory_space<vmem>>, vector<2x16x18x128xf32>
    %32 = vector.extract_strided_slice %31 {offsets = [0, 0, 0, 0], sizes = [2, 16, 16, 128], strides = [1, 1, 1, 1]} : vector<2x16x18x128xf32> to vector<2x16x16x128xf32>
    %33 = vector.extract_strided_slice %5 {offsets = [1, 0, 0], sizes = [1, 1, 128], strides = [1, 1, 1]} : vector<3x3x128xf32> to vector<1x1x128xf32>
    %34 = vector.shape_cast %33 : vector<1x1x128xf32> to vector<128xf32>
    %35 = vector.shape_cast %34 : vector<128xf32> to vector<1x1x1x128xf32>
    %36 = vector.broadcast %35 : vector<1x1x1x128xf32> to vector<2x16x16x128xf32>
    %37 = arith.mulf %32, %36 : vector<2x16x16x128xf32>
    %38 = arith.addf %28, %37 : vector<2x16x16x128xf32>
    %39 = vector.extract_strided_slice %31 {offsets = [0, 0, 1, 0], sizes = [2, 16, 16, 128], strides = [1, 1, 1, 1]} : vector<2x16x18x128xf32> to vector<2x16x16x128xf32>
    %40 = vector.extract_strided_slice %5 {offsets = [1, 1, 0], sizes = [1, 1, 128], strides = [1, 1, 1]} : vector<3x3x128xf32> to vector<1x1x128xf32>
    %41 = vector.shape_cast %40 : vector<1x1x128xf32> to vector<128xf32>
    %42 = vector.shape_cast %41 : vector<128xf32> to vector<1x1x1x128xf32>
    %43 = vector.broadcast %42 : vector<1x1x1x128xf32> to vector<2x16x16x128xf32>
    %44 = arith.mulf %39, %43 : vector<2x16x16x128xf32>
    %45 = arith.addf %38, %44 : vector<2x16x16x128xf32>
    %46 = vector.extract_strided_slice %31 {offsets = [0, 0, 2, 0], sizes = [2, 16, 16, 128], strides = [1, 1, 1, 1]} : vector<2x16x18x128xf32> to vector<2x16x16x128xf32>
    %47 = vector.extract_strided_slice %5 {offsets = [1, 2, 0], sizes = [1, 1, 128], strides = [1, 1, 1]} : vector<3x3x128xf32> to vector<1x1x128xf32>
    %48 = vector.shape_cast %47 : vector<1x1x128xf32> to vector<128xf32>
    %49 = vector.shape_cast %48 : vector<128xf32> to vector<1x1x1x128xf32>
    %50 = vector.broadcast %49 : vector<1x1x1x128xf32> to vector<2x16x16x128xf32>
    %51 = arith.mulf %46, %50 : vector<2x16x16x128xf32>
    %52 = arith.addf %45, %51 : vector<2x16x16x128xf32>
    %c2_i32 = arith.constant 2 : i32
    %53 = arith.addi %4, %c2_i32 : i32
    %c0_10 = arith.constant 0 : index
    %54 = arith.index_cast %53 : i32 to index
    %c0_11 = arith.constant 0 : index
    %c0_12 = arith.constant 0 : index
    %55 = vector.load %arg8[%c0_10, %54, %c0_11, %c0_12] : memref<2x18x18x128xf32, #tpu.memory_space<vmem>>, vector<2x16x18x128xf32>
    %56 = vector.extract_strided_slice %55 {offsets = [0, 0, 0, 0], sizes = [2, 16, 16, 128], strides = [1, 1, 1, 1]} : vector<2x16x18x128xf32> to vector<2x16x16x128xf32>
    %57 = vector.extract_strided_slice %5 {offsets = [2, 0, 0], sizes = [1, 1, 128], strides = [1, 1, 1]} : vector<3x3x128xf32> to vector<1x1x128xf32>
    %58 = vector.shape_cast %57 : vector<1x1x128xf32> to vector<128xf32>
    %59 = vector.shape_cast %58 : vector<128xf32> to vector<1x1x1x128xf32>
    %60 = vector.broadcast %59 : vector<1x1x1x128xf32> to vector<2x16x16x128xf32>
    %61 = arith.mulf %56, %60 : vector<2x16x16x128xf32>
    %62 = arith.addf %52, %61 : vector<2x16x16x128xf32>
    %63 = vector.extract_strided_slice %55 {offsets = [0, 0, 1, 0], sizes = [2, 16, 16, 128], strides = [1, 1, 1, 1]} : vector<2x16x18x128xf32> to vector<2x16x16x128xf32>
    %64 = vector.extract_strided_slice %5 {offsets = [2, 1, 0], sizes = [1, 1, 128], strides = [1, 1, 1]} : vector<3x3x128xf32> to vector<1x1x128xf32>
    %65 = vector.shape_cast %64 : vector<1x1x128xf32> to vector<128xf32>
    %66 = vector.shape_cast %65 : vector<128xf32> to vector<1x1x1x128xf32>
    %67 = vector.broadcast %66 : vector<1x1x1x128xf32> to vector<2x16x16x128xf32>
    %68 = arith.mulf %63, %67 : vector<2x16x16x128xf32>
    %69 = arith.addf %62, %68 : vector<2x16x16x128xf32>
    %70 = vector.extract_strided_slice %55 {offsets = [0, 0, 2, 0], sizes = [2, 16, 16, 128], strides = [1, 1, 1, 1]} : vector<2x16x18x128xf32> to vector<2x16x16x128xf32>
    %71 = vector.extract_strided_slice %5 {offsets = [2, 2, 0], sizes = [1, 1, 128], strides = [1, 1, 1]} : vector<3x3x128xf32> to vector<1x1x128xf32>
    %72 = vector.shape_cast %71 : vector<1x1x128xf32> to vector<128xf32>
    %73 = vector.shape_cast %72 : vector<128xf32> to vector<1x1x1x128xf32>
    %74 = vector.broadcast %73 : vector<1x1x1x128xf32> to vector<2x16x16x128xf32>
    %75 = arith.mulf %70, %74 : vector<2x16x16x128xf32>
    %76 = arith.addf %69, %75 : vector<2x16x16x128xf32>
    %c0_13 = arith.constant 0 : index
    %c0_14 = arith.constant 0 : index
    %c0_15 = arith.constant 0 : index
    %77 = vector.load %arg4[%c0_13, %c0_14, %c0_15] : memref<1x1x128xf32, #tpu.memory_space<vmem>>, vector<1x1x128xf32>
    %78 = vector.shape_cast %77 : vector<1x1x128xf32> to vector<128xf32>
    %79 = vector.shape_cast %78 : vector<128xf32> to vector<1x1x1x128xf32>
    %80 = vector.broadcast %79 : vector<1x1x1x128xf32> to vector<2x16x16x128xf32>
    %81 = arith.addf %76, %80 : vector<2x16x16x128xf32>
    %cst = arith.constant 0.000000e+00 : f32
    %82 = vector.broadcast %cst : f32 to vector<2x16x16x128xf32>
    %83 = arith.maximumf %81, %82 : vector<2x16x16x128xf32>
    %84 = vector.shape_cast %83 : vector<2x16x16x128xf32> to vector<512x128xf32>
    %c0_16 = arith.constant 0 : index
    %c0_17 = arith.constant 0 : index
    %85 = vector.load %arg5[%c0_16, %c0_17] : memref<128x128xf32, #tpu.memory_space<vmem>>, vector<128x128xf32>
    %cst_18 = arith.constant dense<0.000000e+00> : vector<512x128xf32>
    %86 = tpu.matmul %84, %85, %cst_18 {dimension_numbers = #tpu.dot_dimension_numbers<[1], [0], [0], [1], [0, 0, 1, 1], [], []>} : vector<512x128xf32>, vector<128x128xf32>, vector<512x128xf32> -> vector<512x128xf32>
    %c0_19 = arith.constant 0 : index
    %c0_20 = arith.constant 0 : index
    %c0_21 = arith.constant 0 : index
    %87 = vector.load %arg6[%c0_19, %c0_20, %c0_21] : memref<1x1x128xf32, #tpu.memory_space<vmem>>, vector<1x1x128xf32>
    %88 = vector.shape_cast %87 : vector<1x1x128xf32> to vector<128xf32>
    %89 = vector.shape_cast %88 : vector<128xf32> to vector<1x128xf32>
    %90 = vector.broadcast %89 : vector<1x128xf32> to vector<512x128xf32>
    %91 = arith.addf %86, %90 : vector<512x128xf32>
    %cst_22 = arith.constant 0.000000e+00 : f32
    %92 = vector.broadcast %cst_22 : f32 to vector<512x128xf32>
    %93 = arith.maximumf %91, %92 : vector<512x128xf32>
    %94 = vector.shape_cast %93 : vector<512x128xf32> to vector<2x16x16x128xf32>
    %c0_23 = arith.constant 0 : index
    %c0_24 = arith.constant 0 : index
    %c0_25 = arith.constant 0 : index
    %c0_26 = arith.constant 0 : index
    %95 = vector.load %arg7[%c0_23, %c0_24, %c0_25, %c0_26] : memref<2x16x16x128xf32, #tpu.memory_space<vmem>>, vector<2x16x16x128xf32>
    tpu.vector_store %arg7[%c0_23, %c0_24, %c0_25, %c0_26], %94 {strides = array<i32>} : memref<2x16x16x128xf32, #tpu.memory_space<vmem>>, vector<2x16x16x128xf32>,
    return
  }
  func.func @transform_0(%arg0: i32, %arg1: i32) -> (i32, i32, i32, i32) {
    %c0_i32 = arith.constant 0 : i32
    %c0_i32_0 = arith.constant 0 : i32
    %c0_i32_1 = arith.constant 0 : i32
    %c0_i32_2 = arith.constant 0 : i32
    return %arg0, %c0_i32, %c0_i32_0, %c0_i32_1 : i32, i32, i32, i32
  }
  func.func @transform_1(%arg0: i32, %arg1: i32) -> (i32, i32, i32) {
    %c0_i32 = arith.constant 0 : i32
    %c0_i32_0 = arith.constant 0 : i32
    %c0_i32_1 = arith.constant 0 : i32
    %c0_i32_2 = arith.constant 0 : i32
    return %c0_i32, %c0_i32_0, %c0_i32_1 : i32, i32, i32
  }
  func.func @transform_2(%arg0: i32, %arg1: i32) -> (i32, i32, i32) {
    %c0_i32 = arith.constant 0 : i32
    %c0_i32_0 = arith.constant 0 : i32
    %c0_i32_1 = arith.constant 0 : i32
    %c0_i32_2 = arith.constant 0 : i32
    return %c0_i32, %c0_i32_0, %c0_i32_1 : i32, i32, i32
  }
  func.func @transform_3(%arg0: i32, %arg1: i32) -> (i32, i32) {
    %c0_i32 = arith.constant 0 : i32
    %c0_i32_0 = arith.constant 0 : i32
    %c0_i32_1 = arith.constant 0 : i32
    return %c0_i32, %c0_i32_0 : i32, i32
  }
  func.func @transform_4(%arg0: i32, %arg1: i32) -> (i32, i32, i32) {
    %c0_i32 = arith.constant 0 : i32
    %c0_i32_0 = arith.constant 0 : i32
    %c0_i32_1 = arith.constant 0 : i32
    %c0_i32_2 = arith.constant 0 : i32
    return %c0_i32, %c0_i32_0, %c0_i32_1 : i32, i32, i32
  }
  func.func @transform_5(%arg0: i32, %arg1: i32) -> (i32, i32, i32, i32) {
    %c0_i32 = arith.constant 0 : i32
    %c0_i32_0 = arith.constant 0 : i32
    %c0_i32_1 = arith.constant 0 : i32
    return %arg0, %arg1, %c0_i32, %c0_i32_0 : i32, i32, i32, i32
  }
}

module attributes {stable_mosaic.version = 11 : i64} {
  func.func @_dsconv_kernel(%arg0: i32, %arg1: i32, %arg2: memref<2x16x16x4xf32, #tpu.memory_space<vmem>>, %arg3: memref<3x3x128xf32, #tpu.memory_space<vmem>>, %arg4: memref<1x1x128xf32, #tpu.memory_space<vmem>>, %arg5: memref<128x128xf32, #tpu.memory_space<vmem>>, %arg6: memref<1x1x128xf32, #tpu.memory_space<vmem>>, %arg7: memref<2x16x16x128xf32, #tpu.memory_space<vmem>>, %arg8: memref<2x18x18x128xf32, #tpu.memory_space<vmem>>) attributes {dimension_semantics = [#tpu.dimension_semantics<parallel>, #tpu.dimension_semantics<arbitrary>], iteration_bounds = array<i64: 1, 1>, scalar_prefetch = 0 : i64, scratch_operands = 1 : i64, tpu.core_type = #tpu.core_type<tc>, window_params = [{transform_indices = @transform_0, window_bounds = array<i64: 2, 16, 16, 4>}, {pipeline_mode = #tpu.pipeline_mode<synchronous>, transform_indices = @transform_1, window_bounds = array<i64: 3, 3, 128>}, {pipeline_mode = #tpu.pipeline_mode<synchronous>, transform_indices = @transform_2, window_bounds = array<i64: 1, 1, 128>}, {pipeline_mode = #tpu.pipeline_mode<synchronous>, transform_indices = @transform_3, window_bounds = array<i64: 128, 128>}, {pipeline_mode = #tpu.pipeline_mode<synchronous>, transform_indices = @transform_4, window_bounds = array<i64: 1, 1, 128>}, {transform_indices = @transform_5, window_bounds = array<i64: 2, 16, 16, 128>}]} {
    %c0_i32 = arith.constant 0 : i32
    %0 = arith.cmpi eq, %arg1, %c0_i32 : i32
    %1 = arith.extui %0 : i1 to i32
    %c0_i32_0 = arith.constant 0 : i32
    %2 = arith.cmpi ne, %1, %c0_i32_0 : i32
    scf.if %2 {
      %cst_27 = arith.constant 0.000000e+00 : f32
      %96 = vector.broadcast %cst_27 : f32 to vector<2x18x18x128xf32>
      %c0_28 = arith.constant 0 : index
      %c0_29 = arith.constant 0 : index
      %c0_30 = arith.constant 0 : index
      %c0_31 = arith.constant 0 : index
      %97 = vector.load %arg8[%c0_28, %c0_29, %c0_30, %c0_31] : memref<2x18x18x128xf32, #tpu.memory_space<vmem>>, vector<2x18x18x128xf32>
      tpu.vector_store %arg8[%c0_28, %c0_29, %c0_30, %c0_31], %96 {strides = array<i32>} : memref<2x18x18x128xf32, #tpu.memory_space<vmem>>, vector<2x18x18x128xf32>,
      %c0_32 = arith.constant 0 : index
      %c0_33 = arith.constant 0 : index
      %c0_34 = arith.constant 0 : index
      %c0_35 = arith.constant 0 : index
      %98 = vector.load %arg2[%c0_32, %c0_33, %c0_34, %c0_35] : memref<2x16x16x4xf32, #tpu.memory_space<vmem>>, vector<2x16x16x4xf32>
      %c0_36 = arith.constant 0 : index
      %c1 = arith.constant 1 : index
      %c1_37 = arith.constant 1 : index
      %c0_38 = arith.constant 0 : index
      %99 = vector.load %arg8[%c0_36, %c1, %c1_37, %c0_38] : memref<2x18x18x128xf32, #tpu.memory_space<vmem>>, vector<2x16x16x4xf32>
      tpu.vector_store %arg8[%c0_36, %c1, %c1_37, %c0_38], %98 {strides = array<i32>} : memref<2x18x18x128xf32, #tpu.memory_space<vmem>>, vector<2x16x16x4xf32>,
    } else {
    }
    %c16_i32 = arith.constant 16 : i32
    %3 = arith.muli %arg1, %c16_i32 : i32
    %4 = tpu.assume_multiple %3, 16 : i32
    %c0 = arith.constant 0 : index
    %c0_1 = arith.constant 0 : index
    %c0_2 = arith.constant 0 : index
    %5 = vector.load %arg3[%c0, %c0_1, %c0_2] : memref<3x3x128xf32, #tpu.memory_space<vmem>>, vector<3x3x128xf32>
    %c0_i32_3 = arith.constant 0 : i32
    %6 = arith.addi %4, %c0_i32_3 : i32
    %c0_4 = arith.constant 0 : index
    %7 = arith.index_cast %6 : i32 to index
    %c0_5 = arith.constant 0 : index
    %c0_6 = arith.constant 0 : index
    %8 = vector.load %arg8[%c0_4, %7, %c0_5, %c0_6] : memref<2x18x18x128xf32, #tpu.memory_space<vmem>>, vector<2x16x18x128xf32>
    %9 = vector.extract_strided_slice %8 {offsets = [0, 0, 0, 0], sizes = [2, 16, 16, 128], strides = [1, 1, 1, 1]} : vector<2x16x18x128xf32> to vector<2x16x16x128xf32>
    %10 = vector.extract_strided_slice %5 {offsets = [0, 0, 0], sizes = [1, 1, 128], strides = [1, 1, 1]} : vector<3x3x128xf32> to vector<1x1x128xf32>
    %11 = vector.shape_cast %10 : vector<1x1x128xf32> to vector<128xf32>
    %12 = vector.shape_cast %11 : vector<128xf32> to vector<1x1x1x128xf32>
    %13 = vector.broadcast %12 : vector<1x1x1x128xf32> to vector<2x16x16x128xf32>
    %14 = arith.mulf %9, %13 : vector<2x16x16x128xf32>
    %15 = vector.extract_strided_slice %8 {offsets = [0, 0, 1, 0], sizes = [2, 16, 16, 128], strides = [1, 1, 1, 1]} : vector<2x16x18x128xf32> to vector<2x16x16x128xf32>
    %16 = vector.extract_strided_slice %5 {offsets = [0, 1, 0], sizes = [1, 1, 128], strides = [1, 1, 1]} : vector<3x3x128xf32> to vector<1x1x128xf32>
    %17 = vector.shape_cast %16 : vector<1x1x128xf32> to vector<128xf32>
    %18 = vector.shape_cast %17 : vector<128xf32> to vector<1x1x1x128xf32>
    %19 = vector.broadcast %18 : vector<1x1x1x128xf32> to vector<2x16x16x128xf32>
    %20 = arith.mulf %15, %19 : vector<2x16x16x128xf32>
    %21 = arith.addf %14, %20 : vector<2x16x16x128xf32>
    %22 = vector.extract_strided_slice %8 {offsets = [0, 0, 2, 0], sizes = [2, 16, 16, 128], strides = [1, 1, 1, 1]} : vector<2x16x18x128xf32> to vector<2x16x16x128xf32>
    %23 = vector.extract_strided_slice %5 {offsets = [0, 2, 0], sizes = [1, 1, 128], strides = [1, 1, 1]} : vector<3x3x128xf32> to vector<1x1x128xf32>
    %24 = vector.shape_cast %23 : vector<1x1x128xf32> to vector<128xf32>
    %25 = vector.shape_cast %24 : vector<128xf32> to vector<1x1x1x128xf32>
    %26 = vector.broadcast %25 : vector<1x1x1x128xf32> to vector<2x16x16x128xf32>
    %27 = arith.mulf %22, %26 : vector<2x16x16x128xf32>
    %28 = arith.addf %21, %27 : vector<2x16x16x128xf32>
    %c1_i32 = arith.constant 1 : i32
    %29 = arith.addi %4, %c1_i32 : i32
    %c0_7 = arith.constant 0 : index
    %30 = arith.index_cast %29 : i32 to index
    %c0_8 = arith.constant 0 : index
    %c0_9 = arith.constant 0 : index
    %31 = vector.load %arg8[%c0_7, %30, %c0_8, %c0_9] : memref<2x18x18x128xf32, #tpu.memory_space<vmem>>, vector<2x16x18x128xf32>
    %32 = vector.extract_strided_slice %31 {offsets = [0, 0, 0, 0], sizes = [2, 16, 16, 128], strides = [1, 1, 1, 1]} : vector<2x16x18x128xf32> to vector<2x16x16x128xf32>
    %33 = vector.extract_strided_slice %5 {offsets = [1, 0, 0], sizes = [1, 1, 128], strides = [1, 1, 1]} : vector<3x3x128xf32> to vector<1x1x128xf32>
    %34 = vector.shape_cast %33 : vector<1x1x128xf32> to vector<128xf32>
    %35 = vector.shape_cast %34 : vector<128xf32> to vector<1x1x1x128xf32>
    %36 = vector.broadcast %35 : vector<1x1x1x128xf32> to vector<2x16x16x128xf32>
    %37 = arith.mulf %32, %36 : vector<2x16x16x128xf32>
    %38 = arith.addf %28, %37 : vector<2x16x16x128xf32>
    %39 = vector.extract_strided_slice %31 {offsets = [0, 0, 1, 0], sizes = [2, 16, 16, 128], strides = [1, 1, 1, 1]} : vector<2x16x18x128xf32> to vector<2x16x16x128xf32>
    %40 = vector.extract_strided_slice %5 {offsets = [1, 1, 0], sizes = [1, 1, 128], strides = [1, 1, 1]} : vector<3x3x128xf32> to vector<1x1x128xf32>
    %41 = vector.shape_cast %40 : vector<1x1x128xf32> to vector<128xf32>
    %42 = vector.shape_cast %41 : vector<128xf32> to vector<1x1x1x128xf32>
    %43 = vector.broadcast %42 : vector<1x1x1x128xf32> to vector<2x16x16x128xf32>
    %44 = arith.mulf %39, %43 : vector<2x16x16x128xf32>
    %45 = arith.addf %38, %44 : vector<2x16x16x128xf32>
    %46 = vector.extract_strided_slice %31 {offsets = [0, 0, 2, 0], sizes = [2, 16, 16, 128], strides = [1, 1, 1, 1]} : vector<2x16x18x128xf32> to vector<2x16x16x128xf32>
    %47 = vector.extract_strided_slice %5 {offsets = [1, 2, 0], sizes = [1, 1, 128], strides = [1, 1, 1]} : vector<3x3x128xf32> to vector<1x1x128xf32>
    %48 = vector.shape_cast %47 : vector<1x1x128xf32> to vector<128xf32>
    %49 = vector.shape_cast %48 : vector<128xf32> to vector<1x1x1x128xf32>
    %50 = vector.broadcast %49 : vector<1x1x1x128xf32> to vector<2x16x16x128xf32>
    %51 = arith.mulf %46, %50 : vector<2x16x16x128xf32>
    %52 = arith.addf %45, %51 : vector<2x16x16x128xf32>
    %c2_i32 = arith.constant 2 : i32
    %53 = arith.addi %4, %c2_i32 : i32
    %c0_10 = arith.constant 0 : index
    %54 = arith.index_cast %53 : i32 to index
    %c0_11 = arith.constant 0 : index
    %c0_12 = arith.constant 0 : index
    %55 = vector.load %arg8[%c0_10, %54, %c0_11, %c0_12] : memref<2x18x18x128xf32, #tpu.memory_space<vmem>>, vector<2x16x18x128xf32>
    %56 = vector.extract_strided_slice %55 {offsets = [0, 0, 0, 0], sizes = [2, 16, 16, 128], strides = [1, 1, 1, 1]} : vector<2x16x18x128xf32> to vector<2x16x16x128xf32>
    %57 = vector.extract_strided_slice %5 {offsets = [2, 0, 0], sizes = [1, 1, 128], strides = [1, 1, 1]} : vector<3x3x128xf32> to vector<1x1x128xf32>
    %58 = vector.shape_cast %57 : vector<1x1x128xf32> to vector<128xf32>
    %59 = vector.shape_cast %58 : vector<128xf32> to vector<1x1x1x128xf32>
    %60 = vector.broadcast %59 : vector<1x1x1x128xf32> to vector<2x16x16x128xf32>
    %61 = arith.mulf %56, %60 : vector<2x16x16x128xf32>
    %62 = arith.addf %52, %61 : vector<2x16x16x128xf32>
    %63 = vector.extract_strided_slice %55 {offsets = [0, 0, 1, 0], sizes = [2, 16, 16, 128], strides = [1, 1, 1, 1]} : vector<2x16x18x128xf32> to vector<2x16x16x128xf32>
    %64 = vector.extract_strided_slice %5 {offsets = [2, 1, 0], sizes = [1, 1, 128], strides = [1, 1, 1]} : vector<3x3x128xf32> to vector<1x1x128xf32>
    %65 = vector.shape_cast %64 : vector<1x1x128xf32> to vector<128xf32>
    %66 = vector.shape_cast %65 : vector<128xf32> to vector<1x1x1x128xf32>
    %67 = vector.broadcast %66 : vector<1x1x1x128xf32> to vector<2x16x16x128xf32>
    %68 = arith.mulf %63, %67 : vector<2x16x16x128xf32>
    %69 = arith.addf %62, %68 : vector<2x16x16x128xf32>
    %70 = vector.extract_strided_slice %55 {offsets = [0, 0, 2, 0], sizes = [2, 16, 16, 128], strides = [1, 1, 1, 1]} : vector<2x16x18x128xf32> to vector<2x16x16x128xf32>
    %71 = vector.extract_strided_slice %5 {offsets = [2, 2, 0], sizes = [1, 1, 128], strides = [1, 1, 1]} : vector<3x3x128xf32> to vector<1x1x128xf32>
    %72 = vector.shape_cast %71 : vector<1x1x128xf32> to vector<128xf32>
    %73 = vector.shape_cast %72 : vector<128xf32> to vector<1x1x1x128xf32>
    %74 = vector.broadcast %73 : vector<1x1x1x128xf32> to vector<2x16x16x128xf32>
    %75 = arith.mulf %70, %74 : vector<2x16x16x128xf32>
    %76 = arith.addf %69, %75 : vector<2x16x16x128xf32>
    %c0_13 = arith.constant 0 : index
    %c0_14 = arith.constant 0 : index
    %c0_15 = arith.constant 0 : index
    %77 = vector.load %arg4[%c0_13, %c0_14, %c0_15] : memref<1x1x128xf32, #tpu.memory_space<vmem>>, vector<1x1x128xf32>
    %78 = vector.shape_cast %77 : vector<1x1x128xf32> to vector<128xf32>
    %79 = vector.shape_cast %78 : vector<128xf32> to vector<1x1x1x128xf32>
    %80 = vector.broadcast %79 : vector<1x1x1x128xf32> to vector<2x16x16x128xf32>
    %81 = arith.addf %76, %80 : vector<2x16x16x128xf32>
    %cst = arith.constant 0.000000e+00 : f32
    %82 = vector.broadcast %cst : f32 to vector<2x16x16x128xf32>
    %83 = arith.maximumf %81, %82 : vector<2x16x16x128xf32>
    %84 = vector.shape_cast %83 : vector<2x16x16x128xf32> to vector<512x128xf32>
    %c0_16 = arith.constant 0 : index
    %c0_17 = arith.constant 0 : index
    %85 = vector.load %arg5[%c0_16, %c0_17] : memref<128x128xf32, #tpu.memory_space<vmem>>, vector<128x128xf32>
    %cst_18 = arith.constant dense<0.000000e+00> : vector<512x128xf32>
    %86 = tpu.matmul %84, %85, %cst_18 {dimension_numbers = #tpu.dot_dimension_numbers<[1], [0], [0], [1], [0, 0, 1, 1], [], []>} : vector<512x128xf32>, vector<128x128xf32>, vector<512x128xf32> -> vector<512x128xf32>
    %c0_19 = arith.constant 0 : index
    %c0_20 = arith.constant 0 : index
    %c0_21 = arith.constant 0 : index
    %87 = vector.load %arg6[%c0_19, %c0_20, %c0_21] : memref<1x1x128xf32, #tpu.memory_space<vmem>>, vector<1x1x128xf32>
    %88 = vector.shape_cast %87 : vector<1x1x128xf32> to vector<128xf32>
    %89 = vector.shape_cast %88 : vector<128xf32> to vector<1x128xf32>
    %90 = vector.broadcast %89 : vector<1x128xf32> to vector<512x128xf32>
    %91 = arith.addf %86, %90 : vector<512x128xf32>
    %cst_22 = arith.constant 0.000000e+00 : f32
    %92 = vector.broadcast %cst_22 : f32 to vector<512x128xf32>
    %93 = arith.maximumf %91, %92 : vector<512x128xf32>
    %94 = vector.shape_cast %93 : vector<512x128xf32> to vector<2x16x16x128xf32>
    %c0_23 = arith.constant 0 : index
    %c0_24 = arith.constant 0 : index
    %c0_25 = arith.constant 0 : index
    %c0_26 = arith.constant 0 : index
    %95 = vector.load %arg7[%c0_23, %c0_24, %c0_25, %c0_26] : memref<2x16x16x128xf32, #tpu.memory_space<vmem>>, vector<2x16x16x128xf32>
    tpu.vector_store %arg7[%c0_23, %c0_24, %c0_25, %c0_26], %94 {strides = array<i32>} : memref<2x16x16x128xf32, #tpu.memory_space<vmem>>, vector<2x16x16x128xf32>,
    return
  }
  func.func @transform_0(%arg0: i32, %arg1: i32) -> (i32, i32, i32, i32) {
    %c0_i32 = arith.constant 0 : i32
    %c0_i32_0 = arith.constant 0 : i32
    %c0_i32_1 = arith.constant 0 : i32
    %c0_i32_2 = arith.constant 0 : i32
    return %arg0, %c0_i32, %c0_i32_0, %c0_i32_1 : i32, i32, i32, i32
  }
  func.func @transform_1(%arg0: i32, %arg1: i32) -> (i32, i32, i32) {
    %c0_i32 = arith.constant 0 : i32
    %c0_i32_0 = arith.constant 0 : i32
    %c0_i32_1 = arith.constant 0 : i32
    %c0_i32_2 = arith.constant 0 : i32
    return %c0_i32, %c0_i32_0, %c0_i32_1 : i32, i32, i32
  }
  func.func @transform_2(%arg0: i32, %arg1: i32) -> (i32, i32, i32) {
    %c0_i32 = arith.constant 0 : i32
    %c0_i32_0 = arith.constant 0 : i32
    %c0_i32_1 = arith.constant 0 : i32
    %c0_i32_2 = arith.constant 0 : i32
    return %c0_i32, %c0_i32_0, %c0_i32_1 : i32, i32, i32
  }
  func.func @transform_3(%arg0: i32, %arg1: i32) -> (i32, i32) {
    %c0_i32 = arith.constant 0 : i32
    %c0_i32_0 = arith.constant 0 : i32
    %c0_i32_1 = arith.constant 0 : i32
    return %c0_i32, %c0_i32_0 : i32, i32
  }
  func.func @transform_4(%arg0: i32, %arg1: i32) -> (i32, i32, i32) {
    %c0_i32 = arith.constant 0 : i32
    %c0_i32_0 = arith.constant 0 : i32
    %c0_i32_1 = arith.constant 0 : i32
    %c0_i32_2 = arith.constant 0 : i32
    return %c0_i32, %c0_i32_0, %c0_i32_1 : i32, i32, i32
  }
  func.func @transform_5(%arg0: i32, %arg1: i32) -> (i32, i32, i32, i32) {
    %c0_i32 = arith.constant 0 : i32
    %c0_i32_0 = arith.constant 0 : i32
    %c0_i32_1 = arith.constant 0 : i32
    return %arg0, %arg1, %c0_i32, %c0_i32_0 : i32, i32, i32, i32
  }
}

</mosaic_0001>

<bundles_post_ra>
// kernel: tpu_custom_call.1
= control target key start
LH: loop header
LB: loop body
LE: loop exit
PB: predicated region body
PF: predicated region fallthrough
CT: control target
= control target key end

     0   :  { %v365_v2 = vlaneseq  ;;  %v4764_v3 = vmov 0.0   ;;  %vm198_vm0 = vcmask 31744   ;;  %vm629_vm1 = vcmask 1046528   ;;  %s8650_s0 = inlined_call_operand.vmem [shape: f32[2,16,16,4], index: 0, kind: input, shape index: {}]   ;;  %s8651_s1 = inlined_call_operand.vmem [shape: f32[3,3,128], index: 1, kind: input, shape index: {}]   ;;  %s8652_s2 = inlined_call_operand.vmem [shape: f32[1,1,128], index: 2, kind: input, shape index: {}]   ;;  %s8653_s3 = inlined_call_operand.vmem [shape: f32[128,128], index: 3, kind: input, shape index: {}]   ;;  %s8654_s4 = inlined_call_operand.vmem [shape: f32[1,1,128], index: 4, kind: input, shape index: {}]   ;;  %s8655_s5 = inlined_call_operand.hbm [shape: f32[2,16,16,128], index: 5, kind: output, shape index: {}]  }
   0x1   :  { %v4801_v0 = vld [vmem:[%s8653_s3 + $0x78] sm:$0xff]  ;;  %v4806_v1 = vld [vmem:[%s8653_s3 + $0x70] sm:$0xff]  ;;  %25 = vst [vmem:[#allocation2] sm:$0xff] %v4764_v3  ;;  %28 = vst [vmem:[#allocation2 + $0x18] sm:$0xff] %v4764_v3  ;;  %vm1114_vm2 = vcmask 1045504  }
   0x2   :  { %4572 = vmatprep.subr.mxu0 %v4801_v0  ;;  %4700 = vmatprep.subr.mxu1 %v4801_v0  ;;  %29 = vst [vmem:[#allocation2 + $0x20] sm:$0xff] %v4764_v3  ;;  %30 = vst [vmem:[#allocation2 + $0x28] sm:$0x3] %v4764_v3  ;;  %v3949_v4 = vld [vmem:[%s8653_s3 + $0x68] sm:$0xff]  ;;  %v366_v5 = vshrl.u32 %v365_v2, 7  ;;  %v3948_v6 = vld [vmem:[%s8653_s3 + $0x60] sm:$0xff] }
   0x3   :  { %31 = vst [vmem:[#allocation2 + $0x30] sm:$0xff] %v4764_v3  ;;  %32 = vst [vmem:[#allocation2 + $0x38] sm:$0xff] %v4764_v3  ;;  %4573 = vmatpush3.msra.mxu0 %v4801_v0  ;;  %4716 = vmatpush3.msra.mxu1 %v4801_v0  ;;  %v3947_v10 = vld [vmem:[%s8653_s3 + $0x58] sm:$0xff]  ;;  %v133_v11 = vld [vmem:[%s8650_s0] sm:$0xff] }
   0x4   :  { %33 = vst [vmem:[#allocation2 + $0x40] sm:$0x3] %v4764_v3  ;;  %27 = vst [vmem:[#allocation2 + $0x10] sm:$0x3] %v4764_v3  ;;  %4574 = vmatprep.subr.mxu0 %v4806_v1  ;;  %4701 = vmatprep.subr.mxu1 %v4806_v1  ;;  %v367_v7 = vsub.s32 0, %v366_v5  ;;  %v435_v8 = vsub.s32 1, %v366_v5 }
   0x5   :  { %34 = vst [vmem:[#allocation2 + $0x48] sm:$0xff] %v4764_v3  ;;  %35 = vst [vmem:[#allocation2 + $0x50] sm:$0xff] %v4764_v3  ;;  %4575 = vmatpush3.msra.mxu0 %v4806_v1  ;;  %4717 = vmatpush3.msra.mxu1 %v4806_v1  ;;  %v4924_v9 = vsub.s32 2, %v366_v5  ;;  %v134_v12 = vld [vmem:[%s8650_s0 + $0x8] sm:$0xff]  ;;  %v135_v13 = vld [vmem:[%s8650_s0 + $0x10] sm:$0xff] }
   0x6   :  { %36 = vst [vmem:[#allocation2 + $0x58] sm:$0x3] %v4764_v3  ;;  %37 = vst [vmem:[#allocation2 + $0x60] sm:$0xff] %v4764_v3  ;;  %4576 = vmatprep.subr.mxu0 %v3949_v4  ;;  %4702 = vmatprep.subr.mxu1 %v3949_v4  ;;  %v136_v14 = vld [vmem:[%s8650_s0 + $0x18] sm:$0xff]  ;;  %v264_v15 = vld [vmem:[%s8651_s1] sm:$0x7] }
   0x7   :  { %38 = vst [vmem:[#allocation2 + $0x68] sm:$0xff] %v4764_v3  ;;  %39 = vst [vmem:[#allocation2 + $0x70] sm:$0x3] %v4764_v3  ;;  %4577 = vmatpush3.msra.mxu0 %v3949_v4  ;;  %4718 = vmatpush3.msra.mxu1 %v3949_v4  ;;  %v3946_v16 = vld [vmem:[%s8653_s3 + $0x50] sm:$0xff]  ;;  %v265_v17 = vld [vmem:[%s8651_s1 + $0x4] sm:$0x7]  ;;  %v4957_v19 = vrot.slane %v264_v15, %v367_v7  ;;  %v4959_v20 = vrot.slane %v264_v15, %v435_v8 }
   0x8   :  { %40 = vst [vmem:[#allocation2 + $0x78] sm:$0xff] %v4764_v3  ;;  %41 = vst [vmem:[#allocation2 + $0x80] sm:$0xff] %v4764_v3  ;;  %4578 = vmatprep.subr.mxu0 %v3948_v6  ;;  %4703 = vmatprep.subr.mxu1 %v3948_v6  ;;  %v266_v18 = vld [vmem:[%s8651_s1 + $0x8] sm:$0x7]  ;;  %v4962_v21 = vrot.slane %v264_v15, %v4924_v9  ;;  %v4967_v23 = vrot.slane %v265_v17, %v367_v7  ;;  %v165_v24 = vld [vmem:[%s8650_s0 + $0x100] sm:$0xff] }
   0x9   :  { %42 = vst [vmem:[#allocation2 + $0x88] sm:$0x3] %v4764_v3  ;;  %43 = vst [vmem:[#allocation2 + $0x90] sm:$0xff] %v4764_v3  ;;  %4579 = vmatpush3.msra.mxu0 %v3948_v6  ;;  %4719 = vmatpush3.msra.mxu1 %v3948_v6  ;;  %v3945_v22 = vld [vmem:[%s8653_s3 + $0x48] sm:$0xff]  ;;  %v167_v26 = vld [vmem:[%s8650_s0 + $0x110] sm:$0xff]  ;;  %v437_v27 = vmul.f32 0.0, %v4959_v20  ;;  %v4980_v29 = vrot.slane %v265_v17, %v435_v8  ;;  %v4995_v35 = vrot.slane %v265_v17, %v4924_v9 }
   0xa   :  { %44 = vst [vmem:[#allocation2 + $0x98] sm:$0xff] %v4764_v3  ;;  %45 = vst [vmem:[#allocation2 + $0xa0] sm:$0x3] %v4764_v3  ;;  %v166_v25 = vld [vmem:[%s8650_s0 + $0x108] sm:$0xff]  ;;  %4580 = vmatprep.subr.mxu0 %v3947_v10  ;;  %4704 = vmatprep.subr.mxu1 %v3947_v10  ;;  %v922_v28 = vmul.f32 0.0, %v4962_v21  ;;  %v168_v30 = vld [vmem:[%s8650_s0 + $0x118] sm:$0xff]  ;;  %v4997_v36 = vrot.slane %v266_v18, %v367_v7  ;;  %v5013_v42 = vrot.slane %v266_v18, %v435_v8 }
   0xb   :  { %46 = vst [vmem:[#allocation2 + $0xa8] sm:$0xff] %v4764_v3  ;;  %47 = vst [vmem:[#allocation2 + $0xb0] sm:$0xff] %v4764_v3  ;;  %v271_v31 = vld [vmem:[#allocation2 + $0x10] sm:$0x3]  ;;  %4581 = vmatpush3.msra.mxu0 %v3947_v10  ;;  %4720 = vmatpush3.msra.mxu1 %v3947_v10  ;;  %v3944_v33 = vld [vmem:[%s8653_s3 + $0x40] sm:$0xff]  ;;  %v4992_v34 = vmul.f32 0.0, %v4957_v19  ;;  %v5031_v47 = vrot.slane %v266_v18, %v4924_v9 }
   0xc   :  { %48 = vst [vmem:[#allocation2 + $0xb8] sm:$0x3] %v4764_v3  ;;  %49 = vst [vmem:[#allocation2 + $0xc0] sm:$0xff] %v4764_v3  ;;  %v137_v37 = vld [vmem:[%s8650_s0 + $0x20] sm:$0xff]  ;;  %v138_v38 = vld [vmem:[%s8650_s0 + $0x28] sm:$0xff]  ;;  %4582 = vmatprep.subr.mxu0 %v3946_v16  ;;  %4705 = vmatprep.subr.mxu1 %v3946_v16  ;;  %v5009_v40 = vrot.slane %v437_v27, 1  ;;  %v5016_v43 = vmul.f32 %v4959_v20, %v271_v31  ;;  %v5034_v48 = vmul.f32 %v4962_v21, %v271_v31 }
   0xd   :  { %50 = vst [vmem:[#allocation2 + $0xc8] sm:$0xff] %v4764_v3  ;;  %51 = vst [vmem:[#allocation2 + $0xd0] sm:$0x3] %v4764_v3  ;;  %v169_v39 = vld [vmem:[%s8650_s0 + $0x120] sm:$0xff]  ;;  %v5011_v41 = vrot.slane %v922_v28, 2  ;;  %v170_v44 = vld [vmem:[%s8650_s0 + $0x128] sm:$0xff]  ;;  %4583 = vmatpush3.msra.mxu0 %v3946_v16  ;;  %4721 = vmatpush3.msra.mxu1 %v3946_v16 }
   0xe   :  { %52 = vst [vmem:[#allocation2 + $0xd8] sm:$0xff] %v4764_v3  ;;  %53 = vst [vmem:[#allocation2 + $0xe0] sm:$0xff] %v4764_v3  ;;  %v139_v45 = vld [vmem:[%s8650_s0 + $0x30] sm:$0xff]  ;;  %v140_v46 = vld [vmem:[%s8650_s0 + $0x38] sm:$0xff]  ;;  %4584 = vmatprep.subr.mxu0 %v3945_v22  ;;  %4706 = vmatprep.subr.mxu1 %v3945_v22  ;;  %v854_v56 = vadd.f32 %v5009_v40, %v4992_v34  ;;  %v633_v0 = vrot.slane %v5016_v43, 1 }
   0xf   :  { %54 = vst [vmem:[#allocation2 + $0xe8] sm:$0x3] %v4764_v3  ;;  %55 = vst [vmem:[#allocation2 + $0xf0] sm:$0xff] %v4764_v3  ;;  %v171_v50 = vld [vmem:[%s8650_s0 + $0x130] sm:$0xff]  ;;  %v172_v51 = vld [vmem:[%s8650_s0 + $0x138] sm:$0xff]  ;;  %4585 = vmatpush3.msra.mxu0 %v3945_v22  ;;  %4722 = vmatpush3.msra.mxu1 %v3945_v22 }
  0x10   :  { %56 = vst [vmem:[#allocation2 + $0xf8] sm:$0xff] %v4764_v3  ;;  %57 = vst [vmem:[#allocation2 + $0x100] sm:$0x3] %v4764_v3  ;;  %v141_v52 = vld [vmem:[%s8650_s0 + $0x40] sm:$0xff]  ;;  %v3943_v55 = vld [vmem:[%s8653_s3 + $0x38] sm:$0xff]  ;;  %4586 = vmatprep.subr.mxu0 %v3944_v33  ;;  %4707 = vmatprep.subr.mxu1 %v3944_v33 }
  0x11   :  { %58 = vst [vmem:[#allocation2 + $0x108] sm:$0xff] %v4764_v3  ;;  %59 = vst [vmem:[#allocation2 + $0x110] sm:$0xff] %v4764_v3  ;;  %v142_v1 = vld [vmem:[%s8650_s0 + $0x48] sm:$0xff]  ;;  %4587 = vmatpush3.msra.mxu0 %v3944_v33  ;;  %4723 = vmatpush3.msra.mxu1 %v3944_v33  ;;  %v3942_v2 = vld [vmem:[%s8653_s3 + $0x30] sm:$0xff] }
  0x12   :  { %60 = vst [vmem:[#allocation2 + $0x118] sm:$0x3] %v4764_v3  ;;  %61 = vst [vmem:[#allocation2 + $0x120] sm:$0xff] %v4764_v3  ;;  %4588 = vmatprep.subr.mxu0 %v3943_v55  ;;  %4708 = vmatprep.subr.mxu1 %v3943_v55 }
  0x13   :  { %62 = vst [vmem:[#allocation2 + $0x128] sm:$0xff] %v4764_v3  ;;  %63 = vst [vmem:[#allocation2 + $0x130] sm:$0x3] %v4764_v3  ;;  %4589 = vmatpush3.msra.mxu0 %v3943_v55  ;;  %4724 = vmatpush3.msra.mxu1 %v3943_v55 }
  0x14   :  { %64 = vst [vmem:[#allocation2 + $0x138] sm:$0xff] %v4764_v3  ;;  %65 = vst [vmem:[#allocation2 + $0x140] sm:$0xff] %v4764_v3  ;;  %4590 = vmatprep.subr.mxu0 %v3942_v2  ;;  %4709 = vmatprep.subr.mxu1 %v3942_v2 }
  0x15   :  { %66 = vst [vmem:[#allocation2 + $0x148] sm:$0x3] %v4764_v3  ;;  %67 = vst [vmem:[#allocation2 + $0x150] sm:$0xff] %v4764_v3  ;;  %4591 = vmatpush3.msra.mxu0 %v3942_v2  ;;  %4725 = vmatpush3.msra.mxu1 %v3942_v2 }
  0x16   :  { %68 = vst [vmem:[#allocation2 + $0x158] sm:$0xff] %v4764_v3  ;;  %69 = vst [vmem:[#allocation2 + $0x160] sm:$0x3] %v4764_v3 }
  0x17   :  { %70 = vst [vmem:[#allocation2 + $0x168] sm:$0xff] %v4764_v3  ;;  %71 = vst [vmem:[#allocation2 + $0x170] sm:$0xff] %v4764_v3 }
  0x18   :  { %72 = vst [vmem:[#allocation2 + $0x178] sm:$0x3] %v4764_v3  ;;  %73 = vst [vmem:[#allocation2 + $0x180] sm:$0xff] %v4764_v3 }
  0x19   :  { %74 = vst [vmem:[#allocation2 + $0x188] sm:$0xff] %v4764_v3  ;;  %75 = vst [vmem:[#allocation2 + $0x190] sm:$0x3] %v4764_v3 }
  0x1a   :  { %78 = vst [vmem:[#allocation2 + $0x1a8] sm:$0x3] %v4764_v3  ;;  %81 = vst [vmem:[#allocation2 + $0x1c0] sm:$0x3] %v4764_v3 }
  0x1b   :  { %82 = vst [vmem:[#allocation2 + $0x1c8] sm:$0xff] %v4764_v3  ;;  %83 = vst [vmem:[#allocation2 + $0x1d0] sm:$0xff] %v4764_v3 }
  0x1c   :  { %84 = vst [vmem:[#allocation2 + $0x1d8] sm:$0x3] %v4764_v3  ;;  %85 = vst [vmem:[#allocation2 + $0x1e0] sm:$0xff] %v4764_v3 }
  0x1d   :  { %86 = vst [vmem:[#allocation2 + $0x1e8] sm:$0xff] %v4764_v3  ;;  %87 = vst [vmem:[#allocation2 + $0x1f0] sm:$0x3] %v4764_v3 }
  0x1e   :  { %88 = vst [vmem:[#allocation2 + $0x1f8] sm:$0xff] %v4764_v3  ;;  %89 = vst [vmem:[#allocation2 + $0x200] sm:$0xff] %v4764_v3 }
  0x1f   :  { %90 = vst [vmem:[#allocation2 + $0x208] sm:$0x3] %v4764_v3  ;;  %91 = vst [vmem:[#allocation2 + $0x210] sm:$0xff] %v4764_v3 }
  0x20   :  { %92 = vst [vmem:[#allocation2 + $0x218] sm:$0xff] %v4764_v3  ;;  %93 = vst [vmem:[#allocation2 + $0x220] sm:$0x3] %v4764_v3 }
  0x21   :  { %94 = vst [vmem:[#allocation2 + $0x228] sm:$0xff] %v4764_v3  ;;  %95 = vst [vmem:[#allocation2 + $0x230] sm:$0xff] %v4764_v3  ;;  %v319_v32 = vld [vmem:[#allocation2 + $0x1c0] sm:$0x3] }
  0x22   :  { %96 = vst [vmem:[#allocation2 + $0x238] sm:$0x3] %v4764_v3  ;;  %97 = vst [vmem:[#allocation2 + $0x240] sm:$0xff] %v4764_v3  ;;  %v5037_v49 = vmul.f32 %v4959_v20, %v319_v32  ;;  %v5054_v54 = vmul.f32 %v4962_v21, %v319_v32 }
  0x23   :  { %98 = vst [vmem:[#allocation2 + $0x248] sm:$0xff] %v4764_v3  ;;  %99 = vst [vmem:[#allocation2 + $0x250] sm:$0x3] %v4764_v3 }
  0x24   :  { %100 = vst [vmem:[#allocation2 + $0x258] sm:$0xff] %v4764_v3  ;;  %101 = vst [vmem:[#allocation2 + $0x260] sm:$0xff] %v4764_v3 }
  0x25   :  { %102 = vst [vmem:[#allocation2 + $0x268] sm:$0x3] %v4764_v3  ;;  %103 = vst [vmem:[#allocation2 + $0x270] sm:$0xff] %v4764_v3 }
  0x26   :  { %104 = vst [vmem:[#allocation2 + $0x278] sm:$0xff] %v4764_v3  ;;  %105 = vst [vmem:[#allocation2 + $0x280] sm:$0x3] %v4764_v3 }
  0x27   :  { %106 = vst [vmem:[#allocation2 + $0x288] sm:$0xff] %v4764_v3  ;;  %107 = vst [vmem:[#allocation2 + $0x290] sm:$0xff] %v4764_v3 }
  0x28   :  { %108 = vst [vmem:[#allocation2 + $0x298] sm:$0x3] %v4764_v3  ;;  %109 = vst [vmem:[#allocation2 + $0x2a0] sm:$0xff] %v4764_v3 }
  0x29   :  { %110 = vst [vmem:[#allocation2 + $0x2a8] sm:$0xff] %v4764_v3  ;;  %111 = vst [vmem:[#allocation2 + $0x2b0] sm:$0x3] %v4764_v3 }
  0x2a   :  { %112 = vst [vmem:[#allocation2 + $0x2b8] sm:$0xff] %v4764_v3  ;;  %113 = vst [vmem:[#allocation2 + $0x2c0] sm:$0xff] %v4764_v3 }
  0x2b   :  { %114 = vst [vmem:[#allocation2 + $0x2c8] sm:$0x3] %v4764_v3  ;;  %115 = vst [vmem:[#allocation2 + $0x2d0] sm:$0xff] %v4764_v3 }
  0x2c   :  { %116 = vst [vmem:[#allocation2 + $0x2d8] sm:$0xff] %v4764_v3  ;;  %117 = vst [vmem:[#allocation2 + $0x2e0] sm:$0x3] %v4764_v3 }
  0x2d   :  { %118 = vst [vmem:[#allocation2 + $0x2e8] sm:$0xff] %v4764_v3  ;;  %119 = vst [vmem:[#allocation2 + $0x2f0] sm:$0xff] %v4764_v3 }
  0x2e   :  { %120 = vst [vmem:[#allocation2 + $0x2f8] sm:$0x3] %v4764_v3  ;;  %121 = vst [vmem:[#allocation2 + $0x300] sm:$0xff] %v4764_v3 }
  0x2f   :  { %122 = vst [vmem:[#allocation2 + $0x308] sm:$0xff] %v4764_v3  ;;  %123 = vst [vmem:[#allocation2 + $0x310] sm:$0x3] %v4764_v3 }
  0x30   :  { %124 = vst [vmem:[#allocation2 + $0x318] sm:$0xff] %v4764_v3  ;;  %125 = vst [vmem:[#allocation2 + $0x320] sm:$0xff] %v4764_v3 }
  0x31   :  { %126 = vst [vmem:[#allocation2 + $0x328] sm:$0x3] %v4764_v3  ;;  %127 = vst [vmem:[#allocation2 + $0x330] sm:$0xff] %v4764_v3 }
  0x32   :  { %128 = vst [vmem:[#allocation2 + $0x338] sm:$0xff] %v4764_v3  ;;  %129 = vst [vmem:[#allocation2 + $0x340] sm:$0x3] %v4764_v3 }
  0x33   :  { %132 = vst [vmem:[#allocation2 + $0x358] sm:$0x3] %v4764_v3  ;;  %199 = vst.msk [vmem:[#allocation2 + $0x19] sm:$0xff] %vm198_vm0, %v133_v11  ;;  %v1339_v3 = vadd.f32 %v5011_v41, %v854_v56 }
  0x34   :  { %200 = vst.msk [vmem:[#allocation2 + $0x21] sm:$0xff] %vm198_vm0, %v134_v12  ;;  %201 = vst.msk [vmem:[#allocation2 + $0x31] sm:$0xff] %vm198_vm0, %v135_v13  ;;  %v3941_v12 = vld [vmem:[%s8653_s3 + $0x28] sm:$0xff] }
  0x35   :  { %202 = vst.msk [vmem:[#allocation2 + $0x39] sm:$0xff] %vm198_vm0, %v136_v14  ;;  %231 = vst.msk [vmem:[#allocation2 + $0x1c9] sm:$0xff] %vm198_vm0, %v165_v24  ;;  %4592 = vmatprep.subr.mxu0 %v3941_v12  ;;  %4710 = vmatprep.subr.mxu1 %v3941_v12 }
  0x36   :  { %232 = vst.msk [vmem:[#allocation2 + $0x1d1] sm:$0xff] %vm198_vm0, %v166_v25  ;;  %233 = vst.msk [vmem:[#allocation2 + $0x1e1] sm:$0xff] %vm198_vm0, %v167_v26  ;;  %v3940_v26 = vld [vmem:[%s8653_s3 + $0x20] sm:$0xff]  ;;  %4593 = vmatpush3.msra.mxu0 %v3941_v12  ;;  %4726 = vmatpush3.msra.mxu1 %v3941_v12 }
  0x37   :  { %234 = vst.msk [vmem:[#allocation2 + $0x1e9] sm:$0xff] %vm198_vm0, %v168_v30  ;;  %203 = vst.msk [vmem:[#allocation2 + $0x49] sm:$0xff] %vm198_vm0, %v137_v37  ;;  %4594 = vmatprep.subr.mxu0 %v3940_v26  ;;  %4711 = vmatprep.subr.mxu1 %v3940_v26 }
  0x38   :  { %204 = vst.msk [vmem:[#allocation2 + $0x51] sm:$0xff] %vm198_vm0, %v138_v38  ;;  %235 = vst.msk [vmem:[#allocation2 + $0x1f9] sm:$0xff] %vm198_vm0, %v169_v39  ;;  %v1118_v39 = vrot.slane %v5034_v48, 2  ;;  %4595 = vmatpush3.msra.mxu0 %v3940_v26  ;;  %4727 = vmatpush3.msra.mxu1 %v3940_v26 }
  0x39   :  { %236 = vst.msk [vmem:[#allocation2 + $0x201] sm:$0xff] %vm198_vm0, %v170_v44  ;;  %205 = vst.msk [vmem:[#allocation2 + $0x61] sm:$0xff] %vm198_vm0, %v139_v45  ;;  %v3939_v44 = vld [vmem:[%s8653_s3 + $0x18] sm:$0xff] }
  0x3a   :  { %206 = vst.msk [vmem:[#allocation2 + $0x69] sm:$0xff] %vm198_vm0, %v140_v46  ;;  %v5051_v53 = vld [vmem:[#allocation2 + $0x18] sm:$0xff]  ;;  %237 = vst.msk [vmem:[#allocation2 + $0x211] sm:$0xff] %vm198_vm0, %v171_v50  ;;  %4596 = vmatprep.subr.mxu0 %v3939_v44  ;;  %4712 = vmatprep.subr.mxu1 %v3939_v44 }
  0x3b   :  { %238 = vst.msk [vmem:[#allocation2 + $0x219] sm:$0xff] %vm198_vm0, %v172_v51  ;;  %207 = vst.msk [vmem:[#allocation2 + $0x79] sm:$0xff] %vm198_vm0, %v141_v52  ;;  %v5064_v57 = vld [vmem:[#allocation2 + $0x20] sm:$0xff]  ;;  %v1506_v58 = vmul.f32 %v4967_v23, %v5051_v53  ;;  %v1638_v59 = vmul.f32 %v4980_v29, %v5051_v53  ;;  %v2122_v61 = vmul.f32 %v4995_v35, %v5051_v53  ;;  %v5080_v63 = vld [vmem:[#allocation2 + $0x30] sm:$0xff]  ;;  %4597 = vmatpush3.msra.mxu0 %v3939_v44 }
  0x3c   :  { %v5072_v60 = vmul.f32 %v4980_v29, %v5064_v57  ;;  %v5078_v62 = vmul.f32 %v4995_v35, %v5064_v57  ;;  %v5090_v5 = vld [vmem:[#allocation2 + $0x38] sm:$0xff]  ;;  %v2705_v6 = vmul.f32 %v4997_v36, %v5080_v63  ;;  %v2837_v7 = vmul.f32 %v5013_v42, %v5080_v63  ;;  %208 = vst.msk [vmem:[#allocation2 + $0x81] sm:$0xff] %vm198_vm0, %v142_v1  ;;  %v5112_v17 = vld [vmem:[#allocation2 + $0x1c8] sm:$0xff] }
  0x3d   :  { %v1830_v4 = vrot.slane %v1638_v59, 1  ;;  %v2314_v9 = vrot.slane %v2122_v61, 2  ;;  %v5101_v11 = vmul.f32 %v5013_v42, %v5090_v5  ;;  %v1570_v13 = vadd.f32 %v1506_v58, %v1339_v3  ;;  %v5127_v31 = vld [vmem:[#allocation2 + $0x1d0] sm:$0xff]  ;;  %v5147_v52 = vld [vmem:[#allocation2 + $0x1e0] sm:$0xff]  ;;  %4728 = vmatpush3.msra.mxu1 %v3939_v44  ;;  %v1408_v44 = vld [vmem:[#allocation2 + $0x28] sm:$0x3] }
  0x3e   :  { %v1831_v8 = vrot.slane %v5072_v60, 1  ;;  %v2315_v10 = vrot.slane %v5078_v62, 2  ;;  %v3029_v14 = vrot.slane %v2837_v7, 1  ;;  %v3321_v15 = vmul.f32 %v5031_v47, %v5080_v63  ;;  %v5154_v56 = vld [vmem:[#allocation2 + $0x1e8] sm:$0xff]  ;;  %v3938_v61 = vld [vmem:[%s8653_s3 + $0x10] sm:$0xff] }
  0x3f   :  { %v5110_v16 = vmul.f32 %v5031_v47, %v5090_v5  ;;  %v3030_v24 = vrot.slane %v5101_v11, 1  ;;  %v1538_v25 = vmul.f32 %v4967_v23, %v5112_v17  ;;  %v1686_v32 = vmul.f32 %v4980_v29, %v5112_v17  ;;  %4598 = vmatprep.subr.mxu0 %v3938_v61  ;;  %4713 = vmatprep.subr.mxu1 %v3938_v61 }
  0x40   :  { %v1832_v18 = vsel %vm629_vm1, %v1830_v4, %v1831_v8  ;;  %v2316_v22 = vsel %vm1114_vm2, %v2314_v9, %v2315_v10  ;;  %v3513_v28 = vrot.slane %v3321_v15, 2  ;;  %v5136_v38 = vmul.f32 %v4980_v29, %v5127_v31  ;;  %v3937_v15 = vld [vmem:[%s8653_s3 + $0x8] sm:$0xff]  ;;  %4599 = vmatpush3.msra.mxu0 %v3938_v61  ;;  %4729 = vmatpush3.msra.mxu1 %v3938_v61 }
  0x41   :  { %v2054_v27 = vadd.f32 %v1832_v18, %v1570_v13  ;;  %v3514_v30 = vrot.slane %v5110_v16, 2  ;;  %v3031_v33 = vsel %vm629_vm1, %v3029_v14, %v3030_v24  ;;  %v1602_v37 = vadd.f32 %v1538_v25, %v1339_v3  ;;  %v173_v13 = vld [vmem:[%s8650_s0 + $0x140] sm:$0xff]  ;;  %v174_v14 = vld [vmem:[%s8650_s0 + $0x148] sm:$0xff]  ;;  %4600 = vmatprep.subr.mxu0 %v3937_v15  ;;  %4714 = vmatprep.subr.mxu1 %v3937_v15 }
  0x42   :  { %v1910_v50 = vrot.slane %v1686_v32, 1  ;;  %v2170_v51 = vmul.f32 %v4995_v35, %v5112_v17  ;;  %v1911_v48 = vrot.slane %v5136_v38, 1  ;;  %v5152_v55 = vmul.f32 %v4995_v35, %v5127_v31  ;;  %239 = vst.msk [vmem:[#allocation2 + $0x229] sm:$0xff] %vm198_vm0, %v173_v13  ;;  %240 = vst.msk [vmem:[#allocation2 + $0x231] sm:$0xff] %vm198_vm0, %v174_v14 }
  0x43   :  { %v2538_v45 = vadd.f32 %v2316_v22, %v2054_v27  ;;  %v3515_v46 = vsel %vm1114_vm2, %v3513_v28, %v3514_v30  ;;  %v2737_v58 = vmul.f32 %v4997_v36, %v5147_v52  ;;  %v2885_v59 = vmul.f32 %v5013_v42, %v5147_v52  ;;  %v5192_v27 = vld [vmem:[%s8652_s2] ss:$0 sm:$0xff] }
  0x44   :  { %v2394_v2 = vrot.slane %v2170_v51, 2  ;;  %v5165_v3 = vmul.f32 %v5013_v42, %v5154_v56  ;;  %v3369_v4 = vmul.f32 %v5031_v47, %v5147_v52  ;;  %v1912_v7 = vsel %vm629_vm1, %v1910_v50, %v1911_v48  ;;  %v3936_v50 = vld [vmem:[%s8653_s3] sm:$0xff] }
  0x45   :  { %v2769_v1 = vadd.f32 %v2705_v6, %v2538_v45  ;;  %v2395_v9 = vrot.slane %v5152_v55, 2  ;;  %v3109_v12 = vrot.slane %v2885_v59, 1  ;;  %v5175_v6 = vmul.f32 %v5031_v47, %v5154_v56  ;;  %v143_v45 = vld [vmem:[%s8650_s0 + $0x50] sm:$0xff] }
  0x46   :  { %v2086_v22 = vadd.f32 %v1912_v7, %v1602_v37  ;;  %v3110_v25 = vrot.slane %v5165_v3, 1  ;;  %v3593_v26 = vrot.slane %v3369_v4, 2  ;;  %v1119_v37 = vsel %vm1114_vm2, %v5011_v41, %v1118_v39  ;;  %209 = vst.msk [vmem:[#allocation2 + $0x91] sm:$0xff] %vm198_vm0, %v143_v45  ;;  %v175_v39 = vld [vmem:[%s8650_s0 + $0x150] sm:$0xff]  ;;  %v176_v7 = vld [vmem:[%s8650_s0 + $0x158] sm:$0xff] }
  0x47   :  { %v3253_v18 = vadd.f32 %v3031_v33, %v2769_v1  ;;  %v2396_v28 = vsel %vm1114_vm2, %v2394_v2, %v2395_v9  ;;  %v3594_v32 = vrot.slane %v5175_v6, 2  ;;  %v634_v33 = vsel %vm629_vm1, %v5009_v40, %v633_v0  ;;  %v144_v0 = vld [vmem:[%s8650_s0 + $0x58] sm:$0xff]  ;;  %v2607_v2 = vld [vmem:[#allocation2 + $0x40] sm:$0x3]  ;;  %241 = vst.msk [vmem:[#allocation2 + $0x241] sm:$0xff] %vm198_vm0, %v175_v39 }
  0x48   :  { %v2570_v59 = vadd.f32 %v2396_v28, %v2086_v22  ;;  %v3111_v43 = vsel %vm629_vm1, %v3109_v12, %v3110_v25  ;;  %v855_v61 = vadd.f32 %v634_v33, %v4992_v34  ;;  %v1507_v1 = vmul.f32 %v4967_v23, %v5064_v57  ;;  %210 = vst.msk [vmem:[#allocation2 + $0x99] sm:$0xff] %vm198_vm0, %v144_v0 }
  0x49   :  { %v3737_v51 = vadd.f32 %v3515_v46, %v3253_v18  ;;  %v3595_v46 = vsel %vm1114_vm2, %v3593_v26, %v3594_v32  ;;  %v713_v4 = vrot.slane %v5037_v49, 1 }
  0x4a   :  { %10 = vsyncpa [#allocation4], 0  ;;  %4601 = vmatpush3.msra.mxu0 %v3937_v15  ;;  %4730 = vmatpush3.msra.mxu1 %v3937_v15  ;;  %v2801_v13 = vadd.f32 %v2737_v58, %v2570_v59  ;;  %v1640_v14 = vmul.f32 %v4980_v29, %v1408_v44  ;;  %242 = vst.msk [vmem:[#allocation2 + $0x249] sm:$0xff] %vm198_vm0, %v176_v7  ;;  %v1198_v26 = vrot.slane %v5054_v54, 2 }
  0x4b   :  { %v3808_v12 = vadd.f32 %v5192_v27, %v3737_v51  ;;  %4602 = vmatprep.subr.mxu0 %v3936_v50  ;;  %4715 = vmatprep.subr.mxu1 %v3936_v50  ;;  %v1340_v49 = vadd.f32 %v1119_v37, %v855_v61  ;;  %v2124_v18 = vmul.f32 %v4995_v35, %v1408_v44 }
  0x4c   :  { %v2706_v22 = vmul.f32 %v4997_v36, %v5090_v5  ;;  %4603 = vmatpush3.msra.mxu0 %v3936_v50  ;;  %4731 = vmatpush3.msra.mxu1 %v3936_v50  ;;  %v3285_v28 = vadd.f32 %v3111_v43, %v2801_v13  ;;  %v1833_v33 = vrot.slane %v1640_v14, 1  ;;  %v2839_v58 = vmul.f32 %v5013_v42, %v2607_v2  ;;  %v1456_v43 = vld [vmem:[#allocation2 + $0x1d8] sm:$0x3] }
  0x4d   :  { %v3872_v15 = vmax.f32 %v3808_v12, 0.0  ;;  %v1571_v45 = vadd.f32 %v1507_v1, %v1340_v49  ;;  %v2317_v51 = vrot.slane %v2124_v18, 2  ;;  %v3323_v59 = vmul.f32 %v5031_v47, %v2607_v2 }
  0x4e   :  { %v714_v37 = vsel %vm629_vm1, %v5009_v40, %v713_v4  ;;  %v3769_v44 = vadd.f32 %v3595_v46, %v3285_v28  ;;  %v1834_v54 = vsel %vm629_vm1, %v1831_v8, %v1833_v33  ;;  %v3032_v0 = vrot.slane %v2839_v58, 1  ;;  %v2655_v40 = vld [vmem:[#allocation2 + $0x1f0] sm:$0x3] }
  0x4f   :  { %4604 = vmatprep.mubr.f32.mxu0 %v3872_v15  ;;  %v887_v50 = vadd.f32 %v714_v37, %v4992_v34  ;;  %v2055_v39 = vadd.f32 %v1834_v54, %v1571_v45  ;;  %v2318_v61 = vsel %vm1114_vm2, %v2315_v10, %v2317_v51  ;;  %v3516_v1 = vrot.slane %v3323_v59, 2 }
  0x50   :  { %v1199_v2 = vsel %vm1114_vm2, %v5011_v41, %v1198_v26  ;;  %v3840_v46 = vadd.f32 %v5192_v27, %v3769_v44  ;;  %v3033_v60 = vsel %vm629_vm1, %v3030_v24, %v3032_v0  ;;  %v1539_v34 = vmul.f32 %v4967_v23, %v5127_v31 }
  0x51   :  { %v1372_v8 = vadd.f32 %v1199_v2, %v887_v50  ;;  %v2539_v4 = vadd.f32 %v2318_v61, %v2055_v39  ;;  %v3517_v62 = vsel %vm1114_vm2, %v3514_v30, %v3516_v1  ;;  %v1688_v10 = vmul.f32 %v4980_v29, %v1456_v43  ;;  %v5309_v1 = vld [vmem:[#allocation2 + $0x48] sm:$0xff] }
  0x52   :  { %v2172_v41 = vmul.f32 %v4995_v35, %v1456_v43  ;;  %v3904_v7 = vmax.f32 %v3840_v46, 0.0  ;;  %v2738_v11 = vmul.f32 %v4997_v36, %v5154_v56  ;;  %v2887_v24 = vmul.f32 %v5013_v42, %v2655_v40 }
  0x53   :  { %v1603_v12 = vadd.f32 %v1539_v34, %v1372_v8  ;;  %v2770_v13 = vadd.f32 %v2706_v22, %v2539_v4  ;;  %v1913_v14 = vrot.slane %v1688_v10, 1  ;;  %v3371_v18 = vmul.f32 %v5031_v47, %v2655_v40  ;;  %v5321_v10 = vld [vmem:[#allocation2 + $0x50] sm:$0xff] }
  0x54   :  { %v2397_v49 = vrot.slane %v2172_v41, 2  ;;  %4652 = vmatprep.mubr.f32.mxu1 %v3904_v7  ;;  %v3112_v16 = vrot.slane %v2887_v24, 1  ;;  %v371_v30 = vmul.f32 %v5051_v53, %v4957_v19  ;;  %v440_v26 = vmul.f32 %v5051_v53, %v4959_v20 }
  0x55   :  { %v5273_v15 = vmul.f32 %v5064_v57, %v4959_v20  ;;  %v3254_v28 = vadd.f32 %v3033_v60, %v2770_v13  ;;  %v1914_v22 = vsel %vm629_vm1, %v1911_v48, %v1913_v14  ;;  %v3596_v58 = vrot.slane %v3371_v18, 2 }
  0x56   :  { %v2398_v33 = vsel %vm1114_vm2, %v2395_v9, %v2397_v49  ;;  %v2087_v45 = vadd.f32 %v1914_v22, %v1603_v12  ;;  %v3113_v51 = vsel %vm629_vm1, %v3110_v25, %v3112_v16  ;;  %v635_v59 = vrot.slane %v440_v26, 1 }
  0x57   :  { %v636_v37 = vrot.slane %v5273_v15, 1  ;;  %v3738_v44 = vadd.f32 %v3517_v62, %v3254_v28  ;;  %v3597_v38 = vsel %vm1114_vm2, %v3594_v32, %v3596_v58  ;;  %v925_v48 = vmul.f32 %v5051_v53, %v4962_v21 }
  0x58   :  { %v5292_v55 = vmul.f32 %v5064_v57, %v4962_v21  ;;  %v2571_v9 = vadd.f32 %v2398_v33, %v2087_v45  ;;  %v1508_v25 = vmul.f32 %v5080_v63, %v4967_v23  ;;  %v1641_v6 = vmul.f32 %v5080_v63, %v4980_v29 }
  0x59   :  { %v637_v3 = vsel %vm629_vm1, %v635_v59, %v636_v37  ;;  %v3809_v32 = vadd.f32 %v5192_v27, %v3738_v44  ;;  %v1120_v0 = vrot.slane %v925_v48, 2  ;;  %v5305_v43 = vmul.f32 %v5090_v5, %v4980_v29 }
  0x5a   :  { %v856_v54 = vadd.f32 %v637_v3, %v371_v30  ;;  %v1121_v53 = vrot.slane %v5292_v55, 2  ;;  %v2802_v50 = vadd.f32 %v2738_v11, %v2571_v9  ;;  %v1835_v39 = vrot.slane %v1641_v6, 1  ;;  %v146_v6 = vld [vmem:[%s8650_s0 + $0x68] sm:$0xff]  ;;  %v1459_v55 = vld [vmem:[#allocation2 + $0x1f0] sm:$0x3] }
  0x5b   :  { %v2125_v61 = vmul.f32 %v5080_v63, %v4995_v35  ;;  %v3873_v2 = vmax.f32 %v3809_v32, 0.0  ;;  %v5316_v46 = vmul.f32 %v5090_v5, %v4995_v35  ;;  %v2707_v60 = vmul.f32 %v4997_v36, %v5309_v1  ;;  %212 = vst.msk [vmem:[#allocation2 + $0xb1] sm:$0xff] %vm198_vm0, %v146_v6 }
  0x5c   :  { %v1122_v40 = vsel %vm1114_vm2, %v1120_v0, %v1121_v53  ;;  %v3286_v8 = vadd.f32 %v3113_v51, %v2802_v50  ;;  %v1836_v4 = vrot.slane %v5305_v43, 1  ;;  %v2840_v7 = vmul.f32 %v5013_v42, %v5309_v1  ;;  %v2658_v43 = vld [vmem:[#allocation2 + $0x208] sm:$0x3] }
  0x5d   :  { %v1341_v34 = vadd.f32 %v1122_v40, %v856_v54  ;;  %v2319_v62 = vrot.slane %v2125_v61, 2  ;;  %4605 = vmatmul.mubr.f32.vlgmr.msra.gmra.mxu0 %v3873_v2  ;;  %v2320_v41 = vrot.slane %v5316_v46, 2  ;;  %v5328_v12 = vmul.f32 %v5013_v42, %v5321_v10  ;;  %v5383_v40 = vld [vmem:[#allocation2 + $0x1f8] sm:$0xff] }
  0x5e   :  { %v3324_v11 = vmul.f32 %v5031_v47, %v5309_v1  ;;  %v3770_v24 = vadd.f32 %v3597_v38, %v3286_v8  ;;  %v1837_v14 = vsel %vm629_vm1, %v1835_v39, %v1836_v4  ;;  %v5337_v49 = vmul.f32 %v5031_v47, %v5321_v10 }
  0x5f   :  { %v1572_v13 = vadd.f32 %v1508_v25, %v1341_v34  ;;  %v2321_v18 = vsel %vm1114_vm2, %v2319_v62, %v2320_v41  ;;  %v3034_v16 = vrot.slane %v2840_v7, 1  ;;  %v3035_v30 = vrot.slane %v5328_v12, 1  ;;  %v145_v25 = vld [vmem:[%s8650_s0 + $0x60] sm:$0xff] }
  0x60   :  { %v3518_v26 = vrot.slane %v3324_v11, 2  ;;  %v3841_v28 = vadd.f32 %v5192_v27, %v3770_v24  ;;  %v3519_v33 = vrot.slane %v5337_v49, 2  ;;  %v403_v58 = vmul.f32 %v5112_v17, %v4957_v19  ;;  %211 = vst.msk [vmem:[#allocation2 + $0xa9] sm:$0xff] %vm198_vm0, %v145_v25 }
  0x61   :  { %v2056_v22 = vadd.f32 %v1837_v14, %v1572_v13  ;;  %v3036_v45 = vsel %vm629_vm1, %v3034_v16, %v3035_v30  ;;  %v488_v51 = vmul.f32 %v5112_v17, %v4959_v20  ;;  %v5354_v59 = vmul.f32 %v5127_v31, %v4959_v20 }
  0x62   :  { %v973_v44 = vmul.f32 %v5112_v17, %v4962_v21  ;;  %v3905_v38 = vmax.f32 %v3841_v28, 0.0  ;;  %v3520_v9 = vsel %vm1114_vm2, %v3518_v26, %v3519_v33  ;;  %v5363_v3 = vmul.f32 %v5127_v31, %v4962_v21  ;;  %v5401_v26 = vld [vmem:[#allocation2 + $0x200] sm:$0xff] }
  0x63   :  { %v2540_v48 = vadd.f32 %v2321_v18, %v2056_v22  ;;  %v715_v32 = vrot.slane %v488_v51, 1  ;;  %v716_v17 = vrot.slane %v5354_v59, 1  ;;  %v1540_v0 = vmul.f32 %v5147_v52, %v4967_v23 }
  0x64   :  { %v1200_v54 = vrot.slane %v973_v44, 2  ;;  %4653 = vmatmul.mubr.f32.vlgmr.msra.gmra.mxu1 %v3905_v38  ;;  %v1201_v39 = vrot.slane %v5363_v3, 2  ;;  %v1689_v61 = vmul.f32 %v5147_v52, %v4980_v29  ;;  %v5381_v2 = vmul.f32 %v5154_v56, %v4980_v29  ;;  %v274_v44 = vld [vmem:[#allocation2 + $0x28] sm:$0x3]  ;;  %v177_v38 = vld [vmem:[%s8650_s0 + $0x160] sm:$0xff] }
  0x65   :  { %v2771_v50 = vadd.f32 %v2707_v60, %v2540_v48  ;;  %v717_v8 = vsel %vm629_vm1, %v715_v32, %v716_v17  ;;  %v2173_v34 = vmul.f32 %v5147_v52, %v4995_v35  ;;  %v5392_v60 = vmul.f32 %v5154_v56, %v4995_v35  ;;  %v178_v48 = vld [vmem:[%s8650_s0 + $0x168] sm:$0xff]  ;;  %243 = vst.msk [vmem:[#allocation2 + $0x259] sm:$0xff] %vm198_vm0, %v177_v38 }
  0x66   :  { %v2739_v62 = vmul.f32 %v4997_v36, %v5383_v40  ;;  %v888_v11 = vadd.f32 %v717_v8, %v403_v58  ;;  %v1202_v24 = vsel %vm1114_vm2, %v1200_v54, %v1201_v39  ;;  %v1915_v13 = vrot.slane %v1689_v61, 1  ;;  %244 = vst.msk [vmem:[#allocation2 + $0x261] sm:$0xff] %vm198_vm0, %v178_v48 }
  0x67   :  { %v3255_v7 = vadd.f32 %v3036_v45, %v2771_v50  ;;  %v1916_v14 = vrot.slane %v5381_v2, 1  ;;  %v2399_v18 = vrot.slane %v2173_v34, 2  ;;  %v8658_v16 = vrot.slane %v5392_v60, 2  ;;  %v1411_v34 = vld [vmem:[#allocation2 + $0x40] sm:$0x3] }
  0x68   :  { %v2888_v28 = vmul.f32 %v5013_v42, %v5383_v40  ;;  %v1373_v51 = vadd.f32 %v1202_v24, %v888_v11  ;;  %v5407_v58 = vmul.f32 %v5013_v42, %v5401_v26  ;;  %v3372_v45 = vmul.f32 %v5031_v47, %v5383_v40 }
  0x69   :  { %v3739_v22 = vadd.f32 %v3520_v9, %v3255_v7  ;;  %v1917_v9 = vsel %vm629_vm1, %v1915_v13, %v1916_v14  ;;  %v2401_v25 = vsel %vm1114_vm2, %v2399_v18, %v8658_v16  ;;  %v5425_v32 = vmul.f32 %v5031_v47, %v5401_v26  ;;  %v2610_v18 = vld [vmem:[#allocation2 + $0x58] sm:$0x3] }
  0x6a   :  { %v3114_v6 = vrot.slane %v2888_v28, 1  ;;  %v1604_v50 = vadd.f32 %v1540_v0, %v1373_v51  ;;  %v8656_v61 = vrot.slane %v5407_v58, 1  ;;  %v3598_v8 = vrot.slane %v3372_v45, 2 }
  0x6b   :  { %v3810_v54 = vadd.f32 %v5192_v27, %v3739_v22  ;;  %v8657_v7 = vrot.slane %v5425_v32, 2  ;;  %v372_v11 = vmul.f32 %v5064_v57, %v4957_v19  ;;  %v442_v24 = vmul.f32 %v4959_v20, %v274_v44 }
  0x6c   :  { %v927_v13 = vmul.f32 %v4962_v21, %v274_v44  ;;  %v2088_v38 = vadd.f32 %v1917_v9, %v1604_v50  ;;  %v3116_v0 = vsel %vm629_vm1, %v3114_v6, %v8656_v61  ;;  %v1509_v22 = vmul.f32 %v5090_v5, %v4967_v23  ;;  %v322_v50 = vld [vmem:[#allocation2 + $0x1d8] sm:$0x3] }
  0x6d   :  { %v3874_v28 = vmax.f32 %v3810_v54, 0.0  ;;  %v3600_v51 = vsel %vm1114_vm2, %v3598_v8, %v8657_v7  ;;  %v638_v45 = vrot.slane %v442_v24, 1  ;;  %v1643_v48 = vmul.f32 %v4980_v29, %v1411_v34 }
  0x6e   :  { %v1123_v57 = vrot.slane %v927_v13, 2  ;;  %v2572_v44 = vadd.f32 %v2401_v25, %v2088_v38  ;;  %v2127_v54 = vmul.f32 %v4995_v35, %v1411_v34  ;;  %v2708_v9 = vmul.f32 %v4997_v36, %v5321_v10 }
  0x6f   :  { %4607 = vmatprep.mubr.f32.mxu0 %v3874_v28  ;;  %v2842_v6 = vmul.f32 %v5013_v42, %v2610_v18  ;;  %v639_v61 = vsel %vm629_vm1, %v636_v37, %v638_v45  ;;  %v1838_v24 = vrot.slane %v1643_v48, 1  ;;  %v3326_v13 = vmul.f32 %v5031_v47, %v2610_v18 }
  0x70   :  { %v1124_v8 = vsel %vm1114_vm2, %v1121_v53, %v1123_v57  ;;  %v2803_v25 = vadd.f32 %v2739_v62, %v2572_v44  ;;  %v857_v28 = vadd.f32 %v639_v61, %v372_v11  ;;  %v2322_v34 = vrot.slane %v2127_v54, 2 }
  0x71   :  { %v3037_v38 = vrot.slane %v2842_v6, 1  ;;  %v1839_v7 = vsel %vm629_vm1, %v1836_v4, %v1838_v24  ;;  %v3521_v16 = vrot.slane %v3326_v13, 2  ;;  %v404_v15 = vmul.f32 %v5127_v31, %v4957_v19 }
  0x72   :  { %v490_v37 = vmul.f32 %v4959_v20, %v322_v50  ;;  %v3287_v45 = vadd.f32 %v3116_v0, %v2803_v25  ;;  %v1342_v53 = vadd.f32 %v1124_v8, %v857_v28  ;;  %v2323_v62 = vsel %vm1114_vm2, %v2320_v41, %v2322_v34 }
  0x73   :  { %v3038_v61 = vsel %vm629_vm1, %v3035_v30, %v3037_v38  ;;  %v3522_v4 = vsel %vm1114_vm2, %v3519_v33, %v3521_v16  ;;  %v975_v31 = vmul.f32 %v4962_v21, %v322_v50  ;;  %v1541_v18 = vmul.f32 %v5154_v56, %v4967_v23 }
  0x74   :  { %v718_v11 = vrot.slane %v490_v37, 1  ;;  %v3771_v0 = vadd.f32 %v3600_v51, %v3287_v45  ;;  %v1573_v57 = vadd.f32 %v1509_v22, %v1342_v53  ;;  %v1691_v46 = vmul.f32 %v4980_v29, %v1459_v55 }
  0x75   :  { %v2175_v41 = vmul.f32 %v4995_v35, %v1459_v55  ;;  %v1203_v30 = vrot.slane %v975_v31, 2  ;;  %v2740_v49 = vmul.f32 %v4997_v36, %v5401_v26  ;;  %v2890_v33 = vmul.f32 %v5013_v42, %v2658_v43 }
  0x76   :  { %v719_v12 = vsel %vm629_vm1, %v716_v17, %v718_v11  ;;  %v3842_v16 = vadd.f32 %v5192_v27, %v3771_v0  ;;  %v2057_v48 = vadd.f32 %v1839_v7, %v1573_v57  ;;  %v1918_v51 = vrot.slane %v1691_v46, 1 }
  0x77   :  { %v889_v44 = vadd.f32 %v719_v12, %v404_v15  ;;  %v1204_v22 = vsel %vm1114_vm2, %v1201_v39, %v1203_v30  ;;  %v2402_v54 = vrot.slane %v2175_v41, 2  ;;  %v3117_v6 = vrot.slane %v2890_v33, 1 }
  0x78   :  { %v3374_v59 = vmul.f32 %v5031_v47, %v2658_v43  ;;  %v3906_v17 = vmax.f32 %v3842_v16, 0.0  ;;  %v2541_v50 = vadd.f32 %v2323_v62, %v2057_v48  ;;  %v1919_v24 = vsel %vm629_vm1, %v1916_v14, %v1918_v51  ;;  %v5537_v48 = vld [vmem:[#allocation2 + $0x60] sm:$0xff] }
  0x79   :  { %v1374_v8 = vadd.f32 %v1204_v22, %v889_v44  ;;  %v8711_v13 = vrot.slane %v5392_v60, 2  ;;  %v8712_v25 = vrot.slane %v5407_v58, 1  ;;  %v373_v28 = vmul.f32 %v5080_v63, %v4957_v19  ;;  %v5542_v22 = vld [vmem:[#allocation2 + $0x68] sm:$0xff] }
  0x7a   :  { %v3601_v39 = vrot.slane %v3374_v59, 2  ;;  %4655 = vmatprep.mubr.f32.mxu1 %v3906_v17  ;;  %v2772_v34 = vadd.f32 %v2708_v9, %v2541_v50  ;;  %v443_v2 = vmul.f32 %v5080_v63, %v4959_v20  ;;  %v5502_v14 = vmul.f32 %v5090_v5, %v4959_v20 }
  0x7b   :  { %v2403_v7 = vsel %vm1114_vm2, %v8711_v13, %v2402_v54  ;;  %v3118_v3 = vsel %vm629_vm1, %v8712_v25, %v3117_v6  ;;  %v1605_v38 = vadd.f32 %v1541_v18, %v1374_v8  ;;  %v8713_v60 = vrot.slane %v5425_v32, 2 }
  0x7c   :  { %v928_v15 = vmul.f32 %v5080_v63, %v4962_v21  ;;  %v5511_v37 = vmul.f32 %v5090_v5, %v4962_v21  ;;  %v1510_v9 = vmul.f32 %v5309_v1, %v4967_v23  ;;  %v3256_v55 = vadd.f32 %v3038_v61, %v2772_v34 }
  0x7d   :  { %v3602_v58 = vsel %vm1114_vm2, %v8713_v60, %v3601_v39  ;;  %v2089_v45 = vadd.f32 %v1919_v24, %v1605_v38  ;;  %v640_v53 = vrot.slane %v443_v2, 1  ;;  %v641_v62 = vrot.slane %v5502_v14, 1 }
  0x7e   :  { %v1125_v43 = vrot.slane %v928_v15, 2  ;;  %v1126_v32 = vrot.slane %v5511_v37, 2  ;;  %v1644_v11 = vmul.f32 %v5309_v1, %v4980_v29  ;;  %v5521_v63 = vmul.f32 %v5321_v10, %v4980_v29  ;;  %v1462_v37 = vld [vmem:[#allocation2 + $0x208] sm:$0x3] }
  0x7f   :  { %v3740_v31 = vadd.f32 %v3522_v4, %v3256_v55  ;;  %v2573_v18 = vadd.f32 %v2403_v7, %v2089_v45  ;;  %v642_v61 = vsel %vm629_vm1, %v640_v53, %v641_v62  ;;  %v2128_v0 = vmul.f32 %v5309_v1, %v4995_v35 }
  0x80   :  { %v858_v57 = vadd.f32 %v642_v61, %v373_v28  ;;  %v1127_v46 = vsel %vm1114_vm2, %v1125_v43, %v1126_v32  ;;  %v1840_v41 = vrot.slane %v1644_v11, 1  ;;  %v1841_v12 = vrot.slane %v5521_v63, 1  ;;  %v2661_v63 = vld [vmem:[#allocation2 + $0x220] sm:$0x3] }
  0x81   :  { %v3811_v30 = vadd.f32 %v5192_v27, %v3740_v31  ;;  %v2804_v33 = vadd.f32 %v2740_v49, %v2573_v18  ;;  %v5535_v4 = vmul.f32 %v5321_v10, %v4995_v35  ;;  %v2324_v16 = vrot.slane %v2128_v0, 2  ;;  %v147_v31 = vld [vmem:[%s8650_s0 + $0x70] sm:$0xff]  ;;  %v148_v18 = vld [vmem:[%s8650_s0 + $0x78] sm:$0xff] }
  0x82   :  { %v1343_v44 = vadd.f32 %v1127_v46, %v858_v57  ;;  %v1842_v51 = vsel %vm629_vm1, %v1840_v41, %v1841_v12  ;;  %v2709_v54 = vmul.f32 %v4997_v36, %v5537_v48  ;;  %v2843_v49 = vmul.f32 %v5013_v42, %v5537_v48  ;;  %213 = vst.msk [vmem:[#allocation2 + $0xc1] sm:$0xff] %vm198_vm0, %v147_v31 }
  0x83   :  { %v3875_v6 = vmax.f32 %v3811_v30, 0.0  ;;  %v3288_v59 = vadd.f32 %v3118_v3, %v2804_v33  ;;  %v2325_v17 = vrot.slane %v5535_v4, 2  ;;  %v5551_v50 = vmul.f32 %v5013_v42, %v5542_v22  ;;  %214 = vst.msk [vmem:[#allocation2 + $0xc9] sm:$0xff] %vm198_vm0, %v148_v18 }
  0x84   :  { %v1574_v8 = vadd.f32 %v1510_v9, %v1343_v44  ;;  %v3039_v24 = vrot.slane %v2843_v49, 1  ;;  %v3327_v13 = vmul.f32 %v5031_v47, %v5537_v48  ;;  %v5557_v7 = vmul.f32 %v5031_v47, %v5542_v22 }
  0x85   :  { %4608 = vmatmul.mubr.f32.gmra.mxu0 %v3875_v6  ;;  %v3772_v25 = vadd.f32 %v3602_v58, %v3288_v59  ;;  %v2326_v3 = vsel %vm1114_vm2, %v2324_v16, %v2325_v17  ;;  %v3040_v39 = vrot.slane %v5551_v50, 1  ;;  %v405_v28 = vmul.f32 %v5147_v52, %v4957_v19  ;;  %v5603_v16 = vld [vmem:[#allocation2 + $0x210] sm:$0xff] }
  0x86   :  { %v2058_v34 = vadd.f32 %v1842_v51, %v1574_v8  ;;  %v3523_v38 = vrot.slane %v3327_v13, 2  ;;  %v3524_v2 = vrot.slane %v5557_v7, 2  ;;  %v491_v60 = vmul.f32 %v5147_v52, %v4959_v20 }
  0x87   :  { %v3843_v15 = vadd.f32 %v5192_v27, %v3772_v25  ;;  %v3041_v58 = vsel %vm629_vm1, %v3039_v24, %v3040_v39  ;;  %v5574_v9 = vmul.f32 %v5154_v56, %v4959_v20  ;;  %v976_v55 = vmul.f32 %v5147_v52, %v4962_v21 }
  0x88   :  { %v2542_v45 = vadd.f32 %v2326_v3, %v2058_v34  ;;  %v3525_v53 = vsel %vm1114_vm2, %v3523_v38, %v3524_v2  ;;  %v720_v43 = vrot.slane %v491_v60, 1  ;;  %v5583_v11 = vmul.f32 %v5154_v56, %v4962_v21  ;;  %v5621_v34 = vld [vmem:[#allocation2 + $0x218] sm:$0xff] }
  0x89   :  { %v3907_v61 = vmax.f32 %v3843_v15, 0.0  ;;  %v721_v52 = vrot.slane %v5574_v9, 1  ;;  %v1205_v0 = vrot.slane %v976_v55, 2  ;;  %v1542_v57 = vmul.f32 %v5383_v40, %v4967_v23  ;;  %v277_v55 = vld [vmem:[#allocation2 + $0x40] sm:$0x3] }
  0x8a   :  { %v2773_v46 = vadd.f32 %v2709_v54, %v2542_v45  ;;  %v1206_v41 = vrot.slane %v5583_v11, 2  ;;  %v1692_v30 = vmul.f32 %v5383_v40, %v4980_v29  ;;  %v5601_v33 = vmul.f32 %v5401_v26, %v4980_v29  ;;  %v179_v45 = vld [vmem:[%s8650_s0 + $0x170] sm:$0xff] }
  0x8b   :  { %4656 = vmatmul.mubr.f32.gmra.mxu1 %v3907_v61  ;;  %v722_v44 = vsel %vm629_vm1, %v720_v43, %v721_v52  ;;  %v2176_v51 = vmul.f32 %v5383_v40, %v4995_v35  ;;  %v5612_v54 = vmul.f32 %v5401_v26, %v4995_v35  ;;  %v2741_v49 = vmul.f32 %v4997_v36, %v5603_v16  ;;  %v180_v43 = vld [vmem:[%s8650_s0 + $0x178] sm:$0xff] }
  0x8c   :  { %v3257_v6 = vadd.f32 %v3041_v58, %v2773_v46  ;;  %v890_v59 = vadd.f32 %v722_v44, %v405_v28  ;;  %v1207_v8 = vsel %vm1114_vm2, %v1205_v0, %v1206_v41  ;;  %v1920_v24 = vrot.slane %v1692_v30, 1  ;;  %245 = vst.msk [vmem:[#allocation2 + $0x271] sm:$0xff] %vm198_vm0, %v179_v45  ;;  %246 = vst.msk [vmem:[#allocation2 + $0x279] sm:$0xff] %vm198_vm0, %v180_v43 }
  0x8d   :  { %v1921_v13 = vrot.slane %v5601_v33, 1  ;;  %v2404_v25 = vrot.slane %v2176_v51, 2  ;;  %v8661_v3 = vrot.slane %v5612_v54, 2  ;;  %v2891_v38 = vmul.f32 %v5013_v42, %v5603_v16  ;;  %v1414_v51 = vld [vmem:[#allocation2 + $0x58] sm:$0x3] }
  0x8e   :  { %v3741_v60 = vadd.f32 %v3525_v53, %v3257_v6  ;;  %v1375_v15 = vadd.f32 %v1207_v8, %v890_v59  ;;  %v5627_v28 = vmul.f32 %v5013_v42, %v5621_v34  ;;  %v3375_v58 = vmul.f32 %v5031_v47, %v5603_v16 }
  0x8f   :  { %v1922_v53 = vsel %vm629_vm1, %v1920_v24, %v1921_v13  ;;  %v2406_v31 = vsel %vm1114_vm2, %v2404_v25, %v8661_v3  ;;  %v3119_v18 = vrot.slane %v2891_v38, 1  ;;  %v5645_v61 = vmul.f32 %v5031_v47, %v5621_v34  ;;  %v2613_v25 = vld [vmem:[#allocation2 + $0x70] sm:$0x3] }
  0x90   :  { %v3812_v0 = vadd.f32 %v5192_v27, %v3741_v60  ;;  %v1606_v46 = vadd.f32 %v1542_v57, %v1375_v15  ;;  %v8659_v30 = vrot.slane %v5627_v28, 1  ;;  %v3603_v44 = vrot.slane %v3375_v58, 2 }
  0x91   :  { %v8660_v6 = vrot.slane %v5645_v61, 2  ;;  %v374_v59 = vmul.f32 %v5090_v5, %v4957_v19  ;;  %v445_v8 = vmul.f32 %v4959_v20, %v277_v55  ;;  %v930_v24 = vmul.f32 %v4962_v21, %v277_v55 }
  0x92   :  { %v3876_v38 = vmax.f32 %v3812_v0, 0.0  ;;  %v2090_v45 = vadd.f32 %v1922_v53, %v1606_v46  ;;  %v3121_v57 = vsel %vm629_vm1, %v3119_v18, %v8659_v30  ;;  %v1511_v60 = vmul.f32 %v5321_v10, %v4967_v23  ;;  %v325_v46 = vld [vmem:[#allocation2 + $0x1f0] sm:$0x3] }
  0x93   :  { %v3605_v15 = vsel %vm1114_vm2, %v3603_v44, %v8660_v6  ;;  %v643_v58 = vrot.slane %v445_v8, 1  ;;  %v1128_v5 = vrot.slane %v930_v24, 2  ;;  %v1646_v43 = vmul.f32 %v4980_v29, %v1414_v51 }
  0x94   :  { %4610 = vmatprep.mubr.f32.mxu0 %v3876_v38  ;;  %v2574_v55 = vadd.f32 %v2406_v31, %v2090_v45  ;;  %v2130_v0 = vmul.f32 %v4995_v35, %v1414_v51  ;;  %v2710_v53 = vmul.f32 %v4997_v36, %v5542_v22  ;;  %v2845_v18 = vmul.f32 %v5013_v42, %v2613_v25 }
  0x95   :  { %v644_v30 = vsel %vm629_vm1, %v641_v62, %v643_v58  ;;  %v1129_v44 = vsel %vm1114_vm2, %v1126_v32, %v1128_v5  ;;  %v1843_v8 = vrot.slane %v1646_v43, 1  ;;  %v3329_v24 = vmul.f32 %v5031_v47, %v2613_v25 }
  0x96   :  { %v2805_v31 = vadd.f32 %v2741_v49, %v2574_v55  ;;  %v859_v38 = vadd.f32 %v644_v30, %v374_v59  ;;  %v2327_v51 = vrot.slane %v2130_v0, 2  ;;  %v3042_v45 = vrot.slane %v2845_v18, 1 }
  0x97   :  { %v1844_v6 = vsel %vm629_vm1, %v1841_v12, %v1843_v8  ;;  %v3526_v3 = vrot.slane %v3329_v24, 2  ;;  %v406_v14 = vmul.f32 %v5154_v56, %v4957_v19  ;;  %v493_v62 = vmul.f32 %v4959_v20, %v325_v46 }
  0x98   :  { %v3289_v58 = vadd.f32 %v3121_v57, %v2805_v31  ;;  %v1344_v32 = vadd.f32 %v1129_v44, %v859_v38  ;;  %v2328_v49 = vsel %vm1114_vm2, %v2325_v17, %v2327_v51  ;;  %v3043_v30 = vsel %vm629_vm1, %v3040_v39, %v3042_v45 }
  0x99   :  { %v3527_v12 = vsel %vm1114_vm2, %v3524_v2, %v3526_v3  ;;  %v723_v59 = vrot.slane %v493_v62, 1  ;;  %v978_v56 = vmul.f32 %v4962_v21, %v325_v46  ;;  %v1543_v25 = vmul.f32 %v5401_v26, %v4967_v23 }
  0x9a   :  { %v3773_v57 = vadd.f32 %v3605_v15, %v3289_v58  ;;  %v1575_v5 = vadd.f32 %v1511_v60, %v1344_v32  ;;  %v1694_v4 = vmul.f32 %v4980_v29, %v1462_v37  ;;  %v2178_v17 = vmul.f32 %v4995_v35, %v1462_v37 }
  0x9b   :  { %v724_v50 = vsel %vm629_vm1, %v721_v52, %v723_v59  ;;  %v1208_v39 = vrot.slane %v978_v56, 2  ;;  %v2742_v7 = vmul.f32 %v4997_v36, %v5621_v34  ;;  %v2893_v2 = vmul.f32 %v5013_v42, %v2661_v63 }
  0x9c   :  { %v3844_v3 = vadd.f32 %v5192_v27, %v3773_v57  ;;  %v2059_v43 = vadd.f32 %v1844_v6, %v1575_v5  ;;  %v891_v55 = vadd.f32 %v724_v50, %v406_v14  ;;  %v1923_v15 = vrot.slane %v1694_v4, 1 }
  0x9d   :  { %v1209_v60 = vsel %vm1114_vm2, %v1206_v41, %v1208_v39  ;;  %v2407_v0 = vrot.slane %v2178_v17, 2  ;;  %v3122_v18 = vrot.slane %v2893_v2, 1  ;;  %v3377_v9 = vmul.f32 %v5031_v47, %v2661_v63 }
  0x9e   :  { %v3908_v52 = vmax.f32 %v3844_v3, 0.0  ;;  %v2543_v46 = vadd.f32 %v2328_v49, %v2059_v43  ;;  %v1376_v44 = vadd.f32 %v1209_v60, %v891_v55  ;;  %v1924_v8 = vsel %vm629_vm1, %v1921_v13, %v1923_v15  ;;  %v5757_v43 = vld [vmem:[#allocation2 + $0x78] sm:$0xff]  ;;  %v5762_v60 = vld [vmem:[#allocation2 + $0x80] sm:$0xff] }
  0x9f   :  { %v8714_v24 = vrot.slane %v5612_v54, 2  ;;  %v8715_v31 = vrot.slane %v5627_v28, 1  ;;  %v3606_v41 = vrot.slane %v3377_v9, 2  ;;  %v375_v38 = vmul.f32 %v5309_v1, %v4957_v19 }
  0xa0   :  { %4658 = vmatprep.mubr.f32.mxu1 %v3908_v52  ;;  %v2774_v51 = vadd.f32 %v2710_v53, %v2543_v46  ;;  %v1607_v45 = vadd.f32 %v1543_v25, %v1376_v44  ;;  %v446_v33 = vmul.f32 %v5309_v1, %v4959_v20  ;;  %v5722_v13 = vmul.f32 %v5321_v10, %v4959_v20 }
  0xa1   :  { %v2408_v6 = vsel %vm1114_vm2, %v8714_v24, %v2407_v0  ;;  %v3123_v11 = vsel %vm629_vm1, %v8715_v31, %v3122_v18  ;;  %v8716_v54 = vrot.slane %v5645_v61, 2  ;;  %v931_v14 = vmul.f32 %v5309_v1, %v4962_v21 }
  0xa2   :  { %v5731_v62 = vmul.f32 %v5321_v10, %v4962_v21  ;;  %v1512_v53 = vmul.f32 %v5537_v48, %v4967_v23  ;;  %v3258_v37 = vadd.f32 %v3043_v30, %v2774_v51  ;;  %v2091_v58 = vadd.f32 %v1924_v8, %v1607_v45 }
  0xa3   :  { %v3607_v28 = vsel %vm1114_vm2, %v8716_v54, %v3606_v41  ;;  %v645_v32 = vrot.slane %v446_v33, 1  ;;  %v646_v49 = vrot.slane %v5722_v13, 1  ;;  %v1130_v63 = vrot.slane %v931_v14, 2 }
  0xa4   :  { %v1131_v61 = vrot.slane %v5731_v62, 2  ;;  %v1647_v59 = vmul.f32 %v5537_v48, %v4980_v29  ;;  %v5741_v1 = vmul.f32 %v5542_v22, %v4980_v29  ;;  %v3742_v56 = vadd.f32 %v3527_v12, %v3258_v37  ;;  %v1465_v62 = vld [vmem:[#allocation2 + $0x220] sm:$0x3] }
  0xa5   :  { %v2575_v25 = vadd.f32 %v2408_v6, %v2091_v58  ;;  %v647_v30 = vsel %vm629_vm1, %v645_v32, %v646_v49  ;;  %v2131_v57 = vmul.f32 %v5537_v48, %v4995_v35  ;;  %v5755_v12 = vmul.f32 %v5542_v22, %v4995_v35 }
  0xa6   :  { %v860_v5 = vadd.f32 %v647_v30, %v375_v38  ;;  %v1132_v4 = vsel %vm1114_vm2, %v1130_v63, %v1131_v61  ;;  %v1845_v17 = vrot.slane %v1647_v59, 1  ;;  %v1846_v50 = vrot.slane %v5741_v1, 1  ;;  %v149_v59 = vld [vmem:[%s8650_s0 + $0x80] sm:$0xff]  ;;  %v2664_v1 = vld [vmem:[#allocation2 + $0x238] sm:$0x3] }
  0xa7   :  { %v3813_v39 = vadd.f32 %v5192_v27, %v3742_v56  ;;  %v2806_v2 = vadd.f32 %v2742_v7, %v2575_v25  ;;  %v2329_v3 = vrot.slane %v2131_v57, 2  ;;  %v2711_v0 = vmul.f32 %v4997_v36, %v5757_v43  ;;  %v150_v56 = vld [vmem:[%s8650_s0 + $0x88] sm:$0xff]  ;;  %215 = vst.msk [vmem:[#allocation2 + $0xd9] sm:$0xff] %vm198_vm0, %v149_v59 }
  0xa8   :  { %v1345_v55 = vadd.f32 %v1132_v4, %v860_v5  ;;  %v1847_v15 = vsel %vm629_vm1, %v1845_v17, %v1846_v50  ;;  %v2846_v7 = vmul.f32 %v5013_v42, %v5757_v43  ;;  %v2330_v52 = vrot.slane %v5755_v12, 2  ;;  %216 = vst.msk [vmem:[#allocation2 + $0xe1] sm:$0xff] %vm198_vm0, %v150_v56 }
  0xa9   :  { %v3877_v18 = vmax.f32 %v3813_v39, 0.0  ;;  %v3290_v9 = vadd.f32 %v3123_v11, %v2806_v2  ;;  %v5771_v46 = vmul.f32 %v5013_v42, %v5762_v60  ;;  %v3330_v24 = vmul.f32 %v5031_v47, %v5757_v43  ;;  %v5823_v2 = vld [vmem:[#allocation2 + $0x228] sm:$0xff] }
  0xaa   :  { %v1576_v44 = vadd.f32 %v1512_v53, %v1345_v55  ;;  %v3044_v8 = vrot.slane %v2846_v7, 1  ;;  %v5777_v6 = vmul.f32 %v5031_v47, %v5762_v60  ;;  %v2331_v11 = vsel %vm1114_vm2, %v2329_v3, %v2330_v52 }
  0xab   :  { %4611 = vmatmul.mubr.f32.gmra.mxu0 %v3877_v18  ;;  %v3774_v31 = vadd.f32 %v3607_v28, %v3290_v9  ;;  %v3045_v41 = vrot.slane %v5771_v46, 1  ;;  %v407_v38 = vmul.f32 %v5383_v40, %v4957_v19  ;;  %v3528_v45 = vrot.slane %v3330_v24, 2 }
  0xac   :  { %v2060_v51 = vadd.f32 %v1847_v15, %v1576_v44  ;;  %v3529_v33 = vrot.slane %v5777_v6, 2  ;;  %v494_v54 = vmul.f32 %v5383_v40, %v4959_v20  ;;  %v5794_v53 = vmul.f32 %v5401_v26, %v4959_v20 }
  0xad   :  { %v3845_v14 = vadd.f32 %v5192_v27, %v3774_v31  ;;  %v3046_v28 = vsel %vm629_vm1, %v3044_v8, %v3045_v41  ;;  %v979_v37 = vmul.f32 %v5383_v40, %v4962_v21  ;;  %v5803_v27 = vmul.f32 %v5401_v26, %v4962_v21 }
  0xae   :  { %v2544_v58 = vadd.f32 %v2331_v11, %v2060_v51  ;;  %v3530_v32 = vsel %vm1114_vm2, %v3528_v45, %v3529_v33  ;;  %v725_v63 = vrot.slane %v494_v54, 1  ;;  %v726_v40 = vrot.slane %v5794_v53, 1  ;;  %v5841_v11 = vld [vmem:[#allocation2 + $0x230] sm:$0xff] }
  0xaf   :  { %v3909_v25 = vmax.f32 %v3845_v14, 0.0  ;;  %v1210_v30 = vrot.slane %v979_v37, 2  ;;  %v1544_v57 = vmul.f32 %v5603_v16, %v4967_v23  ;;  %v1211_v4 = vrot.slane %v5803_v27, 2  ;;  %v181_v37 = vld [vmem:[%s8650_s0 + $0x180] sm:$0xff] }
  0xb0   :  { %v2775_v5 = vadd.f32 %v2711_v0, %v2544_v58  ;;  %v1695_v17 = vmul.f32 %v5603_v16, %v4980_v29  ;;  %v5821_v39 = vmul.f32 %v5621_v34, %v4980_v29  ;;  %v727_v3 = vsel %vm629_vm1, %v725_v63, %v726_v40  ;;  %v182_v58 = vld [vmem:[%s8650_s0 + $0x188] sm:$0xff]  ;;  %247 = vst.msk [vmem:[#allocation2 + $0x289] sm:$0xff] %vm198_vm0, %v181_v37 }
  0xb1   :  { %4659 = vmatmul.mubr.f32.gmra.mxu1 %v3909_v25  ;;  %v2179_v55 = vmul.f32 %v5603_v16, %v4995_v35  ;;  %v5832_v15 = vmul.f32 %v5621_v34, %v4995_v35  ;;  %v2743_v0 = vmul.f32 %v4997_v36, %v5823_v2  ;;  %v892_v18 = vadd.f32 %v727_v3, %v407_v38  ;;  %v5872_v25 = vld [vmem:[%s8652_s2] ss:$0 sm:$0xff] }
  0xb2   :  { %v3259_v7 = vadd.f32 %v3046_v28, %v2775_v5  ;;  %v1212_v9 = vsel %vm1114_vm2, %v1210_v30, %v1211_v4  ;;  %v1925_v44 = vrot.slane %v1695_v17, 1  ;;  %v1926_v8 = vrot.slane %v5821_v39, 1  ;;  %v280_v28 = vld [vmem:[#allocation2 + $0x58] sm:$0x3]  ;;  %248 = vst.msk [vmem:[#allocation2 + $0x291] sm:$0xff] %vm198_vm0, %v182_v58 }
  0xb3   :  { %v2409_v24 = vrot.slane %v2179_v55, 2  ;;  %v8664_v31 = vrot.slane %v5832_v15, 2  ;;  %v2894_v51 = vmul.f32 %v5013_v42, %v5823_v2  ;;  %v1377_v54 = vadd.f32 %v1212_v9, %v892_v18  ;;  %v1417_v55 = vld [vmem:[#allocation2 + $0x70] sm:$0x3] }
  0xb4   :  { %v3743_v45 = vadd.f32 %v3530_v32, %v3259_v7  ;;  %v5847_v38 = vmul.f32 %v5013_v42, %v5841_v11  ;;  %v3378_v14 = vmul.f32 %v5031_v47, %v5823_v2  ;;  %v1927_v32 = vsel %vm629_vm1, %v1925_v44, %v1926_v8 }
  0xb5   :  { %v2411_v63 = vsel %vm1114_vm2, %v2409_v24, %v8664_v31  ;;  %v3124_v59 = vrot.slane %v2894_v51, 1  ;;  %v5865_v56 = vmul.f32 %v5031_v47, %v5841_v11  ;;  %v1608_v5 = vadd.f32 %v1544_v57, %v1377_v54  ;;  %v2616_v24 = vld [vmem:[#allocation2 + $0x88] sm:$0x3] }
  0xb6   :  { %v3814_v30 = vadd.f32 %v5872_v25, %v3743_v45  ;;  %v8662_v17 = vrot.slane %v5847_v38, 1  ;;  %v3608_v3 = vrot.slane %v3378_v14, 2  ;;  %v376_v18 = vmul.f32 %v5321_v10, %v4957_v19 }
  0xb7   :  { %v8663_v7 = vrot.slane %v5865_v56, 2  ;;  %v448_v9 = vmul.f32 %v4959_v20, %v280_v28  ;;  %v933_v44 = vmul.f32 %v4962_v21, %v280_v28  ;;  %v2092_v37 = vadd.f32 %v1927_v32, %v1608_v5  ;;  %v328_v5 = vld [vmem:[#allocation2 + $0x208] sm:$0x3] }
  0xb8   :  { %v3878_v51 = vmax.f32 %v3814_v30, 0.0  ;;  %v3126_v57 = vsel %vm629_vm1, %v3124_v59, %v8662_v17  ;;  %v1513_v45 = vmul.f32 %v5542_v22, %v4967_v23  ;;  %v1649_v58 = vmul.f32 %v4980_v29, %v1417_v55 }
  0xb9   :  { %v3610_v54 = vsel %vm1114_vm2, %v3608_v3, %v8663_v7  ;;  %v648_v14 = vrot.slane %v448_v9, 1  ;;  %v1133_v10 = vrot.slane %v933_v44, 2  ;;  %v2576_v28 = vadd.f32 %v2411_v63, %v2092_v37 }
  0xba   :  { %4613 = vmatprep.mubr.f32.mxu0 %v3878_v51  ;;  %v2133_v30 = vmul.f32 %v4995_v35, %v1417_v55  ;;  %v2712_v32 = vmul.f32 %v4997_v36, %v5762_v60  ;;  %v2848_v59 = vmul.f32 %v5013_v42, %v2616_v24  ;;  %v1848_v9 = vrot.slane %v1649_v58, 1 }
  0xbb   :  { %v649_v17 = vsel %vm629_vm1, %v646_v49, %v648_v14  ;;  %v1134_v3 = vsel %vm1114_vm2, %v1131_v61, %v1133_v10  ;;  %v3332_v44 = vmul.f32 %v5031_v47, %v2616_v24  ;;  %v2807_v63 = vadd.f32 %v2743_v0, %v2576_v28 }
  0xbc   :  { %v861_v51 = vadd.f32 %v649_v17, %v376_v18  ;;  %v2332_v55 = vrot.slane %v2133_v30, 2  ;;  %v3047_v37 = vrot.slane %v2848_v59, 1  ;;  %v1849_v7 = vsel %vm629_vm1, %v1846_v50, %v1848_v9 }
  0xbd   :  { %v3531_v31 = vrot.slane %v3332_v44, 2  ;;  %v408_v13 = vmul.f32 %v5401_v26, %v4957_v19  ;;  %v496_v49 = vmul.f32 %v4959_v20, %v328_v5  ;;  %v3291_v14 = vadd.f32 %v3126_v57, %v2807_v63 }
  0xbe   :  { %v1346_v61 = vadd.f32 %v1134_v3, %v861_v51  ;;  %v2333_v0 = vsel %vm1114_vm2, %v2330_v52, %v2332_v55  ;;  %v3048_v17 = vsel %vm629_vm1, %v3045_v41, %v3047_v37  ;;  %v981_v26 = vmul.f32 %v4962_v21, %v328_v5 }
  0xbf   :  { %v3532_v50 = vsel %vm1114_vm2, %v3529_v33, %v3531_v31  ;;  %v728_v18 = vrot.slane %v496_v49, 1  ;;  %v1545_v24 = vmul.f32 %v5621_v34, %v4967_v23  ;;  %v3775_v57 = vadd.f32 %v3610_v54, %v3291_v14 }
  0xc0   :  { %v1577_v10 = vadd.f32 %v1513_v45, %v1346_v61  ;;  %v1697_v12 = vmul.f32 %v4980_v29, %v1465_v62  ;;  %v2181_v52 = vmul.f32 %v4995_v35, %v1465_v62  ;;  %v1213_v41 = vrot.slane %v981_v26, 2 }
  0xc1   :  { %v729_v46 = vsel %vm629_vm1, %v726_v40, %v728_v18  ;;  %v2744_v6 = vmul.f32 %v4997_v36, %v5841_v11  ;;  %v2896_v33 = vmul.f32 %v5013_v42, %v2664_v1  ;;  %v3846_v31 = vadd.f32 %v5872_v25, %v3775_v57 }
  0xc2   :  { %v2061_v58 = vadd.f32 %v1849_v7, %v1577_v10  ;;  %v893_v28 = vadd.f32 %v729_v46, %v408_v13  ;;  %v1928_v54 = vrot.slane %v1697_v12, 1  ;;  %v1214_v45 = vsel %vm1114_vm2, %v1211_v4, %v1213_v41 }
  0xc3   :  { %v2412_v30 = vrot.slane %v2181_v52, 2  ;;  %v3127_v59 = vrot.slane %v2896_v33, 1  ;;  %v3380_v53 = vmul.f32 %v5031_v47, %v2664_v1  ;;  %v3910_v40 = vmax.f32 %v3846_v31, 0.0 }
  0xc4   :  { %v2545_v5 = vadd.f32 %v2333_v0, %v2061_v58  ;;  %v1378_v3 = vadd.f32 %v1214_v45, %v893_v28  ;;  %v1929_v9 = vsel %vm629_vm1, %v1926_v8, %v1928_v54  ;;  %v8717_v44 = vrot.slane %v5832_v15, 2  ;;  %v5982_v58 = vld [vmem:[#allocation2 + $0x90] sm:$0xff]  ;;  %v5987_v45 = vld [vmem:[#allocation2 + $0x98] sm:$0xff] }
  0xc5   :  { %v8718_v63 = vrot.slane %v5847_v38, 1  ;;  %v3611_v4 = vrot.slane %v3380_v53, 2  ;;  %v377_v51 = vmul.f32 %v5537_v48, %v4957_v19  ;;  %4661 = vmatprep.mubr.f32.mxu1 %v3910_v40  ;;  %v449_v39 = vmul.f32 %v5537_v48, %v4959_v20 }
  0xc6   :  { %v2413_v7 = vsel %vm1114_vm2, %v8717_v44, %v2412_v30  ;;  %v2776_v55 = vadd.f32 %v2712_v32, %v2545_v5  ;;  %v1609_v37 = vadd.f32 %v1545_v24, %v1378_v3  ;;  %v5947_v8 = vmul.f32 %v5542_v22, %v4959_v20 }
  0xc7   :  { %v3128_v27 = vsel %vm629_vm1, %v8718_v63, %v3127_v59  ;;  %v8719_v15 = vrot.slane %v5865_v56, 2  ;;  %v934_v13 = vmul.f32 %v5537_v48, %v4962_v21  ;;  %v5956_v49 = vmul.f32 %v5542_v22, %v4962_v21 }
  0xc8   :  { %v1514_v32 = vmul.f32 %v5757_v43, %v4967_v23  ;;  %v3260_v62 = vadd.f32 %v3048_v17, %v2776_v55  ;;  %v2093_v14 = vadd.f32 %v1929_v9, %v1609_v37  ;;  %v650_v61 = vrot.slane %v449_v39, 1 }
  0xc9   :  { %v3612_v38 = vsel %vm1114_vm2, %v8719_v15, %v3611_v4  ;;  %v651_v0 = vrot.slane %v5947_v8, 1  ;;  %v1135_v1 = vrot.slane %v934_v13, 2  ;;  %v1136_v56 = vrot.slane %v5956_v49, 2  ;;  %v1468_v49 = vld [vmem:[#allocation2 + $0x238] sm:$0x3] }
  0xca   :  { %v1650_v18 = vmul.f32 %v5757_v43, %v4980_v29  ;;  %v5966_v48 = vmul.f32 %v5762_v60, %v4980_v29  ;;  %v3744_v26 = vadd.f32 %v3532_v50, %v3260_v62  ;;  %v2577_v24 = vadd.f32 %v2413_v7, %v2093_v14 }
  0xcb   :  { %v652_v17 = vsel %vm629_vm1, %v650_v61, %v651_v0  ;;  %v2134_v57 = vmul.f32 %v5757_v43, %v4995_v35  ;;  %v1137_v12 = vsel %vm1114_vm2, %v1135_v1, %v1136_v56  ;;  %v5980_v50 = vmul.f32 %v5762_v60, %v4995_v35 }
  0xcc   :  { %v862_v10 = vadd.f32 %v652_v17, %v377_v51  ;;  %v1850_v52 = vrot.slane %v1650_v18, 1  ;;  %v1851_v46 = vrot.slane %v5966_v48, 1  ;;  %v3815_v41 = vadd.f32 %v5872_v25, %v3744_v26  ;;  %v151_v26 = vld [vmem:[%s8650_s0 + $0x90] sm:$0xff] }
  0xcd   :  { %v2808_v33 = vadd.f32 %v2744_v6, %v2577_v24  ;;  %v2334_v31 = vrot.slane %v2134_v57, 2  ;;  %v2713_v30 = vmul.f32 %v4997_v36, %v5982_v58  ;;  %v2849_v6 = vmul.f32 %v5013_v42, %v5982_v58  ;;  %v152_v24 = vld [vmem:[%s8650_s0 + $0x98] sm:$0xff]  ;;  %217 = vst.msk [vmem:[#allocation2 + $0xf1] sm:$0xff] %vm198_vm0, %v151_v26  ;;  %v2667_v48 = vld [vmem:[#allocation2 + $0x250] sm:$0x3] }
  0xce   :  { %v1347_v28 = vadd.f32 %v1137_v12, %v862_v10  ;;  %v1852_v54 = vsel %vm629_vm1, %v1850_v52, %v1851_v46  ;;  %v3879_v59 = vmax.f32 %v3815_v41, 0.0  ;;  %v2335_v40 = vrot.slane %v5980_v50, 2  ;;  %218 = vst.msk [vmem:[#allocation2 + $0xf9] sm:$0xff] %vm198_vm0, %v152_v24 }
  0xcf   :  { %v3292_v53 = vadd.f32 %v3128_v27, %v2808_v33  ;;  %v5996_v5 = vmul.f32 %v5013_v42, %v5987_v45  ;;  %v3049_v9 = vrot.slane %v2849_v6, 1  ;;  %v3333_v44 = vmul.f32 %v5031_v47, %v5982_v58 }
  0xd0   :  { %v1578_v3 = vadd.f32 %v1514_v32, %v1347_v28  ;;  %v6002_v7 = vmul.f32 %v5031_v47, %v5987_v45  ;;  %4614 = vmatmul.mubr.f32.gmra.mxu0 %v3879_v59  ;;  %v2336_v27 = vsel %vm1114_vm2, %v2334_v31, %v2335_v40  ;;  %v409_v51 = vmul.f32 %v5603_v16, %v4957_v19  ;;  %v6048_v31 = vld [vmem:[#allocation2 + $0x240] sm:$0xff] }
  0xd1   :  { %v3776_v63 = vadd.f32 %v3612_v38, %v3292_v53  ;;  %v3050_v4 = vrot.slane %v5996_v5, 1  ;;  %v3533_v37 = vrot.slane %v3333_v44, 2  ;;  %v497_v15 = vmul.f32 %v5603_v16, %v4959_v20 }
  0xd2   :  { %v2062_v55 = vadd.f32 %v1852_v54, %v1578_v3  ;;  %v3534_v39 = vrot.slane %v6002_v7, 2  ;;  %v6019_v32 = vmul.f32 %v5621_v34, %v4959_v20  ;;  %v982_v62 = vmul.f32 %v5603_v16, %v4962_v21 }
  0xd3   :  { %v3847_v13 = vadd.f32 %v5872_v25, %v3776_v63  ;;  %v3051_v38 = vsel %vm629_vm1, %v3049_v9, %v3050_v4  ;;  %v730_v1 = vrot.slane %v497_v15, 1  ;;  %v6028_v18 = vmul.f32 %v5621_v34, %v4962_v21 }
  0xd4   :  { %v2546_v14 = vadd.f32 %v2336_v27, %v2062_v55  ;;  %v3535_v61 = vsel %vm1114_vm2, %v3533_v37, %v3534_v39  ;;  %v731_v16 = vrot.slane %v6019_v32, 1  ;;  %v1215_v57 = vrot.slane %v982_v62, 2  ;;  %v6066_v55 = vld [vmem:[#allocation2 + $0x248] sm:$0xff]  ;;  %v283_v62 = vld [vmem:[#allocation2 + $0x70] sm:$0x3] }
  0xd5   :  { %v3911_v17 = vmax.f32 %v3847_v13, 0.0  ;;  %v1546_v10 = vmul.f32 %v5823_v2, %v4967_v23  ;;  %v1216_v52 = vrot.slane %v6028_v18, 2  ;;  %v1698_v41 = vmul.f32 %v5823_v2, %v4980_v29 }
  0xd6   :  { %v2777_v12 = vadd.f32 %v2713_v30, %v2546_v14  ;;  %v6046_v33 = vmul.f32 %v5841_v11, %v4980_v29  ;;  %v732_v28 = vsel %vm629_vm1, %v730_v1, %v731_v16  ;;  %v2182_v54 = vmul.f32 %v5823_v2, %v4995_v35  ;;  %v183_v14 = vld [vmem:[%s8650_s0 + $0x190] sm:$0xff]  ;;  %v184_v1 = vld [vmem:[%s8650_s0 + $0x198] sm:$0xff] }
  0xd7   :  { %4662 = vmatmul.mubr.f32.gmra.mxu1 %v3911_v17  ;;  %v6057_v30 = vmul.f32 %v5841_v11, %v4995_v35  ;;  %v2745_v6 = vmul.f32 %v4997_v36, %v6048_v31  ;;  %v894_v53 = vadd.f32 %v732_v28, %v409_v51  ;;  %v1217_v3 = vsel %vm1114_vm2, %v1215_v57, %v1216_v52 }
  0xd8   :  { %v3261_v59 = vadd.f32 %v3051_v38, %v2777_v12  ;;  %v1930_v9 = vrot.slane %v1698_v41, 1  ;;  %v1931_v44 = vrot.slane %v6046_v33, 1  ;;  %v2414_v63 = vrot.slane %v2182_v54, 2  ;;  %249 = vst.msk [vmem:[#allocation2 + $0x2a1] sm:$0xff] %vm198_vm0, %v183_v14  ;;  %250 = vst.msk [vmem:[#allocation2 + $0x2a9] sm:$0xff] %vm198_vm0, %v184_v1 }
  0xd9   :  { %v8667_v27 = vrot.slane %v6057_v30, 2  ;;  %v2897_v37 = vmul.f32 %v5013_v42, %v6048_v31  ;;  %v1379_v13 = vadd.f32 %v1217_v3, %v894_v53  ;;  %v6072_v51 = vmul.f32 %v5013_v42, %v6066_v55  ;;  %v1420_v54 = vld [vmem:[#allocation2 + $0x88] sm:$0x3] }
  0xda   :  { %v3745_v15 = vadd.f32 %v3535_v61, %v3261_v59  ;;  %v3381_v38 = vmul.f32 %v5031_v47, %v6048_v31  ;;  %v1932_v61 = vsel %vm629_vm1, %v1930_v9, %v1931_v44  ;;  %v6090_v17 = vmul.f32 %v5031_v47, %v6066_v55 }
  0xdb   :  { %v2416_v26 = vsel %vm1114_vm2, %v2414_v63, %v8667_v27  ;;  %v3129_v24 = vrot.slane %v2897_v37, 1  ;;  %v1610_v12 = vadd.f32 %v1546_v10, %v1379_v13  ;;  %v8665_v41 = vrot.slane %v6072_v51, 1  ;;  %v2619_v63 = vld [vmem:[#allocation2 + $0xa0] sm:$0x3] }
  0xdc   :  { %v3816_v57 = vadd.f32 %v5872_v25, %v3745_v15  ;;  %v3613_v28 = vrot.slane %v3381_v38, 2  ;;  %v8666_v59 = vrot.slane %v6090_v17, 2  ;;  %v378_v53 = vmul.f32 %v5542_v22, %v4957_v19 }
  0xdd   :  { %v451_v3 = vmul.f32 %v4959_v20, %v283_v62  ;;  %v936_v9 = vmul.f32 %v4962_v21, %v283_v62  ;;  %v2094_v14 = vadd.f32 %v1932_v61, %v1610_v12  ;;  %v3131_v10 = vsel %vm629_vm1, %v3129_v24, %v8665_v41  ;;  %v331_v12 = vld [vmem:[#allocation2 + $0x220] sm:$0x3] }
  0xde   :  { %v3880_v37 = vmax.f32 %v3816_v57, 0.0  ;;  %v1515_v15 = vmul.f32 %v5762_v60, %v4967_v23  ;;  %v3615_v13 = vsel %vm1114_vm2, %v3613_v28, %v8666_v59  ;;  %v1652_v1 = vmul.f32 %v4980_v29, %v1420_v54 }
  0xdf   :  { %v653_v38 = vrot.slane %v451_v3, 1  ;;  %v1138_v22 = vrot.slane %v936_v9, 2  ;;  %v2578_v62 = vadd.f32 %v2416_v26, %v2094_v14  ;;  %v2136_v57 = vmul.f32 %v4995_v35, %v1420_v54 }
  0xe0   :  { %4616 = vmatprep.mubr.f32.mxu0 %v3880_v37  ;;  %v2714_v61 = vmul.f32 %v4997_v36, %v5987_v45  ;;  %v2851_v24 = vmul.f32 %v5013_v42, %v2619_v63  ;;  %v1853_v3 = vrot.slane %v1652_v1, 1  ;;  %v3335_v9 = vmul.f32 %v5031_v47, %v2619_v63 }
  0xe1   :  { %v654_v41 = vsel %vm629_vm1, %v651_v0, %v653_v38  ;;  %v1139_v28 = vsel %vm1114_vm2, %v1136_v56, %v1138_v22  ;;  %v2809_v26 = vadd.f32 %v2745_v6, %v2578_v62  ;;  %v2337_v54 = vrot.slane %v2136_v57, 2 }
  0xe2   :  { %v863_v37 = vadd.f32 %v654_v41, %v378_v53  ;;  %v3052_v14 = vrot.slane %v2851_v24, 1  ;;  %v1854_v59 = vsel %vm629_vm1, %v1851_v46, %v1853_v3  ;;  %v3536_v27 = vrot.slane %v3335_v9, 2 }
  0xe3   :  { %v410_v8 = vmul.f32 %v5621_v34, %v4957_v19  ;;  %v499_v0 = vmul.f32 %v4959_v20, %v331_v12  ;;  %v3293_v38 = vadd.f32 %v3131_v10, %v2809_v26  ;;  %v2338_v6 = vsel %vm1114_vm2, %v2335_v40, %v2337_v54 }
  0xe4   :  { %v1348_v56 = vadd.f32 %v1139_v28, %v863_v37  ;;  %v3053_v41 = vsel %vm629_vm1, %v3050_v4, %v3052_v14  ;;  %v3537_v46 = vsel %vm1114_vm2, %v3534_v39, %v3536_v27  ;;  %v984_v34 = vmul.f32 %v4962_v21, %v331_v12 }
  0xe5   :  { %v733_v53 = vrot.slane %v499_v0, 1  ;;  %v1547_v63 = vmul.f32 %v5841_v11, %v4967_v23  ;;  %v3777_v10 = vadd.f32 %v3615_v13, %v3293_v38  ;;  %v1700_v50 = vmul.f32 %v4980_v29, %v1468_v49 }
  0xe6   :  { %v1579_v22 = vadd.f32 %v1515_v15, %v1348_v56  ;;  %v2184_v40 = vmul.f32 %v4995_v35, %v1468_v49  ;;  %v1218_v4 = vrot.slane %v984_v34, 2  ;;  %v2746_v7 = vmul.f32 %v4997_v36, %v6066_v55 }
  0xe7   :  { %v734_v5 = vsel %vm629_vm1, %v731_v16, %v733_v53  ;;  %v2899_v39 = vmul.f32 %v5013_v42, %v2667_v48  ;;  %v3848_v27 = vadd.f32 %v5872_v25, %v3777_v10  ;;  %v1933_v13 = vrot.slane %v1700_v50, 1 }
  0xe8   :  { %v2063_v1 = vadd.f32 %v1854_v59, %v1579_v22  ;;  %v895_v62 = vadd.f32 %v734_v5, %v410_v8  ;;  %v1219_v15 = vsel %vm1114_vm2, %v1216_v52, %v1218_v4  ;;  %v2417_v57 = vrot.slane %v2184_v40, 2 }
  0xe9   :  { %v3132_v24 = vrot.slane %v2899_v39, 1  ;;  %v3383_v32 = vmul.f32 %v5031_v47, %v2667_v48  ;;  %v3912_v16 = vmax.f32 %v3848_v27, 0.0  ;;  %v1934_v3 = vsel %vm629_vm1, %v1931_v44, %v1933_v13 }
  0xea   :  { %v2547_v12 = vadd.f32 %v2338_v6, %v2063_v1  ;;  %v1380_v28 = vadd.f32 %v1219_v15, %v895_v62  ;;  %v8720_v9 = vrot.slane %v6057_v30, 2  ;;  %v8721_v26 = vrot.slane %v6072_v51, 1  ;;  %v6202_v1 = vld [vmem:[#allocation2 + $0xa8] sm:$0xff]  ;;  %v6207_v15 = vld [vmem:[#allocation2 + $0xb0] sm:$0xff] }
  0xeb   :  { %v3616_v52 = vrot.slane %v3383_v32, 2  ;;  %v379_v37 = vmul.f32 %v5757_v43, %v4957_v19  ;;  %4664 = vmatprep.mubr.f32.mxu1 %v3912_v16  ;;  %v452_v33 = vmul.f32 %v5757_v43, %v4959_v20  ;;  %v6167_v44 = vmul.f32 %v5762_v60, %v4959_v20 }
  0xec   :  { %v2418_v59 = vsel %vm1114_vm2, %v8720_v9, %v2417_v57  ;;  %v3133_v18 = vsel %vm629_vm1, %v8721_v26, %v3132_v24  ;;  %v2778_v54 = vadd.f32 %v2714_v61, %v2547_v12  ;;  %v1611_v14 = vadd.f32 %v1547_v63, %v1380_v28 }
  0xed   :  { %v8722_v30 = vrot.slane %v6090_v17, 2  ;;  %v937_v8 = vmul.f32 %v5757_v43, %v4962_v21  ;;  %v6176_v0 = vmul.f32 %v5762_v60, %v4962_v21  ;;  %v1516_v61 = vmul.f32 %v5982_v58, %v4967_v23 }
  0xee   :  { %v3262_v49 = vadd.f32 %v3053_v41, %v2778_v54  ;;  %v2095_v38 = vadd.f32 %v1934_v3, %v1611_v14  ;;  %v655_v56 = vrot.slane %v452_v33, 1  ;;  %v656_v6 = vrot.slane %v6167_v44, 1 }
  0xef   :  { %v3617_v51 = vsel %vm1114_vm2, %v8722_v30, %v3616_v52  ;;  %v1140_v48 = vrot.slane %v937_v8, 2  ;;  %v1141_v17 = vrot.slane %v6176_v0, 2  ;;  %v1653_v53 = vmul.f32 %v5982_v58, %v4980_v29  ;;  %v1471_v0 = vld [vmem:[#allocation2 + $0x250] sm:$0x3] }
  0xf0   :  { %v6186_v43 = vmul.f32 %v5987_v45, %v4980_v29  ;;  %v3746_v34 = vadd.f32 %v3537_v46, %v3262_v49  ;;  %v2579_v63 = vadd.f32 %v2418_v59, %v2095_v38  ;;  %v657_v41 = vsel %vm629_vm1, %v655_v56, %v656_v6 }
  0xf1   :  { %v2137_v10 = vmul.f32 %v5982_v58, %v4995_v35  ;;  %v864_v22 = vadd.f32 %v657_v41, %v379_v37  ;;  %v1142_v50 = vsel %vm1114_vm2, %v1140_v48, %v1141_v17  ;;  %v1855_v40 = vrot.slane %v1653_v53, 1 }
  0xf2   :  { %v1856_v5 = vrot.slane %v6186_v43, 1  ;;  %v3817_v4 = vadd.f32 %v5872_v25, %v3746_v34  ;;  %v2810_v39 = vadd.f32 %v2746_v7, %v2579_v63  ;;  %v6200_v46 = vmul.f32 %v5987_v45, %v4995_v35  ;;  %v153_v34 = vld [vmem:[%s8650_s0 + $0xa0] sm:$0xff]  ;;  %v154_v63 = vld [vmem:[%s8650_s0 + $0xa8] sm:$0xff] }
  0xf3   :  { %v2339_v27 = vrot.slane %v2137_v10, 2  ;;  %v1349_v62 = vadd.f32 %v1142_v50, %v864_v22  ;;  %v2715_v57 = vmul.f32 %v4997_v36, %v6202_v1  ;;  %v2852_v7 = vmul.f32 %v5013_v42, %v6202_v1  ;;  %219 = vst.msk [vmem:[#allocation2 + $0x109] sm:$0xff] %vm198_vm0, %v153_v34  ;;  %220 = vst.msk [vmem:[#allocation2 + $0x111] sm:$0xff] %vm198_vm0, %v154_v63  ;;  %v2670_v43 = vld [vmem:[#allocation2 + $0x268] sm:$0x3] }
  0xf4   :  { %v1857_v13 = vsel %vm629_vm1, %v1855_v40, %v1856_v5  ;;  %v3881_v24 = vmax.f32 %v3817_v4, 0.0  ;;  %v3294_v32 = vadd.f32 %v3133_v18, %v2810_v39  ;;  %v2340_v16 = vrot.slane %v6200_v46, 2 }
  0xf5   :  { %v6216_v12 = vmul.f32 %v5013_v42, %v6207_v15  ;;  %v1580_v28 = vadd.f32 %v1516_v61, %v1349_v62  ;;  %v3054_v3 = vrot.slane %v2852_v7, 1  ;;  %v3336_v9 = vmul.f32 %v5031_v47, %v6202_v1 }
  0xf6   :  { %v6222_v59 = vmul.f32 %v5031_v47, %v6207_v15  ;;  %4617 = vmatmul.mubr.f32.gmra.mxu0 %v3881_v24  ;;  %v3778_v26 = vadd.f32 %v3617_v51, %v3294_v32  ;;  %v2341_v18 = vsel %vm1114_vm2, %v2339_v27, %v2340_v16  ;;  %v411_v37 = vmul.f32 %v5823_v2, %v4957_v19  ;;  %v6268_v27 = vld [vmem:[#allocation2 + $0x258] sm:$0xff] }
  0xf7   :  { %v3055_v52 = vrot.slane %v6216_v12, 1  ;;  %v2064_v54 = vadd.f32 %v1857_v13, %v1580_v28  ;;  %v3538_v14 = vrot.slane %v3336_v9, 2  ;;  %v500_v30 = vmul.f32 %v5823_v2, %v4959_v20 }
  0xf8   :  { %v3539_v33 = vrot.slane %v6222_v59, 2  ;;  %v3849_v8 = vadd.f32 %v5872_v25, %v3778_v26  ;;  %v6239_v61 = vmul.f32 %v5841_v11, %v4959_v20  ;;  %v985_v49 = vmul.f32 %v5823_v2, %v4962_v21 }
  0xf9   :  { %v3056_v51 = vsel %vm629_vm1, %v3054_v3, %v3055_v52  ;;  %v2548_v38 = vadd.f32 %v2341_v18, %v2064_v54  ;;  %v735_v48 = vrot.slane %v500_v30, 1  ;;  %v6248_v53 = vmul.f32 %v5841_v11, %v4962_v21  ;;  %v6286_v54 = vld [vmem:[#allocation2 + $0x260] sm:$0xff] }
  0xfa   :  { %v3540_v56 = vsel %vm1114_vm2, %v3538_v14, %v3539_v33  ;;  %v3913_v41 = vmax.f32 %v3849_v8, 0.0  ;;  %v736_v2 = vrot.slane %v6239_v61, 1  ;;  %v1220_v10 = vrot.slane %v985_v49, 2  ;;  %v286_v49 = vld [vmem:[#allocation2 + $0x88] sm:$0x3] }
  0xfb   :  { %v1548_v22 = vmul.f32 %v6048_v31, %v4967_v23  ;;  %v2779_v50 = vadd.f32 %v2715_v57, %v2548_v38  ;;  %v1221_v40 = vrot.slane %v6248_v53, 2  ;;  %v1701_v4 = vmul.f32 %v6048_v31, %v4980_v29  ;;  %v185_v38 = vld [vmem:[%s8650_s0 + $0x1a0] sm:$0xff] }
  0xfc   :  { %v6266_v39 = vmul.f32 %v6066_v55, %v4980_v29  ;;  %4665 = vmatmul.mubr.f32.gmra.mxu1 %v3913_v41  ;;  %v737_v62 = vsel %vm629_vm1, %v735_v48, %v736_v2  ;;  %v2185_v13 = vmul.f32 %v6048_v31, %v4995_v35  ;;  %v6277_v57 = vmul.f32 %v6066_v55, %v4995_v35  ;;  %v186_v48 = vld [vmem:[%s8650_s0 + $0x1a8] sm:$0xff] }
  0xfd   :  { %v2747_v7 = vmul.f32 %v4997_v36, %v6268_v27  ;;  %v3263_v24 = vadd.f32 %v3056_v51, %v2779_v50  ;;  %v896_v32 = vadd.f32 %v737_v62, %v411_v37  ;;  %v1222_v28 = vsel %vm1114_vm2, %v1220_v10, %v1221_v40  ;;  %251 = vst.msk [vmem:[#allocation2 + $0x2b9] sm:$0xff] %vm198_vm0, %v185_v38 }
  0xfe   :  { %v1935_v3 = vrot.slane %v1701_v4, 1  ;;  %v1936_v9 = vrot.slane %v6266_v39, 1  ;;  %v2419_v26 = vrot.slane %v2185_v13, 2  ;;  %v8670_v18 = vrot.slane %v6277_v57, 2  ;;  %252 = vst.msk [vmem:[#allocation2 + $0x2c1] sm:$0xff] %vm198_vm0, %v186_v48 }
  0xff   :  { %v2900_v14 = vmul.f32 %v5013_v42, %v6268_v27  ;;  %v3747_v30 = vadd.f32 %v3540_v56, %v3263_v24  ;;  %v1381_v8 = vadd.f32 %v1222_v28, %v896_v32  ;;  %v6292_v37 = vmul.f32 %v5013_v42, %v6286_v54  ;;  %v1423_v13 = vld [vmem:[#allocation2 + $0xa0] sm:$0x3] }
 0x100   :  { %v3384_v51 = vmul.f32 %v5031_v47, %v6268_v27  ;;  %v1937_v56 = vsel %vm629_vm1, %v1935_v3, %v1936_v9  ;;  %v2421_v34 = vsel %vm1114_vm2, %v2419_v26, %v8670_v18  ;;  %v6310_v41 = vmul.f32 %v5031_v47, %v6286_v54  ;;  %v2622_v26 = vld [vmem:[#allocation2 + $0xb8] sm:$0x3] }
 0x101   :  { %v3134_v63 = vrot.slane %v2900_v14, 1  ;;  %v3818_v10 = vadd.f32 %v5872_v25, %v3747_v30  ;;  %v1612_v50 = vadd.f32 %v1548_v22, %v1381_v8  ;;  %v8668_v4 = vrot.slane %v6292_v37, 1 }
 0x102   :  { %v3618_v62 = vrot.slane %v3384_v51, 2  ;;  %v8669_v24 = vrot.slane %v6310_v41, 2  ;;  %v380_v32 = vmul.f32 %v5762_v60, %v4957_v19  ;;  %v454_v28 = vmul.f32 %v4959_v20, %v286_v49 }
 0x103   :  { %v939_v3 = vmul.f32 %v4962_v21, %v286_v49  ;;  %v3882_v14 = vmax.f32 %v3818_v10, 0.0  ;;  %v2096_v38 = vadd.f32 %v1937_v56, %v1612_v50  ;;  %v3136_v22 = vsel %vm629_vm1, %v3134_v63, %v8668_v4  ;;  %v334_v50 = vld [vmem:[#allocation2 + $0x238] sm:$0x3] }
 0x104   :  { %v1517_v30 = vmul.f32 %v5987_v45, %v4967_v23  ;;  %v3620_v8 = vsel %vm1114_vm2, %v3618_v62, %v8669_v24  ;;  %v658_v51 = vrot.slane %v454_v28, 1  ;;  %v1655_v48 = vmul.f32 %v4980_v29, %v1423_v13 }
 0x105   :  { %v1143_v60 = vrot.slane %v939_v3, 2  ;;  %4619 = vmatprep.mubr.f32.mxu0 %v3882_v14  ;;  %v2580_v49 = vadd.f32 %v2421_v34, %v2096_v38  ;;  %v2139_v10 = vmul.f32 %v4995_v35, %v1423_v13  ;;  %v2716_v56 = vmul.f32 %v4997_v36, %v6207_v15 }
 0x106   :  { %v2854_v63 = vmul.f32 %v5013_v42, %v2622_v26  ;;  %v659_v4 = vsel %vm629_vm1, %v656_v6, %v658_v51  ;;  %v1858_v28 = vrot.slane %v1655_v48, 1  ;;  %v3338_v3 = vmul.f32 %v5031_v47, %v2622_v26 }
 0x107   :  { %v1144_v62 = vsel %vm1114_vm2, %v1141_v17, %v1143_v60  ;;  %v2811_v34 = vadd.f32 %v2747_v7, %v2580_v49  ;;  %v865_v14 = vadd.f32 %v659_v4, %v380_v32  ;;  %v2342_v13 = vrot.slane %v2139_v10, 2 }
 0x108   :  { %v3057_v38 = vrot.slane %v2854_v63, 1  ;;  %v1859_v24 = vsel %vm629_vm1, %v1856_v5, %v1858_v28  ;;  %v3541_v18 = vrot.slane %v3338_v3, 2  ;;  %v412_v44 = vmul.f32 %v5841_v11, %v4957_v19 }
 0x109   :  { %v502_v6 = vmul.f32 %v4959_v20, %v334_v50  ;;  %v3295_v51 = vadd.f32 %v3136_v22, %v2811_v34  ;;  %v1350_v17 = vadd.f32 %v1144_v62, %v865_v14  ;;  %v2343_v7 = vsel %vm1114_vm2, %v2340_v16, %v2342_v13 }
 0x10a   :  { %v3058_v4 = vsel %vm629_vm1, %v3055_v52, %v3057_v38  ;;  %v3542_v5 = vsel %vm1114_vm2, %v3539_v33, %v3541_v18  ;;  %v987_v11 = vmul.f32 %v4962_v21, %v334_v50  ;;  %v1549_v26 = vmul.f32 %v6066_v55, %v4967_v23 }
 0x10b   :  { %v738_v32 = vrot.slane %v502_v6, 1  ;;  %v3779_v22 = vadd.f32 %v3620_v8, %v3295_v51  ;;  %v1581_v60 = vadd.f32 %v1517_v30, %v1350_v17  ;;  %v1703_v46 = vmul.f32 %v4980_v29, %v1471_v0 }
 0x10c   :  { %v2187_v16 = vmul.f32 %v4995_v35, %v1471_v0  ;;  %v1223_v52 = vrot.slane %v987_v11, 2  ;;  %v2748_v59 = vmul.f32 %v4997_v36, %v6286_v54  ;;  %v2902_v33 = vmul.f32 %v5013_v42, %v2670_v43 }
 0x10d   :  { %v739_v12 = vsel %vm629_vm1, %v736_v2, %v738_v32  ;;  %v3850_v18 = vadd.f32 %v5872_v25, %v3779_v22  ;;  %v2065_v48 = vadd.f32 %v1859_v24, %v1581_v60  ;;  %v1938_v8 = vrot.slane %v1703_v46, 1 }
 0x10e   :  { %v897_v49 = vadd.f32 %v739_v12, %v412_v44  ;;  %v1224_v30 = vsel %vm1114_vm2, %v1221_v40, %v1223_v52  ;;  %v2422_v10 = vrot.slane %v2187_v16, 2  ;;  %v3137_v63 = vrot.slane %v2902_v33, 1 }
 0x10f   :  { %v3386_v61 = vmul.f32 %v5031_v47, %v2670_v43  ;;  %v3914_v2 = vmax.f32 %v3850_v18, 0.0  ;;  %v2549_v50 = vadd.f32 %v2343_v7, %v2065_v48  ;;  %v1939_v28 = vsel %vm629_vm1, %v1936_v9, %v1938_v8  ;;  %v6422_v48 = vld [vmem:[#allocation2 + $0xc0] sm:$0xff] }
 0x110   :  { %v1382_v62 = vadd.f32 %v1224_v30, %v897_v49  ;;  %v8723_v3 = vrot.slane %v6277_v57, 2  ;;  %v8724_v34 = vrot.slane %v6292_v37, 1  ;;  %v381_v14 = vmul.f32 %v5982_v58, %v4957_v19  ;;  %v6427_v30 = vld [vmem:[#allocation2 + $0xc8] sm:$0xff] }
 0x111   :  { %v3621_v40 = vrot.slane %v3386_v61, 2  ;;  %4667 = vmatprep.mubr.f32.mxu1 %v3914_v2  ;;  %v2780_v13 = vadd.f32 %v2716_v56, %v2549_v50  ;;  %v455_v39 = vmul.f32 %v5982_v58, %v4959_v20  ;;  %v6387_v9 = vmul.f32 %v5987_v45, %v4959_v20 }
 0x112   :  { %v2423_v24 = vsel %vm1114_vm2, %v8723_v3, %v2422_v10  ;;  %v3138_v53 = vsel %vm629_vm1, %v8724_v34, %v3137_v63  ;;  %v1613_v38 = vadd.f32 %v1549_v26, %v1382_v62  ;;  %v8725_v57 = vrot.slane %v6310_v41, 2 }
 0x113   :  { %v940_v44 = vmul.f32 %v5982_v58, %v4962_v21  ;;  %v6396_v6 = vmul.f32 %v5987_v45, %v4962_v21  ;;  %v1518_v56 = vmul.f32 %v6202_v1, %v4967_v23  ;;  %v3264_v0 = vadd.f32 %v3058_v4, %v2780_v13 }
 0x114   :  { %v3622_v37 = vsel %vm1114_vm2, %v8725_v57, %v3621_v40  ;;  %v2097_v51 = vadd.f32 %v1939_v28, %v1613_v38  ;;  %v660_v17 = vrot.slane %v455_v39, 1  ;;  %v661_v7 = vrot.slane %v6387_v9, 1 }
 0x115   :  { %v1145_v43 = vrot.slane %v940_v44, 2  ;;  %v1146_v41 = vrot.slane %v6396_v6, 2  ;;  %v1656_v32 = vmul.f32 %v6202_v1, %v4980_v29  ;;  %v6406_v58 = vmul.f32 %v6207_v15, %v4980_v29  ;;  %v1474_v6 = vld [vmem:[#allocation2 + $0x268] sm:$0x3] }
 0x116   :  { %v3748_v11 = vadd.f32 %v3542_v5, %v3264_v0  ;;  %v2581_v26 = vadd.f32 %v2423_v24, %v2097_v51  ;;  %v662_v4 = vsel %vm629_vm1, %v660_v17, %v661_v7  ;;  %v2140_v22 = vmul.f32 %v6202_v1, %v4995_v35 }
 0x117   :  { %v866_v60 = vadd.f32 %v662_v4, %v381_v14  ;;  %v1147_v46 = vsel %vm1114_vm2, %v1145_v43, %v1146_v41  ;;  %v1860_v16 = vrot.slane %v1656_v32, 1  ;;  %v1861_v12 = vrot.slane %v6406_v58, 1  ;;  %v2673_v58 = vld [vmem:[#allocation2 + $0x280] sm:$0x3] }
 0x118   :  { %v3819_v52 = vadd.f32 %v5872_v25, %v3748_v11  ;;  %v2812_v33 = vadd.f32 %v2748_v59, %v2581_v26  ;;  %v6420_v5 = vmul.f32 %v6207_v15, %v4995_v35  ;;  %v2344_v18 = vrot.slane %v2140_v22, 2  ;;  %v155_v11 = vld [vmem:[%s8650_s0 + $0xb0] sm:$0xff]  ;;  %v156_v26 = vld [vmem:[%s8650_s0 + $0xb8] sm:$0xff] }
 0x119   :  { %v1351_v49 = vadd.f32 %v1147_v46, %v866_v60  ;;  %v1862_v8 = vsel %vm629_vm1, %v1860_v16, %v1861_v12  ;;  %v2717_v10 = vmul.f32 %v4997_v36, %v6422_v48  ;;  %v2855_v59 = vmul.f32 %v5013_v42, %v6422_v48  ;;  %221 = vst.msk [vmem:[#allocation2 + $0x121] sm:$0xff] %vm198_vm0, %v155_v11 }
 0x11a   :  { %v3883_v63 = vmax.f32 %v3819_v52, 0.0  ;;  %v3296_v61 = vadd.f32 %v3138_v53, %v2812_v33  ;;  %v2345_v2 = vrot.slane %v6420_v5, 2  ;;  %v6436_v50 = vmul.f32 %v5013_v42, %v6427_v30  ;;  %222 = vst.msk [vmem:[#allocation2 + $0x129] sm:$0xff] %vm198_vm0, %v156_v26 }
 0x11b   :  { %v1582_v62 = vadd.f32 %v1518_v56, %v1351_v49  ;;  %v3059_v28 = vrot.slane %v2855_v59, 1  ;;  %v3339_v3 = vmul.f32 %v5031_v47, %v6422_v48  ;;  %v6442_v24 = vmul.f32 %v5031_v47, %v6427_v30 }
 0x11c   :  { %4620 = vmatmul.mubr.f32.gmra.mxu0 %v3883_v63  ;;  %v3780_v34 = vadd.f32 %v3622_v37, %v3296_v61  ;;  %v2346_v53 = vsel %vm1114_vm2, %v2344_v18, %v2345_v2  ;;  %v3060_v40 = vrot.slane %v6436_v50, 1  ;;  %v413_v14 = vmul.f32 %v6048_v31, %v4957_v19  ;;  %v6488_v18 = vld [vmem:[#allocation2 + $0x270] sm:$0xff] }
 0x11d   :  { %v2066_v13 = vadd.f32 %v1862_v8, %v1582_v62  ;;  %v3543_v38 = vrot.slane %v3339_v3, 2  ;;  %v3544_v39 = vrot.slane %v6442_v24, 2  ;;  %v503_v57 = vmul.f32 %v6048_v31, %v4959_v20 }
 0x11e   :  { %v3851_v44 = vadd.f32 %v5872_v25, %v3780_v34  ;;  %v3061_v37 = vsel %vm629_vm1, %v3059_v28, %v3060_v40  ;;  %v6459_v56 = vmul.f32 %v6066_v55, %v4959_v20  ;;  %v988_v0 = vmul.f32 %v6048_v31, %v4962_v21 }
 0x11f   :  { %v2550_v51 = vadd.f32 %v2346_v53, %v2066_v13  ;;  %v3545_v17 = vsel %vm1114_vm2, %v3543_v38, %v3544_v39  ;;  %v740_v43 = vrot.slane %v503_v57, 1  ;;  %v6468_v32 = vmul.f32 %v6066_v55, %v4962_v21  ;;  %v6506_v13 = vld [vmem:[#allocation2 + $0x278] sm:$0xff] }
 0x120   :  { %v3915_v4 = vmax.f32 %v3851_v44, 0.0  ;;  %v741_v31 = vrot.slane %v6459_v56, 1  ;;  %v1225_v22 = vrot.slane %v988_v0, 2  ;;  %v1550_v60 = vmul.f32 %v6268_v27, %v4967_v23  ;;  %v289_v0 = vld [vmem:[#allocation2 + $0xa0] sm:$0x3] }
 0x121   :  { %v2781_v46 = vadd.f32 %v2717_v10, %v2550_v51  ;;  %v1226_v16 = vrot.slane %v6468_v32, 2  ;;  %v1704_v52 = vmul.f32 %v6268_v27, %v4980_v29  ;;  %v6486_v33 = vmul.f32 %v6286_v54, %v4980_v29  ;;  %v187_v51 = vld [vmem:[%s8650_s0 + $0x1b0] sm:$0xff] }
 0x122   :  { %4668 = vmatmul.mubr.f32.gmra.mxu1 %v3915_v4  ;;  %v742_v49 = vsel %vm629_vm1, %v740_v43, %v741_v31  ;;  %v2188_v8 = vmul.f32 %v6268_v27, %v4995_v35  ;;  %v6497_v10 = vmul.f32 %v6286_v54, %v4995_v35  ;;  %v2749_v59 = vmul.f32 %v4997_v36, %v6488_v18  ;;  %v188_v43 = vld [vmem:[%s8650_s0 + $0x1b8] sm:$0xff] }
 0x123   :  { %v3265_v63 = vadd.f32 %v3061_v37, %v2781_v46  ;;  %v898_v61 = vadd.f32 %v742_v49, %v413_v14  ;;  %v1227_v62 = vsel %vm1114_vm2, %v1225_v22, %v1226_v16  ;;  %v1940_v28 = vrot.slane %v1704_v52, 1  ;;  %253 = vst.msk [vmem:[#allocation2 + $0x2d1] sm:$0xff] %vm198_vm0, %v187_v51  ;;  %254 = vst.msk [vmem:[#allocation2 + $0x2d9] sm:$0xff] %vm198_vm0, %v188_v43 }
 0x124   :  { %v1941_v3 = vrot.slane %v6486_v33, 1  ;;  %v2424_v34 = vrot.slane %v2188_v8, 2  ;;  %v2425_v53 = vrot.slane %v6497_v10, 2  ;;  %v2903_v38 = vmul.f32 %v5013_v42, %v6488_v18  ;;  %v1426_v8 = vld [vmem:[#allocation2 + $0xb8] sm:$0x3] }
 0x125   :  { %v3749_v57 = vadd.f32 %v3545_v17, %v3265_v63  ;;  %v1383_v44 = vadd.f32 %v1227_v62, %v898_v61  ;;  %v6512_v14 = vmul.f32 %v5013_v42, %v6506_v13  ;;  %v3387_v37 = vmul.f32 %v5031_v47, %v6488_v18 }
 0x126   :  { %v1942_v17 = vsel %vm629_vm1, %v1940_v28, %v1941_v3  ;;  %v2426_v11 = vsel %vm1114_vm2, %v2424_v34, %v2425_v53  ;;  %v3139_v26 = vrot.slane %v2903_v38, 1  ;;  %v6530_v4 = vmul.f32 %v5031_v47, %v6506_v13  ;;  %v2625_v34 = vld [vmem:[#allocation2 + $0xd0] sm:$0x3] }
 0x127   :  { %v3820_v22 = vadd.f32 %v5872_v25, %v3749_v57  ;;  %v1614_v46 = vadd.f32 %v1550_v60, %v1383_v44  ;;  %v8672_v52 = vrot.slane %v6512_v14, 1  ;;  %v3623_v49 = vrot.slane %v3387_v37, 2 }
 0x128   :  { %v8671_v63 = vrot.slane %v6530_v4, 2  ;;  %v382_v61 = vmul.f32 %v5987_v45, %v4957_v19  ;;  %v457_v62 = vmul.f32 %v4959_v20, %v289_v0  ;;  %v942_v28 = vmul.f32 %v4962_v21, %v289_v0 }
 0x129   :  { %v3884_v38 = vmax.f32 %v3820_v22, 0.0  ;;  %v2098_v51 = vadd.f32 %v1942_v17, %v1614_v46  ;;  %v3141_v25 = vsel %vm629_vm1, %v3139_v26, %v8672_v52  ;;  %v1519_v60 = vmul.f32 %v6207_v15, %v4967_v23  ;;  %v337_v22 = vld [vmem:[#allocation2 + $0x250] sm:$0x3] }
 0x12a   :  { %v3625_v57 = vsel %vm1114_vm2, %v3623_v49, %v8671_v63  ;;  %v663_v44 = vrot.slane %v457_v62, 1  ;;  %v1148_v45 = vrot.slane %v942_v28, 2  ;;  %v1658_v37 = vmul.f32 %v4980_v29, %v1426_v8 }
 0x12b   :  { %4622 = vmatprep.mubr.f32.mxu0 %v3884_v38  ;;  %v2582_v0 = vadd.f32 %v2426_v11, %v2098_v51  ;;  %v2142_v43 = vmul.f32 %v4995_v35, %v1426_v8  ;;  %v2718_v17 = vmul.f32 %v4997_v36, %v6427_v30  ;;  %v2857_v26 = vmul.f32 %v5013_v42, %v2625_v34 }
 0x12c   :  { %v664_v46 = vsel %vm629_vm1, %v661_v7, %v663_v44  ;;  %v1149_v49 = vsel %vm1114_vm2, %v1146_v41, %v1148_v45  ;;  %v1863_v62 = vrot.slane %v1658_v37, 1  ;;  %v3341_v28 = vmul.f32 %v5031_v47, %v2625_v34 }
 0x12d   :  { %v2813_v11 = vadd.f32 %v2749_v59, %v2582_v0  ;;  %v867_v38 = vadd.f32 %v664_v46, %v382_v61  ;;  %v2347_v8 = vrot.slane %v2142_v43, 2  ;;  %v3062_v51 = vrot.slane %v2857_v26, 1 }
 0x12e   :  { %v1864_v63 = vsel %vm629_vm1, %v1861_v12, %v1863_v62  ;;  %v3546_v52 = vrot.slane %v3341_v28, 2  ;;  %v414_v9 = vmul.f32 %v6066_v55, %v4957_v19  ;;  %v505_v7 = vmul.f32 %v4959_v20, %v337_v22 }
 0x12f   :  { %v3297_v44 = vadd.f32 %v3141_v25, %v2813_v11  ;;  %v1352_v41 = vadd.f32 %v1149_v49, %v867_v38  ;;  %v2348_v59 = vsel %vm1114_vm2, %v2345_v2, %v2347_v8  ;;  %v3063_v61 = vsel %vm629_vm1, %v3060_v40, %v3062_v51 }
 0x130   :  { %v3547_v12 = vsel %vm1114_vm2, %v3544_v39, %v3546_v52  ;;  %v743_v34 = vrot.slane %v505_v7, 1  ;;  %v990_v55 = vmul.f32 %v4962_v21, %v337_v22  ;;  %v1551_v25 = vmul.f32 %v6286_v54, %v4967_v23  ;;  %v6590_v52 = vld [vmem:[%s8652_s2] ss:$0 sm:$0xff] }
 0x131   :  { %v3781_v45 = vadd.f32 %v3625_v57, %v3297_v44  ;;  %v1583_v37 = vadd.f32 %v1519_v60, %v1352_v41  ;;  %v1706_v5 = vmul.f32 %v4980_v29, %v1474_v6  ;;  %v2190_v2 = vmul.f32 %v4995_v35, %v1474_v6 }
 0x132   :  { %v744_v50 = vsel %vm629_vm1, %v741_v31, %v743_v34  ;;  %v1228_v40 = vrot.slane %v990_v55, 2  ;;  %v2750_v24 = vmul.f32 %v4997_v36, %v6506_v13  ;;  %v2905_v39 = vmul.f32 %v5013_v42, %v2673_v58 }
 0x133   :  { %v3852_v60 = vadd.f32 %v6590_v52, %v3781_v45  ;;  %v2067_v57 = vadd.f32 %v1864_v63, %v1583_v37  ;;  %v899_v0 = vadd.f32 %v744_v50, %v414_v9  ;;  %v1943_v43 = vrot.slane %v1706_v5, 1 }
 0x134   :  { %v1229_v56 = vsel %vm1114_vm2, %v1226_v16, %v1228_v40  ;;  %v2427_v31 = vrot.slane %v2190_v2, 2  ;;  %v3142_v26 = vrot.slane %v2905_v39, 1  ;;  %v3389_v22 = vmul.f32 %v5031_v47, %v2673_v58 }
 0x135   :  { %v3916_v46 = vmax.f32 %v3852_v60, 0.0  ;;  %v2551_v49 = vadd.f32 %v2348_v59, %v2067_v57  ;;  %v1384_v62 = vadd.f32 %v1229_v56, %v899_v0  ;;  %v1944_v28 = vsel %vm629_vm1, %v1941_v3, %v1943_v43  ;;  %v6647_v60 = vld [vmem:[#allocation2 + $0xd8] sm:$0xff]  ;;  %v6652_v43 = vld [vmem:[#allocation2 + $0xe0] sm:$0xff] }
 0x136   :  { %v2428_v63 = vsel %vm1114_vm2, %v2425_v53, %v2427_v31  ;;  %v8726_v11 = vrot.slane %v6512_v14, 1  ;;  %v3626_v16 = vrot.slane %v3389_v22, 2  ;;  %v383_v38 = vmul.f32 %v6202_v1, %v4957_v19 }
 0x137   :  { %4670 = vmatprep.mubr.f32.mxu1 %v3916_v46  ;;  %v2782_v8 = vadd.f32 %v2718_v17, %v2551_v49  ;;  %v1615_v51 = vadd.f32 %v1551_v25, %v1384_v62  ;;  %v458_v33 = vmul.f32 %v6202_v1, %v4959_v20  ;;  %v6612_v3 = vmul.f32 %v6207_v15, %v4959_v20 }
 0x138   :  { %v3143_v32 = vsel %vm629_vm1, %v8726_v11, %v3142_v26  ;;  %v8727_v10 = vrot.slane %v6530_v4, 2  ;;  %v943_v14 = vmul.f32 %v6202_v1, %v4962_v21  ;;  %v6621_v9 = vmul.f32 %v6207_v15, %v4962_v21 }
 0x139   :  { %v1520_v17 = vmul.f32 %v6422_v48, %v4967_v23  ;;  %v3266_v7 = vadd.f32 %v3063_v61, %v2782_v8  ;;  %v2099_v6 = vadd.f32 %v1944_v28, %v1615_v51  ;;  %v665_v44 = vrot.slane %v458_v33, 1 }
 0x13a   :  { %v3627_v53 = vsel %vm1114_vm2, %v8727_v10, %v3626_v16  ;;  %v666_v41 = vrot.slane %v6612_v3, 1  ;;  %v1150_v59 = vrot.slane %v943_v14, 2  ;;  %v1151_v4 = vrot.slane %v6621_v9, 2  ;;  %v1477_v9 = vld [vmem:[#allocation2 + $0x280] sm:$0x3] }
 0x13b   :  { %v1659_v58 = vmul.f32 %v6422_v48, %v4980_v29  ;;  %v6631_v1 = vmul.f32 %v6427_v30, %v4980_v29  ;;  %v3750_v34 = vadd.f32 %v3547_v12, %v3266_v7  ;;  %v2583_v55 = vadd.f32 %v2428_v63, %v2099_v6 }
 0x13c   :  { %v667_v61 = vsel %vm629_vm1, %v665_v44, %v666_v41  ;;  %v2143_v25 = vmul.f32 %v6422_v48, %v4995_v35  ;;  %v1152_v37 = vsel %vm1114_vm2, %v1150_v59, %v1151_v4  ;;  %v6645_v12 = vmul.f32 %v6427_v30, %v4995_v35 }
 0x13d   :  { %v868_v45 = vadd.f32 %v667_v61, %v383_v38  ;;  %v1865_v5 = vrot.slane %v1659_v58, 1  ;;  %v1866_v2 = vrot.slane %v6631_v1, 1  ;;  %v3821_v50 = vadd.f32 %v6590_v52, %v3750_v34  ;;  %v157_v34 = vld [vmem:[%s8650_s0 + $0xc0] sm:$0xff]  ;;  %v2676_v1 = vld [vmem:[#allocation2 + $0x298] sm:$0x3] }
 0x13e   :  { %v2814_v40 = vadd.f32 %v2750_v24, %v2583_v55  ;;  %v2349_v39 = vrot.slane %v2143_v25, 2  ;;  %v2719_v56 = vmul.f32 %v4997_v36, %v6647_v60  ;;  %v2858_v24 = vmul.f32 %v5013_v42, %v6647_v60  ;;  %v158_v55 = vld [vmem:[%s8650_s0 + $0xc8] sm:$0xff]  ;;  %223 = vst.msk [vmem:[#allocation2 + $0x139] sm:$0xff] %vm198_vm0, %v157_v34 }
 0x13f   :  { %v1353_v57 = vadd.f32 %v1152_v37, %v868_v45  ;;  %v1867_v0 = vsel %vm629_vm1, %v1865_v5, %v1866_v2  ;;  %v3885_v31 = vmax.f32 %v3821_v50, 0.0  ;;  %v2350_v22 = vrot.slane %v6645_v12, 2  ;;  %224 = vst.msk [vmem:[#allocation2 + $0x141] sm:$0xff] %vm198_vm0, %v158_v55 }
 0x140   :  { %v3298_v26 = vadd.f32 %v3143_v32, %v2814_v40  ;;  %v6661_v46 = vmul.f32 %v5013_v42, %v6652_v43  ;;  %v3064_v62 = vrot.slane %v2858_v24, 1  ;;  %v3342_v28 = vmul.f32 %v5031_v47, %v6647_v60 }
 0x141   :  { %v1584_v49 = vadd.f32 %v1520_v17, %v1353_v57  ;;  %v6667_v63 = vmul.f32 %v5031_v47, %v6652_v43  ;;  %4623 = vmatmul.mubr.f32.gmra.mxu0 %v3885_v31  ;;  %v2351_v32 = vsel %vm1114_vm2, %v2349_v39, %v2350_v22  ;;  %v415_v38 = vmul.f32 %v6268_v27, %v4957_v19  ;;  %v6713_v39 = vld [vmem:[#allocation2 + $0x288] sm:$0xff] }
 0x142   :  { %v3782_v11 = vadd.f32 %v3627_v53, %v3298_v26  ;;  %v3065_v16 = vrot.slane %v6661_v46, 1  ;;  %v3548_v51 = vrot.slane %v3342_v28, 2  ;;  %v506_v10 = vmul.f32 %v6268_v27, %v4959_v20 }
 0x143   :  { %v2068_v8 = vadd.f32 %v1867_v0, %v1584_v49  ;;  %v3549_v33 = vrot.slane %v6667_v63, 2  ;;  %v6684_v17 = vmul.f32 %v6286_v54, %v4959_v20  ;;  %v991_v7 = vmul.f32 %v6268_v27, %v4962_v21 }
 0x144   :  { %v3853_v14 = vadd.f32 %v6590_v52, %v3782_v11  ;;  %v3066_v53 = vsel %vm629_vm1, %v3064_v62, %v3065_v16  ;;  %v745_v59 = vrot.slane %v506_v10, 1  ;;  %v6693_v58 = vmul.f32 %v6286_v54, %v4962_v21 }
 0x145   :  { %v2552_v6 = vadd.f32 %v2351_v32, %v2068_v8  ;;  %v3550_v44 = vsel %vm1114_vm2, %v3548_v51, %v3549_v33  ;;  %v746_v27 = vrot.slane %v6684_v17, 1  ;;  %v1230_v25 = vrot.slane %v991_v7, 2  ;;  %v6731_v8 = vld [vmem:[#allocation2 + $0x290] sm:$0xff]  ;;  %v292_v7 = vld [vmem:[#allocation2 + $0xb8] sm:$0x3] }
 0x146   :  { %v3917_v61 = vmax.f32 %v3853_v14, 0.0  ;;  %v1552_v45 = vmul.f32 %v6488_v18, %v4967_v23  ;;  %v1231_v5 = vrot.slane %v6693_v58, 2  ;;  %v1707_v50 = vmul.f32 %v6488_v18, %v4980_v29 }
 0x147   :  { %v2783_v37 = vadd.f32 %v2719_v56, %v2552_v6  ;;  %v6711_v40 = vmul.f32 %v6506_v13, %v4980_v29  ;;  %v747_v57 = vsel %vm629_vm1, %v745_v59, %v746_v27  ;;  %v2191_v0 = vmul.f32 %v6488_v18, %v4995_v35  ;;  %v189_v6 = vld [vmem:[%s8650_s0 + $0x1c0] sm:$0xff]  ;;  %v190_v59 = vld [vmem:[%s8650_s0 + $0x1c8] sm:$0xff] }
 0x148   :  { %4671 = vmatmul.mubr.f32.gmra.mxu1 %v3917_v61  ;;  %v6722_v56 = vmul.f32 %v6506_v13, %v4995_v35  ;;  %v2751_v24 = vmul.f32 %v4997_v36, %v6713_v39  ;;  %v900_v26 = vadd.f32 %v747_v57, %v415_v38  ;;  %v1232_v49 = vsel %vm1114_vm2, %v1230_v25, %v1231_v5 }
 0x149   :  { %v3267_v31 = vadd.f32 %v3066_v53, %v2783_v37  ;;  %v1945_v62 = vrot.slane %v1707_v50, 1  ;;  %v1946_v28 = vrot.slane %v6711_v40, 1  ;;  %v2429_v11 = vrot.slane %v2191_v0, 2  ;;  %255 = vst.msk [vmem:[#allocation2 + $0x2e9] sm:$0xff] %vm198_vm0, %v189_v6  ;;  %256 = vst.msk [vmem:[#allocation2 + $0x2f1] sm:$0xff] %vm198_vm0, %v190_v59 }
 0x14a   :  { %v8675_v32 = vrot.slane %v6722_v56, 2  ;;  %v2906_v51 = vmul.f32 %v5013_v42, %v6713_v39  ;;  %v1385_v14 = vadd.f32 %v1232_v49, %v900_v26  ;;  %v6737_v38 = vmul.f32 %v5013_v42, %v6731_v8  ;;  %v1429_v0 = vld [vmem:[#allocation2 + $0xd0] sm:$0x3] }
 0x14b   :  { %v3751_v10 = vadd.f32 %v3550_v44, %v3267_v31  ;;  %v3390_v53 = vmul.f32 %v5031_v47, %v6713_v39  ;;  %v1947_v44 = vsel %vm629_vm1, %v1945_v62, %v1946_v28  ;;  %v6755_v61 = vmul.f32 %v5031_v47, %v6731_v8 }
 0x14c   :  { %v2431_v34 = vsel %vm1114_vm2, %v2429_v11, %v8675_v32  ;;  %v3144_v55 = vrot.slane %v2906_v51, 1  ;;  %v1616_v37 = vadd.f32 %v1552_v45, %v1385_v14  ;;  %v8673_v50 = vrot.slane %v6737_v38, 1  ;;  %v2628_v11 = vld [vmem:[#allocation2 + $0xe8] sm:$0x3] }
 0x14d   :  { %v3822_v25 = vadd.f32 %v6590_v52, %v3751_v10  ;;  %v3628_v57 = vrot.slane %v3390_v53, 2  ;;  %v8674_v31 = vrot.slane %v6755_v61, 2  ;;  %v384_v26 = vmul.f32 %v6207_v15, %v4957_v19 }
 0x14e   :  { %v460_v49 = vmul.f32 %v4959_v20, %v292_v7  ;;  %v945_v62 = vmul.f32 %v4962_v21, %v292_v7  ;;  %v2100_v6 = vadd.f32 %v1947_v44, %v1616_v37  ;;  %v3146_v45 = vsel %vm629_vm1, %v3144_v55, %v8673_v50  ;;  %v340_v37 = vld [vmem:[#allocation2 + $0x268] sm:$0x3] }
 0x14f   :  { %v3886_v51 = vmax.f32 %v3822_v25, 0.0  ;;  %v1521_v10 = vmul.f32 %v6427_v30, %v4967_v23  ;;  %v3630_v14 = vsel %vm1114_vm2, %v3628_v57, %v8674_v31  ;;  %v1661_v59 = vmul.f32 %v4980_v29, %v1429_v0 }
 0x150   :  { %v668_v53 = vrot.slane %v460_v49, 1  ;;  %v1153_v15 = vrot.slane %v945_v62, 2  ;;  %v2584_v7 = vadd.f32 %v2431_v34, %v2100_v6  ;;  %v2145_v25 = vmul.f32 %v4995_v35, %v1429_v0 }
 0x151   :  { %4625 = vmatprep.mubr.f32.mxu0 %v3886_v51  ;;  %v2720_v44 = vmul.f32 %v4997_v36, %v6652_v43  ;;  %v2860_v55 = vmul.f32 %v5013_v42, %v2628_v11  ;;  %v1868_v49 = vrot.slane %v1661_v59, 1  ;;  %v3344_v62 = vmul.f32 %v5031_v47, %v2628_v11 }
 0x152   :  { %v669_v50 = vsel %vm629_vm1, %v666_v41, %v668_v53  ;;  %v1154_v57 = vsel %vm1114_vm2, %v1151_v4, %v1153_v15  ;;  %v2815_v34 = vadd.f32 %v2751_v24, %v2584_v7  ;;  %v2352_v0 = vrot.slane %v2145_v25, 2 }
 0x153   :  { %v869_v51 = vadd.f32 %v669_v50, %v384_v26  ;;  %v3067_v6 = vrot.slane %v2860_v55, 1  ;;  %v1869_v31 = vsel %vm629_vm1, %v1866_v2, %v1868_v49  ;;  %v3551_v32 = vrot.slane %v3344_v62, 2 }
 0x154   :  { %v416_v3 = vmul.f32 %v6286_v54, %v4957_v19  ;;  %v508_v41 = vmul.f32 %v4959_v20, %v340_v37  ;;  %v3299_v53 = vadd.f32 %v3146_v45, %v2815_v34  ;;  %v2353_v24 = vsel %vm1114_vm2, %v2350_v22, %v2352_v0 }
 0x155   :  { %v1354_v4 = vadd.f32 %v1154_v57, %v869_v51  ;;  %v3068_v50 = vsel %vm629_vm1, %v3065_v16, %v3067_v6  ;;  %v3552_v2 = vsel %vm1114_vm2, %v3549_v33, %v3551_v32  ;;  %v993_v54 = vmul.f32 %v4962_v21, %v340_v37 }
 0x156   :  { %v748_v26 = vrot.slane %v508_v41, 1  ;;  %v1553_v11 = vmul.f32 %v6506_v13, %v4967_v23  ;;  %v3783_v45 = vadd.f32 %v3630_v14, %v3299_v53  ;;  %v1709_v12 = vmul.f32 %v4980_v29, %v1477_v9 }
 0x157   :  { %v1585_v15 = vadd.f32 %v1521_v10, %v1354_v4  ;;  %v2193_v22 = vmul.f32 %v4995_v35, %v1477_v9  ;;  %v1233_v16 = vrot.slane %v993_v54, 2  ;;  %v2752_v63 = vmul.f32 %v4997_v36, %v6731_v8 }
 0x158   :  { %v749_v46 = vsel %vm629_vm1, %v746_v27, %v748_v26  ;;  %v2908_v33 = vmul.f32 %v5013_v42, %v2676_v1  ;;  %v3854_v32 = vadd.f32 %v6590_v52, %v3783_v45  ;;  %v1948_v14 = vrot.slane %v1709_v12, 1 }
 0x159   :  { %v2069_v59 = vadd.f32 %v1869_v31, %v1585_v15  ;;  %v901_v7 = vadd.f32 %v749_v46, %v416_v3  ;;  %v1234_v10 = vsel %vm1114_vm2, %v1231_v5, %v1233_v16  ;;  %v2432_v25 = vrot.slane %v2193_v22, 2 }
 0x15a   :  { %v3147_v55 = vrot.slane %v2908_v33, 1  ;;  %v3392_v17 = vmul.f32 %v5031_v47, %v2676_v1  ;;  %v3918_v27 = vmax.f32 %v3854_v32, 0.0  ;;  %v1949_v49 = vsel %vm629_vm1, %v1946_v28, %v1948_v14 }
 0x15b   :  { %v2553_v37 = vadd.f32 %v2353_v24, %v2069_v59  ;;  %v1386_v57 = vadd.f32 %v1234_v10, %v901_v7  ;;  %v8728_v62 = vrot.slane %v6722_v56, 2  ;;  %v8729_v34 = vrot.slane %v6737_v38, 1  ;;  %v6867_v59 = vld [vmem:[#allocation2 + $0xf0] sm:$0xff]  ;;  %v6872_v10 = vld [vmem:[#allocation2 + $0xf8] sm:$0xff] }
 0x15c   :  { %v3631_v5 = vrot.slane %v3392_v17, 2  ;;  %v385_v51 = vmul.f32 %v6422_v48, %v4957_v19  ;;  %4673 = vmatprep.mubr.f32.mxu1 %v3918_v27  ;;  %v461_v40 = vmul.f32 %v6422_v48, %v4959_v20  ;;  %v6832_v28 = vmul.f32 %v6427_v30, %v4959_v20 }
 0x15d   :  { %v2433_v31 = vsel %vm1114_vm2, %v8728_v62, %v2432_v25  ;;  %v3148_v58 = vsel %vm629_vm1, %v8729_v34, %v3147_v55  ;;  %v2784_v0 = vadd.f32 %v2720_v44, %v2553_v37  ;;  %v1617_v6 = vadd.f32 %v1553_v11, %v1386_v57 }
 0x15e   :  { %v8730_v56 = vrot.slane %v6755_v61, 2  ;;  %v946_v3 = vmul.f32 %v6422_v48, %v4962_v21  ;;  %v6841_v41 = vmul.f32 %v6427_v30, %v4962_v21  ;;  %v1522_v44 = vmul.f32 %v6647_v60, %v4967_v23 }
 0x15f   :  { %v3268_v9 = vadd.f32 %v3068_v50, %v2784_v0  ;;  %v2101_v53 = vadd.f32 %v1949_v49, %v1617_v6  ;;  %v670_v4 = vrot.slane %v461_v40, 1  ;;  %v671_v24 = vrot.slane %v6832_v28, 1 }
 0x160   :  { %v3632_v38 = vsel %vm1114_vm2, %v8730_v56, %v3631_v5  ;;  %v1155_v1 = vrot.slane %v946_v3, 2  ;;  %v1156_v61 = vrot.slane %v6841_v41, 2  ;;  %v1662_v26 = vmul.f32 %v6647_v60, %v4980_v29  ;;  %v1480_v41 = vld [vmem:[#allocation2 + $0x298] sm:$0x3] }
 0x161   :  { %v6851_v48 = vmul.f32 %v6652_v43, %v4980_v29  ;;  %v3752_v54 = vadd.f32 %v3552_v2, %v3268_v9  ;;  %v2585_v11 = vadd.f32 %v2433_v31, %v2101_v53  ;;  %v672_v50 = vsel %vm629_vm1, %v670_v4, %v671_v24 }
 0x162   :  { %v2146_v45 = vmul.f32 %v6647_v60, %v4995_v35  ;;  %v870_v15 = vadd.f32 %v672_v50, %v385_v51  ;;  %v1157_v12 = vsel %vm1114_vm2, %v1155_v1, %v1156_v61  ;;  %v1870_v22 = vrot.slane %v1662_v26, 1 }
 0x163   :  { %v1871_v46 = vrot.slane %v6851_v48, 1  ;;  %v3823_v16 = vadd.f32 %v6590_v52, %v3752_v54  ;;  %v2816_v33 = vadd.f32 %v2752_v63, %v2585_v11  ;;  %v6865_v2 = vmul.f32 %v6652_v43, %v4995_v35  ;;  %v159_v54 = vld [vmem:[%s8650_s0 + $0xd0] sm:$0xff]  ;;  %v160_v11 = vld [vmem:[%s8650_s0 + $0xd8] sm:$0xff] }
 0x164   :  { %v2354_v32 = vrot.slane %v2146_v45, 2  ;;  %v1355_v7 = vadd.f32 %v1157_v12, %v870_v15  ;;  %v2721_v25 = vmul.f32 %v4997_v36, %v6867_v59  ;;  %v2861_v63 = vmul.f32 %v5013_v42, %v6867_v59  ;;  %225 = vst.msk [vmem:[#allocation2 + $0x151] sm:$0xff] %vm198_vm0, %v159_v54  ;;  %226 = vst.msk [vmem:[#allocation2 + $0x159] sm:$0xff] %vm198_vm0, %v160_v11  ;;  %v2679_v48 = vld [vmem:[#allocation2 + $0x2b0] sm:$0x3] }
 0x165   :  { %v1872_v14 = vsel %vm629_vm1, %v1870_v22, %v1871_v46  ;;  %v3887_v55 = vmax.f32 %v3823_v16, 0.0  ;;  %v3300_v17 = vadd.f32 %v3148_v58, %v2816_v33  ;;  %v2355_v27 = vrot.slane %v6865_v2, 2 }
 0x166   :  { %v6881_v37 = vmul.f32 %v5013_v42, %v6872_v10  ;;  %v1586_v57 = vadd.f32 %v1522_v44, %v1355_v7  ;;  %v3069_v49 = vrot.slane %v2861_v63, 1  ;;  %v3345_v62 = vmul.f32 %v5031_v47, %v6867_v59 }
 0x167   :  { %v6887_v31 = vmul.f32 %v5031_v47, %v6872_v10  ;;  %4626 = vmatmul.mubr.f32.gmra.mxu0 %v3887_v55  ;;  %v3784_v34 = vadd.f32 %v3632_v38, %v3300_v17  ;;  %v2356_v58 = vsel %vm1114_vm2, %v2354_v32, %v2355_v27  ;;  %v417_v51 = vmul.f32 %v6488_v18, %v4957_v19  ;;  %v6933_v32 = vld [vmem:[#allocation2 + $0x2a0] sm:$0xff] }
 0x168   :  { %v3070_v5 = vrot.slane %v6881_v37, 1  ;;  %v2070_v0 = vadd.f32 %v1872_v14, %v1586_v57  ;;  %v3553_v6 = vrot.slane %v3345_v62, 2  ;;  %v509_v56 = vmul.f32 %v6488_v18, %v4959_v20 }
 0x169   :  { %v3554_v40 = vrot.slane %v6887_v31, 2  ;;  %v3855_v3 = vadd.f32 %v6590_v52, %v3784_v34  ;;  %v6904_v44 = vmul.f32 %v6506_v13, %v4959_v20  ;;  %v994_v9 = vmul.f32 %v6488_v18, %v4962_v21 }
 0x16a   :  { %v3071_v38 = vsel %vm629_vm1, %v3069_v49, %v3070_v5  ;;  %v2554_v53 = vadd.f32 %v2356_v58, %v2070_v0  ;;  %v750_v1 = vrot.slane %v509_v56, 1  ;;  %v6913_v26 = vmul.f32 %v6506_v13, %v4962_v21  ;;  %v6951_v0 = vld [vmem:[#allocation2 + $0x2a8] sm:$0xff] }
 0x16b   :  { %v3555_v4 = vsel %vm1114_vm2, %v3553_v6, %v3554_v40  ;;  %v3919_v50 = vmax.f32 %v3855_v3, 0.0  ;;  %v751_v18 = vrot.slane %v6904_v44, 1  ;;  %v1235_v45 = vrot.slane %v994_v9, 2  ;;  %v295_v9 = vld [vmem:[#allocation2 + $0xd0] sm:$0x3] }
 0x16c   :  { %v1554_v15 = vmul.f32 %v6713_v39, %v4967_v23  ;;  %v2785_v12 = vadd.f32 %v2721_v25, %v2554_v53  ;;  %v1236_v22 = vrot.slane %v6913_v26, 2  ;;  %v1710_v16 = vmul.f32 %v6713_v39, %v4980_v29  ;;  %v191_v53 = vld [vmem:[%s8650_s0 + $0x1d0] sm:$0xff] }
 0x16d   :  { %v6931_v33 = vmul.f32 %v6731_v8, %v4980_v29  ;;  %4674 = vmatmul.mubr.f32.gmra.mxu1 %v3919_v50  ;;  %v752_v7 = vsel %vm629_vm1, %v750_v1, %v751_v18  ;;  %v2194_v14 = vmul.f32 %v6713_v39, %v4995_v35  ;;  %v6942_v25 = vmul.f32 %v6731_v8, %v4995_v35  ;;  %v192_v1 = vld [vmem:[%s8650_s0 + $0x1d8] sm:$0xff] }
 0x16e   :  { %v2753_v63 = vmul.f32 %v4997_v36, %v6933_v32  ;;  %v3269_v55 = vadd.f32 %v3071_v38, %v2785_v12  ;;  %v902_v17 = vadd.f32 %v752_v7, %v417_v51  ;;  %v1237_v57 = vsel %vm1114_vm2, %v1235_v45, %v1236_v22  ;;  %257 = vst.msk [vmem:[#allocation2 + $0x301] sm:$0xff] %vm198_vm0, %v191_v53 }
 0x16f   :  { %v1950_v49 = vrot.slane %v1710_v16, 1  ;;  %v1951_v62 = vrot.slane %v6931_v33, 1  ;;  %v2434_v34 = vrot.slane %v2194_v14, 2  ;;  %v8678_v58 = vrot.slane %v6942_v25, 2  ;;  %258 = vst.msk [vmem:[#allocation2 + $0x309] sm:$0xff] %vm198_vm0, %v192_v1 }
 0x170   :  { %v2909_v6 = vmul.f32 %v5013_v42, %v6933_v32  ;;  %v3753_v56 = vadd.f32 %v3555_v4, %v3269_v55  ;;  %v1387_v3 = vadd.f32 %v1237_v57, %v902_v17  ;;  %v6957_v51 = vmul.f32 %v5013_v42, %v6951_v0  ;;  %v1432_v14 = vld [vmem:[#allocation2 + $0xe8] sm:$0x3] }
 0x171   :  { %v3393_v38 = vmul.f32 %v5031_v47, %v6933_v32  ;;  %v1952_v4 = vsel %vm629_vm1, %v1950_v49, %v1951_v62  ;;  %v2436_v54 = vsel %vm1114_vm2, %v2434_v34, %v8678_v58  ;;  %v6975_v50 = vmul.f32 %v5031_v47, %v6951_v0  ;;  %v2631_v34 = vld [vmem:[#allocation2 + $0x100] sm:$0x3] }
 0x172   :  { %v3149_v11 = vrot.slane %v2909_v6, 1  ;;  %v3824_v45 = vadd.f32 %v6590_v52, %v3753_v56  ;;  %v1618_v12 = vadd.f32 %v1554_v15, %v1387_v3  ;;  %v8676_v16 = vrot.slane %v6957_v51, 1 }
 0x173   :  { %v3633_v7 = vrot.slane %v3393_v38, 2  ;;  %v8677_v55 = vrot.slane %v6975_v50, 2  ;;  %v386_v17 = vmul.f32 %v6427_v30, %v4957_v19  ;;  %v463_v57 = vmul.f32 %v4959_v20, %v295_v9 }
 0x174   :  { %v948_v49 = vmul.f32 %v4962_v21, %v295_v9  ;;  %v3888_v6 = vmax.f32 %v3824_v45, 0.0  ;;  %v2102_v53 = vadd.f32 %v1952_v4, %v1618_v12  ;;  %v3151_v15 = vsel %vm629_vm1, %v3149_v11, %v8676_v16  ;;  %v343_v12 = vld [vmem:[#allocation2 + $0x280] sm:$0x3] }
 0x175   :  { %v1523_v56 = vmul.f32 %v6652_v43, %v4967_v23  ;;  %v3635_v3 = vsel %vm1114_vm2, %v3633_v7, %v8677_v55  ;;  %v673_v38 = vrot.slane %v463_v57, 1  ;;  %v1664_v1 = vmul.f32 %v4980_v29, %v1432_v14 }
 0x176   :  { %v1158_v30 = vrot.slane %v948_v49, 2  ;;  %4628 = vmatprep.mubr.f32.mxu0 %v3888_v6  ;;  %v2586_v9 = vadd.f32 %v2436_v54, %v2102_v53  ;;  %v2148_v45 = vmul.f32 %v4995_v35, %v1432_v14  ;;  %v2722_v4 = vmul.f32 %v4997_v36, %v6872_v10 }
 0x177   :  { %v2863_v11 = vmul.f32 %v5013_v42, %v2631_v34  ;;  %v674_v16 = vsel %vm629_vm1, %v671_v24, %v673_v38  ;;  %v1873_v57 = vrot.slane %v1664_v1, 1  ;;  %v3347_v49 = vmul.f32 %v5031_v47, %v2631_v34 }
 0x178   :  { %v1159_v7 = vsel %vm1114_vm2, %v1156_v61, %v1158_v30  ;;  %v2817_v54 = vadd.f32 %v2753_v63, %v2586_v9  ;;  %v871_v6 = vadd.f32 %v674_v16, %v386_v17  ;;  %v2357_v14 = vrot.slane %v2148_v45, 2 }
 0x179   :  { %v3072_v53 = vrot.slane %v2863_v11, 1  ;;  %v1874_v55 = vsel %vm629_vm1, %v1871_v46, %v1873_v57  ;;  %v3556_v58 = vrot.slane %v3347_v49, 2  ;;  %v418_v28 = vmul.f32 %v6506_v13, %v4957_v19 }
 0x17a   :  { %v511_v24 = vmul.f32 %v4959_v20, %v343_v12  ;;  %v3301_v38 = vadd.f32 %v3151_v15, %v2817_v54  ;;  %v1356_v61 = vadd.f32 %v1159_v7, %v871_v6  ;;  %v2358_v63 = vsel %vm1114_vm2, %v2355_v27, %v2357_v14 }
 0x17b   :  { %v3073_v16 = vsel %vm629_vm1, %v3070_v5, %v3072_v53  ;;  %v3557_v46 = vsel %vm1114_vm2, %v3554_v40, %v3556_v58  ;;  %v996_v13 = vmul.f32 %v4962_v21, %v343_v12  ;;  %v1555_v34 = vmul.f32 %v6731_v8, %v4967_v23 }
 0x17c   :  { %v753_v17 = vrot.slane %v511_v24, 1  ;;  %v3785_v15 = vadd.f32 %v3635_v3, %v3301_v38  ;;  %v1587_v30 = vadd.f32 %v1523_v56, %v1356_v61  ;;  %v1712_v2 = vmul.f32 %v4980_v29, %v1480_v41 }
 0x17d   :  { %v2196_v27 = vmul.f32 %v4995_v35, %v1480_v41  ;;  %v1238_v5 = vrot.slane %v996_v13, 2  ;;  %v2754_v31 = vmul.f32 %v4997_v36, %v6951_v0  ;;  %v2911_v40 = vmul.f32 %v5013_v42, %v2679_v48 }
 0x17e   :  { %v754_v37 = vsel %vm629_vm1, %v751_v18, %v753_v17  ;;  %v3856_v58 = vadd.f32 %v6590_v52, %v3785_v15  ;;  %v2071_v1 = vadd.f32 %v1874_v55, %v1587_v30  ;;  %v1953_v3 = vrot.slane %v1712_v2, 1 }
 0x17f   :  { %v903_v9 = vadd.f32 %v754_v37, %v418_v28  ;;  %v1239_v56 = vsel %vm1114_vm2, %v1236_v22, %v1238_v5  ;;  %v2437_v45 = vrot.slane %v2196_v27, 2  ;;  %v3152_v11 = vrot.slane %v2911_v40, 1 }
 0x180   :  { %v3395_v44 = vmul.f32 %v5031_v47, %v2679_v48  ;;  %v3920_v18 = vmax.f32 %v3856_v58, 0.0  ;;  %v2555_v12 = vadd.f32 %v2358_v63, %v2071_v1  ;;  %v1954_v57 = vsel %vm629_vm1, %v1951_v62, %v1953_v3  ;;  %v7087_v1 = vld [vmem:[#allocation2 + $0x108] sm:$0xff] }
 0x181   :  { %v1388_v7 = vadd.f32 %v1239_v56, %v903_v9  ;;  %v8731_v49 = vrot.slane %v6942_v25, 2  ;;  %v8732_v54 = vrot.slane %v6957_v51, 1  ;;  %v387_v6 = vmul.f32 %v6647_v60, %v4957_v19  ;;  %v7092_v56 = vld [vmem:[#allocation2 + $0x110] sm:$0xff] }
 0x182   :  { %v3636_v22 = vrot.slane %v3395_v44, 2  ;;  %4676 = vmatprep.mubr.f32.mxu1 %v3920_v18  ;;  %v2786_v14 = vadd.f32 %v2722_v4, %v2555_v12  ;;  %v464_v33 = vmul.f32 %v6647_v60, %v4959_v20  ;;  %v7052_v62 = vmul.f32 %v6652_v43, %v4959_v20 }
 0x183   :  { %v2438_v55 = vsel %vm1114_vm2, %v8731_v49, %v2437_v45  ;;  %v3153_v26 = vsel %vm629_vm1, %v8732_v54, %v3152_v11  ;;  %v1619_v53 = vadd.f32 %v1555_v34, %v1388_v7  ;;  %v8733_v25 = vrot.slane %v6975_v50, 2 }
 0x184   :  { %v949_v28 = vmul.f32 %v6647_v60, %v4962_v21  ;;  %v7061_v24 = vmul.f32 %v6652_v43, %v4962_v21  ;;  %v1524_v4 = vmul.f32 %v6867_v59, %v4967_v23  ;;  %v3270_v41 = vadd.f32 %v3073_v16, %v2786_v14 }
 0x185   :  { %v3637_v51 = vsel %vm1114_vm2, %v8733_v25, %v3636_v22  ;;  %v2103_v38 = vadd.f32 %v1954_v57, %v1619_v53  ;;  %v675_v61 = vrot.slane %v464_v33, 1  ;;  %v676_v63 = vrot.slane %v7052_v62, 1 }
 0x186   :  { %v1160_v48 = vrot.slane %v949_v28, 2  ;;  %v1161_v50 = vrot.slane %v7061_v24, 2  ;;  %v1665_v17 = vmul.f32 %v6867_v59, %v4980_v29  ;;  %v7071_v60 = vmul.f32 %v6872_v10, %v4980_v29  ;;  %v1483_v24 = vld [vmem:[#allocation2 + $0x2b0] sm:$0x3] }
 0x187   :  { %v3754_v13 = vadd.f32 %v3557_v46, %v3270_v41  ;;  %v2587_v34 = vadd.f32 %v2438_v55, %v2103_v38  ;;  %v677_v16 = vsel %vm629_vm1, %v675_v61, %v676_v63  ;;  %v2149_v15 = vmul.f32 %v6867_v59, %v4995_v35 }
 0x188   :  { %v872_v30 = vadd.f32 %v677_v16, %v387_v6  ;;  %v1162_v2 = vsel %vm1114_vm2, %v1160_v48, %v1161_v50  ;;  %v1875_v27 = vrot.slane %v1665_v17, 1  ;;  %v1876_v37 = vrot.slane %v7071_v60, 1  ;;  %v2682_v60 = vld [vmem:[#allocation2 + $0x2c8] sm:$0x3] }
 0x189   :  { %v3825_v5 = vadd.f32 %v6590_v52, %v3754_v13  ;;  %v2818_v40 = vadd.f32 %v2754_v31, %v2587_v34  ;;  %v7085_v46 = vmul.f32 %v6872_v10, %v4995_v35  ;;  %v2359_v58 = vrot.slane %v2149_v15, 2  ;;  %v161_v13 = vld [vmem:[%s8650_s0 + $0xe0] sm:$0xff]  ;;  %v162_v34 = vld [vmem:[%s8650_s0 + $0xe8] sm:$0xff] }
 0x18a   :  { %v1357_v9 = vadd.f32 %v1162_v2, %v872_v30  ;;  %v1877_v3 = vsel %vm629_vm1, %v1875_v27, %v1876_v37  ;;  %v2723_v45 = vmul.f32 %v4997_v36, %v7087_v1  ;;  %v2864_v31 = vmul.f32 %v5013_v42, %v7087_v1  ;;  %227 = vst.msk [vmem:[#allocation2 + $0x169] sm:$0xff] %vm198_vm0, %v161_v13 }
 0x18b   :  { %v3889_v11 = vmax.f32 %v3825_v5, 0.0  ;;  %v3302_v44 = vadd.f32 %v3153_v26, %v2818_v40  ;;  %v2360_v18 = vrot.slane %v7085_v46, 2  ;;  %v7101_v12 = vmul.f32 %v5013_v42, %v7092_v56  ;;  %228 = vst.msk [vmem:[#allocation2 + $0x171] sm:$0xff] %vm198_vm0, %v162_v34 }
 0x18c   :  { %v1588_v7 = vadd.f32 %v1524_v4, %v1357_v9  ;;  %v3074_v57 = vrot.slane %v2864_v31, 1  ;;  %v3348_v49 = vmul.f32 %v5031_v47, %v7087_v1  ;;  %v7107_v55 = vmul.f32 %v5031_v47, %v7092_v56 }
 0x18d   :  { %4629 = vmatmul.mubr.f32.gmra.mxu0 %v3889_v11  ;;  %v3786_v54 = vadd.f32 %v3637_v51, %v3302_v44  ;;  %v2361_v26 = vsel %vm1114_vm2, %v2359_v58, %v2360_v18  ;;  %v3075_v22 = vrot.slane %v7101_v12, 1  ;;  %v419_v6 = vmul.f32 %v6713_v39, %v4957_v19  ;;  %v7153_v58 = vld [vmem:[#allocation2 + $0x2b8] sm:$0xff] }
 0x18e   :  { %v2072_v14 = vadd.f32 %v1877_v3, %v1588_v7  ;;  %v3558_v53 = vrot.slane %v3348_v49, 2  ;;  %v3559_v33 = vrot.slane %v7107_v55, 2  ;;  %v512_v25 = vmul.f32 %v6713_v39, %v4959_v20 }
 0x18f   :  { %v3857_v28 = vadd.f32 %v6590_v52, %v3786_v54  ;;  %v3076_v51 = vsel %vm629_vm1, %v3074_v57, %v3075_v22  ;;  %v7124_v4 = vmul.f32 %v6731_v8, %v4959_v20  ;;  %v997_v41 = vmul.f32 %v6713_v39, %v4962_v21 }
 0x190   :  { %v2556_v38 = vadd.f32 %v2361_v26, %v2072_v14  ;;  %v3560_v61 = vsel %vm1114_vm2, %v3558_v53, %v3559_v33  ;;  %v755_v48 = vrot.slane %v512_v25, 1  ;;  %v7133_v17 = vmul.f32 %v6731_v8, %v4962_v21  ;;  %v7171_v14 = vld [vmem:[#allocation2 + $0x2c0] sm:$0xff] }
 0x191   :  { %v3921_v16 = vmax.f32 %v3857_v28, 0.0  ;;  %v756_v39 = vrot.slane %v7124_v4, 1  ;;  %v1240_v15 = vrot.slane %v997_v41, 2  ;;  %v1556_v30 = vmul.f32 %v6933_v32, %v4967_v23  ;;  %v298_v41 = vld [vmem:[#allocation2 + $0xe8] sm:$0x3] }
 0x192   :  { %v2787_v2 = vadd.f32 %v2723_v45, %v2556_v38  ;;  %v1241_v27 = vrot.slane %v7133_v17, 2  ;;  %v1713_v5 = vmul.f32 %v6933_v32, %v4980_v29  ;;  %v7151_v40 = vmul.f32 %v6951_v0, %v4980_v29  ;;  %v193_v38 = vld [vmem:[%s8650_s0 + $0x1e0] sm:$0xff] }
 0x193   :  { %4677 = vmatmul.mubr.f32.gmra.mxu1 %v3921_v16  ;;  %v757_v9 = vsel %vm629_vm1, %v755_v48, %v756_v39  ;;  %v2197_v3 = vmul.f32 %v6933_v32, %v4995_v35  ;;  %v7162_v45 = vmul.f32 %v6951_v0, %v4995_v35  ;;  %v2755_v31 = vmul.f32 %v4997_v36, %v7153_v58  ;;  %v194_v48 = vld [vmem:[%s8650_s0 + $0x1e8] sm:$0xff] }
 0x194   :  { %v3271_v11 = vadd.f32 %v3076_v51, %v2787_v2  ;;  %v904_v44 = vadd.f32 %v757_v9, %v419_v6  ;;  %v1242_v7 = vsel %vm1114_vm2, %v1240_v15, %v1241_v27  ;;  %v1955_v57 = vrot.slane %v1713_v5, 1  ;;  %259 = vst.msk [vmem:[#allocation2 + $0x319] sm:$0xff] %vm198_vm0, %v193_v38  ;;  %260 = vst.msk [vmem:[#allocation2 + $0x321] sm:$0xff] %vm198_vm0, %v194_v48 }
 0x195   :  { %v1956_v49 = vrot.slane %v7151_v40, 1  ;;  %v2439_v54 = vrot.slane %v2197_v3, 2  ;;  %v8681_v26 = vrot.slane %v7162_v45, 2  ;;  %v2912_v53 = vmul.f32 %v5013_v42, %v7153_v58  ;;  %v1435_v3 = vld [vmem:[#allocation2 + $0x100] sm:$0x3] }
 0x196   :  { %v3755_v25 = vadd.f32 %v3560_v61, %v3271_v11  ;;  %v1389_v28 = vadd.f32 %v1242_v7, %v904_v44  ;;  %v7177_v6 = vmul.f32 %v5013_v42, %v7171_v14  ;;  %v3396_v51 = vmul.f32 %v5031_v47, %v7153_v58 }
 0x197   :  { %v1957_v61 = vsel %vm629_vm1, %v1955_v57, %v1956_v49  ;;  %v2441_v13 = vsel %vm1114_vm2, %v2439_v54, %v8681_v26  ;;  %v3154_v34 = vrot.slane %v2912_v53, 1  ;;  %v7195_v16 = vmul.f32 %v5031_v47, %v7171_v14  ;;  %v2634_v54 = vld [vmem:[#allocation2 + $0x118] sm:$0x3] }
 0x198   :  { %v3826_v15 = vadd.f32 %v6590_v52, %v3755_v25  ;;  %v1620_v2 = vadd.f32 %v1556_v30, %v1389_v28  ;;  %v8679_v5 = vrot.slane %v7177_v6, 1  ;;  %v3638_v9 = vrot.slane %v3396_v51, 2 }
 0x199   :  { %v8680_v11 = vrot.slane %v7195_v16, 2  ;;  %v388_v44 = vmul.f32 %v6652_v43, %v4957_v19  ;;  %v466_v7 = vmul.f32 %v4959_v20, %v298_v41  ;;  %v951_v57 = vmul.f32 %v4962_v21, %v298_v41 }
 0x19a   :  { %v3890_v53 = vmax.f32 %v3826_v15, 0.0  ;;  %v2104_v38 = vadd.f32 %v1957_v61, %v1620_v2  ;;  %v3156_v30 = vsel %vm629_vm1, %v3154_v34, %v8679_v5  ;;  %v1525_v25 = vmul.f32 %v6872_v10, %v4967_v23  ;;  %v346_v2 = vld [vmem:[#allocation2 + $0x298] sm:$0x3] }
 0x19b   :  { %v3640_v28 = vsel %vm1114_vm2, %v3638_v9, %v8680_v11  ;;  %v678_v51 = vrot.slane %v466_v7, 1  ;;  %v1163_v43 = vrot.slane %v951_v57, 2  ;;  %v1667_v48 = vmul.f32 %v4980_v29, %v1435_v3 }
 0x19c   :  { %4631 = vmatprep.mubr.f32.mxu0 %v3890_v53  ;;  %v2588_v41 = vadd.f32 %v2441_v13, %v2104_v38  ;;  %v2151_v15 = vmul.f32 %v4995_v35, %v1435_v3  ;;  %v2724_v61 = vmul.f32 %v4997_v36, %v7092_v56  ;;  %v2866_v34 = vmul.f32 %v5013_v42, %v2634_v54 }
 0x19d   :  { %v679_v5 = vsel %vm629_vm1, %v676_v63, %v678_v51  ;;  %v1164_v9 = vsel %vm1114_vm2, %v1161_v50, %v1163_v43  ;;  %v1878_v7 = vrot.slane %v1667_v48, 1  ;;  %v3350_v57 = vmul.f32 %v5031_v47, %v2634_v54 }
 0x19e   :  { %v2819_v13 = vadd.f32 %v2755_v31, %v2588_v41  ;;  %v873_v53 = vadd.f32 %v679_v5, %v388_v44  ;;  %v2362_v3 = vrot.slane %v2151_v15, 2  ;;  %v3077_v38 = vrot.slane %v2866_v34, 1 }
 0x19f   :  { %v1879_v11 = vsel %vm629_vm1, %v1876_v37, %v1878_v7  ;;  %v3561_v26 = vrot.slane %v3350_v57, 2  ;;  %v420_v62 = vmul.f32 %v6731_v8, %v4957_v19  ;;  %v514_v63 = vmul.f32 %v4959_v20, %v346_v2 }
 0x1a0   :  { %v3303_v51 = vadd.f32 %v3156_v30, %v2819_v13  ;;  %v1358_v50 = vadd.f32 %v1164_v9, %v873_v53  ;;  %v2363_v31 = vsel %vm1114_vm2, %v2360_v18, %v2362_v3  ;;  %v3078_v5 = vsel %vm629_vm1, %v3075_v22, %v3077_v38 }
 0x1a1   :  { %v3562_v37 = vsel %vm1114_vm2, %v3559_v33, %v3561_v26  ;;  %v758_v44 = vrot.slane %v514_v63, 1  ;;  %v999_v8 = vmul.f32 %v4962_v21, %v346_v2  ;;  %v1557_v54 = vmul.f32 %v6951_v0, %v4967_v23 }
 0x1a2   :  { %v3787_v30 = vadd.f32 %v3640_v28, %v3303_v51  ;;  %v1589_v43 = vadd.f32 %v1525_v25, %v1358_v50  ;;  %v1715_v46 = vmul.f32 %v4980_v29, %v1483_v24  ;;  %v2199_v18 = vmul.f32 %v4995_v35, %v1483_v24 }
 0x1a3   :  { %v759_v12 = vsel %vm629_vm1, %v756_v39, %v758_v44  ;;  %v1243_v22 = vrot.slane %v999_v8, 2  ;;  %v2756_v55 = vmul.f32 %v4997_v36, %v7171_v14  ;;  %v2914_v33 = vmul.f32 %v5013_v42, %v2682_v60 }
 0x1a4   :  { %v3858_v26 = vadd.f32 %v6590_v52, %v3787_v30  ;;  %v2073_v48 = vadd.f32 %v1879_v11, %v1589_v43  ;;  %v905_v41 = vadd.f32 %v759_v12, %v420_v62  ;;  %v1958_v28 = vrot.slane %v1715_v46, 1 }
 0x1a5   :  { %v1244_v25 = vsel %vm1114_vm2, %v1241_v27, %v1243_v22  ;;  %v2442_v15 = vrot.slane %v2199_v18, 2  ;;  %v3157_v34 = vrot.slane %v2914_v33, 1  ;;  %v3398_v4 = vmul.f32 %v5031_v47, %v2682_v60 }
 0x1a6   :  { %v3922_v39 = vmax.f32 %v3858_v26, 0.0  ;;  %v2557_v2 = vadd.f32 %v2363_v31, %v2073_v48  ;;  %v1390_v9 = vadd.f32 %v1244_v25, %v905_v41  ;;  %v1959_v7 = vsel %vm629_vm1, %v1956_v49, %v1958_v28  ;;  %v7312_v48 = vld [vmem:[#allocation2 + $0x120] sm:$0xff]  ;;  %v7317_v25 = vld [vmem:[#allocation2 + $0x128] sm:$0xff] }
 0x1a7   :  { %v8734_v52 = vrot.slane %v7162_v45, 2  ;;  %v8735_v57 = vrot.slane %v7177_v6, 1  ;;  %v3641_v27 = vrot.slane %v3398_v4, 2  ;;  %v389_v13 = vmul.f32 %v6867_v59, %v4957_v19 }
 0x1a8   :  { %4679 = vmatprep.mubr.f32.mxu1 %v3922_v39  ;;  %v2788_v53 = vadd.f32 %v2724_v61, %v2557_v2  ;;  %v1621_v3 = vadd.f32 %v1557_v54, %v1390_v9  ;;  %v467_v40 = vmul.f32 %v6867_v59, %v4959_v20  ;;  %v7272_v49 = vmul.f32 %v6872_v10, %v4959_v20 }
 0x1a9   :  { %v2443_v11 = vsel %vm1114_vm2, %v8734_v52, %v2442_v15  ;;  %v3158_v17 = vsel %vm629_vm1, %v8735_v57, %v3157_v34  ;;  %v8736_v45 = vrot.slane %v7195_v16, 2  ;;  %v952_v38 = vmul.f32 %v6867_v59, %v4962_v21 }
 0x1aa   :  { %v7281_v62 = vmul.f32 %v6872_v10, %v4962_v21  ;;  %v1526_v61 = vmul.f32 %v7087_v1, %v4967_v23  ;;  %v3272_v63 = vadd.f32 %v3078_v5, %v2788_v53  ;;  %v2105_v24 = vadd.f32 %v1959_v7, %v1621_v3 }
 0x1ab   :  { %v3642_v6 = vsel %vm1114_vm2, %v8736_v45, %v3641_v27  ;;  %v680_v51 = vrot.slane %v467_v40, 1  ;;  %v681_v50 = vrot.slane %v7272_v49, 1  ;;  %v1165_v31 = vrot.slane %v952_v38, 2 }
 0x1ac   :  { %v1166_v16 = vrot.slane %v7281_v62, 2  ;;  %v1668_v60 = vmul.f32 %v7087_v1, %v4980_v29  ;;  %v7291_v59 = vmul.f32 %v7092_v56, %v4980_v29  ;;  %v3756_v44 = vadd.f32 %v3562_v37, %v3272_v63  ;;  %v7305_v37 = vld [vmem:[%s8652_s2] ss:$0 sm:$0xff]  ;;  %v1486_v62 = vld [vmem:[#allocation2 + $0x2c8] sm:$0x3] }
 0x1ad   :  { %v2589_v8 = vadd.f32 %v2443_v11, %v2105_v24  ;;  %v682_v5 = vsel %vm629_vm1, %v680_v51, %v681_v50  ;;  %v2152_v54 = vmul.f32 %v7087_v1, %v4995_v35  ;;  %v7310_v33 = vmul.f32 %v7092_v56, %v4995_v35 }
 0x1ae   :  { %v874_v30 = vadd.f32 %v682_v5, %v389_v13  ;;  %v1167_v43 = vsel %vm1114_vm2, %v1165_v31, %v1166_v16  ;;  %v1880_v46 = vrot.slane %v1668_v60, 1  ;;  %v1881_v18 = vrot.slane %v7291_v59, 1  ;;  %v2685_v59 = vld [vmem:[#allocation2 + $0x2e0] sm:$0x3] }
 0x1af   :  { %v3827_v12 = vadd.f32 %v7305_v37, %v3756_v44  ;;  %v2820_v22 = vadd.f32 %v2756_v55, %v2589_v8  ;;  %v2364_v26 = vrot.slane %v2152_v54, 2  ;;  %v2725_v15 = vmul.f32 %v4997_v36, %v7312_v48 }
 0x1b0   :  { %v1359_v41 = vadd.f32 %v1167_v43, %v874_v30  ;;  %v1882_v28 = vsel %vm629_vm1, %v1880_v46, %v1881_v18  ;;  %v2867_v55 = vmul.f32 %v5013_v42, %v7312_v48  ;;  %v2365_v39 = vrot.slane %v7310_v33, 2 }
 0x1b1   :  { %v3891_v34 = vmax.f32 %v3827_v12, 0.0  ;;  %v3304_v4 = vadd.f32 %v3158_v17, %v2820_v22  ;;  %v7326_v2 = vmul.f32 %v5013_v42, %v7317_v25  ;;  %v3351_v52 = vmul.f32 %v5031_v47, %v7312_v48  ;;  %v7370_v12 = vld [vmem:[#allocation2 + $0x2d0] sm:$0xff] }
 0x1b2   :  { %v1590_v9 = vadd.f32 %v1526_v61, %v1359_v41  ;;  %v3079_v7 = vrot.slane %v2867_v55, 1  ;;  %v7332_v11 = vmul.f32 %v5031_v47, %v7317_v25  ;;  %v2366_v17 = vsel %vm1114_vm2, %v2364_v26, %v2365_v39  ;;  %v163_v22 = vld [vmem:[%s8650_s0 + $0xf0] sm:$0xff]  ;;  %v164_v26 = vld [vmem:[%s8650_s0 + $0xf8] sm:$0xff] }
 0x1b3   :  { %4632 = vmatmul.mubr.f32.gmra.mxu0 %v3891_v34  ;;  %v3788_v57 = vadd.f32 %v3642_v6, %v3304_v4  ;;  %v3080_v27 = vrot.slane %v7326_v2, 1  ;;  %v421_v13 = vmul.f32 %v6933_v32, %v4957_v19  ;;  %v3563_v3 = vrot.slane %v3351_v52, 2  ;;  %229 = vst.msk [vmem:[#allocation2 + $0x181] sm:$0xff] %vm198_vm0, %v163_v22  ;;  %230 = vst.msk [vmem:[#allocation2 + $0x189] sm:$0xff] %vm198_vm0, %v164_v26  ;;  %v1438_v26 = vld [vmem:[#allocation2 + $0x118] sm:$0x3] }
 0x1b4   :  { %v2074_v53 = vadd.f32 %v1882_v28, %v1590_v9  ;;  %v3564_v40 = vrot.slane %v7332_v11, 2  ;;  %v515_v45 = vmul.f32 %v6933_v32, %v4959_v20  ;;  %v7349_v61 = vmul.f32 %v6951_v0, %v4959_v20 }
 0x1b5   :  { %v3859_v38 = vadd.f32 %v7305_v37, %v3788_v57  ;;  %v3081_v6 = vsel %vm629_vm1, %v3079_v7, %v3080_v27  ;;  %v1000_v63 = vmul.f32 %v6933_v32, %v4962_v21  ;;  %v7358_v60 = vmul.f32 %v6951_v0, %v4962_v21 }
 0x1b6   :  { %v2558_v24 = vadd.f32 %v2366_v17, %v2074_v53  ;;  %v3565_v51 = vsel %vm1114_vm2, %v3563_v3, %v3564_v40  ;;  %v760_v31 = vrot.slane %v515_v45, 1  ;;  %v761_v8 = vrot.slane %v7349_v61, 1  ;;  %v7396_v53 = vld [vmem:[#allocation2 + $0x2d8] sm:$0xff] }
 0x1b7   :  { %v3923_v44 = vmax.f32 %v3859_v38, 0.0  ;;  %v1245_v5 = vrot.slane %v1000_v63, 2  ;;  %v1558_v54 = vmul.f32 %v7153_v58, %v4967_v23  ;;  %v1246_v32 = vrot.slane %v7358_v60, 2  ;;  %v301_v63 = vld [vmem:[#allocation2 + $0x100] sm:$0x3] }
 0x1b8   :  { %v2789_v30 = vadd.f32 %v2725_v15, %v2558_v24  ;;  %v1716_v43 = vmul.f32 %v7153_v58, %v4980_v29  ;;  %v7368_v46 = vmul.f32 %v7171_v14, %v4980_v29  ;;  %v762_v41 = vsel %vm629_vm1, %v760_v31, %v761_v8 }
 0x1b9   :  { %4680 = vmatmul.mubr.f32.gmra.mxu1 %v3923_v44  ;;  %v2200_v28 = vmul.f32 %v7153_v58, %v4995_v35  ;;  %v7385_v15 = vmul.f32 %v7171_v14, %v4995_v35  ;;  %v2757_v55 = vmul.f32 %v4997_v36, %v7370_v12  ;;  %v906_v4 = vadd.f32 %v762_v41, %v421_v13  ;;  %v195_v41 = vld [vmem:[%s8650_s0 + $0x1f0] sm:$0xff] }
 0x1ba   :  { %v3273_v34 = vadd.f32 %v3081_v6, %v2789_v30  ;;  %v1247_v9 = vsel %vm1114_vm2, %v1245_v5, %v1246_v32  ;;  %v1960_v7 = vrot.slane %v1716_v43, 1  ;;  %v1961_v52 = vrot.slane %v7368_v46, 1  ;;  %261 = vst.msk [vmem:[#allocation2 + $0x331] sm:$0xff] %vm198_vm0, %v195_v41 }
 0x1bb   :  { %v2444_v57 = vrot.slane %v2200_v28, 2  ;;  %v8682_v17 = vrot.slane %v7385_v15, 2  ;;  %v2915_v3 = vmul.f32 %v5013_v42, %v7370_v12  ;;  %v1391_v38 = vadd.f32 %v1247_v9, %v906_v4  ;;  %v196_v28 = vld [vmem:[%s8650_s0 + $0x1f8] sm:$0xff] }
 0x1bc   :  { %v3757_v45 = vadd.f32 %v3565_v51, %v3273_v34  ;;  %v7402_v13 = vmul.f32 %v5013_v42, %v7396_v53  ;;  %v3399_v6 = vmul.f32 %v5031_v47, %v7370_v12  ;;  %v1962_v24 = vsel %vm629_vm1, %v1960_v7, %v1961_v52  ;;  %v2637_v7 = vld [vmem:[#allocation2 + $0x130] sm:$0x3]  ;;  %262 = vst.msk [vmem:[#allocation2 + $0x339] sm:$0xff] %vm198_vm0, %v196_v28 }
 0x1bd   :  { %v2446_v31 = vsel %vm1114_vm2, %v2444_v57, %v8682_v17  ;;  %v3159_v44 = vrot.slane %v2915_v3, 1  ;;  %v7414_v51 = vmul.f32 %v5031_v47, %v7396_v53  ;;  %v1622_v30 = vadd.f32 %v1558_v54, %v1391_v38 }
 0x1be   :  { %v3828_v5 = vadd.f32 %v7305_v37, %v3757_v45  ;;  %v8684_v43 = vrot.slane %v7402_v13, 1  ;;  %v3643_v22 = vrot.slane %v3399_v6, 2  ;;  %v390_v4 = vmul.f32 %v6872_v10, %v4957_v19 }
 0x1bf   :  { %v8683_v34 = vrot.slane %v7414_v51, 2  ;;  %v469_v9 = vmul.f32 %v4959_v20, %v301_v63  ;;  %v954_v54 = vmul.f32 %v4962_v21, %v301_v63  ;;  %v2106_v3 = vadd.f32 %v1962_v24, %v1622_v30  ;;  %v349_v30 = vld [vmem:[#allocation2 + $0x2b0] sm:$0x3] }
 0x1c0   :  { %v3892_v57 = vmax.f32 %v3828_v5, 0.0  ;;  %v3161_v45 = vsel %vm629_vm1, %v3159_v44, %v8684_v43  ;;  %v1527_v38 = vmul.f32 %v7092_v56, %v4967_v23  ;;  %v1670_v17 = vmul.f32 %v4980_v29, %v1438_v26 }
 0x1c1   :  { %v3645_v10 = vsel %vm1114_vm2, %v3643_v22, %v8683_v34  ;;  %v683_v6 = vrot.slane %v469_v9, 1  ;;  %v1168_v63 = vrot.slane %v954_v54, 2  ;;  %v2590_v41 = vadd.f32 %v2446_v31, %v2106_v3 }
 0x1c2   :  { %4634 = vmatprep.mubr.f32.mxu0 %v3892_v57  ;;  %v2154_v5 = vmul.f32 %v4995_v35, %v1438_v26  ;;  %v2726_v24 = vmul.f32 %v4997_v36, %v7317_v25  ;;  %v2869_v44 = vmul.f32 %v5013_v42, %v2637_v7  ;;  %v1883_v9 = vrot.slane %v1670_v17, 1 }
 0x1c3   :  { %v684_v28 = vsel %vm629_vm1, %v681_v50, %v683_v6  ;;  %v1169_v22 = vsel %vm1114_vm2, %v1166_v16, %v1168_v63  ;;  %v3353_v54 = vmul.f32 %v5031_v47, %v2637_v7  ;;  %v2821_v31 = vadd.f32 %v2757_v55, %v2590_v41 }
 0x1c4   :  { %v875_v57 = vadd.f32 %v684_v28, %v390_v4  ;;  %v2367_v26 = vrot.slane %v2154_v5, 2  ;;  %v3082_v3 = vrot.slane %v2869_v44, 1  ;;  %v1884_v34 = vsel %vm629_vm1, %v1881_v18, %v1883_v9 }
 0x1c5   :  { %v3566_v43 = vrot.slane %v3353_v54, 2  ;;  %v422_v49 = vmul.f32 %v6951_v0, %v4957_v19  ;;  %v517_v50 = vmul.f32 %v4959_v20, %v349_v30  ;;  %v3305_v6 = vadd.f32 %v3161_v45, %v2821_v31 }
 0x1c6   :  { %v1360_v16 = vadd.f32 %v1169_v22, %v875_v57  ;;  %v2368_v55 = vsel %vm1114_vm2, %v2365_v39, %v2367_v26  ;;  %v3083_v17 = vsel %vm629_vm1, %v3080_v27, %v3082_v3  ;;  %v1002_v0 = vmul.f32 %v4962_v21, %v349_v30 }
 0x1c7   :  { %v3567_v18 = vsel %vm1114_vm2, %v3564_v40, %v3566_v43  ;;  %v763_v4 = vrot.slane %v517_v50, 1  ;;  %v1559_v7 = vmul.f32 %v7171_v14, %v4967_v23  ;;  %v3789_v45 = vadd.f32 %v3645_v10, %v3305_v6 }
 0x1c8   :  { %v1591_v63 = vadd.f32 %v1527_v38, %v1360_v16  ;;  %v1718_v33 = vmul.f32 %v4980_v29, %v1486_v62  ;;  %v2202_v39 = vmul.f32 %v4995_v35, %v1486_v62  ;;  %v1248_v27 = vrot.slane %v1002_v0, 2 }
 0x1c9   :  { %v764_v2 = vsel %vm629_vm1, %v761_v8, %v763_v4  ;;  %v2758_v11 = vmul.f32 %v4997_v36, %v7396_v53  ;;  %v2917_v40 = vmul.f32 %v5013_v42, %v2685_v59  ;;  %v3860_v43 = vadd.f32 %v7305_v37, %v3789_v45 }
 0x1ca   :  { %v2075_v41 = vadd.f32 %v1884_v34, %v1591_v63  ;;  %v907_v5 = vadd.f32 %v764_v2, %v422_v49  ;;  %v1963_v10 = vrot.slane %v1718_v33, 1  ;;  %v1249_v38 = vsel %vm1114_vm2, %v1246_v32, %v1248_v27 }
 0x1cb   :  { %v2447_v44 = vrot.slane %v2202_v39, 2  ;;  %v3162_v30 = vrot.slane %v2917_v40, 1  ;;  %v3401_v61 = vmul.f32 %v5031_v47, %v2685_v59  ;;  %v3924_v8 = vmax.f32 %v3860_v43, 0.0 }
 0x1cc   :  { %v2559_v28 = vadd.f32 %v2368_v55, %v2075_v41  ;;  %v1392_v22 = vadd.f32 %v1249_v38, %v907_v5  ;;  %v1964_v9 = vsel %vm629_vm1, %v1961_v52, %v1963_v10  ;;  %v8737_v54 = vrot.slane %v7385_v15, 2  ;;  %v7532_v41 = vld [vmem:[#allocation2 + $0x138] sm:$0xff]  ;;  %v7537_v38 = vld [vmem:[#allocation2 + $0x140] sm:$0xff] }
 0x1cd   :  { %v8738_v31 = vrot.slane %v7402_v13, 1  ;;  %v3646_v32 = vrot.slane %v3401_v61, 2  ;;  %v391_v57 = vmul.f32 %v7087_v1, %v4957_v19  ;;  %4682 = vmatprep.mubr.f32.mxu1 %v3924_v8  ;;  %v470_v46 = vmul.f32 %v7087_v1, %v4959_v20 }
 0x1ce   :  { %v2448_v34 = vsel %vm1114_vm2, %v8737_v54, %v2447_v44  ;;  %v2790_v26 = vadd.f32 %v2726_v24, %v2559_v28  ;;  %v1623_v3 = vadd.f32 %v1559_v7, %v1392_v22  ;;  %v7497_v52 = vmul.f32 %v7092_v56, %v4959_v20 }
 0x1cf   :  { %v3163_v60 = vsel %vm629_vm1, %v8738_v31, %v3162_v30  ;;  %v8739_v15 = vrot.slane %v7414_v51, 2  ;;  %v955_v49 = vmul.f32 %v7087_v1, %v4962_v21  ;;  %v7506_v50 = vmul.f32 %v7092_v56, %v4962_v21 }
 0x1d0   :  { %v1528_v24 = vmul.f32 %v7312_v48, %v4967_v23  ;;  %v3274_v62 = vadd.f32 %v3083_v17, %v2790_v26  ;;  %v2107_v6 = vadd.f32 %v1964_v9, %v1623_v3  ;;  %v685_v16 = vrot.slane %v470_v46, 1 }
 0x1d1   :  { %v3647_v13 = vsel %vm1114_vm2, %v8739_v15, %v3646_v32  ;;  %v686_v55 = vrot.slane %v7497_v52, 1  ;;  %v1170_v59 = vrot.slane %v955_v49, 2  ;;  %v1171_v51 = vrot.slane %v7506_v50, 2  ;;  %v1489_v50 = vld [vmem:[#allocation2 + $0x2e0] sm:$0x3] }
 0x1d2   :  { %v1671_v4 = vmul.f32 %v7312_v48, %v4980_v29  ;;  %v7516_v1 = vmul.f32 %v7317_v25, %v4980_v29  ;;  %v3758_v0 = vadd.f32 %v3567_v18, %v3274_v62  ;;  %v2591_v7 = vadd.f32 %v2448_v34, %v2107_v6 }
 0x1d3   :  { %v687_v17 = vsel %vm629_vm1, %v685_v16, %v686_v55  ;;  %v2155_v45 = vmul.f32 %v7312_v48, %v4995_v35  ;;  %v1172_v33 = vsel %vm1114_vm2, %v1170_v59, %v1171_v51  ;;  %v7530_v18 = vmul.f32 %v7317_v25, %v4995_v35 }
 0x1d4   :  { %v876_v63 = vadd.f32 %v687_v17, %v391_v57  ;;  %v1885_v39 = vrot.slane %v1671_v4, 1  ;;  %v1886_v2 = vrot.slane %v7516_v1, 1  ;;  %v3829_v27 = vadd.f32 %v7305_v37, %v3758_v0  ;;  %v2688_v1 = vld [vmem:[#allocation2 + $0x2f8] sm:$0x3] }
 0x1d5   :  { %v2822_v40 = vadd.f32 %v2758_v11, %v2591_v7  ;;  %v2369_v43 = vrot.slane %v2155_v45, 2  ;;  %v2727_v44 = vmul.f32 %v4997_v36, %v7532_v41  ;;  %v2870_v11 = vmul.f32 %v5013_v42, %v7532_v41 }
 0x1d6   :  { %v1361_v5 = vadd.f32 %v1172_v33, %v876_v63  ;;  %v1887_v10 = vsel %vm629_vm1, %v1885_v39, %v1886_v2  ;;  %v3893_v30 = vmax.f32 %v3829_v27, 0.0  ;;  %v2370_v8 = vrot.slane %v7530_v18, 2  ;;  %v7590_v27 = vld [vmem:[#allocation2 + $0x2e8] sm:$0xff] }
 0x1d7   :  { %v3306_v61 = vadd.f32 %v3163_v60, %v2822_v40  ;;  %v7546_v28 = vmul.f32 %v5013_v42, %v7537_v38  ;;  %v3084_v9 = vrot.slane %v2870_v11, 1  ;;  %v3354_v54 = vmul.f32 %v5031_v47, %v7532_v41 }
 0x1d8   :  { %v1592_v22 = vadd.f32 %v1528_v24, %v1361_v5  ;;  %v7552_v34 = vmul.f32 %v5031_v47, %v7537_v38  ;;  %4635 = vmatmul.mubr.f32.gmra.mxu0 %v3893_v30  ;;  %v2371_v60 = vsel %vm1114_vm2, %v2369_v43, %v2370_v8  ;;  %v423_v57 = vmul.f32 %v7153_v58, %v4957_v19 }
 0x1d9   :  { %v3790_v31 = vadd.f32 %v3647_v13, %v3306_v61  ;;  %v3085_v32 = vrot.slane %v7546_v28, 1  ;;  %v3568_v3 = vrot.slane %v3354_v54, 2  ;;  %v518_v15 = vmul.f32 %v7153_v58, %v4959_v20 }
 0x1da   :  { %v2076_v26 = vadd.f32 %v1887_v10, %v1592_v22  ;;  %v3569_v46 = vrot.slane %v7552_v34, 2  ;;  %v7569_v24 = vmul.f32 %v7171_v14, %v4959_v20  ;;  %v1003_v62 = vmul.f32 %v7153_v58, %v4962_v21 }
 0x1db   :  { %v3861_v49 = vadd.f32 %v7305_v37, %v3790_v31  ;;  %v3086_v13 = vsel %vm629_vm1, %v3084_v9, %v3085_v32  ;;  %v765_v59 = vrot.slane %v518_v15, 1  ;;  %v7578_v4 = vmul.f32 %v7171_v14, %v4962_v21  ;;  %v7608_v31 = vld [vmem:[#allocation2 + $0x2f0] sm:$0xff] }
 0x1dc   :  { %v2560_v6 = vadd.f32 %v2371_v60, %v2076_v26  ;;  %v3570_v16 = vsel %vm1114_vm2, %v3568_v3, %v3569_v46  ;;  %v766_v7 = vrot.slane %v7569_v24, 1  ;;  %v1250_v17 = vrot.slane %v1003_v62, 2 }
 0x1dd   :  { %v3925_v0 = vmax.f32 %v3861_v49, 0.0  ;;  %v1560_v45 = vmul.f32 %v7370_v12, %v4967_v23  ;;  %v1251_v58 = vrot.slane %v7578_v4, 2  ;;  %v1719_v33 = vmul.f32 %v7370_v12, %v4980_v29  ;;  %v304_v49 = vld [vmem:[#allocation2 + $0x118] sm:$0x3] }
 0x1de   :  { %v2791_v63 = vadd.f32 %v2727_v44, %v2560_v6  ;;  %v7588_v39 = vmul.f32 %v7396_v53, %v4980_v29  ;;  %v767_v40 = vsel %vm629_vm1, %v765_v59, %v766_v7  ;;  %v2203_v43 = vmul.f32 %v7370_v12, %v4995_v35 }
 0x1df   :  { %4683 = vmatmul.mubr.f32.gmra.mxu1 %v3925_v0  ;;  %v7599_v5 = vmul.f32 %v7396_v53, %v4995_v35  ;;  %v2759_v10 = vmul.f32 %v4997_v36, %v7590_v27  ;;  %v908_v11 = vadd.f32 %v767_v40, %v423_v57  ;;  %v1252_v30 = vsel %vm1114_vm2, %v1250_v17, %v1251_v58 }
 0x1e0   :  { %v3275_v44 = vadd.f32 %v3086_v13, %v2791_v63  ;;  %v1965_v61 = vrot.slane %v1719_v33, 1  ;;  %v1966_v22 = vrot.slane %v7588_v39, 1  ;;  %v2449_v9 = vrot.slane %v2203_v43, 2  ;;  %v1441_v33 = vld [vmem:[#allocation2 + $0x130] sm:$0x3] }
 0x1e1   :  { %v8687_v54 = vrot.slane %v7599_v5, 2  ;;  %v2918_v60 = vmul.f32 %v5013_v42, %v7590_v27  ;;  %v1393_v3 = vadd.f32 %v1252_v30, %v908_v11  ;;  %v7614_v57 = vmul.f32 %v5013_v42, %v7608_v31  ;;  %v2640_v30 = vld [vmem:[#allocation2 + $0x148] sm:$0x3] }
 0x1e2   :  { %v3759_v26 = vadd.f32 %v3570_v16, %v3275_v44  ;;  %v3402_v15 = vmul.f32 %v5031_v47, %v7590_v27  ;;  %v1967_v13 = vsel %vm629_vm1, %v1965_v61, %v1966_v22  ;;  %v7626_v16 = vmul.f32 %v5031_v47, %v7608_v31 }
 0x1e3   :  { %v2451_v62 = vsel %vm1114_vm2, %v2449_v9, %v8687_v54  ;;  %v3164_v6 = vrot.slane %v2918_v60, 1  ;;  %v1624_v0 = vadd.f32 %v1560_v45, %v1393_v3  ;;  %v8685_v17 = vrot.slane %v7614_v57, 1 }
 0x1e4   :  { %v3830_v59 = vadd.f32 %v7305_v37, %v3759_v26  ;;  %v3648_v63 = vrot.slane %v3402_v15, 2  ;;  %v8686_v40 = vrot.slane %v7626_v16, 2  ;;  %v392_v43 = vmul.f32 %v7092_v56, %v4957_v19 }
 0x1e5   :  { %v472_v44 = vmul.f32 %v4959_v20, %v304_v49  ;;  %v957_v11 = vmul.f32 %v4962_v21, %v304_v49  ;;  %v2108_v9 = vadd.f32 %v1967_v13, %v1624_v0  ;;  %v3166_v45 = vsel %vm629_vm1, %v3164_v6, %v8685_v17  ;;  %v352_v0 = vld [vmem:[#allocation2 + $0x2c8] sm:$0x3] }
 0x1e6   :  { %v3894_v61 = vmax.f32 %v3830_v59, 0.0  ;;  %v1529_v60 = vmul.f32 %v7317_v25, %v4967_v23  ;;  %v3650_v26 = vsel %vm1114_vm2, %v3648_v63, %v8686_v40  ;;  %v1673_v15 = vmul.f32 %v4980_v29, %v1441_v33 }
 0x1e7   :  { %v688_v3 = vrot.slane %v472_v44, 1  ;;  %v1173_v56 = vrot.slane %v957_v11, 2  ;;  %v2592_v49 = vadd.f32 %v2451_v62, %v2108_v9  ;;  %v2157_v59 = vmul.f32 %v4995_v35, %v1441_v33 }
 0x1e8   :  { %4637 = vmatprep.mubr.f32.mxu0 %v3894_v61  ;;  %v2728_v13 = vmul.f32 %v4997_v36, %v7537_v38  ;;  %v2872_v6 = vmul.f32 %v5013_v42, %v2640_v30  ;;  %v1888_v44 = vrot.slane %v1673_v15, 1  ;;  %v3356_v11 = vmul.f32 %v5031_v47, %v2640_v30 }
 0x1e9   :  { %v689_v17 = vsel %vm629_vm1, %v686_v55, %v688_v3  ;;  %v1174_v63 = vsel %vm1114_vm2, %v1171_v51, %v1173_v56  ;;  %v2823_v62 = vadd.f32 %v2759_v10, %v2592_v49  ;;  %v2372_v33 = vrot.slane %v2157_v59, 2 }
 0x1ea   :  { %v877_v61 = vadd.f32 %v689_v17, %v392_v43  ;;  %v3087_v9 = vrot.slane %v2872_v6, 1  ;;  %v1889_v40 = vsel %vm629_vm1, %v1886_v2, %v1888_v44  ;;  %v3571_v54 = vrot.slane %v3356_v11, 2 }
 0x1eb   :  { %v424_v52 = vmul.f32 %v7171_v14, %v4957_v19  ;;  %v520_v55 = vmul.f32 %v4959_v20, %v352_v0  ;;  %v3307_v3 = vadd.f32 %v3166_v45, %v2823_v62  ;;  %v2373_v10 = vsel %vm1114_vm2, %v2370_v8, %v2372_v33 }
 0x1ec   :  { %v1362_v51 = vadd.f32 %v1174_v63, %v877_v61  ;;  %v3088_v17 = vsel %vm629_vm1, %v3085_v32, %v3087_v9  ;;  %v3572_v2 = vsel %vm1114_vm2, %v3569_v46, %v3571_v54  ;;  %v1005_v14 = vmul.f32 %v4962_v21, %v352_v0 }
 0x1ed   :  { %v768_v43 = vrot.slane %v520_v55, 1  ;;  %v1561_v30 = vmul.f32 %v7396_v53, %v4967_v23  ;;  %v3791_v45 = vadd.f32 %v3650_v26, %v3307_v3  ;;  %v1721_v18 = vmul.f32 %v4980_v29, %v1489_v50 }
 0x1ee   :  { %v1593_v56 = vadd.f32 %v1529_v60, %v1362_v51  ;;  %v2205_v8 = vmul.f32 %v4995_v35, %v1489_v50  ;;  %v1253_v32 = vrot.slane %v1005_v14, 2  ;;  %v2760_v34 = vmul.f32 %v4997_v36, %v7608_v31 }
 0x1ef   :  { %v769_v28 = vsel %vm629_vm1, %v766_v7, %v768_v43  ;;  %v2920_v46 = vmul.f32 %v5013_v42, %v2688_v1  ;;  %v3862_v54 = vadd.f32 %v7305_v37, %v3791_v45  ;;  %v1968_v26 = vrot.slane %v1721_v18, 1 }
 0x1f0   :  { %v2077_v15 = vadd.f32 %v1889_v40, %v1593_v56  ;;  %v909_v49 = vadd.f32 %v769_v28, %v424_v52  ;;  %v1254_v60 = vsel %vm1114_vm2, %v1251_v58, %v1253_v32  ;;  %v2452_v59 = vrot.slane %v2205_v8, 2 }
 0x1f1   :  { %v3167_v6 = vrot.slane %v2920_v46, 1  ;;  %v3404_v24 = vmul.f32 %v5031_v47, %v2688_v1  ;;  %v3926_v7 = vmax.f32 %v3862_v54, 0.0  ;;  %v1969_v44 = vsel %vm629_vm1, %v1966_v22, %v1968_v26 }
 0x1f2   :  { %v2561_v0 = vadd.f32 %v2373_v10, %v2077_v15  ;;  %v1394_v63 = vadd.f32 %v1254_v60, %v909_v49  ;;  %v8740_v11 = vrot.slane %v7599_v5, 2  ;;  %v8741_v62 = vrot.slane %v7614_v57, 1  ;;  %v7736_v15 = vld [vmem:[#allocation2 + $0x150] sm:$0xff]  ;;  %v7741_v60 = vld [vmem:[#allocation2 + $0x158] sm:$0xff] }
 0x1f3   :  { %v3651_v58 = vrot.slane %v3404_v24, 2  ;;  %v393_v61 = vmul.f32 %v7312_v48, %v4957_v19  ;;  %4685 = vmatprep.mubr.f32.mxu1 %v3926_v7  ;;  %v473_v39 = vmul.f32 %v7312_v48, %v4959_v20  ;;  %v7701_v22 = vmul.f32 %v7317_v25, %v4959_v20 }
 0x1f4   :  { %v2453_v40 = vsel %vm1114_vm2, %v8740_v11, %v2452_v59  ;;  %v3168_v4 = vsel %vm629_vm1, %v8741_v62, %v3167_v6  ;;  %v2792_v33 = vadd.f32 %v2728_v13, %v2561_v0  ;;  %v1625_v9 = vadd.f32 %v1561_v30, %v1394_v63 }
 0x1f5   :  { %v8742_v5 = vrot.slane %v7626_v16, 2  ;;  %v958_v52 = vmul.f32 %v7312_v48, %v4962_v21  ;;  %v7710_v55 = vmul.f32 %v7317_v25, %v4962_v21  ;;  %v1530_v13 = vmul.f32 %v7532_v41, %v4967_v23 }
 0x1f6   :  { %v3276_v50 = vadd.f32 %v3088_v17, %v2792_v33  ;;  %v2109_v3 = vadd.f32 %v1969_v44, %v1625_v9  ;;  %v690_v51 = vrot.slane %v473_v39, 1  ;;  %v691_v10 = vrot.slane %v7701_v22, 1 }
 0x1f7   :  { %v3652_v57 = vsel %vm1114_vm2, %v8742_v5, %v3651_v58  ;;  %v1175_v1 = vrot.slane %v958_v52, 2  ;;  %v1176_v16 = vrot.slane %v7710_v55, 2  ;;  %v1674_v43 = vmul.f32 %v7532_v41, %v4980_v29  ;;  %v1492_v55 = vld [vmem:[#allocation2 + $0x2f8] sm:$0x3] }
 0x1f8   :  { %v7720_v48 = vmul.f32 %v7537_v38, %v4980_v29  ;;  %v3760_v14 = vadd.f32 %v3572_v2, %v3276_v50  ;;  %v2593_v30 = vadd.f32 %v2453_v40, %v2109_v3  ;;  %v692_v17 = vsel %vm629_vm1, %v690_v51, %v691_v10 }
 0x1f9   :  { %v2158_v45 = vmul.f32 %v7532_v41, %v4995_v35  ;;  %v878_v56 = vadd.f32 %v692_v17, %v393_v61  ;;  %v1177_v18 = vsel %vm1114_vm2, %v1175_v1, %v1176_v16  ;;  %v1890_v8 = vrot.slane %v1674_v43, 1 }
 0x1fa   :  { %v1891_v28 = vrot.slane %v7720_v48, 1  ;;  %v3831_v32 = vadd.f32 %v7305_v37, %v3760_v14  ;;  %v2824_v46 = vadd.f32 %v2760_v34, %v2593_v30  ;;  %v7734_v2 = vmul.f32 %v7537_v38, %v4995_v35  ;;  %v2691_v48 = vld [vmem:[#allocation2 + $0x310] sm:$0x3] }
 0x1fb   :  { %v2374_v54 = vrot.slane %v2158_v45, 2  ;;  %v1363_v49 = vadd.f32 %v1177_v18, %v878_v56  ;;  %v2729_v59 = vmul.f32 %v4997_v36, %v7736_v15  ;;  %v2873_v34 = vmul.f32 %v5013_v42, %v7736_v15 }
 0x1fc   :  { %v1892_v26 = vsel %vm629_vm1, %v1890_v8, %v1891_v28  ;;  %v3895_v6 = vmax.f32 %v3831_v32, 0.0  ;;  %v3308_v24 = vadd.f32 %v3168_v4, %v2824_v46  ;;  %v2375_v7 = vrot.slane %v7734_v2, 2  ;;  %v7794_v32 = vld [vmem:[#allocation2 + $0x300] sm:$0xff] }
 0x1fd   :  { %v7750_v0 = vmul.f32 %v5013_v42, %v7741_v60  ;;  %v1594_v63 = vadd.f32 %v1530_v13, %v1363_v49  ;;  %v3089_v44 = vrot.slane %v2873_v34, 1  ;;  %v3357_v11 = vmul.f32 %v5031_v47, %v7736_v15 }
 0x1fe   :  { %v7756_v40 = vmul.f32 %v5031_v47, %v7741_v60  ;;  %4638 = vmatmul.mubr.f32.gmra.mxu0 %v3895_v6  ;;  %v3792_v62 = vadd.f32 %v3652_v57, %v3308_v24  ;;  %v2376_v4 = vsel %vm1114_vm2, %v2374_v54, %v2375_v7  ;;  %v425_v61 = vmul.f32 %v7370_v12, %v4957_v19 }
 0x1ff   :  { %v3090_v58 = vrot.slane %v7750_v0, 1  ;;  %v2078_v33 = vadd.f32 %v1892_v26, %v1594_v63  ;;  %v3573_v9 = vrot.slane %v3357_v11, 2  ;;  %v521_v5 = vmul.f32 %v7370_v12, %v4959_v20 }
 0x200   :  { %v3574_v39 = vrot.slane %v7756_v40, 2  ;;  %v3863_v52 = vadd.f32 %v7305_v37, %v3792_v62  ;;  %v7773_v13 = vmul.f32 %v7396_v53, %v4959_v20  ;;  %v1006_v50 = vmul.f32 %v7370_v12, %v4962_v21  ;;  %v7812_v62 = vld [vmem:[#allocation2 + $0x308] sm:$0xff] }
 0x201   :  { %v3091_v57 = vsel %vm629_vm1, %v3089_v44, %v3090_v58  ;;  %v2562_v3 = vadd.f32 %v2376_v4, %v2078_v33  ;;  %v770_v1 = vrot.slane %v521_v5, 1  ;;  %v7782_v43 = vmul.f32 %v7396_v53, %v4962_v21 }
 0x202   :  { %v3575_v51 = vsel %vm1114_vm2, %v3573_v9, %v3574_v39  ;;  %v3927_v14 = vmax.f32 %v3863_v52, 0.0  ;;  %v771_v30 = vrot.slane %v7773_v13, 1  ;;  %v1255_v17 = vrot.slane %v1006_v50, 2  ;;  %v307_v52 = vld [vmem:[#allocation2 + $0x130] sm:$0x3] }
 0x203   :  { %v1562_v45 = vmul.f32 %v7590_v27, %v4967_v23  ;;  %v2793_v56 = vadd.f32 %v2729_v59, %v2562_v3  ;;  %v1256_v12 = vrot.slane %v7782_v43, 2  ;;  %v1722_v18 = vmul.f32 %v7590_v27, %v4980_v29 }
 0x204   :  { %v7792_v8 = vmul.f32 %v7608_v31, %v4980_v29  ;;  %4686 = vmatmul.mubr.f32.gmra.mxu1 %v3927_v14  ;;  %v772_v46 = vsel %vm629_vm1, %v770_v1, %v771_v30  ;;  %v2206_v54 = vmul.f32 %v7590_v27, %v4995_v35  ;;  %v7803_v49 = vmul.f32 %v7608_v31, %v4995_v35 }
 0x205   :  { %v2761_v26 = vmul.f32 %v4997_v36, %v7794_v32  ;;  %v3277_v59 = vadd.f32 %v3091_v57, %v2793_v56  ;;  %v910_v34 = vadd.f32 %v772_v46, %v425_v61  ;;  %v1257_v6 = vsel %vm1114_vm2, %v1255_v17, %v1256_v12 }
 0x206   :  { %v1970_v24 = vrot.slane %v1722_v18, 1  ;;  %v1971_v63 = vrot.slane %v7792_v8, 1  ;;  %v2454_v44 = vrot.slane %v2206_v54, 2  ;;  %v8690_v11 = vrot.slane %v7803_v49, 2  ;;  %v1444_v18 = vld [vmem:[#allocation2 + $0x148] sm:$0x3] }
 0x207   :  { %v2921_v4 = vmul.f32 %v5013_v42, %v7794_v32  ;;  %v3761_v33 = vadd.f32 %v3575_v51, %v3277_v59  ;;  %v1395_v9 = vadd.f32 %v1257_v6, %v910_v34  ;;  %v7818_v61 = vmul.f32 %v5013_v42, %v7812_v62  ;;  %v2643_v6 = vld [vmem:[#allocation2 + $0x160] sm:$0x3] }
 0x208   :  { %v3405_v5 = vmul.f32 %v5031_v47, %v7794_v32  ;;  %v1972_v57 = vsel %vm629_vm1, %v1970_v24, %v1971_v63  ;;  %v2456_v50 = vsel %vm1114_vm2, %v2454_v44, %v8690_v11  ;;  %v7830_v51 = vmul.f32 %v5031_v47, %v7812_v62 }
 0x209   :  { %v3169_v3 = vrot.slane %v2921_v4, 1  ;;  %v3832_v1 = vadd.f32 %v7305_v37, %v3761_v33  ;;  %v1626_v14 = vadd.f32 %v1562_v45, %v1395_v9  ;;  %v8688_v17 = vrot.slane %v7818_v61, 1 }
 0x20a   :  { %v3653_v56 = vrot.slane %v3405_v5, 2  ;;  %v8689_v46 = vrot.slane %v7830_v51, 2  ;;  %v394_v54 = vmul.f32 %v7317_v25, %v4957_v19  ;;  %v475_v59 = vmul.f32 %v4959_v20, %v307_v52 }
 0x20b   :  { %v960_v34 = vmul.f32 %v4962_v21, %v307_v52  ;;  %v3896_v24 = vmax.f32 %v3832_v1, 0.0  ;;  %v2110_v44 = vadd.f32 %v1972_v57, %v1626_v14  ;;  %v3171_v45 = vsel %vm629_vm1, %v3169_v3, %v8688_v17  ;;  %v355_v14 = vld [vmem:[#allocation2 + $0x2e0] sm:$0x3] }
 0x20c   :  { %v1531_v4 = vmul.f32 %v7537_v38, %v4967_v23  ;;  %v3655_v33 = vsel %vm1114_vm2, %v3653_v56, %v8689_v46  ;;  %v693_v9 = vrot.slane %v475_v59, 1  ;;  %v1676_v5 = vmul.f32 %v4980_v29, %v1444_v18 }
 0x20d   :  { %v1178_v25 = vrot.slane %v960_v34, 2  ;;  %4640 = vmatprep.mubr.f32.mxu0 %v3896_v24  ;;  %v2594_v52 = vadd.f32 %v2456_v50, %v2110_v44  ;;  %v2160_v1 = vmul.f32 %v4995_v35, %v1444_v18  ;;  %v2730_v57 = vmul.f32 %v4997_v36, %v7741_v60 }
 0x20e   :  { %v2875_v3 = vmul.f32 %v5013_v42, %v2643_v6  ;;  %v694_v17 = vsel %vm629_vm1, %v691_v10, %v693_v9  ;;  %v1893_v59 = vrot.slane %v1676_v5, 1  ;;  %v3359_v34 = vmul.f32 %v5031_v47, %v2643_v6 }
 0x20f   :  { %v1179_v56 = vsel %vm1114_vm2, %v1176_v16, %v1178_v25  ;;  %v2825_v50 = vadd.f32 %v2761_v26, %v2594_v52  ;;  %v879_v24 = vadd.f32 %v694_v17, %v394_v54  ;;  %v2377_v18 = vrot.slane %v2160_v1, 2 }
 0x210   :  { %v3092_v44 = vrot.slane %v2875_v3, 1  ;;  %v1894_v46 = vsel %vm629_vm1, %v1891_v28, %v1893_v59  ;;  %v3576_v11 = vrot.slane %v3359_v34, 2  ;;  %v426_v22 = vmul.f32 %v7396_v53, %v4957_v19 }
 0x211   :  { %v523_v10 = vmul.f32 %v4959_v20, %v355_v14  ;;  %v3309_v9 = vadd.f32 %v3171_v45, %v2825_v50  ;;  %v1364_v16 = vadd.f32 %v1179_v56, %v879_v24  ;;  %v2378_v26 = vsel %vm1114_vm2, %v2375_v7, %v2377_v18 }
 0x212   :  { %v3093_v17 = vsel %vm629_vm1, %v3090_v58, %v3092_v44  ;;  %v3577_v28 = vsel %vm1114_vm2, %v3574_v39, %v3576_v11  ;;  %v1008_v53 = vmul.f32 %v4962_v21, %v355_v14  ;;  %v1563_v6 = vmul.f32 %v7608_v31, %v4967_v23 }
 0x213   :  { %v773_v54 = vrot.slane %v523_v10, 1  ;;  %v3793_v45 = vadd.f32 %v3655_v33, %v3309_v9  ;;  %v1595_v25 = vadd.f32 %v1531_v4, %v1364_v16  ;;  %v1724_v2 = vmul.f32 %v4980_v29, %v1492_v55 }
 0x214   :  { %v2208_v7 = vmul.f32 %v4995_v35, %v1492_v55  ;;  %v1258_v58 = vrot.slane %v1008_v53, 2  ;;  %v2762_v40 = vmul.f32 %v4997_v36, %v7812_v62  ;;  %v2923_v39 = vmul.f32 %v5013_v42, %v2691_v48 }
 0x215   :  { %v774_v0 = vsel %vm629_vm1, %v771_v30, %v773_v54  ;;  %v3864_v11 = vadd.f32 %v7305_v37, %v3793_v45  ;;  %v2079_v5 = vadd.f32 %v1894_v46, %v1595_v25  ;;  %v1973_v33 = vrot.slane %v1724_v2, 1 }
 0x216   :  { %v911_v52 = vadd.f32 %v774_v0, %v426_v22  ;;  %v1259_v4 = vsel %vm1114_vm2, %v1256_v12, %v1258_v58  ;;  %v2457_v1 = vrot.slane %v2208_v7, 2  ;;  %v3172_v3 = vrot.slane %v2923_v39, 1 }
 0x217   :  { %v3407_v13 = vmul.f32 %v5031_v47, %v2691_v48  ;;  %v3928_v30 = vmax.f32 %v3864_v11, 0.0  ;;  %v2563_v14 = vadd.f32 %v2378_v26, %v2079_v5  ;;  %v1974_v59 = vsel %vm629_vm1, %v1971_v63, %v1973_v33  ;;  %v7940_v5 = vld [vmem:[#allocation2 + $0x168] sm:$0xff] }
 0x218   :  { %v1396_v56 = vadd.f32 %v1259_v4, %v911_v52  ;;  %v8743_v34 = vrot.slane %v7803_v49, 2  ;;  %v8744_v50 = vrot.slane %v7818_v61, 1  ;;  %v395_v24 = vmul.f32 %v7532_v41, %v4957_v19  ;;  %v7945_v4 = vld [vmem:[#allocation2 + $0x170] sm:$0xff] }
 0x219   :  { %v3656_v12 = vrot.slane %v3407_v13, 2  ;;  %4688 = vmatprep.mubr.f32.mxu1 %v3928_v30  ;;  %v2794_v18 = vadd.f32 %v2730_v57, %v2563_v14  ;;  %v476_v8 = vmul.f32 %v7532_v41, %v4959_v20  ;;  %v7905_v63 = vmul.f32 %v7537_v38, %v4959_v20 }
 0x21a   :  { %v2458_v46 = vsel %vm1114_vm2, %v8743_v34, %v2457_v1  ;;  %v3173_v43 = vsel %vm629_vm1, %v8744_v50, %v3172_v3  ;;  %v1627_v44 = vadd.f32 %v1563_v6, %v1396_v56  ;;  %v8745_v49 = vrot.slane %v7830_v51, 2 }
 0x21b   :  { %v961_v22 = vmul.f32 %v7532_v41, %v4962_v21  ;;  %v7914_v10 = vmul.f32 %v7537_v38, %v4962_v21  ;;  %v1532_v57 = vmul.f32 %v7736_v15, %v4967_v23  ;;  %v3278_v55 = vadd.f32 %v3093_v17, %v2794_v18 }
 0x21c   :  { %v3657_v61 = vsel %vm1114_vm2, %v8745_v49, %v3656_v12  ;;  %v2111_v9 = vadd.f32 %v1974_v59, %v1627_v44  ;;  %v695_v16 = vrot.slane %v476_v8, 1  ;;  %v696_v26 = vrot.slane %v7905_v63, 1  ;;  %v7974_v49 = vld [vmem:[%s8652_s2] ss:$0 sm:$0xff] }
 0x21d   :  { %v1180_v48 = vrot.slane %v961_v22, 2  ;;  %v1181_v51 = vrot.slane %v7914_v10, 2  ;;  %v1677_v54 = vmul.f32 %v7736_v15, %v4980_v29  ;;  %v7924_v41 = vmul.f32 %v7741_v60, %v4980_v29  ;;  %v1495_v10 = vld [vmem:[#allocation2 + $0x310] sm:$0x3] }
 0x21e   :  { %v3762_v53 = vadd.f32 %v3577_v28, %v3278_v55  ;;  %v2595_v6 = vadd.f32 %v2458_v46, %v2111_v9  ;;  %v697_v17 = vsel %vm629_vm1, %v695_v16, %v696_v26  ;;  %v2161_v45 = vmul.f32 %v7736_v15, %v4995_v35 }
 0x21f   :  { %v880_v25 = vadd.f32 %v697_v17, %v395_v24  ;;  %v1182_v2 = vsel %vm1114_vm2, %v1180_v48, %v1181_v51  ;;  %v1895_v7 = vrot.slane %v1677_v54, 1  ;;  %v1896_v0 = vrot.slane %v7924_v41, 1  ;;  %v2694_v41 = vld [vmem:[#allocation2 + $0x328] sm:$0x3] }
 0x220   :  { %v3833_v58 = vadd.f32 %v7305_v37, %v3762_v53  ;;  %v2826_v39 = vadd.f32 %v2762_v40, %v2595_v6  ;;  %v7938_v28 = vmul.f32 %v7741_v60, %v4995_v35  ;;  %v2379_v11 = vrot.slane %v2161_v45, 2 }
 0x221   :  { %v1365_v52 = vadd.f32 %v1182_v2, %v880_v25  ;;  %v1897_v33 = vsel %vm629_vm1, %v1895_v7, %v1896_v0  ;;  %v2731_v1 = vmul.f32 %v4997_v36, %v7940_v5  ;;  %v2876_v37 = vmul.f32 %v5013_v42, %v7940_v5 }
 0x222   :  { %v3897_v40 = vmax.f32 %v3833_v58, 0.0  ;;  %v3310_v3 = vadd.f32 %v3173_v43, %v2826_v39  ;;  %v2380_v13 = vrot.slane %v7938_v28, 2  ;;  %v7954_v30 = vmul.f32 %v5013_v42, %v7945_v4  ;;  %v8003_v58 = vld [vmem:[#allocation2 + $0x318] sm:$0xff] }
 0x223   :  { %v1596_v14 = vadd.f32 %v1532_v57, %v1365_v52  ;;  %v3094_v56 = vrot.slane %v2876_v37, 1  ;;  %v3360_v59 = vmul.f32 %v5031_v47, %v7940_v5  ;;  %v7960_v34 = vmul.f32 %v5031_v47, %v7945_v4 }
 0x224   :  { %4641 = vmatmul.mubr.f32.gmra.mxu0 %v3897_v40  ;;  %v3794_v46 = vadd.f32 %v3657_v61, %v3310_v3  ;;  %v2381_v50 = vsel %vm1114_vm2, %v2379_v11, %v2380_v13  ;;  %v3095_v43 = vrot.slane %v7954_v30, 1  ;;  %v427_v12 = vmul.f32 %v7590_v27, %v4957_v19 }
 0x225   :  { %v2080_v24 = vadd.f32 %v1897_v33, %v1596_v14  ;;  %v3578_v18 = vrot.slane %v3360_v59, 2  ;;  %v3579_v44 = vrot.slane %v7960_v34, 2  ;;  %v524_v8 = vmul.f32 %v7590_v27, %v4959_v20 }
 0x226   :  { %v3865_v61 = vadd.f32 %v7974_v49, %v3794_v46  ;;  %v3096_v22 = vsel %vm629_vm1, %v3094_v56, %v3095_v43  ;;  %v7982_v57 = vmul.f32 %v7608_v31, %v4959_v20  ;;  %v1009_v55 = vmul.f32 %v7590_v27, %v4962_v21  ;;  %v8021_v46 = vld [vmem:[#allocation2 + $0x320] sm:$0xff] }
 0x227   :  { %v2564_v9 = vadd.f32 %v2381_v50, %v2080_v24  ;;  %v3580_v16 = vsel %vm1114_vm2, %v3578_v18, %v3579_v44  ;;  %v775_v48 = vrot.slane %v524_v8, 1  ;;  %v7991_v54 = vmul.f32 %v7608_v31, %v4962_v21 }
 0x228   :  { %v3929_v53 = vmax.f32 %v3865_v61, 0.0  ;;  %v776_v6 = vrot.slane %v7982_v57, 1  ;;  %v1260_v17 = vrot.slane %v1009_v55, 2  ;;  %v1564_v45 = vmul.f32 %v7794_v32, %v4967_v23  ;;  %v310_v61 = vld [vmem:[#allocation2 + $0x148] sm:$0x3] }
 0x229   :  { %v2795_v25 = vadd.f32 %v2731_v1, %v2564_v9  ;;  %v1261_v27 = vrot.slane %v7991_v54, 2  ;;  %v1725_v2 = vmul.f32 %v7794_v32, %v4980_v29  ;;  %v8001_v7 = vmul.f32 %v7812_v62, %v4980_v29 }
 0x22a   :  { %4689 = vmatmul.mubr.f32.gmra.mxu1 %v3929_v53  ;;  %v777_v39 = vsel %vm629_vm1, %v775_v48, %v776_v6  ;;  %v2209_v11 = vmul.f32 %v7794_v32, %v4995_v35  ;;  %v8012_v52 = vmul.f32 %v7812_v62, %v4995_v35  ;;  %v2763_v33 = vmul.f32 %v4997_v36, %v8003_v58 }
 0x22b   :  { %v3279_v1 = vadd.f32 %v3096_v22, %v2795_v25  ;;  %v912_v37 = vadd.f32 %v777_v39, %v427_v12  ;;  %v1262_v40 = vsel %vm1114_vm2, %v1260_v17, %v1261_v27  ;;  %v1975_v3 = vrot.slane %v1725_v2, 1  ;;  %v1447_v2 = vld [vmem:[#allocation2 + $0x160] sm:$0x3] }
 0x22c   :  { %v1976_v14 = vrot.slane %v8001_v7, 1  ;;  %v2459_v56 = vrot.slane %v2209_v11, 2  ;;  %v8693_v59 = vrot.slane %v8012_v52, 2  ;;  %v2924_v50 = vmul.f32 %v5013_v42, %v8003_v58 }
 0x22d   :  { %v3763_v24 = vadd.f32 %v3580_v16, %v3279_v1  ;;  %v1397_v18 = vadd.f32 %v1262_v40, %v912_v37  ;;  %v8027_v12 = vmul.f32 %v5013_v42, %v8021_v46  ;;  %v3408_v8 = vmul.f32 %v5031_v47, %v8003_v58  ;;  %v2646_v40 = vld [vmem:[#allocation2 + $0x178] sm:$0x3] }
 0x22e   :  { %v1977_v22 = vsel %vm629_vm1, %v1975_v3, %v1976_v14  ;;  %v2461_v55 = vsel %vm1114_vm2, %v2459_v56, %v8693_v59  ;;  %v3174_v9 = vrot.slane %v2924_v50, 1  ;;  %v8039_v16 = vmul.f32 %v5031_v47, %v8021_v46 }
 0x22f   :  { %v3834_v48 = vadd.f32 %v7974_v49, %v3763_v24  ;;  %v1628_v53 = vadd.f32 %v1564_v45, %v1397_v18  ;;  %v8691_v17 = vrot.slane %v8027_v12, 1  ;;  %v3658_v25 = vrot.slane %v3408_v8, 2 }
 0x230   :  { %v8692_v39 = vrot.slane %v8039_v16, 2  ;;  %v396_v11 = vmul.f32 %v7537_v38, %v4957_v19  ;;  %v478_v1 = vmul.f32 %v4959_v20, %v310_v61  ;;  %v963_v37 = vmul.f32 %v4962_v21, %v310_v61 }
 0x231   :  { %v3898_v3 = vmax.f32 %v3834_v48, 0.0  ;;  %v2112_v56 = vadd.f32 %v1977_v22, %v1628_v53  ;;  %v3176_v45 = vsel %vm629_vm1, %v3174_v9, %v8691_v17  ;;  %v1533_v50 = vmul.f32 %v7741_v60, %v4967_v23  ;;  %v358_v53 = vld [vmem:[#allocation2 + $0x2f8] sm:$0x3] }
 0x232   :  { %v3660_v24 = vsel %vm1114_vm2, %v3658_v25, %v8692_v39  ;;  %v698_v18 = vrot.slane %v478_v1, 1  ;;  %v1183_v38 = vrot.slane %v963_v37, 2  ;;  %v1679_v8 = vmul.f32 %v4980_v29, %v1447_v2 }
 0x233   :  { %4643 = vmatprep.mubr.f32.mxu0 %v3898_v3  ;;  %v2596_v61 = vadd.f32 %v2461_v55, %v2112_v56  ;;  %v2163_v48 = vmul.f32 %v4995_v35, %v1447_v2  ;;  %v2732_v22 = vmul.f32 %v4997_v36, %v7945_v4  ;;  %v2878_v9 = vmul.f32 %v5013_v42, %v2646_v40 }
 0x234   :  { %v699_v17 = vsel %vm629_vm1, %v696_v26, %v698_v18  ;;  %v1184_v25 = vsel %vm1114_vm2, %v1181_v51, %v1183_v38  ;;  %v1898_v1 = vrot.slane %v1679_v8, 1  ;;  %v3362_v37 = vmul.f32 %v5031_v47, %v2646_v40 }
 0x235   :  { %v2827_v55 = vadd.f32 %v2763_v33, %v2596_v61  ;;  %v881_v3 = vadd.f32 %v699_v17, %v396_v11  ;;  %v2382_v2 = vrot.slane %v2163_v48, 2  ;;  %v3097_v56 = vrot.slane %v2878_v9, 1 }
 0x236   :  { %v1899_v39 = vsel %vm629_vm1, %v1896_v0, %v1898_v1  ;;  %v3581_v59 = vrot.slane %v3362_v37, 2  ;;  %v428_v63 = vmul.f32 %v7608_v31, %v4957_v19  ;;  %v526_v26 = vmul.f32 %v4959_v20, %v358_v53 }
 0x237   :  { %v3311_v18 = vadd.f32 %v3176_v45, %v2827_v55  ;;  %v1366_v51 = vadd.f32 %v1184_v25, %v881_v3  ;;  %v2383_v33 = vsel %vm1114_vm2, %v2380_v13, %v2382_v2  ;;  %v3098_v17 = vsel %vm629_vm1, %v3095_v43, %v3097_v56 }
 0x238   :  { %v3582_v0 = vsel %vm1114_vm2, %v3579_v44, %v3581_v59  ;;  %v778_v11 = vrot.slane %v526_v26, 1  ;;  %v1011_v31 = vmul.f32 %v4962_v21, %v358_v53  ;;  %v1565_v40 = vmul.f32 %v7812_v62, %v4967_v23 }
 0x239   :  { %v3795_v45 = vadd.f32 %v3660_v24, %v3311_v18  ;;  %v1597_v38 = vadd.f32 %v1533_v50, %v1366_v51  ;;  %v1727_v28 = vmul.f32 %v4980_v29, %v1495_v10  ;;  %v2211_v13 = vmul.f32 %v4995_v35, %v1495_v10 }
 0x23a   :  { %v779_v30 = vsel %vm629_vm1, %v776_v6, %v778_v11  ;;  %v1263_v43 = vrot.slane %v1011_v31, 2  ;;  %v2764_v34 = vmul.f32 %v4997_v36, %v8021_v46  ;;  %v2926_v44 = vmul.f32 %v5013_v42, %v2694_v41 }
 0x23b   :  { %v3866_v59 = vadd.f32 %v7974_v49, %v3795_v45  ;;  %v2081_v8 = vadd.f32 %v1899_v39, %v1597_v38  ;;  %v913_v61 = vadd.f32 %v779_v30, %v428_v63  ;;  %v1978_v24 = vrot.slane %v1727_v28, 1 }
 0x23c   :  { %v1264_v50 = vsel %vm1114_vm2, %v1261_v27, %v1263_v43  ;;  %v2462_v48 = vrot.slane %v2211_v13, 2  ;;  %v3177_v9 = vrot.slane %v2926_v44, 1  ;;  %v3410_v57 = vmul.f32 %v5031_v47, %v2694_v41 }
 0x23d   :  { %v3930_v6 = vmax.f32 %v3866_v59, 0.0  ;;  %v2565_v53 = vadd.f32 %v2383_v33, %v2081_v8  ;;  %v1398_v25 = vadd.f32 %v1264_v50, %v913_v61  ;;  %v1979_v1 = vsel %vm629_vm1, %v1976_v14, %v1978_v24  ;;  %v8149_v8 = vld [vmem:[#allocation2 + $0x180] sm:$0xff]  ;;  %v8154_v50 = vld [vmem:[#allocation2 + $0x188] sm:$0xff] }
 0x23e   :  { %v8746_v37 = vrot.slane %v8012_v52, 2  ;;  %v8747_v55 = vrot.slane %v8027_v12, 1  ;;  %v3661_v27 = vrot.slane %v3410_v57, 2  ;;  %v397_v3 = vmul.f32 %v7736_v15, %v4957_v19 }
 0x23f   :  { %4691 = vmatprep.mubr.f32.mxu1 %v3930_v6  ;;  %v2796_v2 = vadd.f32 %v2732_v22, %v2565_v53  ;;  %v1629_v56 = vadd.f32 %v1565_v40, %v1398_v25  ;;  %v479_v7 = vmul.f32 %v7736_v15, %v4959_v20  ;;  %v8114_v14 = vmul.f32 %v7741_v60, %v4959_v20 }
 0x240   :  { %v2463_v39 = vsel %vm1114_vm2, %v8746_v37, %v2462_v48  ;;  %v3178_v54 = vsel %vm629_vm1, %v8747_v55, %v3177_v9  ;;  %v8748_v52 = vrot.slane %v8039_v16, 2  ;;  %v964_v63 = vmul.f32 %v7736_v15, %v4962_v21 }
 0x241   :  { %v8123_v26 = vmul.f32 %v7741_v60, %v4962_v21  ;;  %v1534_v22 = vmul.f32 %v7940_v5, %v4967_v23  ;;  %v3280_v10 = vadd.f32 %v3098_v17, %v2796_v2  ;;  %v2113_v18 = vadd.f32 %v1979_v1, %v1629_v56 }
 0x242   :  { %v3662_v12 = vsel %vm1114_vm2, %v8748_v52, %v3661_v27  ;;  %v700_v51 = vrot.slane %v479_v7, 1  ;;  %v701_v33 = vrot.slane %v8114_v14, 1  ;;  %v1185_v41 = vrot.slane %v964_v63, 2  ;;  %v8180_v63 = vpop.f32.mrf.mxu0 }
 0x243   :  { %v1186_v16 = vrot.slane %v8123_v26, 2  ;;  %v1680_v11 = vmul.f32 %v7940_v5, %v4980_v29  ;;  %v8133_v15 = vmul.f32 %v7945_v4, %v4980_v29  ;;  %v3764_v31 = vadd.f32 %v3582_v0, %v3280_v10 }
 0x244   :  { %v2597_v40 = vadd.f32 %v2463_v39, %v2113_v18  ;;  %v702_v17 = vsel %vm629_vm1, %v700_v51, %v701_v33  ;;  %v2164_v45 = vmul.f32 %v7940_v5, %v4995_v35  ;;  %v8147_v0 = vmul.f32 %v7945_v4, %v4995_v35 }
 0x245   :  { %v882_v38 = vadd.f32 %v702_v17, %v397_v3  ;;  %v1187_v28 = vsel %vm1114_vm2, %v1185_v41, %v1186_v16  ;;  %v1900_v13 = vrot.slane %v1680_v11, 1  ;;  %v8703_v30 = vrot.slane %v8133_v15, 1 }
 0x246   :  { %v3835_v43 = vadd.f32 %v7974_v49, %v3764_v31  ;;  %v2828_v44 = vadd.f32 %v2764_v34, %v2597_v40  ;;  %v2384_v59 = vrot.slane %v2164_v45, 2  ;;  %v2733_v48 = vmul.f32 %v4997_v36, %v8149_v8  ;;  %v8199_v40 = vpop.f32.mrf.mxu1 }
 0x247   :  { %v1367_v61 = vadd.f32 %v1187_v28, %v882_v38  ;;  %v1902_v24 = vsel %vm629_vm1, %v1900_v13, %v8703_v30  ;;  %v2879_v34 = vmul.f32 %v5013_v42, %v8149_v8  ;;  %v8701_v6 = vrot.slane %v8147_v0, 2 }
 0x248   :  { %v3899_v9 = vmax.f32 %v3835_v43, 0.0  ;;  %v3312_v57 = vadd.f32 %v3178_v54, %v2828_v44  ;;  %v8163_v53 = vmul.f32 %v5013_v42, %v8154_v50  ;;  %v3363_v37 = vmul.f32 %v5031_v47, %v8149_v8 }
 0x249   :  { %v1598_v25 = vadd.f32 %v1534_v22, %v1367_v61  ;;  %v3099_v1 = vrot.slane %v2879_v34, 1  ;;  %v8169_v39 = vmul.f32 %v5031_v47, %v8154_v50  ;;  %v2386_v54 = vsel %vm1114_vm2, %v2384_v59, %v8701_v6  ;;  %v8211_v59 = vld [vmem:[#allocation2 + $0x330] sm:$0xff]  ;;  %v8213_v61 = vpop.f32.mrf.mxu0 }
 0x24a   :  { %4644 = vmatmul.mubr.f32.gmra.mxu0 %v3899_v9  ;;  %v3796_v55 = vadd.f32 %v3662_v12, %v3312_v57  ;;  %v8699_v27 = vrot.slane %v8163_v53, 1  ;;  %v429_v3 = vmul.f32 %v7794_v32, %v4957_v19  ;;  %v3583_v56 = vrot.slane %v3363_v37, 2 }
 0x24b   :  { %v2082_v2 = vadd.f32 %v1902_v24, %v1598_v25  ;;  %v8698_v7 = vrot.slane %v8169_v39, 2  ;;  %v527_v52 = vmul.f32 %v7794_v32, %v4959_v20  ;;  %v8188_v10 = vmul.f32 %v7812_v62, %v4959_v20 }
 0x24c   :  { %v3867_v12 = vadd.f32 %v7974_v49, %v3796_v55  ;;  %v3101_v22 = vsel %vm629_vm1, %v3099_v1, %v8699_v27  ;;  %v1012_v18 = vmul.f32 %v7794_v32, %v4962_v21  ;;  %v8197_v31 = vmul.f32 %v7812_v62, %v4962_v21  ;;  %v8229_v55 = vpop.f32.mrf.mxu1 }
 0x24d   :  { %v2566_v51 = vadd.f32 %v2386_v54, %v2082_v2  ;;  %v3585_v41 = vsel %vm1114_vm2, %v3583_v56, %v8698_v7  ;;  %v780_v11 = vrot.slane %v527_v52, 1  ;;  %v8697_v45 = vrot.slane %v8188_v10, 1  ;;  %v8233_v52 = vld [vmem:[#allocation2 + $0x338] sm:$0xff] }
 0x24e   :  { %v3931_v17 = vmax.f32 %v3867_v12, 0.0  ;;  %v1265_v38 = vrot.slane %v1012_v18, 2  ;;  %v1566_v28 = vmul.f32 %v8003_v58, %v4967_v23  ;;  %v8694_v13 = vrot.slane %v8197_v31, 2 }
 0x24f   :  { %v2797_v32 = vadd.f32 %v2733_v48, %v2566_v51  ;;  %v1728_v43 = vmul.f32 %v8003_v58, %v4980_v29  ;;  %v8209_v44 = vmul.f32 %v8021_v46, %v4980_v29  ;;  %v782_v24 = vsel %vm629_vm1, %v780_v11, %v8697_v45  ;;  %v313_v11 = vld [vmem:[#allocation2 + $0x160] sm:$0x3] }
 0x250   :  { %4692 = vmatmul.mubr.f32.gmra.mxu1 %v3931_v17  ;;  %v2212_v48 = vmul.f32 %v8003_v58, %v4995_v35  ;;  %v8222_v34 = vmul.f32 %v8021_v46, %v4995_v35  ;;  %v2765_v9 = vmul.f32 %v4997_v36, %v8211_v59  ;;  %v914_v25 = vadd.f32 %v782_v24, %v429_v3  ;;  %v8243_v17 = vpop.f32.mrf.mxu0 }
 0x251   :  { %v3281_v57 = vadd.f32 %v3101_v22, %v2797_v32  ;;  %v1267_v1 = vsel %vm1114_vm2, %v1265_v38, %v8694_v13  ;;  %v1980_v37 = vrot.slane %v1728_v43, 1  ;;  %v8695_v54 = vrot.slane %v8209_v44, 1  ;;  %v8257_v13 = vpop.f32.mrf.mxu1 }
 0x252   :  { %v2464_v2 = vrot.slane %v2212_v48, 2  ;;  %v8696_v56 = vrot.slane %v8222_v34, 2  ;;  %v2927_v12 = vmul.f32 %v5013_v42, %v8211_v59  ;;  %v1399_v22 = vadd.f32 %v1267_v1, %v914_v25  ;;  %v1450_v1 = vld [vmem:[#allocation2 + $0x178] sm:$0x3] }
 0x253   :  { %v3765_v18 = vadd.f32 %v3585_v41, %v3281_v57  ;;  %v8239_v3 = vmul.f32 %v5013_v42, %v8233_v52  ;;  %v3411_v51 = vmul.f32 %v5031_v47, %v8211_v59  ;;  %v1982_v38 = vsel %vm629_vm1, %v1980_v37, %v8695_v54  ;;  %v8279_v6 = vpop.f32.mrf.mxu1 }
 0x254   :  { %v2466_v32 = vsel %vm1114_vm2, %v2464_v2, %v8696_v56  ;;  %v3179_v41 = vrot.slane %v2927_v12, 1  ;;  %v8253_v43 = vmul.f32 %v5031_v47, %v8233_v52  ;;  %v1630_v48 = vadd.f32 %v1566_v28, %v1399_v22  ;;  %v2649_v56 = vld [vmem:[#allocation2 + $0x190] sm:$0x3]  ;;  %v8269_v22 = vpop.f32.mrf.mxu0  ;;  %8750 = vst [vmem:[#allocation7_spill] sm:$0xff] %v8279_v6 }
 0x255   :  { %v3836_v24 = vadd.f32 %v7974_v49, %v3765_v18  ;;  %v8700_v57 = vrot.slane %v8239_v3, 1  ;;  %v3663_v25 = vrot.slane %v3411_v51, 2  ;;  %v398_v54 = vmul.f32 %v7741_v60, %v4957_v19  ;;  %8749 = vst [vmem:[#allocation6_spill] sm:$0xff] %v8269_v22 }
 0x256   :  { %v8702_v37 = vrot.slane %v8253_v43, 2  ;;  %v481_v2 = vmul.f32 %v4959_v20, %v313_v11  ;;  %v966_v12 = vmul.f32 %v4962_v21, %v313_v11  ;;  %v2114_v7 = vadd.f32 %v1982_v38, %v1630_v48  ;;  %v8288_v30 = vpop.f32.mrf.mxu0 }
 0x257   :  { %v3900_v45 = vmax.f32 %v3836_v24, 0.0  ;;  %v3181_v28 = vsel %vm629_vm1, %v3179_v41, %v8700_v57  ;;  %v1535_v18 = vmul.f32 %v7945_v4, %v4967_v23  ;;  %v1682_v11 = vmul.f32 %v4980_v29, %v1450_v1  ;;  %v361_v57 = vld [vmem:[#allocation2 + $0x310] sm:$0x3] }
 0x258   :  { %v3665_v60 = vsel %vm1114_vm2, %v3663_v25, %v8702_v37  ;;  %v703_v51 = vrot.slane %v481_v2, 1  ;;  %v1188_v27 = vrot.slane %v966_v12, 2  ;;  %v2598_v24 = vadd.f32 %v2466_v32, %v2114_v7 }
 0x259   :  { %4646 = vmatprep.mubr.f32.mxu0 %v3900_v45  ;;  %v2166_v38 = vmul.f32 %v4995_v35, %v1450_v1  ;;  %v2734_v41 = vmul.f32 %v4997_v36, %v8154_v50  ;;  %v2881_v48 = vmul.f32 %v5013_v42, %v2649_v56  ;;  %v1903_v45 = vrot.slane %v1682_v11, 1 }
 0x25a   :  { %v704_v25 = vsel %vm629_vm1, %v701_v33, %v703_v51  ;;  %v1189_v2 = vsel %vm1114_vm2, %v1186_v16, %v1188_v27  ;;  %v3365_v7 = vmul.f32 %v5031_v47, %v2649_v56  ;;  %v2829_v32 = vadd.f32 %v2765_v9, %v2598_v24  ;;  %v1498_v16 = vld [vmem:[#allocation2 + $0x328] sm:$0x3]  ;;  %v8302_v24 = vpop.f32.mrf.mxu1 }
 0x25b   :  { %v883_v1 = vadd.f32 %v704_v25, %v398_v54  ;;  %v2387_v12 = vrot.slane %v2166_v38, 2  ;;  %v3102_v37 = vrot.slane %v2881_v48, 1  ;;  %v8751_v22 = vrot.slane %v8133_v15, 1  ;;  %v2697_v15 = vld [vmem:[#allocation2 + $0x340] sm:$0x3] }
 0x25c   :  { %v3586_v14 = vrot.slane %v3365_v7, 2  ;;  %v430_v33 = vmul.f32 %v7812_v62, %v4957_v19  ;;  %v529_v26 = vmul.f32 %v4959_v20, %v361_v57  ;;  %v3313_v27 = vadd.f32 %v3181_v28, %v2829_v32 }
 0x25d   :  { %v1904_v6 = vsel %vm629_vm1, %v8751_v22, %v1903_v45  ;;  %v1368_v51 = vadd.f32 %v1189_v2, %v883_v1  ;;  %v8752_v9 = vrot.slane %v8147_v0, 2  ;;  %v8753_v56 = vrot.slane %v8163_v53, 1 }
 0x25e   :  { %v8754_v22 = vrot.slane %v8169_v39, 2  ;;  %v783_v38 = vrot.slane %v529_v26, 1  ;;  %v1014_v48 = vmul.f32 %v4962_v21, %v361_v57  ;;  %v1567_v28 = vmul.f32 %v8021_v46, %v4967_v23 }
 0x25f   :  { %v2388_v54 = vsel %vm1114_vm2, %v8752_v9, %v2387_v12  ;;  %v3103_v11 = vsel %vm629_vm1, %v8753_v56, %v3102_v37  ;;  %v3797_v0 = vadd.f32 %v3665_v60, %v3313_v27  ;;  %v1599_v25 = vadd.f32 %v1535_v18, %v1368_v51  ;;  %v8312_v37 = vpop.f32.mrf.mxu0 }
 0x260   :  { %v3587_v62 = vsel %vm1114_vm2, %v8754_v22, %v3586_v14  ;;  %v1730_v2 = vmul.f32 %v4980_v29, %v1498_v16  ;;  %v2214_v53 = vmul.f32 %v4995_v35, %v1498_v16  ;;  %v8755_v45 = vrot.slane %v8188_v10, 1  ;;  %v8321_v14 = vpop.f32.mrf.mxu1 }
 0x261   :  { %v1268_v7 = vrot.slane %v1014_v48, 2  ;;  %v2766_v32 = vmul.f32 %v4997_v36, %v8233_v52  ;;  %v2929_v57 = vmul.f32 %v5013_v42, %v2697_v15  ;;  %v3868_v1 = vadd.f32 %v7974_v49, %v3797_v0 }
 0x262   :  { %v784_v39 = vsel %vm629_vm1, %v8755_v45, %v783_v38  ;;  %v2083_v60 = vadd.f32 %v1904_v6, %v1599_v25  ;;  %v1983_v12 = vrot.slane %v1730_v2, 1  ;;  %v8756_v26 = vrot.slane %v8197_v31, 2  ;;  %v8330_v6 = vpop.f32.mrf.mxu0 }
 0x263   :  { %v915_v18 = vadd.f32 %v784_v39, %v430_v33  ;;  %v2467_v10 = vrot.slane %v2214_v53, 2  ;;  %v3182_v27 = vrot.slane %v2929_v57, 1  ;;  %v3413_v51 = vmul.f32 %v5031_v47, %v2697_v15 }
 0x264   :  { %v1269_v16 = vsel %vm1114_vm2, %v8756_v26, %v1268_v7  ;;  %v3932_v9 = vmax.f32 %v3868_v1, 0.0  ;;  %v2567_v56 = vadd.f32 %v2388_v54, %v2083_v60  ;;  %v8757_v38 = vrot.slane %v8209_v44, 1 }
 0x265   :  { %v1400_v22 = vadd.f32 %v1269_v16, %v915_v18  ;;  %v8758_v33 = vrot.slane %v8222_v34, 2  ;;  %v8759_v31 = vrot.slane %v8239_v3, 1  ;;  %v3666_v2 = vrot.slane %v3413_v51, 2  ;;  %v8346_v34 = vpop.f32.mrf.mxu1 }
 0x266   :  { %v1984_v48 = vsel %vm629_vm1, %v8757_v38, %v1983_v12  ;;  %v399_v15 = vmul.f32 %v7940_v5, %v4957_v19  ;;  %4694 = vmatprep.mubr.f32.mxu1 %v3932_v9  ;;  %v2798_v54 = vadd.f32 %v2734_v41, %v2567_v56  ;;  %v482_v44 = vmul.f32 %v7940_v5, %v4959_v20  ;;  %v8360_v12 = vpop.f32.mrf.mxu0 }
 0x267   :  { %v2468_v0 = vsel %vm1114_vm2, %v8758_v33, %v2467_v10  ;;  %v3183_v25 = vsel %vm629_vm1, %v8759_v31, %v3182_v27  ;;  %v1631_v53 = vadd.f32 %v1567_v28, %v1400_v22  ;;  %v8344_v45 = vmul.f32 %v7945_v4, %v4959_v20  ;;  %v8374_v9 = vpop.f32.mrf.mxu1 }
 0x268   :  { %v8760_v3 = vrot.slane %v8253_v43, 2  ;;  %v967_v7 = vmul.f32 %v7940_v5, %v4962_v21  ;;  %v8355_v41 = vmul.f32 %v7945_v4, %v4962_v21  ;;  %v1536_v28 = vmul.f32 %v8149_v8, %v4967_v23 }
 0x269   :  { %v3282_v57 = vadd.f32 %v3103_v11, %v2798_v54  ;;  %v2115_v1 = vadd.f32 %v1984_v48, %v1631_v53  ;;  %v705_v60 = vrot.slane %v482_v44, 1  ;;  %v8709_v18 = vrot.slane %v8344_v45, 1  ;;  %v4740_v54 = vld [vmem:[#allocation2] sm:$0xff] }
 0x26a   :  { %v3667_v39 = vsel %vm1114_vm2, %v8760_v3, %v3666_v2  ;;  %v1190_v43 = vrot.slane %v967_v7, 2  ;;  %v8708_v26 = vrot.slane %v8355_v41, 2  ;;  %v1683_v5 = vmul.f32 %v8149_v8, %v4980_v29  ;;  %v8385_v2 = vpop.f32.mrf.mxu0 }
 0x26b   :  { %v8367_v16 = vmul.f32 %v8154_v50, %v4980_v29  ;;  %v3766_v10 = vadd.f32 %v3587_v62, %v3282_v57  ;;  %v2599_v27 = vadd.f32 %v2468_v0, %v2115_v1  ;;  %v707_v11 = vsel %vm629_vm1, %v705_v60, %v8709_v18  ;;  %v8396_v1 = vpop.f32.mrf.mxu1 }
 0x26c   :  { %v2167_v51 = vmul.f32 %v8149_v8, %v4995_v35  ;;  %v884_v56 = vadd.f32 %v707_v11, %v399_v15  ;;  %v1192_v22 = vsel %vm1114_vm2, %v1190_v43, %v8708_v26  ;;  %v1905_v38 = vrot.slane %v1683_v5, 1 }
 0x26d   :  { %v8707_v48 = vrot.slane %v8367_v16, 1  ;;  %v3837_v62 = vadd.f32 %v7974_v49, %v3766_v10  ;;  %v2830_v33 = vadd.f32 %v2766_v32, %v2599_v27  ;;  %v8383_v0 = vmul.f32 %v8154_v50, %v4995_v35 }
 0x26e   :  { %v2389_v31 = vrot.slane %v2167_v51, 2  ;;  %v1369_v8 = vadd.f32 %v1192_v22, %v884_v56  ;;  %v8391_v53 = vmul.f32 %v4740_v54, %v4997_v36  ;;  %v2882_v44 = vmul.f32 %v4740_v54, %v5013_v42 }
 0x26f   :  { %v1907_v15 = vsel %vm629_vm1, %v1905_v38, %v8707_v48  ;;  %v3901_v3 = vmax.f32 %v3837_v62, 0.0  ;;  %v3314_v32 = vadd.f32 %v3183_v25, %v2830_v33  ;;  %v8705_v7 = vrot.slane %v8383_v0, 2  ;;  %v8423_v33 = vpop.f32.mrf.mxu1 }
 0x270   :  { %v3366_v57 = vmul.f32 %v4740_v54, %v5031_v47  ;;  %v1600_v60 = vadd.f32 %v1536_v28, %v1369_v8  ;;  %v8398_v43 = vrot.slane %v2882_v44, 1  ;;  %v431_v5 = vmul.f32 %v8003_v58, %v4957_v19  ;;  %v8413_v28 = vpop.f32.mrf.mxu0  ;;  %8762 = vst [vmem:[#allocation9_spill] sm:$0xff] %v8423_v33 }
 0x271   :  { %v530_v36 = vmul.f32 %v8003_v58, %v4959_v20  ;;  %4647 = vmatmul.mubr.f32.gmra.mxu0 %v3901_v3  ;;  %v3798_v10 = vadd.f32 %v3667_v39, %v3314_v32  ;;  %v2391_v25 = vsel %vm1114_vm2, %v2389_v31, %v8705_v7  ;;  %v8411_v11 = vmul.f32 %v8021_v46, %v4959_v20  ;;  %v2652_v7 = vld [vmem:[#allocation2 + $0x1a8] sm:$0x3] }
 0x272   :  { %v8407_v27 = vrot.slane %v3366_v57, 2  ;;  %8761 = vst [vmem:[#allocation8_spill] sm:$0xff] %v8413_v28  ;;  %v2084_v51 = vadd.f32 %v1907_v15, %v1600_v60  ;;  %v1015_v22 = vmul.f32 %v8003_v58, %v4962_v21  ;;  %v8421_v62 = vmul.f32 %v8021_v46, %v4962_v21  ;;  %v316_v57 = vld [vmem:[#allocation2 + $0x178] sm:$0x3]  ;;  %v8437_v60 = vpop.f32.mrf.mxu0 }
 0x273   :  { %v785_v56 = vrot.slane %v530_v36, 1  ;;  %v3869_v38 = vadd.f32 %v7974_v49, %v3798_v10  ;;  %v8704_v39 = vrot.slane %v8411_v11, 1  ;;  %v1568_v54 = vmul.f32 %v8211_v59, %v4967_v23  ;;  %8763 = vst [vmem:[#allocation10_spill] sm:$0xff] %v8437_v60 }
 0x274   :  { %v2568_v31 = vadd.f32 %v2391_v25, %v2084_v51  ;;  %v1270_v8 = vrot.slane %v1015_v22, 2  ;;  %v1731_v15 = vmul.f32 %v8211_v59, %v4980_v29  ;;  %v8706_v3 = vrot.slane %v8421_v62, 2  ;;  %v8463_v26 = vpop.f32.mrf.mxu0 }
 0x275   :  { %v3933_v44 = vmax.f32 %v3869_v38, 0.0  ;;  %v787_v58 = vsel %vm629_vm1, %v785_v56, %v8704_v39  ;;  %v8435_v32 = vmul.f32 %v8233_v52, %v4980_v29  ;;  %v2215_v51 = vmul.f32 %v8211_v59, %v4995_v35  ;;  %8765 = vst [vmem:[#allocation12_spill] sm:$0xff] %v8463_v26 }
 0x276   :  { %v2799_v36 = vadd.f32 %v8391_v53, %v2568_v31  ;;  %v916_v10 = vadd.f32 %v787_v58, %v431_v5  ;;  %v1985_v25 = vrot.slane %v1731_v15, 1  ;;  %v1272_v56 = vsel %vm1114_vm2, %v1270_v8, %v8706_v3  ;;  %v1453_v31 = vld [vmem:[#allocation2 + $0x190] sm:$0x3]  ;;  %v8452_v5 = vpop.f32.mrf.mxu1  ;;  %v8479_v33 = vpop.f32.mrf.mxu0 }
 0x277   :  { %4695 = vmatmul.mubr.f32.gmra.mxu1 %v3933_v44  ;;  %v8710_v22 = vrot.slane %v8435_v32, 1  ;;  %v8448_v38 = vmul.f32 %v8233_v52, %v4995_v35  ;;  %v400_v39 = vmul.f32 %v7945_v4, %v4957_v19  ;;  %8764 = vst [vmem:[#allocation11_spill] sm:$0xff] %v8452_v5  ;;  %v2469_v44 = vrot.slane %v2215_v51, 2 }
 0x278   :  { %v3283_v15 = vadd.f32 %v8398_v43, %v2799_v36  ;;  %v1401_v59 = vadd.f32 %v1272_v56, %v916_v10  ;;  %v484_v58 = vmul.f32 %v4959_v20, %v316_v57  ;;  %v969_v48 = vmul.f32 %v4962_v21, %v316_v57 }
 0x279   :  { %v1987_v8 = vsel %vm629_vm1, %v1985_v25, %v8710_v22  ;;  %v2470_v3 = vrot.slane %v8448_v38, 2  ;;  %v1537_v4 = vmul.f32 %v8154_v50, %v4967_v23  ;;  %v1685_v56 = vmul.f32 %v4980_v29, %v1453_v31  ;;  %v8470_v22 = vpop.f32.mrf.mxu1 }
 0x27a   :  { %v3767_v36 = vadd.f32 %v8407_v27, %v3283_v15  ;;  %v1632_v10 = vadd.f32 %v1568_v54, %v1401_v59  ;;  %v708_v51 = vrot.slane %v484_v58, 1  ;;  %v1193_v5 = vrot.slane %v969_v48, 2  ;;  %8766 = vst [vmem:[#allocation13_spill] sm:$0xff] %v8470_v22 }
 0x27b   :  { %v2471_v18 = vsel %vm1114_vm2, %v2469_v44, %v2470_v3  ;;  %v2169_v25 = vmul.f32 %v4995_v35, %v1453_v31  ;;  %v2884_v38 = vmul.f32 %v5013_v42, %v2652_v7  ;;  %v8767_v26 = vrot.slane %v8344_v45, 1  ;;  %v364_v31 = vld [vmem:[#allocation2 + $0x328] sm:$0x3] }
 0x27c   :  { %v3838_v57 = vadd.f32 %v7974_v49, %v3767_v36  ;;  %v2116_v50 = vadd.f32 %v1987_v8, %v1632_v10  ;;  %v1908_v54 = vrot.slane %v1685_v56, 1  ;;  %v8768_v58 = vrot.slane %v8355_v41, 2  ;;  %v8492_v56 = vpop.f32.mrf.mxu1 }
 0x27d   :  { %v709_v15 = vsel %vm629_vm1, %v8767_v26, %v708_v51  ;;  %v2392_v48 = vrot.slane %v2169_v25, 2  ;;  %v3107_v60 = vrot.slane %v2884_v38, 1  ;;  %v8769_v36 = vrot.slane %v8367_v16, 1  ;;  %v1501_v26 = vld [vmem:[#allocation2 + $0x340] sm:$0x3] }
 0x27e   :  { %v885_v59 = vadd.f32 %v709_v15, %v400_v39  ;;  %v1194_v44 = vsel %vm1114_vm2, %v8768_v58, %v1193_v5  ;;  %v3902_v28 = vmax.f32 %v3838_v57, 0.0  ;;  %v2600_v22 = vadd.f32 %v2471_v18, %v2116_v50  ;;  %v2700_v38 = vld [vmem:[#allocation2 + $0x358] sm:$0x3] }
 0x27f   :  { %v1909_v8 = vsel %vm629_vm1, %v8769_v36, %v1908_v54  ;;  %v3368_v45 = vmul.f32 %v5031_v47, %v2652_v7  ;;  %v8770_v39 = vrot.slane %v8383_v0, 2  ;;  %v3108_v5 = vsel %vm629_vm1, %v8398_v43, %v3107_v60 }
 0x280   :  { %v1370_v10 = vadd.f32 %v1194_v44, %v885_v59  ;;  %v432_v51 = vmul.f32 %v8021_v46, %v4957_v19  ;;  %4649 = vmatprep.mubr.f32.mxu0 %v3902_v28  ;;  %v2831_v18 = vadd.f32 %v8391_v53, %v2600_v22  ;;  %v532_v7 = vmul.f32 %v4959_v20, %v364_v31  ;;  %v8501_v19 = vpop.f32.mrf.mxu0 }
 0x281   :  { %v2393_v41 = vsel %vm1114_vm2, %v8770_v39, %v2392_v48  ;;  %v3591_v16 = vrot.slane %v3368_v45, 2  ;;  %v1017_v25 = vmul.f32 %v4962_v21, %v364_v31  ;;  %v1569_v57 = vmul.f32 %v8233_v52, %v4967_v23  ;;  %v8510_v23 = vld [vmem:[%s8654_s4] ss:$0 sm:$0xff] }
 0x282   :  { %v1601_v0 = vadd.f32 %v1537_v4, %v1370_v10  ;;  %v1733_v60 = vmul.f32 %v4980_v29, %v1501_v26  ;;  %v2217_v50 = vmul.f32 %v4995_v35, %v1501_v26  ;;  %v3315_v46 = vadd.f32 %v8398_v43, %v2831_v18  ;;  %v8512_v29 = vpop.f32.mrf.mxu1  ;;  %v8526_v26 = vpop.f32.mrf.mxu0 }
 0x283   :  { %v3592_v28 = vsel %vm1114_vm2, %v8407_v27, %v3591_v16  ;;  %v788_v22 = vrot.slane %v532_v7, 1  ;;  %v1273_v20 = vrot.slane %v1017_v25, 2  ;;  %v2932_v4 = vmul.f32 %v5013_v42, %v2700_v38 }
 0x284   :  { %v2085_v15 = vadd.f32 %v1909_v8, %v1601_v0  ;;  %v1988_v21 = vrot.slane %v1733_v60, 1  ;;  %v2472_v54 = vrot.slane %v2217_v50, 2  ;;  %v3799_v35 = vadd.f32 %v8407_v27, %v3315_v46  ;;  %v8542_v50 = vpop.f32.mrf.mxu0  ;;  %v8774_v46 = vld [vmem:[#allocation6_spill] sm:$0xff] }
 0x285   :  { %v8771_v52 = vrot.slane %v8411_v11, 1  ;;  %v8772_v58 = vrot.slane %v8421_v62, 2  ;;  %v3416_v48 = vmul.f32 %v5031_v47, %v2700_v38  ;;  %v8773_v36 = vrot.slane %v8435_v32, 1 }
 0x286   :  { %v2569_v42 = vadd.f32 %v2393_v41, %v2085_v15  ;;  %v2473_v45 = vsel %vm1114_vm2, %v2470_v3, %v2472_v54  ;;  %v3870_v11 = vadd.f32 %v7974_v49, %v3799_v35  ;;  %v3187_v10 = vrot.slane %v2932_v4, 1 }
 0x287   :  { %v789_v59 = vsel %vm629_vm1, %v8771_v52, %v788_v22  ;;  %v1274_v44 = vsel %vm1114_vm2, %v8772_v58, %v1273_v20  ;;  %v1989_v8 = vsel %vm629_vm1, %v8773_v36, %v1988_v21  ;;  %v3671_v39 = vrot.slane %v3416_v48, 2  ;;  %v8775_v22 = vld [vmem:[#allocation7_spill] sm:$0xff] }
 0x288   :  { %v917_v31 = vadd.f32 %v789_v59, %v432_v51  ;;  %v4031_v62 = vadd.f32 %v8180_v63, %v8510_v23  ;;  %v2800_v18 = vadd.f32 %v8391_v53, %v2569_v42  ;;  %v4191_v41 = vadd.f32 %v8199_v40, %v8510_v23  ;;  %v8536_v51 = vpop.f32.mrf.mxu1  ;;  %v8559_v59 = vpop.f32.mrf.mxu0 }
 0x289   :  { %v4026_v32 = vadd.f32 %v8510_v23, %v8213_v61  ;;  %v3934_v3 = vmax.f32 %v3870_v11, 0.0  ;;  %v3188_v16 = vsel %vm629_vm1, %v8398_v43, %v3187_v10  ;;  %v3672_v7 = vsel %vm1114_vm2, %v8407_v27, %v3671_v39 }
 0x28a   :  { %v1402_v47 = vadd.f32 %v1274_v44, %v917_v31  ;;  %v4345_v25 = vmax.f32 %v4031_v62, 0.0  ;;  %v3284_v63 = vadd.f32 %v3108_v5, %v2800_v18  ;;  %v4377_v0 = vmax.f32 %v4191_v41, 0.0  ;;  %v4105_v39 = vpop.f32.mrf.mxu0  ;;  %v8776_v62 = vld [vmem:[#allocation8_spill] sm:$0xff] }
 0x28b   :  { %v4344_v60 = vmax.f32 %v4026_v32, 0.0  ;;  %4697 = vmatprep.mubr.f32.mxu1 %v3934_v3  ;;  %v4186_v40 = vadd.f32 %v8510_v23, %v8229_v55  ;;  %v4041_v61 = vadd.f32 %v8243_v17, %v8510_v23  ;;  %v4201_v43 = vadd.f32 %v8257_v13, %v8510_v23  ;;  %v8556_v55 = vpop.f32.mrf.mxu1  ;;  %v8778_v3 = vld [vmem:[#allocation10_spill] sm:$0xff] }
 0x28c   :  { %v1633_v38 = vadd.f32 %v1569_v57, %v1402_v47  ;;  %4409 = vst [vmem:[#allocation3 + $0x8] sm:$0xff] %v4345_v25  ;;  %v4036_v27 = vadd.f32 %v8510_v23, %v8774_v46  ;;  %v3768_v5 = vadd.f32 %v3592_v28, %v3284_v63  ;;  %4441 = vst [vmem:[#allocation3 + $0x108] sm:$0xff] %v4377_v0  ;;  %v8777_v47 = vld [vmem:[#allocation9_spill] sm:$0xff]  ;;  %v8779_v25 = vld [vmem:[#allocation11_spill] sm:$0xff] }
 0x28d   :  { %4408 = vst [vmem:[#allocation3] sm:$0xff] %v4344_v60  ;;  %v4196_v20 = vadd.f32 %v8510_v23, %v8775_v22  ;;  %v4051_v15 = vadd.f32 %v8288_v30, %v8510_v23  ;;  %v4376_v21 = vmax.f32 %v4186_v40, 0.0  ;;  %v4347_v17 = vmax.f32 %v4041_v61, 0.0  ;;  %v8574_v36 = vpop.f32.mrf.mxu1  ;;  %v4741_v40 = vld [vmem:[%s8652_s2] ss:$0 sm:$0xff]  ;;  %v8780_v46 = vld [vmem:[#allocation12_spill] sm:$0xff] }
 0x28e   :  { %v2117_v57 = vadd.f32 %v1989_v8, %v1633_v38  ;;  %v4379_v54 = vmax.f32 %v4201_v43, 0.0  ;;  %v4346_v4 = vmax.f32 %v4036_v27, 0.0  ;;  %v3839_v13 = vadd.f32 %v7974_v49, %v3768_v5  ;;  %v4633_v5 = vpop.f32.mrf.mxu0  ;;  %s4765_s2 = smov [#allocation3]  }
 0x28f   :  { %v4378_v52 = vmax.f32 %v4196_v20, 0.0  ;;  %v4349_v28 = vmax.f32 %v4051_v15, 0.0  ;;  %4440 = vst [vmem:[#allocation3 + $0x100] sm:$0xff] %v4376_v21  ;;  %4411 = vst [vmem:[#allocation3 + $0x18] sm:$0xff] %v4347_v17  ;;  %v4211_v30 = vadd.f32 %v8302_v24, %v8510_v23  ;;  %v4046_v58 = vadd.f32 %v8510_v23, %v8312_v37  ;;  %s4477_s11 = sshll.u32 %s4765_s2, 4  ;;  %s4478_s11 = int_to_ptr.vmem [resolvable:$true] %s4477_s11 }
 0x290   :  { %v2601_v35 = vadd.f32 %v2473_v45, %v2117_v57  ;;  %4443 = vst [vmem:[#allocation3 + $0x118] sm:$0xff] %v4379_v54  ;;  %4410 = vst [vmem:[#allocation3 + $0x10] sm:$0xff] %v4346_v4  ;;  %v4206_v44 = vadd.f32 %v8510_v23, %v8321_v14  ;;  %v4061_v49 = vadd.f32 %v8330_v6, %v8510_v23  ;;  %v3903_v48 = vmax.f32 %v3839_v13, 0.0  ;;  %v8781_v57 = vld [vmem:[#allocation13_spill] sm:$0xff]  ;;  %s4742_s12 = scalar_lea.vmem %s4478_s11, 8192  ;;  %p4747_p1 = scmp.lt.s32.totalorder %s4478_s11, %s4478_s11 }
 0x291   :  { %4442 = vst [vmem:[#allocation3 + $0x110] sm:$0xff] %v4378_v52  ;;  %4413 = vst [vmem:[#allocation3 + $0x28] sm:$0xff] %v4349_v28  ;;  %v4221_v31 = vadd.f32 %v8346_v34, %v8510_v23  ;;  %v4056_v24 = vadd.f32 %v8510_v23, %v8360_v12  ;;  %v4381_v37 = vmax.f32 %v4211_v30, 0.0  ;;  %v4348_v8 = vmax.f32 %v4046_v58, 0.0  ;;  %p4743_p0 = scmp.ne.s32.totalorder %s4478_s11, %s4742_s12  ;;  %p4748_p2 = scmp.lt.s32.totalorder %s4742_s12, %s4742_s12 }
 0x292   :  { %v2832_v42 = vadd.f32 %v8391_v53, %v2601_v35  ;;  %v4380_v45 = vmax.f32 %v4206_v44, 0.0  ;;  %v4351_v14 = vmax.f32 %v4061_v49, 0.0  ;;  %4650 = vmatmul.mubr.f32.gmra.mxu0 %v3903_v48  ;;  %v4216_v53 = vadd.f32 %v8510_v23, %v8374_v9  ;;  %v4115_v49 = vpop.f32.mrf.mxu0 }
 0x293   :  { %v4383_v6 = vmax.f32 %v4221_v31, 0.0  ;;  %v4350_v10 = vmax.f32 %v4056_v24, 0.0  ;;  %4445 = vst [vmem:[#allocation3 + $0x128] sm:$0xff] %v4381_v37  ;;  %4412 = vst [vmem:[#allocation3 + $0x20] sm:$0xff] %v4348_v8  ;;  %v4071_v34 = vadd.f32 %v8385_v2, %v8510_v23  ;;  %v4231_v12 = vadd.f32 %v8396_v1, %v8510_v23  ;;  %v4265_v2 = vpop.f32.mrf.mxu1  ;;  %p4749_p3 = por %p4748_p2, %p4747_p1 }
 0x294   :  { %v3316_v11 = vadd.f32 %v3188_v16, %v2832_v42  ;;  %4444 = vst [vmem:[#allocation3 + $0x120] sm:$0xff] %v4380_v45  ;;  %4415 = vst [vmem:[#allocation3 + $0x38] sm:$0xff] %v4351_v14  ;;  %v4066_v18 = vadd.f32 %v8510_v23, %v8776_v62  ;;  %v4226_v41 = vadd.f32 %v8510_v23, %v8777_v47  ;;  %v4382_v9 = vmax.f32 %v4216_v53, 0.0 }
 0x295   :  { %4447 = vst [vmem:[#allocation3 + $0x138] sm:$0xff] %v4383_v6  ;;  %4414 = vst [vmem:[#allocation3 + $0x30] sm:$0xff] %v4350_v10  ;;  %v4081_v16 = vadd.f32 %v8778_v3, %v8510_v23  ;;  %v4241_v63 = vadd.f32 %v8779_v25, %v8510_v23  ;;  %v4353_v38 = vmax.f32 %v4071_v34, 0.0  ;;  %v4385_v0 = vmax.f32 %v4231_v12, 0.0  ;;  %v4681_v35 = vpop.f32.mrf.mxu1  ;;  %p4750_p4 = pnand %p4749_p3, %p4743_p0 }
 0x296   :  { %v3800_v32 = vadd.f32 %v3672_v7, %v3316_v11  ;;  %v4352_v1 = vmax.f32 %v4066_v18, 0.0  ;;  %v4384_v60 = vmax.f32 %v4226_v41, 0.0  ;;  %4446 = vst [vmem:[#allocation3 + $0x130] sm:$0xff] %v4382_v9  ;;  %v4076_v27 = vadd.f32 %v8510_v23, %v8780_v46 }
 0x297   :  { %v4355_v7 = vmax.f32 %v4081_v16, 0.0  ;;  %v4387_v43 = vmax.f32 %v4241_v63, 0.0  ;;  %4417 = vst [vmem:[#allocation3 + $0x48] sm:$0xff] %v4353_v38  ;;  %4449 = vst [vmem:[#allocation3 + $0x148] sm:$0xff] %v4385_v0  ;;  %v4236_v22 = vadd.f32 %v8510_v23, %v8781_v57  ;;  %v4091_v20 = vadd.f32 %v8479_v33, %v8510_v23  ;;  %v4275_v37 = vpop.f32.mrf.mxu1 }
 0x298   :  { %v3871_v61 = vadd.f32 %v4741_v40, %v3800_v32  ;;  %4416 = vst [vmem:[#allocation3 + $0x40] sm:$0xff] %v4352_v1  ;;  %4448 = vst [vmem:[#allocation3 + $0x140] sm:$0xff] %v4384_v60  ;;  %v4251_v15 = vadd.f32 %v8492_v56, %v8510_v23  ;;  %v4086_v21 = vadd.f32 %v8510_v23, %v8501_v19  ;;  %v4354_v54 = vmax.f32 %v4076_v27, 0.0  ;;  %v4636_v10 = vpop.f32.mrf.mxu0 }
 0x299   :  { %4419 = vst [vmem:[#allocation3 + $0x58] sm:$0xff] %v4355_v7  ;;  %4451 = vst [vmem:[#allocation3 + $0x158] sm:$0xff] %v4387_v43  ;;  %v4246_v4 = vadd.f32 %v8510_v23, %v8512_v29  ;;  %v4101_v13 = vadd.f32 %v8526_v26, %v8510_v23  ;;  %v4386_v52 = vmax.f32 %v4236_v22, 0.0  ;;  %v4357_v28 = vmax.f32 %v4091_v20, 0.0 }
 0x29a   :  { %v3935_v17 = vmax.f32 %v3871_v61, 0.0  ;;  %v4389_v33 = vmax.f32 %v4251_v15, 0.0  ;;  %v4356_v30 = vmax.f32 %v4086_v21, 0.0  ;;  %4418 = vst [vmem:[#allocation3 + $0x50] sm:$0xff] %v4354_v54  ;;  %v4261_v19 = vadd.f32 %v8536_v51, %v8510_v23  ;;  %v4125_v62 = vpop.f32.mrf.mxu0 }
 0x29b   :  { %v4388_v56 = vmax.f32 %v4246_v4, 0.0  ;;  %v4359_v58 = vmax.f32 %v4101_v13, 0.0  ;;  %v4096_v44 = vadd.f32 %v8510_v23, %v8542_v50  ;;  %4450 = vst [vmem:[#allocation3 + $0x150] sm:$0xff] %v4386_v52  ;;  %4421 = vst [vmem:[#allocation3 + $0x68] sm:$0xff] %v4357_v28  ;;  %v4256_v29 = vadd.f32 %v8510_v23, %v8556_v55 }
 0x29c   :  { %4698 = vmatmul.mubr.f32.gmra.mxu1 %v3935_v17  ;;  %4453 = vst [vmem:[#allocation3 + $0x168] sm:$0xff] %v4389_v33  ;;  %4420 = vst [vmem:[#allocation3 + $0x60] sm:$0xff] %v4356_v30  ;;  %v4111_v26 = vadd.f32 %v8559_v59, %v8510_v23  ;;  %v4271_v48 = vadd.f32 %v8574_v36, %v8510_v23  ;;  %v4106_v42 = vadd.f32 %v8510_v23, %v4105_v39 }
 0x29d   :  { %4452 = vst [vmem:[#allocation3 + $0x160] sm:$0xff] %v4388_v56  ;;  %4423 = vst [vmem:[#allocation3 + $0x78] sm:$0xff] %v4359_v58  ;;  %v4391_v51 = vmax.f32 %v4261_v19, 0.0  ;;  %v4358_v50 = vmax.f32 %v4096_v44, 0.0  ;;  %v4266_v31 = vadd.f32 %v8510_v23, %v4265_v2  ;;  %v4121_v24 = vadd.f32 %v4633_v5, %v8510_v23 }
 0x29e   :  { %v4390_v8 = vmax.f32 %v4256_v29, 0.0  ;;  %v4361_v45 = vmax.f32 %v4111_v26, 0.0  ;;  %v4393_v55 = vmax.f32 %v4271_v48, 0.0  ;;  %v4360_v14 = vmax.f32 %v4106_v42, 0.0 }
 0x29f   :  { %4455 = vst [vmem:[#allocation3 + $0x178] sm:$0xff] %v4391_v51  ;;  %4422 = vst [vmem:[#allocation3 + $0x70] sm:$0xff] %v4358_v50  ;;  %v4392_v59 = vmax.f32 %v4266_v31, 0.0  ;;  %v4363_v11 = vmax.f32 %v4121_v24, 0.0  ;;  %v4281_v36 = vadd.f32 %v4681_v35, %v8510_v23  ;;  %v4116_v6 = vadd.f32 %v8510_v23, %v4115_v49  ;;  %v4684_v9 = vpop.f32.mrf.mxu1 }
 0x2a0   :  { %4454 = vst [vmem:[#allocation3 + $0x170] sm:$0xff] %v4390_v8  ;;  %4425 = vst [vmem:[#allocation3 + $0x88] sm:$0xff] %v4361_v45  ;;  %v4276_v53 = vadd.f32 %v8510_v23, %v4275_v37  ;;  %v4131_v39 = vadd.f32 %v4636_v10, %v8510_v23  ;;  %v4126_v41 = vadd.f32 %v8510_v23, %v4125_v62 }
 0x2a1   :  { %4457 = vst [vmem:[#allocation3 + $0x188] sm:$0xff] %v4393_v55  ;;  %4424 = vst [vmem:[#allocation3 + $0x80] sm:$0xff] %v4360_v14  ;;  %v4395_v34 = vmax.f32 %v4281_v36, 0.0  ;;  %v4362_v12 = vmax.f32 %v4116_v6, 0.0  ;;  %v4291_v3 = vadd.f32 %v4684_v9, %v8510_v23  ;;  %v4285_v16 = vpop.f32.mrf.mxu1 }
 0x2a2   :  { %4456 = vst [vmem:[#allocation3 + $0x180] sm:$0xff] %v4392_v59  ;;  %4427 = vst [vmem:[#allocation3 + $0x98] sm:$0xff] %v4363_v11  ;;  %v4394_v18 = vmax.f32 %v4276_v53, 0.0  ;;  %v4365_v47 = vmax.f32 %v4131_v39, 0.0  ;;  %v4364_v32 = vmax.f32 %v4126_v41, 0.0  ;;  %v4286_v63 = vadd.f32 %v8510_v23, %v4285_v16 }
 0x2a3   :  { %4459 = vst [vmem:[#allocation3 + $0x198] sm:$0xff] %v4395_v34  ;;  %4426 = vst [vmem:[#allocation3 + $0x90] sm:$0xff] %v4362_v12  ;;  %v4397_v25 = vmax.f32 %v4291_v3, 0.0 }
 0x2a4   :  { %4458 = vst [vmem:[#allocation3 + $0x190] sm:$0xff] %v4394_v18  ;;  %4429 = vst [vmem:[#allocation3 + $0xa8] sm:$0xff] %v4365_v47  ;;  %v4396_v2 = vmax.f32 %v4286_v63, 0.0 }
 0x2a5   :  { %4428 = vst [vmem:[#allocation3 + $0xa0] sm:$0xff] %v4364_v32  ;;  %4461 = vst [vmem:[#allocation3 + $0x1a8] sm:$0xff] %v4397_v25 }
 0x2a6   :  { %4460 = vst [vmem:[#allocation3 + $0x1a0] sm:$0xff] %v4396_v2 }
 0x2be   :  { %v4639_v38 = vpop.f32.mrf.mxu0 }
 0x2bf   :  { %v4141_v0 = vadd.f32 %v4639_v38, %v8510_v23 }
 0x2c0   :  { %v4135_v1 = vpop.f32.mrf.mxu0 }
 0x2c1   :  { %v4367_v60 = vmax.f32 %v4141_v0, 0.0  ;;  %v4136_v40 = vadd.f32 %v8510_v23, %v4135_v1 }
 0x2c3   :  { %4431 = vst [vmem:[#allocation3 + $0xb8] sm:$0xff] %v4367_v60  ;;  %v4366_v61 = vmax.f32 %v4136_v40, 0.0 }
 0x2c4   :  { %v4687_v7 = vpop.f32.mrf.mxu1 }
 0x2c5   :  { %v4301_v43 = vadd.f32 %v4687_v7, %v8510_v23  ;;  %4430 = vst [vmem:[#allocation3 + $0xb0] sm:$0xff] %v4366_v61 }
 0x2c6   :  { %v4295_v46 = vpop.f32.mrf.mxu1 }
 0x2c7   :  { %v4399_v27 = vmax.f32 %v4301_v43, 0.0  ;;  %v4296_v5 = vadd.f32 %v8510_v23, %v4295_v46 }
 0x2c9   :  { %4463 = vst [vmem:[#allocation3 + $0x1b8] sm:$0xff] %v4399_v27  ;;  %v4398_v57 = vmax.f32 %v4296_v5, 0.0 }
 0x2cb   :  { %4462 = vst [vmem:[#allocation3 + $0x1b0] sm:$0xff] %v4398_v57 }
 0x2e4   :  { %v4642_v22 = vpop.f32.mrf.mxu0 }
 0x2e5   :  { %v4151_v20 = vadd.f32 %v4642_v22, %v8510_v23 }
 0x2e6   :  { %v4145_v15 = vpop.f32.mrf.mxu0 }
 0x2e7   :  { %v4369_v21 = vmax.f32 %v4151_v20, 0.0  ;;  %v4146_v17 = vadd.f32 %v8510_v23, %v4145_v15 }
 0x2e9   :  { %4433 = vst [vmem:[#allocation3 + $0xc8] sm:$0xff] %v4369_v21  ;;  %v4368_v54 = vmax.f32 %v4146_v17, 0.0 }
 0x2ea   :  { %v4690_v4 = vpop.f32.mrf.mxu1 }
 0x2eb   :  { %v4311_v13 = vadd.f32 %v4690_v4, %v8510_v23  ;;  %4432 = vst [vmem:[#allocation3 + $0xc0] sm:$0xff] %v4368_v54 }
 0x2ec   :  { %v4305_v35 = vpop.f32.mrf.mxu1 }
 0x2ed   :  { %v4401_v52 = vmax.f32 %v4311_v13, 0.0  ;;  %v4306_v28 = vadd.f32 %v8510_v23, %v4305_v35 }
 0x2ef   :  { %4465 = vst [vmem:[#allocation3 + $0x1c8] sm:$0xff] %v4401_v52  ;;  %v4400_v33 = vmax.f32 %v4306_v28, 0.0 }
 0x2f1   :  { %4464 = vst [vmem:[#allocation3 + $0x1c0] sm:$0xff] %v4400_v33 }
 0x30a   :  { %v4645_v30 = vpop.f32.mrf.mxu0 }
 0x30b   :  { %v4161_v56 = vadd.f32 %v4645_v30, %v8510_v23 }
 0x30c   :  { %v4155_v58 = vpop.f32.mrf.mxu0 }
 0x30d   :  { %v4371_v19 = vmax.f32 %v4161_v56, 0.0  ;;  %v4156_v44 = vadd.f32 %v8510_v23, %v4155_v58 }
 0x30f   :  { %4435 = vst [vmem:[#allocation3 + $0xd8] sm:$0xff] %v4371_v19  ;;  %v4370_v49 = vmax.f32 %v4156_v44, 0.0 }
 0x310   :  { %v4693_v29 = vpop.f32.mrf.mxu1 }
 0x311   :  { %v4321_v26 = vadd.f32 %v4693_v29, %v8510_v23  ;;  %4434 = vst [vmem:[#allocation3 + $0xd0] sm:$0xff] %v4370_v49 }
 0x312   :  { %v4315_v48 = vpop.f32.mrf.mxu1 }
 0x313   :  { %v4403_v42 = vmax.f32 %v4321_v26, 0.0  ;;  %v4316_v51 = vadd.f32 %v8510_v23, %v4315_v48 }
 0x315   :  { %4467 = vst [vmem:[#allocation3 + $0x1d8] sm:$0xff] %v4403_v42  ;;  %v4402_v50 = vmax.f32 %v4316_v51, 0.0 }
 0x317   :  { %4466 = vst [vmem:[#allocation3 + $0x1d0] sm:$0xff] %v4402_v50 }
 0x331   :  { %v4648_v31 = vpop.f32.mrf.mxu0 }
 0x332   :  { %v4171_v24 = vadd.f32 %v4648_v31, %v8510_v23 }
 0x333   :  { %v4165_v37 = vpop.f32.mrf.mxu0 }
 0x334   :  { %v4373_v8 = vmax.f32 %v4171_v24, 0.0  ;;  %v4166_v45 = vadd.f32 %v8510_v23, %v4165_v37 }
 0x336   :  { %4437 = vst [vmem:[#allocation3 + $0xe8] sm:$0xff] %v4373_v8  ;;  %v4372_v55 = vmax.f32 %v4166_v45, 0.0 }
 0x337   :  { %v4696_v14 = vpop.f32.mrf.mxu1 }
 0x338   :  { %v4331_v59 = vadd.f32 %v4696_v14, %v8510_v23  ;;  %4436 = vst [vmem:[#allocation3 + $0xe0] sm:$0xff] %v4372_v55 }
 0x339   :  { %v4325_v11 = vpop.f32.mrf.mxu1 }
 0x33a   :  { %v4405_v36 = vmax.f32 %v4331_v59, 0.0  ;;  %v4326_v6 = vadd.f32 %v8510_v23, %v4325_v11 }
 0x33c   :  { %4469 = vst [vmem:[#allocation3 + $0x1e8] sm:$0xff] %v4405_v36  ;;  %v4404_v10 = vmax.f32 %v4326_v6, 0.0 }
 0x33e   :  { %4468 = vst [vmem:[#allocation3 + $0x1e0] sm:$0xff] %v4404_v10 }
 0x352   :  { %v4651_v53 = vpop.f32.mrf.mxu0 }
 0x353   :  { %v4181_v39 = vadd.f32 %v4651_v53, %v8510_v23 }
 0x354   :  { %v4175_v34 = vpop.f32.mrf.mxu0 }
 0x355   :  { %v4375_v12 = vmax.f32 %v4181_v39, 0.0  ;;  %v4176_v62 = vadd.f32 %v8510_v23, %v4175_v34 }
 0x357   :  { %4439 = vst [vmem:[#allocation3 + $0xf8] sm:$0xff] %v4375_v12  ;;  %v4374_v18 = vmax.f32 %v4176_v62, 0.0 }
 0x359   :  { %4438 = vst [vmem:[#allocation3 + $0xf0] sm:$0xff] %v4374_v18 }
 0x35c   :  { %v4699_v47 = vpop.f32.mrf.mxu1 }
 0x35d   :  { %v4341_v41 = vadd.f32 %v4699_v47, %v8510_v23 }
 0x35e   :  { %v4335_v32 = vpop.f32.mrf.mxu1 }
 0x35f   :  { %v4407_v9 = vmax.f32 %v4341_v41, 0.0  ;;  %v4336_v3 = vadd.f32 %v8510_v23, %v4335_v32 }
 0x361   :  { %4471 = vst [vmem:[#allocation3 + $0x1f8] sm:$0xff] %v4407_v9  ;;  %v4406_v16 = vmax.f32 %v4336_v3, 0.0 }
 0x363   :  { %4470 = vst [vmem:[#allocation3 + $0x1f0] sm:$0xff] %v4406_v16 }
 0x364   :  { %4753 = shalt.err (!%p4750_p4)
}
 0x365   :  { %s4766_s13 = smov 128   ;;  %s4767_s14 = smov 8  }
 0x366   :  { %4483 = dma.vmem_to_hbm [thread:$0]  %s4478_s11, 8192, %s8655_s5, [#allocation4], %s4766_s13, %s4766_s13, %s4767_s14  }
 0x367   :  { %4762 = dma.done.wait [#allocation4], 8192  }
 0x368   :  { %4763 = vsyncadd [#allocation4], 4294959104 }
 0x369   :  { %4487 = vsyncpa [#allocation4], 1 }

// kernel: tpu_custom_call.1
= control target key start
LH: loop header
LB: loop body
LE: loop exit
PB: predicated region body
PF: predicated region fallthrough
CT: control target
= control target key end

     0   :  { %v365_v2 = vlaneseq  ;;  %v4764_v3 = vmov 0.0   ;;  %vm198_vm0 = vcmask 31744   ;;  %vm629_vm1 = vcmask 1046528   ;;  %s8650_s0 = inlined_call_operand.vmem [shape: f32[2,16,16,4], index: 0, kind: input, shape index: {}]   ;;  %s8651_s1 = inlined_call_operand.vmem [shape: f32[3,3,128], index: 1, kind: input, shape index: {}]   ;;  %s8652_s2 = inlined_call_operand.vmem [shape: f32[1,1,128], index: 2, kind: input, shape index: {}]   ;;  %s8653_s3 = inlined_call_operand.vmem [shape: f32[128,128], index: 3, kind: input, shape index: {}]   ;;  %s8654_s4 = inlined_call_operand.vmem [shape: f32[1,1,128], index: 4, kind: input, shape index: {}]   ;;  %s8655_s5 = inlined_call_operand.hbm [shape: f32[2,16,16,128], index: 5, kind: output, shape index: {}]  }
   0x1   :  { %v4801_v0 = vld [vmem:[%s8653_s3 + $0x78] sm:$0xff]  ;;  %v4806_v1 = vld [vmem:[%s8653_s3 + $0x70] sm:$0xff]  ;;  %25 = vst [vmem:[#allocation2] sm:$0xff] %v4764_v3  ;;  %28 = vst [vmem:[#allocation2 + $0x18] sm:$0xff] %v4764_v3  ;;  %vm1114_vm2 = vcmask 1045504  }
   0x2   :  { %4572 = vmatprep.subr.mxu0 %v4801_v0  ;;  %4700 = vmatprep.subr.mxu1 %v4801_v0  ;;  %29 = vst [vmem:[#allocation2 + $0x20] sm:$0xff] %v4764_v3  ;;  %30 = vst [vmem:[#allocation2 + $0x28] sm:$0x3] %v4764_v3  ;;  %v3949_v4 = vld [vmem:[%s8653_s3 + $0x68] sm:$0xff]  ;;  %v366_v5 = vshrl.u32 %v365_v2, 7  ;;  %v3948_v6 = vld [vmem:[%s8653_s3 + $0x60] sm:$0xff] }
   0x3   :  { %31 = vst [vmem:[#allocation2 + $0x30] sm:$0xff] %v4764_v3  ;;  %32 = vst [vmem:[#allocation2 + $0x38] sm:$0xff] %v4764_v3  ;;  %4573 = vmatpush3.msra.mxu0 %v4801_v0  ;;  %4716 = vmatpush3.msra.mxu1 %v4801_v0  ;;  %v3947_v10 = vld [vmem:[%s8653_s3 + $0x58] sm:$0xff]  ;;  %v133_v11 = vld [vmem:[%s8650_s0] sm:$0xff] }
   0x4   :  { %33 = vst [vmem:[#allocation2 + $0x40] sm:$0x3] %v4764_v3  ;;  %27 = vst [vmem:[#allocation2 + $0x10] sm:$0x3] %v4764_v3  ;;  %4574 = vmatprep.subr.mxu0 %v4806_v1  ;;  %4701 = vmatprep.subr.mxu1 %v4806_v1  ;;  %v367_v7 = vsub.s32 0, %v366_v5  ;;  %v435_v8 = vsub.s32 1, %v366_v5 }
   0x5   :  { %34 = vst [vmem:[#allocation2 + $0x48] sm:$0xff] %v4764_v3  ;;  %35 = vst [vmem:[#allocation2 + $0x50] sm:$0xff] %v4764_v3  ;;  %4575 = vmatpush3.msra.mxu0 %v4806_v1  ;;  %4717 = vmatpush3.msra.mxu1 %v4806_v1  ;;  %v4924_v9 = vsub.s32 2, %v366_v5  ;;  %v134_v12 = vld [vmem:[%s8650_s0 + $0x8] sm:$0xff]  ;;  %v135_v13 = vld [vmem:[%s8650_s0 + $0x10] sm:$0xff] }
   0x6   :  { %36 = vst [vmem:[#allocation2 + $0x58] sm:$0x3] %v4764_v3  ;;  %37 = vst [vmem:[#allocation2 + $0x60] sm:$0xff] %v4764_v3  ;;  %4576 = vmatprep.subr.mxu0 %v3949_v4  ;;  %4702 = vmatprep.subr.mxu1 %v3949_v4  ;;  %v136_v14 = vld [vmem:[%s8650_s0 + $0x18] sm:$0xff]  ;;  %v264_v15 = vld [vmem:[%s8651_s1] sm:$0x7] }
   0x7   :  { %38 = vst [vmem:[#allocation2 + $0x68] sm:$0xff] %v4764_v3  ;;  %39 = vst [vmem:[#allocation2 + $0x70] sm:$0x3] %v4764_v3  ;;  %4577 = vmatpush3.msra.mxu0 %v3949_v4  ;;  %4718 = vmatpush3.msra.mxu1 %v3949_v4  ;;  %v3946_v16 = vld [vmem:[%s8653_s3 + $0x50] sm:$0xff]  ;;  %v265_v17 = vld [vmem:[%s8651_s1 + $0x4] sm:$0x7]  ;;  %v4957_v19 = vrot.slane %v264_v15, %v367_v7  ;;  %v4959_v20 = vrot.slane %v264_v15, %v435_v8 }
   0x8   :  { %40 = vst [vmem:[#allocation2 + $0x78] sm:$0xff] %v4764_v3  ;;  %41 = vst [vmem:[#allocation2 + $0x80] sm:$0xff] %v4764_v3  ;;  %4578 = vmatprep.subr.mxu0 %v3948_v6  ;;  %4703 = vmatprep.subr.mxu1 %v3948_v6  ;;  %v266_v18 = vld [vmem:[%s8651_s1 + $0x8] sm:$0x7]  ;;  %v4962_v21 = vrot.slane %v264_v15, %v4924_v9  ;;  %v4967_v23 = vrot.slane %v265_v17, %v367_v7  ;;  %v165_v24 = vld [vmem:[%s8650_s0 + $0x100] sm:$0xff] }
   0x9   :  { %42 = vst [vmem:[#allocation2 + $0x88] sm:$0x3] %v4764_v3  ;;  %43 = vst [vmem:[#allocation2 + $0x90] sm:$0xff] %v4764_v3  ;;  %4579 = vmatpush3.msra.mxu0 %v3948_v6  ;;  %4719 = vmatpush3.msra.mxu1 %v3948_v6  ;;  %v3945_v22 = vld [vmem:[%s8653_s3 + $0x48] sm:$0xff]  ;;  %v167_v26 = vld [vmem:[%s8650_s0 + $0x110] sm:$0xff]  ;;  %v437_v27 = vmul.f32 0.0, %v4959_v20  ;;  %v4980_v29 = vrot.slane %v265_v17, %v435_v8  ;;  %v4995_v35 = vrot.slane %v265_v17, %v4924_v9 }
   0xa   :  { %44 = vst [vmem:[#allocation2 + $0x98] sm:$0xff] %v4764_v3  ;;  %45 = vst [vmem:[#allocation2 + $0xa0] sm:$0x3] %v4764_v3  ;;  %v166_v25 = vld [vmem:[%s8650_s0 + $0x108] sm:$0xff]  ;;  %4580 = vmatprep.subr.mxu0 %v3947_v10  ;;  %4704 = vmatprep.subr.mxu1 %v3947_v10  ;;  %v922_v28 = vmul.f32 0.0, %v4962_v21  ;;  %v168_v30 = vld [vmem:[%s8650_s0 + $0x118] sm:$0xff]  ;;  %v4997_v36 = vrot.slane %v266_v18, %v367_v7  ;;  %v5013_v42 = vrot.slane %v266_v18, %v435_v8 }
   0xb   :  { %46 = vst [vmem:[#allocation2 + $0xa8] sm:$0xff] %v4764_v3  ;;  %47 = vst [vmem:[#allocation2 + $0xb0] sm:$0xff] %v4764_v3  ;;  %v271_v31 = vld [vmem:[#allocation2 + $0x10] sm:$0x3]  ;;  %4581 = vmatpush3.msra.mxu0 %v3947_v10  ;;  %4720 = vmatpush3.msra.mxu1 %v3947_v10  ;;  %v3944_v33 = vld [vmem:[%s8653_s3 + $0x40] sm:$0xff]  ;;  %v4992_v34 = vmul.f32 0.0, %v4957_v19  ;;  %v5031_v47 = vrot.slane %v266_v18, %v4924_v9 }
   0xc   :  { %48 = vst [vmem:[#allocation2 + $0xb8] sm:$0x3] %v4764_v3  ;;  %49 = vst [vmem:[#allocation2 + $0xc0] sm:$0xff] %v4764_v3  ;;  %v137_v37 = vld [vmem:[%s8650_s0 + $0x20] sm:$0xff]  ;;  %v138_v38 = vld [vmem:[%s8650_s0 + $0x28] sm:$0xff]  ;;  %4582 = vmatprep.subr.mxu0 %v3946_v16  ;;  %4705 = vmatprep.subr.mxu1 %v3946_v16  ;;  %v5009_v40 = vrot.slane %v437_v27, 1  ;;  %v5016_v43 = vmul.f32 %v4959_v20, %v271_v31  ;;  %v5034_v48 = vmul.f32 %v4962_v21, %v271_v31 }
   0xd   :  { %50 = vst [vmem:[#allocation2 + $0xc8] sm:$0xff] %v4764_v3  ;;  %51 = vst [vmem:[#allocation2 + $0xd0] sm:$0x3] %v4764_v3  ;;  %v169_v39 = vld [vmem:[%s8650_s0 + $0x120] sm:$0xff]  ;;  %v5011_v41 = vrot.slane %v922_v28, 2  ;;  %v170_v44 = vld [vmem:[%s8650_s0 + $0x128] sm:$0xff]  ;;  %4583 = vmatpush3.msra.mxu0 %v3946_v16  ;;  %4721 = vmatpush3.msra.mxu1 %v3946_v16 }
   0xe   :  { %52 = vst [vmem:[#allocation2 + $0xd8] sm:$0xff] %v4764_v3  ;;  %53 = vst [vmem:[#allocation2 + $0xe0] sm:$0xff] %v4764_v3  ;;  %v139_v45 = vld [vmem:[%s8650_s0 + $0x30] sm:$0xff]  ;;  %v140_v46 = vld [vmem:[%s8650_s0 + $0x38] sm:$0xff]  ;;  %4584 = vmatprep.subr.mxu0 %v3945_v22  ;;  %4706 = vmatprep.subr.mxu1 %v3945_v22  ;;  %v854_v56 = vadd.f32 %v5009_v40, %v4992_v34  ;;  %v633_v0 = vrot.slane %v5016_v43, 1 }
   0xf   :  { %54 = vst [vmem:[#allocation2 + $0xe8] sm:$0x3] %v4764_v3  ;;  %55 = vst [vmem:[#allocation2 + $0xf0] sm:$0xff] %v4764_v3  ;;  %v171_v50 = vld [vmem:[%s8650_s0 + $0x130] sm:$0xff]  ;;  %v172_v51 = vld [vmem:[%s8650_s0 + $0x138] sm:$0xff]  ;;  %4585 = vmatpush3.msra.mxu0 %v3945_v22  ;;  %4722 = vmatpush3.msra.mxu1 %v3945_v22 }
  0x10   :  { %56 = vst [vmem:[#allocation2 + $0xf8] sm:$0xff] %v4764_v3  ;;  %57 = vst [vmem:[#allocation2 + $0x100] sm:$0x3] %v4764_v3  ;;  %v141_v52 = vld [vmem:[%s8650_s0 + $0x40] sm:$0xff]  ;;  %v3943_v55 = vld [vmem:[%s8653_s3 + $0x38] sm:$0xff]  ;;  %4586 = vmatprep.subr.mxu0 %v3944_v33  ;;  %4707 = vmatprep.subr.mxu1 %v3944_v33 }
  0x11   :  { %58 = vst [vmem:[#allocation2 + $0x108] sm:$0xff] %v4764_v3  ;;  %59 = vst [vmem:[#allocation2 + $0x110] sm:$0xff] %v4764_v3  ;;  %v142_v1 = vld [vmem:[%s8650_s0 + $0x48] sm:$0xff]  ;;  %4587 = vmatpush3.msra.mxu0 %v3944_v33  ;;  %4723 = vmatpush3.msra.mxu1 %v3944_v33  ;;  %v3942_v2 = vld [vmem:[%s8653_s3 + $0x30] sm:$0xff] }
  0x12   :  { %60 = vst [vmem:[#allocation2 + $0x118] sm:$0x3] %v4764_v3  ;;  %61 = vst [vmem:[#allocation2 + $0x120] sm:$0xff] %v4764_v3  ;;  %4588 = vmatprep.subr.mxu0 %v3943_v55  ;;  %4708 = vmatprep.subr.mxu1 %v3943_v55 }
  0x13   :  { %62 = vst [vmem:[#allocation2 + $0x128] sm:$0xff] %v4764_v3  ;;  %63 = vst [vmem:[#allocation2 + $0x130] sm:$0x3] %v4764_v3  ;;  %4589 = vmatpush3.msra.mxu0 %v3943_v55  ;;  %4724 = vmatpush3.msra.mxu1 %v3943_v55 }
  0x14   :  { %64 = vst [vmem:[#allocation2 + $0x138] sm:$0xff] %v4764_v3  ;;  %65 = vst [vmem:[#allocation2 + $0x140] sm:$0xff] %v4764_v3  ;;  %4590 = vmatprep.subr.mxu0 %v3942_v2  ;;  %4709 = vmatprep.subr.mxu1 %v3942_v2 }
  0x15   :  { %66 = vst [vmem:[#allocation2 + $0x148] sm:$0x3] %v4764_v3  ;;  %67 = vst [vmem:[#allocation2 + $0x150] sm:$0xff] %v4764_v3  ;;  %4591 = vmatpush3.msra.mxu0 %v3942_v2  ;;  %4725 = vmatpush3.msra.mxu1 %v3942_v2 }
  0x16   :  { %68 = vst [vmem:[#allocation2 + $0x158] sm:$0xff] %v4764_v3  ;;  %69 = vst [vmem:[#allocation2 + $0x160] sm:$0x3] %v4764_v3 }
  0x17   :  { %70 = vst [vmem:[#allocation2 + $0x168] sm:$0xff] %v4764_v3  ;;  %71 = vst [vmem:[#allocation2 + $0x170] sm:$0xff] %v4764_v3 }
  0x18   :  { %72 = vst [vmem:[#allocation2 + $0x178] sm:$0x3] %v4764_v3  ;;  %73 = vst [vmem:[#allocation2 + $0x180] sm:$0xff] %v4764_v3 }
  0x19   :  { %74 = vst [vmem:[#allocation2 + $0x188] sm:$0xff] %v4764_v3  ;;  %75 = vst [vmem:[#allocation2 + $0x190] sm:$0x3] %v4764_v3 }
  0x1a   :  { %78 = vst [vmem:[#allocation2 + $0x1a8] sm:$0x3] %v4764_v3  ;;  %81 = vst [vmem:[#allocation2 + $0x1c0] sm:$0x3] %v4764_v3 }
  0x1b   :  { %82 = vst [vmem:[#allocation2 + $0x1c8] sm:$0xff] %v4764_v3  ;;  %83 = vst [vmem:[#allocation2 + $0x1d0] sm:$0xff] %v4764_v3 }
  0x1c   :  { %84 = vst [vmem:[#allocation2 + $0x1d8] sm:$0x3] %v4764_v3  ;;  %85 = vst [vmem:[#allocation2 + $0x1e0] sm:$0xff] %v4764_v3 }
  0x1d   :  { %86 = vst [vmem:[#allocation2 + $0x1e8] sm:$0xff] %v4764_v3  ;;  %87 = vst [vmem:[#allocation2 + $0x1f0] sm:$0x3] %v4764_v3 }
  0x1e   :  { %88 = vst [vmem:[#allocation2 + $0x1f8] sm:$0xff] %v4764_v3  ;;  %89 = vst [vmem:[#allocation2 + $0x200] sm:$0xff] %v4764_v3 }
  0x1f   :  { %90 = vst [vmem:[#allocation2 + $0x208] sm:$0x3] %v4764_v3  ;;  %91 = vst [vmem:[#allocation2 + $0x210] sm:$0xff] %v4764_v3 }
  0x20   :  { %92 = vst [vmem:[#allocation2 + $0x218] sm:$0xff] %v4764_v3  ;;  %93 = vst [vmem:[#allocation2 + $0x220] sm:$0x3] %v4764_v3 }
  0x21   :  { %94 = vst [vmem:[#allocation2 + $0x228] sm:$0xff] %v4764_v3  ;;  %95 = vst [vmem:[#allocation2 + $0x230] sm:$0xff] %v4764_v3  ;;  %v319_v32 = vld [vmem:[#allocation2 + $0x1c0] sm:$0x3] }
  0x22   :  { %96 = vst [vmem:[#allocation2 + $0x238] sm:$0x3] %v4764_v3  ;;  %97 = vst [vmem:[#allocation2 + $0x240] sm:$0xff] %v4764_v3  ;;  %v5037_v49 = vmul.f32 %v4959_v20, %v319_v32  ;;  %v5054_v54 = vmul.f32 %v4962_v21, %v319_v32 }
  0x23   :  { %98 = vst [vmem:[#allocation2 + $0x248] sm:$0xff] %v4764_v3  ;;  %99 = vst [vmem:[#allocation2 + $0x250] sm:$0x3] %v4764_v3 }
  0x24   :  { %100 = vst [vmem:[#allocation2 + $0x258] sm:$0xff] %v4764_v3  ;;  %101 = vst [vmem:[#allocation2 + $0x260] sm:$0xff] %v4764_v3 }
  0x25   :  { %102 = vst [vmem:[#allocation2 + $0x268] sm:$0x3] %v4764_v3  ;;  %103 = vst [vmem:[#allocation2 + $0x270] sm:$0xff] %v4764_v3 }
  0x26   :  { %104 = vst [vmem:[#allocation2 + $0x278] sm:$0xff] %v4764_v3  ;;  %105 = vst [vmem:[#allocation2 + $0x280] sm:$0x3] %v4764_v3 }
  0x27   :  { %106 = vst [vmem:[#allocation2 + $0x288] sm:$0xff] %v4764_v3  ;;  %107 = vst [vmem:[#allocation2 + $0x290] sm:$0xff] %v4764_v3 }
  0x28   :  { %108 = vst [vmem:[#allocation2 + $0x298] sm:$0x3] %v4764_v3  ;;  %109 = vst [vmem:[#allocation2 + $0x2a0] sm:$0xff] %v4764_v3 }
  0x29   :  { %110 = vst [vmem:[#allocation2 + $0x2a8] sm:$0xff] %v4764_v3  ;;  %111 = vst [vmem:[#allocation2 + $0x2b0] sm:$0x3] %v4764_v3 }
  0x2a   :  { %112 = vst [vmem:[#allocation2 + $0x2b8] sm:$0xff] %v4764_v3  ;;  %113 = vst [vmem:[#allocation2 + $0x2c0] sm:$0xff] %v4764_v3 }
  0x2b   :  { %114 = vst [vmem:[#allocation2 + $0x2c8] sm:$0x3] %v4764_v3  ;;  %115 = vst [vmem:[#allocation2 + $0x2d0] sm:$0xff] %v4764_v3 }
  0x2c   :  { %116 = vst [vmem:[#allocation2 + $0x2d8] sm:$0xff] %v4764_v3  ;;  %117 = vst [vmem:[#allocation2 + $0x2e0] sm:$0x3] %v4764_v3 }
  0x2d   :  { %118 = vst [vmem:[#allocation2 + $0x2e8] sm:$0xff] %v4764_v3  ;;  %119 = vst [vmem:[#allocation2 + $0x2f0] sm:$0xff] %v4764_v3 }
  0x2e   :  { %120 = vst [vmem:[#allocation2 + $0x2f8] sm:$0x3] %v4764_v3  ;;  %121 = vst [vmem:[#allocation2 + $0x300] sm:$0xff] %v4764_v3 }
  0x2f   :  { %122 = vst [vmem:[#allocation2 + $0x308] sm:$0xff] %v4764_v3  ;;  %123 = vst [vmem:[#allocation2 + $0x310] sm:$0x3] %v4764_v3 }
  0x30   :  { %124 = vst [vmem:[#allocation2 + $0x318] sm:$0xff] %v4764_v3  ;;  %125 = vst [vmem:[#allocation2 + $0x320] sm:$0xff] %v4764_v3 }
  0x31   :  { %126 = vst [vmem:[#allocation2 + $0x328] sm:$0x3] %v4764_v3  ;;  %127 = vst [vmem:[#allocation2 + $0x330] sm:$0xff] %v4764_v3 }
  0x32   :  { %128 = vst [vmem:[#allocation2 + $0x338] sm:$0xff] %v4764_v3  ;;  %129 = vst [vmem:[#allocation2 + $0x340] sm:$0x3] %v4764_v3 }
  0x33   :  { %132 = vst [vmem:[#allocation2 + $0x358] sm:$0x3] %v4764_v3  ;;  %199 = vst.msk [vmem:[#allocation2 + $0x19] sm:$0xff] %vm198_vm0, %v133_v11  ;;  %v1339_v3 = vadd.f32 %v5011_v41, %v854_v56 }
  0x34   :  { %200 = vst.msk [vmem:[#allocation2 + $0x21] sm:$0xff] %vm198_vm0, %v134_v12  ;;  %201 = vst.msk [vmem:[#allocation2 + $0x31] sm:$0xff] %vm198_vm0, %v135_v13  ;;  %v3941_v12 = vld [vmem:[%s8653_s3 + $0x28] sm:$0xff] }
  0x35   :  { %202 = vst.msk [vmem:[#allocation2 + $0x39] sm:$0xff] %vm198_vm0, %v136_v14  ;;  %231 = vst.msk [vmem:[#allocation2 + $0x1c9] sm:$0xff] %vm198_vm0, %v165_v24  ;;  %4592 = vmatprep.subr.mxu0 %v3941_v12  ;;  %4710 = vmatprep.subr.mxu1 %v3941_v12 }
  0x36   :  { %232 = vst.msk [vmem:[#allocation2 + $0x1d1] sm:$0xff] %vm198_vm0, %v166_v25  ;;  %233 = vst.msk [vmem:[#allocation2 + $0x1e1] sm:$0xff] %vm198_vm0, %v167_v26  ;;  %v3940_v26 = vld [vmem:[%s8653_s3 + $0x20] sm:$0xff]  ;;  %4593 = vmatpush3.msra.mxu0 %v3941_v12  ;;  %4726 = vmatpush3.msra.mxu1 %v3941_v12 }
  0x37   :  { %234 = vst.msk [vmem:[#allocation2 + $0x1e9] sm:$0xff] %vm198_vm0, %v168_v30  ;;  %203 = vst.msk [vmem:[#allocation2 + $0x49] sm:$0xff] %vm198_vm0, %v137_v37  ;;  %4594 = vmatprep.subr.mxu0 %v3940_v26  ;;  %4711 = vmatprep.subr.mxu1 %v3940_v26 }
  0x38   :  { %204 = vst.msk [vmem:[#allocation2 + $0x51] sm:$0xff] %vm198_vm0, %v138_v38  ;;  %235 = vst.msk [vmem:[#allocation2 + $0x1f9] sm:$0xff] %vm198_vm0, %v169_v39  ;;  %v1118_v39 = vrot.slane %v5034_v48, 2  ;;  %4595 = vmatpush3.msra.mxu0 %v3940_v26  ;;  %4727 = vmatpush3.msra.mxu1 %v3940_v26 }
  0x39   :  { %236 = vst.msk [vmem:[#allocation2 + $0x201] sm:$0xff] %vm198_vm0, %v170_v44  ;;  %205 = vst.msk [vmem:[#allocation2 + $0x61] sm:$0xff] %vm198_vm0, %v139_v45  ;;  %v3939_v44 = vld [vmem:[%s8653_s3 + $0x18] sm:$0xff] }
  0x3a   :  { %206 = vst.msk [vmem:[#allocation2 + $0x69] sm:$0xff] %vm198_vm0, %v140_v46  ;;  %v5051_v53 = vld [vmem:[#allocation2 + $0x18] sm:$0xff]  ;;  %237 = vst.msk [vmem:[#allocation2 + $0x211] sm:$0xff] %vm198_vm0, %v171_v50  ;;  %4596 = vmatprep.subr.mxu0 %v3939_v44  ;;  %4712 = vmatprep.subr.mxu1 %v3939_v44 }
  0x3b   :  { %238 = vst.msk [vmem:[#allocation2 + $0x219] sm:$0xff] %vm198_vm0, %v172_v51  ;;  %207 = vst.msk [vmem:[#allocation2 + $0x79] sm:$0xff] %vm198_vm0, %v141_v52  ;;  %v5064_v57 = vld [vmem:[#allocation2 + $0x20] sm:$0xff]  ;;  %v1506_v58 = vmul.f32 %v4967_v23, %v5051_v53  ;;  %v1638_v59 = vmul.f32 %v4980_v29, %v5051_v53  ;;  %v2122_v61 = vmul.f32 %v4995_v35, %v5051_v53  ;;  %v5080_v63 = vld [vmem:[#allocation2 + $0x30] sm:$0xff]  ;;  %4597 = vmatpush3.msra.mxu0 %v3939_v44 }
  0x3c   :  { %v5072_v60 = vmul.f32 %v4980_v29, %v5064_v57  ;;  %v5078_v62 = vmul.f32 %v4995_v35, %v5064_v57  ;;  %v5090_v5 = vld [vmem:[#allocation2 + $0x38] sm:$0xff]  ;;  %v2705_v6 = vmul.f32 %v4997_v36, %v5080_v63  ;;  %v2837_v7 = vmul.f32 %v5013_v42, %v5080_v63  ;;  %208 = vst.msk [vmem:[#allocation2 + $0x81] sm:$0xff] %vm198_vm0, %v142_v1  ;;  %v5112_v17 = vld [vmem:[#allocation2 + $0x1c8] sm:$0xff] }
  0x3d   :  { %v1830_v4 = vrot.slane %v1638_v59, 1  ;;  %v2314_v9 = vrot.slane %v2122_v61, 2  ;;  %v5101_v11 = vmul.f32 %v5013_v42, %v5090_v5  ;;  %v1570_v13 = vadd.f32 %v1506_v58, %v1339_v3  ;;  %v5127_v31 = vld [vmem:[#allocation2 + $0x1d0] sm:$0xff]  ;;  %v5147_v52 = vld [vmem:[#allocation2 + $0x1e0] sm:$0xff]  ;;  %4728 = vmatpush3.msra.mxu1 %v3939_v44  ;;  %v1408_v44 = vld [vmem:[#allocation2 + $0x28] sm:$0x3] }
  0x3e   :  { %v1831_v8 = vrot.slane %v5072_v60, 1  ;;  %v2315_v10 = vrot.slane %v5078_v62, 2  ;;  %v3029_v14 = vrot.slane %v2837_v7, 1  ;;  %v3321_v15 = vmul.f32 %v5031_v47, %v5080_v63  ;;  %v5154_v56 = vld [vmem:[#allocation2 + $0x1e8] sm:$0xff]  ;;  %v3938_v61 = vld [vmem:[%s8653_s3 + $0x10] sm:$0xff] }
  0x3f   :  { %v5110_v16 = vmul.f32 %v5031_v47, %v5090_v5  ;;  %v3030_v24 = vrot.slane %v5101_v11, 1  ;;  %v1538_v25 = vmul.f32 %v4967_v23, %v5112_v17  ;;  %v1686_v32 = vmul.f32 %v4980_v29, %v5112_v17  ;;  %4598 = vmatprep.subr.mxu0 %v3938_v61  ;;  %4713 = vmatprep.subr.mxu1 %v3938_v61 }
  0x40   :  { %v1832_v18 = vsel %vm629_vm1, %v1830_v4, %v1831_v8  ;;  %v2316_v22 = vsel %vm1114_vm2, %v2314_v9, %v2315_v10  ;;  %v3513_v28 = vrot.slane %v3321_v15, 2  ;;  %v5136_v38 = vmul.f32 %v4980_v29, %v5127_v31  ;;  %v3937_v15 = vld [vmem:[%s8653_s3 + $0x8] sm:$0xff]  ;;  %4599 = vmatpush3.msra.mxu0 %v3938_v61  ;;  %4729 = vmatpush3.msra.mxu1 %v3938_v61 }
  0x41   :  { %v2054_v27 = vadd.f32 %v1832_v18, %v1570_v13  ;;  %v3514_v30 = vrot.slane %v5110_v16, 2  ;;  %v3031_v33 = vsel %vm629_vm1, %v3029_v14, %v3030_v24  ;;  %v1602_v37 = vadd.f32 %v1538_v25, %v1339_v3  ;;  %v173_v13 = vld [vmem:[%s8650_s0 + $0x140] sm:$0xff]  ;;  %v174_v14 = vld [vmem:[%s8650_s0 + $0x148] sm:$0xff]  ;;  %4600 = vmatprep.subr.mxu0 %v3937_v15  ;;  %4714 = vmatprep.subr.mxu1 %v3937_v15 }
  0x42   :  { %v1910_v50 = vrot.slane %v1686_v32, 1  ;;  %v2170_v51 = vmul.f32 %v4995_v35, %v5112_v17  ;;  %v1911_v48 = vrot.slane %v5136_v38, 1  ;;  %v5152_v55 = vmul.f32 %v4995_v35, %v5127_v31  ;;  %239 = vst.msk [vmem:[#allocation2 + $0x229] sm:$0xff] %vm198_vm0, %v173_v13  ;;  %240 = vst.msk [vmem:[#allocation2 + $0x231] sm:$0xff] %vm198_vm0, %v174_v14 }
  0x43   :  { %v2538_v45 = vadd.f32 %v2316_v22, %v2054_v27  ;;  %v3515_v46 = vsel %vm1114_vm2, %v3513_v28, %v3514_v30  ;;  %v2737_v58 = vmul.f32 %v4997_v36, %v5147_v52  ;;  %v2885_v59 = vmul.f32 %v5013_v42, %v5147_v52  ;;  %v5192_v27 = vld [vmem:[%s8652_s2] ss:$0 sm:$0xff] }
  0x44   :  { %v2394_v2 = vrot.slane %v2170_v51, 2  ;;  %v5165_v3 = vmul.f32 %v5013_v42, %v5154_v56  ;;  %v3369_v4 = vmul.f32 %v5031_v47, %v5147_v52  ;;  %v1912_v7 = vsel %vm629_vm1, %v1910_v50, %v1911_v48  ;;  %v3936_v50 = vld [vmem:[%s8653_s3] sm:$0xff] }
  0x45   :  { %v2769_v1 = vadd.f32 %v2705_v6, %v2538_v45  ;;  %v2395_v9 = vrot.slane %v5152_v55, 2  ;;  %v3109_v12 = vrot.slane %v2885_v59, 1  ;;  %v5175_v6 = vmul.f32 %v5031_v47, %v5154_v56  ;;  %v143_v45 = vld [vmem:[%s8650_s0 + $0x50] sm:$0xff] }
  0x46   :  { %v2086_v22 = vadd.f32 %v1912_v7, %v1602_v37  ;;  %v3110_v25 = vrot.slane %v5165_v3, 1  ;;  %v3593_v26 = vrot.slane %v3369_v4, 2  ;;  %v1119_v37 = vsel %vm1114_vm2, %v5011_v41, %v1118_v39  ;;  %209 = vst.msk [vmem:[#allocation2 + $0x91] sm:$0xff] %vm198_vm0, %v143_v45  ;;  %v175_v39 = vld [vmem:[%s8650_s0 + $0x150] sm:$0xff]  ;;  %v176_v7 = vld [vmem:[%s8650_s0 + $0x158] sm:$0xff] }
  0x47   :  { %v3253_v18 = vadd.f32 %v3031_v33, %v2769_v1  ;;  %v2396_v28 = vsel %vm1114_vm2, %v2394_v2, %v2395_v9  ;;  %v3594_v32 = vrot.slane %v5175_v6, 2  ;;  %v634_v33 = vsel %vm629_vm1, %v5009_v40, %v633_v0  ;;  %v144_v0 = vld [vmem:[%s8650_s0 + $0x58] sm:$0xff]  ;;  %v2607_v2 = vld [vmem:[#allocation2 + $0x40] sm:$0x3]  ;;  %241 = vst.msk [vmem:[#allocation2 + $0x241] sm:$0xff] %vm198_vm0, %v175_v39 }
  0x48   :  { %v2570_v59 = vadd.f32 %v2396_v28, %v2086_v22  ;;  %v3111_v43 = vsel %vm629_vm1, %v3109_v12, %v3110_v25  ;;  %v855_v61 = vadd.f32 %v634_v33, %v4992_v34  ;;  %v1507_v1 = vmul.f32 %v4967_v23, %v5064_v57  ;;  %210 = vst.msk [vmem:[#allocation2 + $0x99] sm:$0xff] %vm198_vm0, %v144_v0 }
  0x49   :  { %v3737_v51 = vadd.f32 %v3515_v46, %v3253_v18  ;;  %v3595_v46 = vsel %vm1114_vm2, %v3593_v26, %v3594_v32  ;;  %v713_v4 = vrot.slane %v5037_v49, 1 }
  0x4a   :  { %10 = vsyncpa [#allocation4], 0  ;;  %4601 = vmatpush3.msra.mxu0 %v3937_v15  ;;  %4730 = vmatpush3.msra.mxu1 %v3937_v15  ;;  %v2801_v13 = vadd.f32 %v2737_v58, %v2570_v59  ;;  %v1640_v14 = vmul.f32 %v4980_v29, %v1408_v44  ;;  %242 = vst.msk [vmem:[#allocation2 + $0x249] sm:$0xff] %vm198_vm0, %v176_v7  ;;  %v1198_v26 = vrot.slane %v5054_v54, 2 }
  0x4b   :  { %v3808_v12 = vadd.f32 %v5192_v27, %v3737_v51  ;;  %4602 = vmatprep.subr.mxu0 %v3936_v50  ;;  %4715 = vmatprep.subr.mxu1 %v3936_v50  ;;  %v1340_v49 = vadd.f32 %v1119_v37, %v855_v61  ;;  %v2124_v18 = vmul.f32 %v4995_v35, %v1408_v44 }
  0x4c   :  { %v2706_v22 = vmul.f32 %v4997_v36, %v5090_v5  ;;  %4603 = vmatpush3.msra.mxu0 %v3936_v50  ;;  %4731 = vmatpush3.msra.mxu1 %v3936_v50  ;;  %v3285_v28 = vadd.f32 %v3111_v43, %v2801_v13  ;;  %v1833_v33 = vrot.slane %v1640_v14, 1  ;;  %v2839_v58 = vmul.f32 %v5013_v42, %v2607_v2  ;;  %v1456_v43 = vld [vmem:[#allocation2 + $0x1d8] sm:$0x3] }
  0x4d   :  { %v3872_v15 = vmax.f32 %v3808_v12, 0.0  ;;  %v1571_v45 = vadd.f32 %v1507_v1, %v1340_v49  ;;  %v2317_v51 = vrot.slane %v2124_v18, 2  ;;  %v3323_v59 = vmul.f32 %v5031_v47, %v2607_v2 }
  0x4e   :  { %v714_v37 = vsel %vm629_vm1, %v5009_v40, %v713_v4  ;;  %v3769_v44 = vadd.f32 %v3595_v46, %v3285_v28  ;;  %v1834_v54 = vsel %vm629_vm1, %v1831_v8, %v1833_v33  ;;  %v3032_v0 = vrot.slane %v2839_v58, 1  ;;  %v2655_v40 = vld [vmem:[#allocation2 + $0x1f0] sm:$0x3] }
  0x4f   :  { %4604 = vmatprep.mubr.f32.mxu0 %v3872_v15  ;;  %v887_v50 = vadd.f32 %v714_v37, %v4992_v34  ;;  %v2055_v39 = vadd.f32 %v1834_v54, %v1571_v45  ;;  %v2318_v61 = vsel %vm1114_vm2, %v2315_v10, %v2317_v51  ;;  %v3516_v1 = vrot.slane %v3323_v59, 2 }
  0x50   :  { %v1199_v2 = vsel %vm1114_vm2, %v5011_v41, %v1198_v26  ;;  %v3840_v46 = vadd.f32 %v5192_v27, %v3769_v44  ;;  %v3033_v60 = vsel %vm629_vm1, %v3030_v24, %v3032_v0  ;;  %v1539_v34 = vmul.f32 %v4967_v23, %v5127_v31 }
  0x51   :  { %v1372_v8 = vadd.f32 %v1199_v2, %v887_v50  ;;  %v2539_v4 = vadd.f32 %v2318_v61, %v2055_v39  ;;  %v3517_v62 = vsel %vm1114_vm2, %v3514_v30, %v3516_v1  ;;  %v1688_v10 = vmul.f32 %v4980_v29, %v1456_v43  ;;  %v5309_v1 = vld [vmem:[#allocation2 + $0x48] sm:$0xff] }
  0x52   :  { %v2172_v41 = vmul.f32 %v4995_v35, %v1456_v43  ;;  %v3904_v7 = vmax.f32 %v3840_v46, 0.0  ;;  %v2738_v11 = vmul.f32 %v4997_v36, %v5154_v56  ;;  %v2887_v24 = vmul.f32 %v5013_v42, %v2655_v40 }
  0x53   :  { %v1603_v12 = vadd.f32 %v1539_v34, %v1372_v8  ;;  %v2770_v13 = vadd.f32 %v2706_v22, %v2539_v4  ;;  %v1913_v14 = vrot.slane %v1688_v10, 1  ;;  %v3371_v18 = vmul.f32 %v5031_v47, %v2655_v40  ;;  %v5321_v10 = vld [vmem:[#allocation2 + $0x50] sm:$0xff] }
  0x54   :  { %v2397_v49 = vrot.slane %v2172_v41, 2  ;;  %4652 = vmatprep.mubr.f32.mxu1 %v3904_v7  ;;  %v3112_v16 = vrot.slane %v2887_v24, 1  ;;  %v371_v30 = vmul.f32 %v5051_v53, %v4957_v19  ;;  %v440_v26 = vmul.f32 %v5051_v53, %v4959_v20 }
  0x55   :  { %v5273_v15 = vmul.f32 %v5064_v57, %v4959_v20  ;;  %v3254_v28 = vadd.f32 %v3033_v60, %v2770_v13  ;;  %v1914_v22 = vsel %vm629_vm1, %v1911_v48, %v1913_v14  ;;  %v3596_v58 = vrot.slane %v3371_v18, 2 }
  0x56   :  { %v2398_v33 = vsel %vm1114_vm2, %v2395_v9, %v2397_v49  ;;  %v2087_v45 = vadd.f32 %v1914_v22, %v1603_v12  ;;  %v3113_v51 = vsel %vm629_vm1, %v3110_v25, %v3112_v16  ;;  %v635_v59 = vrot.slane %v440_v26, 1 }
  0x57   :  { %v636_v37 = vrot.slane %v5273_v15, 1  ;;  %v3738_v44 = vadd.f32 %v3517_v62, %v3254_v28  ;;  %v3597_v38 = vsel %vm1114_vm2, %v3594_v32, %v3596_v58  ;;  %v925_v48 = vmul.f32 %v5051_v53, %v4962_v21 }
  0x58   :  { %v5292_v55 = vmul.f32 %v5064_v57, %v4962_v21  ;;  %v2571_v9 = vadd.f32 %v2398_v33, %v2087_v45  ;;  %v1508_v25 = vmul.f32 %v5080_v63, %v4967_v23  ;;  %v1641_v6 = vmul.f32 %v5080_v63, %v4980_v29 }
  0x59   :  { %v637_v3 = vsel %vm629_vm1, %v635_v59, %v636_v37  ;;  %v3809_v32 = vadd.f32 %v5192_v27, %v3738_v44  ;;  %v1120_v0 = vrot.slane %v925_v48, 2  ;;  %v5305_v43 = vmul.f32 %v5090_v5, %v4980_v29 }
  0x5a   :  { %v856_v54 = vadd.f32 %v637_v3, %v371_v30  ;;  %v1121_v53 = vrot.slane %v5292_v55, 2  ;;  %v2802_v50 = vadd.f32 %v2738_v11, %v2571_v9  ;;  %v1835_v39 = vrot.slane %v1641_v6, 1  ;;  %v146_v6 = vld [vmem:[%s8650_s0 + $0x68] sm:$0xff]  ;;  %v1459_v55 = vld [vmem:[#allocation2 + $0x1f0] sm:$0x3] }
  0x5b   :  { %v2125_v61 = vmul.f32 %v5080_v63, %v4995_v35  ;;  %v3873_v2 = vmax.f32 %v3809_v32, 0.0  ;;  %v5316_v46 = vmul.f32 %v5090_v5, %v4995_v35  ;;  %v2707_v60 = vmul.f32 %v4997_v36, %v5309_v1  ;;  %212 = vst.msk [vmem:[#allocation2 + $0xb1] sm:$0xff] %vm198_vm0, %v146_v6 }
  0x5c   :  { %v1122_v40 = vsel %vm1114_vm2, %v1120_v0, %v1121_v53  ;;  %v3286_v8 = vadd.f32 %v3113_v51, %v2802_v50  ;;  %v1836_v4 = vrot.slane %v5305_v43, 1  ;;  %v2840_v7 = vmul.f32 %v5013_v42, %v5309_v1  ;;  %v2658_v43 = vld [vmem:[#allocation2 + $0x208] sm:$0x3] }
  0x5d   :  { %v1341_v34 = vadd.f32 %v1122_v40, %v856_v54  ;;  %v2319_v62 = vrot.slane %v2125_v61, 2  ;;  %4605 = vmatmul.mubr.f32.vlgmr.msra.gmra.mxu0 %v3873_v2  ;;  %v2320_v41 = vrot.slane %v5316_v46, 2  ;;  %v5328_v12 = vmul.f32 %v5013_v42, %v5321_v10  ;;  %v5383_v40 = vld [vmem:[#allocation2 + $0x1f8] sm:$0xff] }
  0x5e   :  { %v3324_v11 = vmul.f32 %v5031_v47, %v5309_v1  ;;  %v3770_v24 = vadd.f32 %v3597_v38, %v3286_v8  ;;  %v1837_v14 = vsel %vm629_vm1, %v1835_v39, %v1836_v4  ;;  %v5337_v49 = vmul.f32 %v5031_v47, %v5321_v10 }
  0x5f   :  { %v1572_v13 = vadd.f32 %v1508_v25, %v1341_v34  ;;  %v2321_v18 = vsel %vm1114_vm2, %v2319_v62, %v2320_v41  ;;  %v3034_v16 = vrot.slane %v2840_v7, 1  ;;  %v3035_v30 = vrot.slane %v5328_v12, 1  ;;  %v145_v25 = vld [vmem:[%s8650_s0 + $0x60] sm:$0xff] }
  0x60   :  { %v3518_v26 = vrot.slane %v3324_v11, 2  ;;  %v3841_v28 = vadd.f32 %v5192_v27, %v3770_v24  ;;  %v3519_v33 = vrot.slane %v5337_v49, 2  ;;  %v403_v58 = vmul.f32 %v5112_v17, %v4957_v19  ;;  %211 = vst.msk [vmem:[#allocation2 + $0xa9] sm:$0xff] %vm198_vm0, %v145_v25 }
  0x61   :  { %v2056_v22 = vadd.f32 %v1837_v14, %v1572_v13  ;;  %v3036_v45 = vsel %vm629_vm1, %v3034_v16, %v3035_v30  ;;  %v488_v51 = vmul.f32 %v5112_v17, %v4959_v20  ;;  %v5354_v59 = vmul.f32 %v5127_v31, %v4959_v20 }
  0x62   :  { %v973_v44 = vmul.f32 %v5112_v17, %v4962_v21  ;;  %v3905_v38 = vmax.f32 %v3841_v28, 0.0  ;;  %v3520_v9 = vsel %vm1114_vm2, %v3518_v26, %v3519_v33  ;;  %v5363_v3 = vmul.f32 %v5127_v31, %v4962_v21  ;;  %v5401_v26 = vld [vmem:[#allocation2 + $0x200] sm:$0xff] }
  0x63   :  { %v2540_v48 = vadd.f32 %v2321_v18, %v2056_v22  ;;  %v715_v32 = vrot.slane %v488_v51, 1  ;;  %v716_v17 = vrot.slane %v5354_v59, 1  ;;  %v1540_v0 = vmul.f32 %v5147_v52, %v4967_v23 }
  0x64   :  { %v1200_v54 = vrot.slane %v973_v44, 2  ;;  %4653 = vmatmul.mubr.f32.vlgmr.msra.gmra.mxu1 %v3905_v38  ;;  %v1201_v39 = vrot.slane %v5363_v3, 2  ;;  %v1689_v61 = vmul.f32 %v5147_v52, %v4980_v29  ;;  %v5381_v2 = vmul.f32 %v5154_v56, %v4980_v29  ;;  %v274_v44 = vld [vmem:[#allocation2 + $0x28] sm:$0x3]  ;;  %v177_v38 = vld [vmem:[%s8650_s0 + $0x160] sm:$0xff] }
  0x65   :  { %v2771_v50 = vadd.f32 %v2707_v60, %v2540_v48  ;;  %v717_v8 = vsel %vm629_vm1, %v715_v32, %v716_v17  ;;  %v2173_v34 = vmul.f32 %v5147_v52, %v4995_v35  ;;  %v5392_v60 = vmul.f32 %v5154_v56, %v4995_v35  ;;  %v178_v48 = vld [vmem:[%s8650_s0 + $0x168] sm:$0xff]  ;;  %243 = vst.msk [vmem:[#allocation2 + $0x259] sm:$0xff] %vm198_vm0, %v177_v38 }
  0x66   :  { %v2739_v62 = vmul.f32 %v4997_v36, %v5383_v40  ;;  %v888_v11 = vadd.f32 %v717_v8, %v403_v58  ;;  %v1202_v24 = vsel %vm1114_vm2, %v1200_v54, %v1201_v39  ;;  %v1915_v13 = vrot.slane %v1689_v61, 1  ;;  %244 = vst.msk [vmem:[#allocation2 + $0x261] sm:$0xff] %vm198_vm0, %v178_v48 }
  0x67   :  { %v3255_v7 = vadd.f32 %v3036_v45, %v2771_v50  ;;  %v1916_v14 = vrot.slane %v5381_v2, 1  ;;  %v2399_v18 = vrot.slane %v2173_v34, 2  ;;  %v8658_v16 = vrot.slane %v5392_v60, 2  ;;  %v1411_v34 = vld [vmem:[#allocation2 + $0x40] sm:$0x3] }
  0x68   :  { %v2888_v28 = vmul.f32 %v5013_v42, %v5383_v40  ;;  %v1373_v51 = vadd.f32 %v1202_v24, %v888_v11  ;;  %v5407_v58 = vmul.f32 %v5013_v42, %v5401_v26  ;;  %v3372_v45 = vmul.f32 %v5031_v47, %v5383_v40 }
  0x69   :  { %v3739_v22 = vadd.f32 %v3520_v9, %v3255_v7  ;;  %v1917_v9 = vsel %vm629_vm1, %v1915_v13, %v1916_v14  ;;  %v2401_v25 = vsel %vm1114_vm2, %v2399_v18, %v8658_v16  ;;  %v5425_v32 = vmul.f32 %v5031_v47, %v5401_v26  ;;  %v2610_v18 = vld [vmem:[#allocation2 + $0x58] sm:$0x3] }
  0x6a   :  { %v3114_v6 = vrot.slane %v2888_v28, 1  ;;  %v1604_v50 = vadd.f32 %v1540_v0, %v1373_v51  ;;  %v8656_v61 = vrot.slane %v5407_v58, 1  ;;  %v3598_v8 = vrot.slane %v3372_v45, 2 }
  0x6b   :  { %v3810_v54 = vadd.f32 %v5192_v27, %v3739_v22  ;;  %v8657_v7 = vrot.slane %v5425_v32, 2  ;;  %v372_v11 = vmul.f32 %v5064_v57, %v4957_v19  ;;  %v442_v24 = vmul.f32 %v4959_v20, %v274_v44 }
  0x6c   :  { %v927_v13 = vmul.f32 %v4962_v21, %v274_v44  ;;  %v2088_v38 = vadd.f32 %v1917_v9, %v1604_v50  ;;  %v3116_v0 = vsel %vm629_vm1, %v3114_v6, %v8656_v61  ;;  %v1509_v22 = vmul.f32 %v5090_v5, %v4967_v23  ;;  %v322_v50 = vld [vmem:[#allocation2 + $0x1d8] sm:$0x3] }
  0x6d   :  { %v3874_v28 = vmax.f32 %v3810_v54, 0.0  ;;  %v3600_v51 = vsel %vm1114_vm2, %v3598_v8, %v8657_v7  ;;  %v638_v45 = vrot.slane %v442_v24, 1  ;;  %v1643_v48 = vmul.f32 %v4980_v29, %v1411_v34 }
  0x6e   :  { %v1123_v57 = vrot.slane %v927_v13, 2  ;;  %v2572_v44 = vadd.f32 %v2401_v25, %v2088_v38  ;;  %v2127_v54 = vmul.f32 %v4995_v35, %v1411_v34  ;;  %v2708_v9 = vmul.f32 %v4997_v36, %v5321_v10 }
  0x6f   :  { %4607 = vmatprep.mubr.f32.mxu0 %v3874_v28  ;;  %v2842_v6 = vmul.f32 %v5013_v42, %v2610_v18  ;;  %v639_v61 = vsel %vm629_vm1, %v636_v37, %v638_v45  ;;  %v1838_v24 = vrot.slane %v1643_v48, 1  ;;  %v3326_v13 = vmul.f32 %v5031_v47, %v2610_v18 }
  0x70   :  { %v1124_v8 = vsel %vm1114_vm2, %v1121_v53, %v1123_v57  ;;  %v2803_v25 = vadd.f32 %v2739_v62, %v2572_v44  ;;  %v857_v28 = vadd.f32 %v639_v61, %v372_v11  ;;  %v2322_v34 = vrot.slane %v2127_v54, 2 }
  0x71   :  { %v3037_v38 = vrot.slane %v2842_v6, 1  ;;  %v1839_v7 = vsel %vm629_vm1, %v1836_v4, %v1838_v24  ;;  %v3521_v16 = vrot.slane %v3326_v13, 2  ;;  %v404_v15 = vmul.f32 %v5127_v31, %v4957_v19 }
  0x72   :  { %v490_v37 = vmul.f32 %v4959_v20, %v322_v50  ;;  %v3287_v45 = vadd.f32 %v3116_v0, %v2803_v25  ;;  %v1342_v53 = vadd.f32 %v1124_v8, %v857_v28  ;;  %v2323_v62 = vsel %vm1114_vm2, %v2320_v41, %v2322_v34 }
  0x73   :  { %v3038_v61 = vsel %vm629_vm1, %v3035_v30, %v3037_v38  ;;  %v3522_v4 = vsel %vm1114_vm2, %v3519_v33, %v3521_v16  ;;  %v975_v31 = vmul.f32 %v4962_v21, %v322_v50  ;;  %v1541_v18 = vmul.f32 %v5154_v56, %v4967_v23 }
  0x74   :  { %v718_v11 = vrot.slane %v490_v37, 1  ;;  %v3771_v0 = vadd.f32 %v3600_v51, %v3287_v45  ;;  %v1573_v57 = vadd.f32 %v1509_v22, %v1342_v53  ;;  %v1691_v46 = vmul.f32 %v4980_v29, %v1459_v55 }
  0x75   :  { %v2175_v41 = vmul.f32 %v4995_v35, %v1459_v55  ;;  %v1203_v30 = vrot.slane %v975_v31, 2  ;;  %v2740_v49 = vmul.f32 %v4997_v36, %v5401_v26  ;;  %v2890_v33 = vmul.f32 %v5013_v42, %v2658_v43 }
  0x76   :  { %v719_v12 = vsel %vm629_vm1, %v716_v17, %v718_v11  ;;  %v3842_v16 = vadd.f32 %v5192_v27, %v3771_v0  ;;  %v2057_v48 = vadd.f32 %v1839_v7, %v1573_v57  ;;  %v1918_v51 = vrot.slane %v1691_v46, 1 }
  0x77   :  { %v889_v44 = vadd.f32 %v719_v12, %v404_v15  ;;  %v1204_v22 = vsel %vm1114_vm2, %v1201_v39, %v1203_v30  ;;  %v2402_v54 = vrot.slane %v2175_v41, 2  ;;  %v3117_v6 = vrot.slane %v2890_v33, 1 }
  0x78   :  { %v3374_v59 = vmul.f32 %v5031_v47, %v2658_v43  ;;  %v3906_v17 = vmax.f32 %v3842_v16, 0.0  ;;  %v2541_v50 = vadd.f32 %v2323_v62, %v2057_v48  ;;  %v1919_v24 = vsel %vm629_vm1, %v1916_v14, %v1918_v51  ;;  %v5537_v48 = vld [vmem:[#allocation2 + $0x60] sm:$0xff] }
  0x79   :  { %v1374_v8 = vadd.f32 %v1204_v22, %v889_v44  ;;  %v8711_v13 = vrot.slane %v5392_v60, 2  ;;  %v8712_v25 = vrot.slane %v5407_v58, 1  ;;  %v373_v28 = vmul.f32 %v5080_v63, %v4957_v19  ;;  %v5542_v22 = vld [vmem:[#allocation2 + $0x68] sm:$0xff] }
  0x7a   :  { %v3601_v39 = vrot.slane %v3374_v59, 2  ;;  %4655 = vmatprep.mubr.f32.mxu1 %v3906_v17  ;;  %v2772_v34 = vadd.f32 %v2708_v9, %v2541_v50  ;;  %v443_v2 = vmul.f32 %v5080_v63, %v4959_v20  ;;  %v5502_v14 = vmul.f32 %v5090_v5, %v4959_v20 }
  0x7b   :  { %v2403_v7 = vsel %vm1114_vm2, %v8711_v13, %v2402_v54  ;;  %v3118_v3 = vsel %vm629_vm1, %v8712_v25, %v3117_v6  ;;  %v1605_v38 = vadd.f32 %v1541_v18, %v1374_v8  ;;  %v8713_v60 = vrot.slane %v5425_v32, 2 }
  0x7c   :  { %v928_v15 = vmul.f32 %v5080_v63, %v4962_v21  ;;  %v5511_v37 = vmul.f32 %v5090_v5, %v4962_v21  ;;  %v1510_v9 = vmul.f32 %v5309_v1, %v4967_v23  ;;  %v3256_v55 = vadd.f32 %v3038_v61, %v2772_v34 }
  0x7d   :  { %v3602_v58 = vsel %vm1114_vm2, %v8713_v60, %v3601_v39  ;;  %v2089_v45 = vadd.f32 %v1919_v24, %v1605_v38  ;;  %v640_v53 = vrot.slane %v443_v2, 1  ;;  %v641_v62 = vrot.slane %v5502_v14, 1 }
  0x7e   :  { %v1125_v43 = vrot.slane %v928_v15, 2  ;;  %v1126_v32 = vrot.slane %v5511_v37, 2  ;;  %v1644_v11 = vmul.f32 %v5309_v1, %v4980_v29  ;;  %v5521_v63 = vmul.f32 %v5321_v10, %v4980_v29  ;;  %v1462_v37 = vld [vmem:[#allocation2 + $0x208] sm:$0x3] }
  0x7f   :  { %v3740_v31 = vadd.f32 %v3522_v4, %v3256_v55  ;;  %v2573_v18 = vadd.f32 %v2403_v7, %v2089_v45  ;;  %v642_v61 = vsel %vm629_vm1, %v640_v53, %v641_v62  ;;  %v2128_v0 = vmul.f32 %v5309_v1, %v4995_v35 }
  0x80   :  { %v858_v57 = vadd.f32 %v642_v61, %v373_v28  ;;  %v1127_v46 = vsel %vm1114_vm2, %v1125_v43, %v1126_v32  ;;  %v1840_v41 = vrot.slane %v1644_v11, 1  ;;  %v1841_v12 = vrot.slane %v5521_v63, 1  ;;  %v2661_v63 = vld [vmem:[#allocation2 + $0x220] sm:$0x3] }
  0x81   :  { %v3811_v30 = vadd.f32 %v5192_v27, %v3740_v31  ;;  %v2804_v33 = vadd.f32 %v2740_v49, %v2573_v18  ;;  %v5535_v4 = vmul.f32 %v5321_v10, %v4995_v35  ;;  %v2324_v16 = vrot.slane %v2128_v0, 2  ;;  %v147_v31 = vld [vmem:[%s8650_s0 + $0x70] sm:$0xff]  ;;  %v148_v18 = vld [vmem:[%s8650_s0 + $0x78] sm:$0xff] }
  0x82   :  { %v1343_v44 = vadd.f32 %v1127_v46, %v858_v57  ;;  %v1842_v51 = vsel %vm629_vm1, %v1840_v41, %v1841_v12  ;;  %v2709_v54 = vmul.f32 %v4997_v36, %v5537_v48  ;;  %v2843_v49 = vmul.f32 %v5013_v42, %v5537_v48  ;;  %213 = vst.msk [vmem:[#allocation2 + $0xc1] sm:$0xff] %vm198_vm0, %v147_v31 }
  0x83   :  { %v3875_v6 = vmax.f32 %v3811_v30, 0.0  ;;  %v3288_v59 = vadd.f32 %v3118_v3, %v2804_v33  ;;  %v2325_v17 = vrot.slane %v5535_v4, 2  ;;  %v5551_v50 = vmul.f32 %v5013_v42, %v5542_v22  ;;  %214 = vst.msk [vmem:[#allocation2 + $0xc9] sm:$0xff] %vm198_vm0, %v148_v18 }
  0x84   :  { %v1574_v8 = vadd.f32 %v1510_v9, %v1343_v44  ;;  %v3039_v24 = vrot.slane %v2843_v49, 1  ;;  %v3327_v13 = vmul.f32 %v5031_v47, %v5537_v48  ;;  %v5557_v7 = vmul.f32 %v5031_v47, %v5542_v22 }
  0x85   :  { %4608 = vmatmul.mubr.f32.gmra.mxu0 %v3875_v6  ;;  %v3772_v25 = vadd.f32 %v3602_v58, %v3288_v59  ;;  %v2326_v3 = vsel %vm1114_vm2, %v2324_v16, %v2325_v17  ;;  %v3040_v39 = vrot.slane %v5551_v50, 1  ;;  %v405_v28 = vmul.f32 %v5147_v52, %v4957_v19  ;;  %v5603_v16 = vld [vmem:[#allocation2 + $0x210] sm:$0xff] }
  0x86   :  { %v2058_v34 = vadd.f32 %v1842_v51, %v1574_v8  ;;  %v3523_v38 = vrot.slane %v3327_v13, 2  ;;  %v3524_v2 = vrot.slane %v5557_v7, 2  ;;  %v491_v60 = vmul.f32 %v5147_v52, %v4959_v20 }
  0x87   :  { %v3843_v15 = vadd.f32 %v5192_v27, %v3772_v25  ;;  %v3041_v58 = vsel %vm629_vm1, %v3039_v24, %v3040_v39  ;;  %v5574_v9 = vmul.f32 %v5154_v56, %v4959_v20  ;;  %v976_v55 = vmul.f32 %v5147_v52, %v4962_v21 }
  0x88   :  { %v2542_v45 = vadd.f32 %v2326_v3, %v2058_v34  ;;  %v3525_v53 = vsel %vm1114_vm2, %v3523_v38, %v3524_v2  ;;  %v720_v43 = vrot.slane %v491_v60, 1  ;;  %v5583_v11 = vmul.f32 %v5154_v56, %v4962_v21  ;;  %v5621_v34 = vld [vmem:[#allocation2 + $0x218] sm:$0xff] }
  0x89   :  { %v3907_v61 = vmax.f32 %v3843_v15, 0.0  ;;  %v721_v52 = vrot.slane %v5574_v9, 1  ;;  %v1205_v0 = vrot.slane %v976_v55, 2  ;;  %v1542_v57 = vmul.f32 %v5383_v40, %v4967_v23  ;;  %v277_v55 = vld [vmem:[#allocation2 + $0x40] sm:$0x3] }
  0x8a   :  { %v2773_v46 = vadd.f32 %v2709_v54, %v2542_v45  ;;  %v1206_v41 = vrot.slane %v5583_v11, 2  ;;  %v1692_v30 = vmul.f32 %v5383_v40, %v4980_v29  ;;  %v5601_v33 = vmul.f32 %v5401_v26, %v4980_v29  ;;  %v179_v45 = vld [vmem:[%s8650_s0 + $0x170] sm:$0xff] }
  0x8b   :  { %4656 = vmatmul.mubr.f32.gmra.mxu1 %v3907_v61  ;;  %v722_v44 = vsel %vm629_vm1, %v720_v43, %v721_v52  ;;  %v2176_v51 = vmul.f32 %v5383_v40, %v4995_v35  ;;  %v5612_v54 = vmul.f32 %v5401_v26, %v4995_v35  ;;  %v2741_v49 = vmul.f32 %v4997_v36, %v5603_v16  ;;  %v180_v43 = vld [vmem:[%s8650_s0 + $0x178] sm:$0xff] }
  0x8c   :  { %v3257_v6 = vadd.f32 %v3041_v58, %v2773_v46  ;;  %v890_v59 = vadd.f32 %v722_v44, %v405_v28  ;;  %v1207_v8 = vsel %vm1114_vm2, %v1205_v0, %v1206_v41  ;;  %v1920_v24 = vrot.slane %v1692_v30, 1  ;;  %245 = vst.msk [vmem:[#allocation2 + $0x271] sm:$0xff] %vm198_vm0, %v179_v45  ;;  %246 = vst.msk [vmem:[#allocation2 + $0x279] sm:$0xff] %vm198_vm0, %v180_v43 }
  0x8d   :  { %v1921_v13 = vrot.slane %v5601_v33, 1  ;;  %v2404_v25 = vrot.slane %v2176_v51, 2  ;;  %v8661_v3 = vrot.slane %v5612_v54, 2  ;;  %v2891_v38 = vmul.f32 %v5013_v42, %v5603_v16  ;;  %v1414_v51 = vld [vmem:[#allocation2 + $0x58] sm:$0x3] }
  0x8e   :  { %v3741_v60 = vadd.f32 %v3525_v53, %v3257_v6  ;;  %v1375_v15 = vadd.f32 %v1207_v8, %v890_v59  ;;  %v5627_v28 = vmul.f32 %v5013_v42, %v5621_v34  ;;  %v3375_v58 = vmul.f32 %v5031_v47, %v5603_v16 }
  0x8f   :  { %v1922_v53 = vsel %vm629_vm1, %v1920_v24, %v1921_v13  ;;  %v2406_v31 = vsel %vm1114_vm2, %v2404_v25, %v8661_v3  ;;  %v3119_v18 = vrot.slane %v2891_v38, 1  ;;  %v5645_v61 = vmul.f32 %v5031_v47, %v5621_v34  ;;  %v2613_v25 = vld [vmem:[#allocation2 + $0x70] sm:$0x3] }
  0x90   :  { %v3812_v0 = vadd.f32 %v5192_v27, %v3741_v60  ;;  %v1606_v46 = vadd.f32 %v1542_v57, %v1375_v15  ;;  %v8659_v30 = vrot.slane %v5627_v28, 1  ;;  %v3603_v44 = vrot.slane %v3375_v58, 2 }
  0x91   :  { %v8660_v6 = vrot.slane %v5645_v61, 2  ;;  %v374_v59 = vmul.f32 %v5090_v5, %v4957_v19  ;;  %v445_v8 = vmul.f32 %v4959_v20, %v277_v55  ;;  %v930_v24 = vmul.f32 %v4962_v21, %v277_v55 }
  0x92   :  { %v3876_v38 = vmax.f32 %v3812_v0, 0.0  ;;  %v2090_v45 = vadd.f32 %v1922_v53, %v1606_v46  ;;  %v3121_v57 = vsel %vm629_vm1, %v3119_v18, %v8659_v30  ;;  %v1511_v60 = vmul.f32 %v5321_v10, %v4967_v23  ;;  %v325_v46 = vld [vmem:[#allocation2 + $0x1f0] sm:$0x3] }
  0x93   :  { %v3605_v15 = vsel %vm1114_vm2, %v3603_v44, %v8660_v6  ;;  %v643_v58 = vrot.slane %v445_v8, 1  ;;  %v1128_v5 = vrot.slane %v930_v24, 2  ;;  %v1646_v43 = vmul.f32 %v4980_v29, %v1414_v51 }
  0x94   :  { %4610 = vmatprep.mubr.f32.mxu0 %v3876_v38  ;;  %v2574_v55 = vadd.f32 %v2406_v31, %v2090_v45  ;;  %v2130_v0 = vmul.f32 %v4995_v35, %v1414_v51  ;;  %v2710_v53 = vmul.f32 %v4997_v36, %v5542_v22  ;;  %v2845_v18 = vmul.f32 %v5013_v42, %v2613_v25 }
  0x95   :  { %v644_v30 = vsel %vm629_vm1, %v641_v62, %v643_v58  ;;  %v1129_v44 = vsel %vm1114_vm2, %v1126_v32, %v1128_v5  ;;  %v1843_v8 = vrot.slane %v1646_v43, 1  ;;  %v3329_v24 = vmul.f32 %v5031_v47, %v2613_v25 }
  0x96   :  { %v2805_v31 = vadd.f32 %v2741_v49, %v2574_v55  ;;  %v859_v38 = vadd.f32 %v644_v30, %v374_v59  ;;  %v2327_v51 = vrot.slane %v2130_v0, 2  ;;  %v3042_v45 = vrot.slane %v2845_v18, 1 }
  0x97   :  { %v1844_v6 = vsel %vm629_vm1, %v1841_v12, %v1843_v8  ;;  %v3526_v3 = vrot.slane %v3329_v24, 2  ;;  %v406_v14 = vmul.f32 %v5154_v56, %v4957_v19  ;;  %v493_v62 = vmul.f32 %v4959_v20, %v325_v46 }
  0x98   :  { %v3289_v58 = vadd.f32 %v3121_v57, %v2805_v31  ;;  %v1344_v32 = vadd.f32 %v1129_v44, %v859_v38  ;;  %v2328_v49 = vsel %vm1114_vm2, %v2325_v17, %v2327_v51  ;;  %v3043_v30 = vsel %vm629_vm1, %v3040_v39, %v3042_v45 }
  0x99   :  { %v3527_v12 = vsel %vm1114_vm2, %v3524_v2, %v3526_v3  ;;  %v723_v59 = vrot.slane %v493_v62, 1  ;;  %v978_v56 = vmul.f32 %v4962_v21, %v325_v46  ;;  %v1543_v25 = vmul.f32 %v5401_v26, %v4967_v23 }
  0x9a   :  { %v3773_v57 = vadd.f32 %v3605_v15, %v3289_v58  ;;  %v1575_v5 = vadd.f32 %v1511_v60, %v1344_v32  ;;  %v1694_v4 = vmul.f32 %v4980_v29, %v1462_v37  ;;  %v2178_v17 = vmul.f32 %v4995_v35, %v1462_v37 }
  0x9b   :  { %v724_v50 = vsel %vm629_vm1, %v721_v52, %v723_v59  ;;  %v1208_v39 = vrot.slane %v978_v56, 2  ;;  %v2742_v7 = vmul.f32 %v4997_v36, %v5621_v34  ;;  %v2893_v2 = vmul.f32 %v5013_v42, %v2661_v63 }
  0x9c   :  { %v3844_v3 = vadd.f32 %v5192_v27, %v3773_v57  ;;  %v2059_v43 = vadd.f32 %v1844_v6, %v1575_v5  ;;  %v891_v55 = vadd.f32 %v724_v50, %v406_v14  ;;  %v1923_v15 = vrot.slane %v1694_v4, 1 }
  0x9d   :  { %v1209_v60 = vsel %vm1114_vm2, %v1206_v41, %v1208_v39  ;;  %v2407_v0 = vrot.slane %v2178_v17, 2  ;;  %v3122_v18 = vrot.slane %v2893_v2, 1  ;;  %v3377_v9 = vmul.f32 %v5031_v47, %v2661_v63 }
  0x9e   :  { %v3908_v52 = vmax.f32 %v3844_v3, 0.0  ;;  %v2543_v46 = vadd.f32 %v2328_v49, %v2059_v43  ;;  %v1376_v44 = vadd.f32 %v1209_v60, %v891_v55  ;;  %v1924_v8 = vsel %vm629_vm1, %v1921_v13, %v1923_v15  ;;  %v5757_v43 = vld [vmem:[#allocation2 + $0x78] sm:$0xff]  ;;  %v5762_v60 = vld [vmem:[#allocation2 + $0x80] sm:$0xff] }
  0x9f   :  { %v8714_v24 = vrot.slane %v5612_v54, 2  ;;  %v8715_v31 = vrot.slane %v5627_v28, 1  ;;  %v3606_v41 = vrot.slane %v3377_v9, 2  ;;  %v375_v38 = vmul.f32 %v5309_v1, %v4957_v19 }
  0xa0   :  { %4658 = vmatprep.mubr.f32.mxu1 %v3908_v52  ;;  %v2774_v51 = vadd.f32 %v2710_v53, %v2543_v46  ;;  %v1607_v45 = vadd.f32 %v1543_v25, %v1376_v44  ;;  %v446_v33 = vmul.f32 %v5309_v1, %v4959_v20  ;;  %v5722_v13 = vmul.f32 %v5321_v10, %v4959_v20 }
  0xa1   :  { %v2408_v6 = vsel %vm1114_vm2, %v8714_v24, %v2407_v0  ;;  %v3123_v11 = vsel %vm629_vm1, %v8715_v31, %v3122_v18  ;;  %v8716_v54 = vrot.slane %v5645_v61, 2  ;;  %v931_v14 = vmul.f32 %v5309_v1, %v4962_v21 }
  0xa2   :  { %v5731_v62 = vmul.f32 %v5321_v10, %v4962_v21  ;;  %v1512_v53 = vmul.f32 %v5537_v48, %v4967_v23  ;;  %v3258_v37 = vadd.f32 %v3043_v30, %v2774_v51  ;;  %v2091_v58 = vadd.f32 %v1924_v8, %v1607_v45 }
  0xa3   :  { %v3607_v28 = vsel %vm1114_vm2, %v8716_v54, %v3606_v41  ;;  %v645_v32 = vrot.slane %v446_v33, 1  ;;  %v646_v49 = vrot.slane %v5722_v13, 1  ;;  %v1130_v63 = vrot.slane %v931_v14, 2 }
  0xa4   :  { %v1131_v61 = vrot.slane %v5731_v62, 2  ;;  %v1647_v59 = vmul.f32 %v5537_v48, %v4980_v29  ;;  %v5741_v1 = vmul.f32 %v5542_v22, %v4980_v29  ;;  %v3742_v56 = vadd.f32 %v3527_v12, %v3258_v37  ;;  %v1465_v62 = vld [vmem:[#allocation2 + $0x220] sm:$0x3] }
  0xa5   :  { %v2575_v25 = vadd.f32 %v2408_v6, %v2091_v58  ;;  %v647_v30 = vsel %vm629_vm1, %v645_v32, %v646_v49  ;;  %v2131_v57 = vmul.f32 %v5537_v48, %v4995_v35  ;;  %v5755_v12 = vmul.f32 %v5542_v22, %v4995_v35 }
  0xa6   :  { %v860_v5 = vadd.f32 %v647_v30, %v375_v38  ;;  %v1132_v4 = vsel %vm1114_vm2, %v1130_v63, %v1131_v61  ;;  %v1845_v17 = vrot.slane %v1647_v59, 1  ;;  %v1846_v50 = vrot.slane %v5741_v1, 1  ;;  %v149_v59 = vld [vmem:[%s8650_s0 + $0x80] sm:$0xff]  ;;  %v2664_v1 = vld [vmem:[#allocation2 + $0x238] sm:$0x3] }
  0xa7   :  { %v3813_v39 = vadd.f32 %v5192_v27, %v3742_v56  ;;  %v2806_v2 = vadd.f32 %v2742_v7, %v2575_v25  ;;  %v2329_v3 = vrot.slane %v2131_v57, 2  ;;  %v2711_v0 = vmul.f32 %v4997_v36, %v5757_v43  ;;  %v150_v56 = vld [vmem:[%s8650_s0 + $0x88] sm:$0xff]  ;;  %215 = vst.msk [vmem:[#allocation2 + $0xd9] sm:$0xff] %vm198_vm0, %v149_v59 }
  0xa8   :  { %v1345_v55 = vadd.f32 %v1132_v4, %v860_v5  ;;  %v1847_v15 = vsel %vm629_vm1, %v1845_v17, %v1846_v50  ;;  %v2846_v7 = vmul.f32 %v5013_v42, %v5757_v43  ;;  %v2330_v52 = vrot.slane %v5755_v12, 2  ;;  %216 = vst.msk [vmem:[#allocation2 + $0xe1] sm:$0xff] %vm198_vm0, %v150_v56 }
  0xa9   :  { %v3877_v18 = vmax.f32 %v3813_v39, 0.0  ;;  %v3290_v9 = vadd.f32 %v3123_v11, %v2806_v2  ;;  %v5771_v46 = vmul.f32 %v5013_v42, %v5762_v60  ;;  %v3330_v24 = vmul.f32 %v5031_v47, %v5757_v43  ;;  %v5823_v2 = vld [vmem:[#allocation2 + $0x228] sm:$0xff] }
  0xaa   :  { %v1576_v44 = vadd.f32 %v1512_v53, %v1345_v55  ;;  %v3044_v8 = vrot.slane %v2846_v7, 1  ;;  %v5777_v6 = vmul.f32 %v5031_v47, %v5762_v60  ;;  %v2331_v11 = vsel %vm1114_vm2, %v2329_v3, %v2330_v52 }
  0xab   :  { %4611 = vmatmul.mubr.f32.gmra.mxu0 %v3877_v18  ;;  %v3774_v31 = vadd.f32 %v3607_v28, %v3290_v9  ;;  %v3045_v41 = vrot.slane %v5771_v46, 1  ;;  %v407_v38 = vmul.f32 %v5383_v40, %v4957_v19  ;;  %v3528_v45 = vrot.slane %v3330_v24, 2 }
  0xac   :  { %v2060_v51 = vadd.f32 %v1847_v15, %v1576_v44  ;;  %v3529_v33 = vrot.slane %v5777_v6, 2  ;;  %v494_v54 = vmul.f32 %v5383_v40, %v4959_v20  ;;  %v5794_v53 = vmul.f32 %v5401_v26, %v4959_v20 }
  0xad   :  { %v3845_v14 = vadd.f32 %v5192_v27, %v3774_v31  ;;  %v3046_v28 = vsel %vm629_vm1, %v3044_v8, %v3045_v41  ;;  %v979_v37 = vmul.f32 %v5383_v40, %v4962_v21  ;;  %v5803_v27 = vmul.f32 %v5401_v26, %v4962_v21 }
  0xae   :  { %v2544_v58 = vadd.f32 %v2331_v11, %v2060_v51  ;;  %v3530_v32 = vsel %vm1114_vm2, %v3528_v45, %v3529_v33  ;;  %v725_v63 = vrot.slane %v494_v54, 1  ;;  %v726_v40 = vrot.slane %v5794_v53, 1  ;;  %v5841_v11 = vld [vmem:[#allocation2 + $0x230] sm:$0xff] }
  0xaf   :  { %v3909_v25 = vmax.f32 %v3845_v14, 0.0  ;;  %v1210_v30 = vrot.slane %v979_v37, 2  ;;  %v1544_v57 = vmul.f32 %v5603_v16, %v4967_v23  ;;  %v1211_v4 = vrot.slane %v5803_v27, 2  ;;  %v181_v37 = vld [vmem:[%s8650_s0 + $0x180] sm:$0xff] }
  0xb0   :  { %v2775_v5 = vadd.f32 %v2711_v0, %v2544_v58  ;;  %v1695_v17 = vmul.f32 %v5603_v16, %v4980_v29  ;;  %v5821_v39 = vmul.f32 %v5621_v34, %v4980_v29  ;;  %v727_v3 = vsel %vm629_vm1, %v725_v63, %v726_v40  ;;  %v182_v58 = vld [vmem:[%s8650_s0 + $0x188] sm:$0xff]  ;;  %247 = vst.msk [vmem:[#allocation2 + $0x289] sm:$0xff] %vm198_vm0, %v181_v37 }
  0xb1   :  { %4659 = vmatmul.mubr.f32.gmra.mxu1 %v3909_v25  ;;  %v2179_v55 = vmul.f32 %v5603_v16, %v4995_v35  ;;  %v5832_v15 = vmul.f32 %v5621_v34, %v4995_v35  ;;  %v2743_v0 = vmul.f32 %v4997_v36, %v5823_v2  ;;  %v892_v18 = vadd.f32 %v727_v3, %v407_v38  ;;  %v5872_v25 = vld [vmem:[%s8652_s2] ss:$0 sm:$0xff] }
  0xb2   :  { %v3259_v7 = vadd.f32 %v3046_v28, %v2775_v5  ;;  %v1212_v9 = vsel %vm1114_vm2, %v1210_v30, %v1211_v4  ;;  %v1925_v44 = vrot.slane %v1695_v17, 1  ;;  %v1926_v8 = vrot.slane %v5821_v39, 1  ;;  %v280_v28 = vld [vmem:[#allocation2 + $0x58] sm:$0x3]  ;;  %248 = vst.msk [vmem:[#allocation2 + $0x291] sm:$0xff] %vm198_vm0, %v182_v58 }
  0xb3   :  { %v2409_v24 = vrot.slane %v2179_v55, 2  ;;  %v8664_v31 = vrot.slane %v5832_v15, 2  ;;  %v2894_v51 = vmul.f32 %v5013_v42, %v5823_v2  ;;  %v1377_v54 = vadd.f32 %v1212_v9, %v892_v18  ;;  %v1417_v55 = vld [vmem:[#allocation2 + $0x70] sm:$0x3] }
  0xb4   :  { %v3743_v45 = vadd.f32 %v3530_v32, %v3259_v7  ;;  %v5847_v38 = vmul.f32 %v5013_v42, %v5841_v11  ;;  %v3378_v14 = vmul.f32 %v5031_v47, %v5823_v2  ;;  %v1927_v32 = vsel %vm629_vm1, %v1925_v44, %v1926_v8 }
  0xb5   :  { %v2411_v63 = vsel %vm1114_vm2, %v2409_v24, %v8664_v31  ;;  %v3124_v59 = vrot.slane %v2894_v51, 1  ;;  %v5865_v56 = vmul.f32 %v5031_v47, %v5841_v11  ;;  %v1608_v5 = vadd.f32 %v1544_v57, %v1377_v54  ;;  %v2616_v24 = vld [vmem:[#allocation2 + $0x88] sm:$0x3] }
  0xb6   :  { %v3814_v30 = vadd.f32 %v5872_v25, %v3743_v45  ;;  %v8662_v17 = vrot.slane %v5847_v38, 1  ;;  %v3608_v3 = vrot.slane %v3378_v14, 2  ;;  %v376_v18 = vmul.f32 %v5321_v10, %v4957_v19 }
  0xb7   :  { %v8663_v7 = vrot.slane %v5865_v56, 2  ;;  %v448_v9 = vmul.f32 %v4959_v20, %v280_v28  ;;  %v933_v44 = vmul.f32 %v4962_v21, %v280_v28  ;;  %v2092_v37 = vadd.f32 %v1927_v32, %v1608_v5  ;;  %v328_v5 = vld [vmem:[#allocation2 + $0x208] sm:$0x3] }
  0xb8   :  { %v3878_v51 = vmax.f32 %v3814_v30, 0.0  ;;  %v3126_v57 = vsel %vm629_vm1, %v3124_v59, %v8662_v17  ;;  %v1513_v45 = vmul.f32 %v5542_v22, %v4967_v23  ;;  %v1649_v58 = vmul.f32 %v4980_v29, %v1417_v55 }
  0xb9   :  { %v3610_v54 = vsel %vm1114_vm2, %v3608_v3, %v8663_v7  ;;  %v648_v14 = vrot.slane %v448_v9, 1  ;;  %v1133_v10 = vrot.slane %v933_v44, 2  ;;  %v2576_v28 = vadd.f32 %v2411_v63, %v2092_v37 }
  0xba   :  { %4613 = vmatprep.mubr.f32.mxu0 %v3878_v51  ;;  %v2133_v30 = vmul.f32 %v4995_v35, %v1417_v55  ;;  %v2712_v32 = vmul.f32 %v4997_v36, %v5762_v60  ;;  %v2848_v59 = vmul.f32 %v5013_v42, %v2616_v24  ;;  %v1848_v9 = vrot.slane %v1649_v58, 1 }
  0xbb   :  { %v649_v17 = vsel %vm629_vm1, %v646_v49, %v648_v14  ;;  %v1134_v3 = vsel %vm1114_vm2, %v1131_v61, %v1133_v10  ;;  %v3332_v44 = vmul.f32 %v5031_v47, %v2616_v24  ;;  %v2807_v63 = vadd.f32 %v2743_v0, %v2576_v28 }
  0xbc   :  { %v861_v51 = vadd.f32 %v649_v17, %v376_v18  ;;  %v2332_v55 = vrot.slane %v2133_v30, 2  ;;  %v3047_v37 = vrot.slane %v2848_v59, 1  ;;  %v1849_v7 = vsel %vm629_vm1, %v1846_v50, %v1848_v9 }
  0xbd   :  { %v3531_v31 = vrot.slane %v3332_v44, 2  ;;  %v408_v13 = vmul.f32 %v5401_v26, %v4957_v19  ;;  %v496_v49 = vmul.f32 %v4959_v20, %v328_v5  ;;  %v3291_v14 = vadd.f32 %v3126_v57, %v2807_v63 }
  0xbe   :  { %v1346_v61 = vadd.f32 %v1134_v3, %v861_v51  ;;  %v2333_v0 = vsel %vm1114_vm2, %v2330_v52, %v2332_v55  ;;  %v3048_v17 = vsel %vm629_vm1, %v3045_v41, %v3047_v37  ;;  %v981_v26 = vmul.f32 %v4962_v21, %v328_v5 }
  0xbf   :  { %v3532_v50 = vsel %vm1114_vm2, %v3529_v33, %v3531_v31  ;;  %v728_v18 = vrot.slane %v496_v49, 1  ;;  %v1545_v24 = vmul.f32 %v5621_v34, %v4967_v23  ;;  %v3775_v57 = vadd.f32 %v3610_v54, %v3291_v14 }
  0xc0   :  { %v1577_v10 = vadd.f32 %v1513_v45, %v1346_v61  ;;  %v1697_v12 = vmul.f32 %v4980_v29, %v1465_v62  ;;  %v2181_v52 = vmul.f32 %v4995_v35, %v1465_v62  ;;  %v1213_v41 = vrot.slane %v981_v26, 2 }
  0xc1   :  { %v729_v46 = vsel %vm629_vm1, %v726_v40, %v728_v18  ;;  %v2744_v6 = vmul.f32 %v4997_v36, %v5841_v11  ;;  %v2896_v33 = vmul.f32 %v5013_v42, %v2664_v1  ;;  %v3846_v31 = vadd.f32 %v5872_v25, %v3775_v57 }
  0xc2   :  { %v2061_v58 = vadd.f32 %v1849_v7, %v1577_v10  ;;  %v893_v28 = vadd.f32 %v729_v46, %v408_v13  ;;  %v1928_v54 = vrot.slane %v1697_v12, 1  ;;  %v1214_v45 = vsel %vm1114_vm2, %v1211_v4, %v1213_v41 }
  0xc3   :  { %v2412_v30 = vrot.slane %v2181_v52, 2  ;;  %v3127_v59 = vrot.slane %v2896_v33, 1  ;;  %v3380_v53 = vmul.f32 %v5031_v47, %v2664_v1  ;;  %v3910_v40 = vmax.f32 %v3846_v31, 0.0 }
  0xc4   :  { %v2545_v5 = vadd.f32 %v2333_v0, %v2061_v58  ;;  %v1378_v3 = vadd.f32 %v1214_v45, %v893_v28  ;;  %v1929_v9 = vsel %vm629_vm1, %v1926_v8, %v1928_v54  ;;  %v8717_v44 = vrot.slane %v5832_v15, 2  ;;  %v5982_v58 = vld [vmem:[#allocation2 + $0x90] sm:$0xff]  ;;  %v5987_v45 = vld [vmem:[#allocation2 + $0x98] sm:$0xff] }
  0xc5   :  { %v8718_v63 = vrot.slane %v5847_v38, 1  ;;  %v3611_v4 = vrot.slane %v3380_v53, 2  ;;  %v377_v51 = vmul.f32 %v5537_v48, %v4957_v19  ;;  %4661 = vmatprep.mubr.f32.mxu1 %v3910_v40  ;;  %v449_v39 = vmul.f32 %v5537_v48, %v4959_v20 }
  0xc6   :  { %v2413_v7 = vsel %vm1114_vm2, %v8717_v44, %v2412_v30  ;;  %v2776_v55 = vadd.f32 %v2712_v32, %v2545_v5  ;;  %v1609_v37 = vadd.f32 %v1545_v24, %v1378_v3  ;;  %v5947_v8 = vmul.f32 %v5542_v22, %v4959_v20 }
  0xc7   :  { %v3128_v27 = vsel %vm629_vm1, %v8718_v63, %v3127_v59  ;;  %v8719_v15 = vrot.slane %v5865_v56, 2  ;;  %v934_v13 = vmul.f32 %v5537_v48, %v4962_v21  ;;  %v5956_v49 = vmul.f32 %v5542_v22, %v4962_v21 }
  0xc8   :  { %v1514_v32 = vmul.f32 %v5757_v43, %v4967_v23  ;;  %v3260_v62 = vadd.f32 %v3048_v17, %v2776_v55  ;;  %v2093_v14 = vadd.f32 %v1929_v9, %v1609_v37  ;;  %v650_v61 = vrot.slane %v449_v39, 1 }
  0xc9   :  { %v3612_v38 = vsel %vm1114_vm2, %v8719_v15, %v3611_v4  ;;  %v651_v0 = vrot.slane %v5947_v8, 1  ;;  %v1135_v1 = vrot.slane %v934_v13, 2  ;;  %v1136_v56 = vrot.slane %v5956_v49, 2  ;;  %v1468_v49 = vld [vmem:[#allocation2 + $0x238] sm:$0x3] }
  0xca   :  { %v1650_v18 = vmul.f32 %v5757_v43, %v4980_v29  ;;  %v5966_v48 = vmul.f32 %v5762_v60, %v4980_v29  ;;  %v3744_v26 = vadd.f32 %v3532_v50, %v3260_v62  ;;  %v2577_v24 = vadd.f32 %v2413_v7, %v2093_v14 }
  0xcb   :  { %v652_v17 = vsel %vm629_vm1, %v650_v61, %v651_v0  ;;  %v2134_v57 = vmul.f32 %v5757_v43, %v4995_v35  ;;  %v1137_v12 = vsel %vm1114_vm2, %v1135_v1, %v1136_v56  ;;  %v5980_v50 = vmul.f32 %v5762_v60, %v4995_v35 }
  0xcc   :  { %v862_v10 = vadd.f32 %v652_v17, %v377_v51  ;;  %v1850_v52 = vrot.slane %v1650_v18, 1  ;;  %v1851_v46 = vrot.slane %v5966_v48, 1  ;;  %v3815_v41 = vadd.f32 %v5872_v25, %v3744_v26  ;;  %v151_v26 = vld [vmem:[%s8650_s0 + $0x90] sm:$0xff] }
  0xcd   :  { %v2808_v33 = vadd.f32 %v2744_v6, %v2577_v24  ;;  %v2334_v31 = vrot.slane %v2134_v57, 2  ;;  %v2713_v30 = vmul.f32 %v4997_v36, %v5982_v58  ;;  %v2849_v6 = vmul.f32 %v5013_v42, %v5982_v58  ;;  %v152_v24 = vld [vmem:[%s8650_s0 + $0x98] sm:$0xff]  ;;  %217 = vst.msk [vmem:[#allocation2 + $0xf1] sm:$0xff] %vm198_vm0, %v151_v26  ;;  %v2667_v48 = vld [vmem:[#allocation2 + $0x250] sm:$0x3] }
  0xce   :  { %v1347_v28 = vadd.f32 %v1137_v12, %v862_v10  ;;  %v1852_v54 = vsel %vm629_vm1, %v1850_v52, %v1851_v46  ;;  %v3879_v59 = vmax.f32 %v3815_v41, 0.0  ;;  %v2335_v40 = vrot.slane %v5980_v50, 2  ;;  %218 = vst.msk [vmem:[#allocation2 + $0xf9] sm:$0xff] %vm198_vm0, %v152_v24 }
  0xcf   :  { %v3292_v53 = vadd.f32 %v3128_v27, %v2808_v33  ;;  %v5996_v5 = vmul.f32 %v5013_v42, %v5987_v45  ;;  %v3049_v9 = vrot.slane %v2849_v6, 1  ;;  %v3333_v44 = vmul.f32 %v5031_v47, %v5982_v58 }
  0xd0   :  { %v1578_v3 = vadd.f32 %v1514_v32, %v1347_v28  ;;  %v6002_v7 = vmul.f32 %v5031_v47, %v5987_v45  ;;  %4614 = vmatmul.mubr.f32.gmra.mxu0 %v3879_v59  ;;  %v2336_v27 = vsel %vm1114_vm2, %v2334_v31, %v2335_v40  ;;  %v409_v51 = vmul.f32 %v5603_v16, %v4957_v19  ;;  %v6048_v31 = vld [vmem:[#allocation2 + $0x240] sm:$0xff] }
  0xd1   :  { %v3776_v63 = vadd.f32 %v3612_v38, %v3292_v53  ;;  %v3050_v4 = vrot.slane %v5996_v5, 1  ;;  %v3533_v37 = vrot.slane %v3333_v44, 2  ;;  %v497_v15 = vmul.f32 %v5603_v16, %v4959_v20 }
  0xd2   :  { %v2062_v55 = vadd.f32 %v1852_v54, %v1578_v3  ;;  %v3534_v39 = vrot.slane %v6002_v7, 2  ;;  %v6019_v32 = vmul.f32 %v5621_v34, %v4959_v20  ;;  %v982_v62 = vmul.f32 %v5603_v16, %v4962_v21 }
  0xd3   :  { %v3847_v13 = vadd.f32 %v5872_v25, %v3776_v63  ;;  %v3051_v38 = vsel %vm629_vm1, %v3049_v9, %v3050_v4  ;;  %v730_v1 = vrot.slane %v497_v15, 1  ;;  %v6028_v18 = vmul.f32 %v5621_v34, %v4962_v21 }
  0xd4   :  { %v2546_v14 = vadd.f32 %v2336_v27, %v2062_v55  ;;  %v3535_v61 = vsel %vm1114_vm2, %v3533_v37, %v3534_v39  ;;  %v731_v16 = vrot.slane %v6019_v32, 1  ;;  %v1215_v57 = vrot.slane %v982_v62, 2  ;;  %v6066_v55 = vld [vmem:[#allocation2 + $0x248] sm:$0xff]  ;;  %v283_v62 = vld [vmem:[#allocation2 + $0x70] sm:$0x3] }
  0xd5   :  { %v3911_v17 = vmax.f32 %v3847_v13, 0.0  ;;  %v1546_v10 = vmul.f32 %v5823_v2, %v4967_v23  ;;  %v1216_v52 = vrot.slane %v6028_v18, 2  ;;  %v1698_v41 = vmul.f32 %v5823_v2, %v4980_v29 }
  0xd6   :  { %v2777_v12 = vadd.f32 %v2713_v30, %v2546_v14  ;;  %v6046_v33 = vmul.f32 %v5841_v11, %v4980_v29  ;;  %v732_v28 = vsel %vm629_vm1, %v730_v1, %v731_v16  ;;  %v2182_v54 = vmul.f32 %v5823_v2, %v4995_v35  ;;  %v183_v14 = vld [vmem:[%s8650_s0 + $0x190] sm:$0xff]  ;;  %v184_v1 = vld [vmem:[%s8650_s0 + $0x198] sm:$0xff] }
  0xd7   :  { %4662 = vmatmul.mubr.f32.gmra.mxu1 %v3911_v17  ;;  %v6057_v30 = vmul.f32 %v5841_v11, %v4995_v35  ;;  %v2745_v6 = vmul.f32 %v4997_v36, %v6048_v31  ;;  %v894_v53 = vadd.f32 %v732_v28, %v409_v51  ;;  %v1217_v3 = vsel %vm1114_vm2, %v1215_v57, %v1216_v52 }
  0xd8   :  { %v3261_v59 = vadd.f32 %v3051_v38, %v2777_v12  ;;  %v1930_v9 = vrot.slane %v1698_v41, 1  ;;  %v1931_v44 = vrot.slane %v6046_v33, 1  ;;  %v2414_v63 = vrot.slane %v2182_v54, 2  ;;  %249 = vst.msk [vmem:[#allocation2 + $0x2a1] sm:$0xff] %vm198_vm0, %v183_v14  ;;  %250 = vst.msk [vmem:[#allocation2 + $0x2a9] sm:$0xff] %vm198_vm0, %v184_v1 }
  0xd9   :  { %v8667_v27 = vrot.slane %v6057_v30, 2  ;;  %v2897_v37 = vmul.f32 %v5013_v42, %v6048_v31  ;;  %v1379_v13 = vadd.f32 %v1217_v3, %v894_v53  ;;  %v6072_v51 = vmul.f32 %v5013_v42, %v6066_v55  ;;  %v1420_v54 = vld [vmem:[#allocation2 + $0x88] sm:$0x3] }
  0xda   :  { %v3745_v15 = vadd.f32 %v3535_v61, %v3261_v59  ;;  %v3381_v38 = vmul.f32 %v5031_v47, %v6048_v31  ;;  %v1932_v61 = vsel %vm629_vm1, %v1930_v9, %v1931_v44  ;;  %v6090_v17 = vmul.f32 %v5031_v47, %v6066_v55 }
  0xdb   :  { %v2416_v26 = vsel %vm1114_vm2, %v2414_v63, %v8667_v27  ;;  %v3129_v24 = vrot.slane %v2897_v37, 1  ;;  %v1610_v12 = vadd.f32 %v1546_v10, %v1379_v13  ;;  %v8665_v41 = vrot.slane %v6072_v51, 1  ;;  %v2619_v63 = vld [vmem:[#allocation2 + $0xa0] sm:$0x3] }
  0xdc   :  { %v3816_v57 = vadd.f32 %v5872_v25, %v3745_v15  ;;  %v3613_v28 = vrot.slane %v3381_v38, 2  ;;  %v8666_v59 = vrot.slane %v6090_v17, 2  ;;  %v378_v53 = vmul.f32 %v5542_v22, %v4957_v19 }
  0xdd   :  { %v451_v3 = vmul.f32 %v4959_v20, %v283_v62  ;;  %v936_v9 = vmul.f32 %v4962_v21, %v283_v62  ;;  %v2094_v14 = vadd.f32 %v1932_v61, %v1610_v12  ;;  %v3131_v10 = vsel %vm629_vm1, %v3129_v24, %v8665_v41  ;;  %v331_v12 = vld [vmem:[#allocation2 + $0x220] sm:$0x3] }
  0xde   :  { %v3880_v37 = vmax.f32 %v3816_v57, 0.0  ;;  %v1515_v15 = vmul.f32 %v5762_v60, %v4967_v23  ;;  %v3615_v13 = vsel %vm1114_vm2, %v3613_v28, %v8666_v59  ;;  %v1652_v1 = vmul.f32 %v4980_v29, %v1420_v54 }
  0xdf   :  { %v653_v38 = vrot.slane %v451_v3, 1  ;;  %v1138_v22 = vrot.slane %v936_v9, 2  ;;  %v2578_v62 = vadd.f32 %v2416_v26, %v2094_v14  ;;  %v2136_v57 = vmul.f32 %v4995_v35, %v1420_v54 }
  0xe0   :  { %4616 = vmatprep.mubr.f32.mxu0 %v3880_v37  ;;  %v2714_v61 = vmul.f32 %v4997_v36, %v5987_v45  ;;  %v2851_v24 = vmul.f32 %v5013_v42, %v2619_v63  ;;  %v1853_v3 = vrot.slane %v1652_v1, 1  ;;  %v3335_v9 = vmul.f32 %v5031_v47, %v2619_v63 }
  0xe1   :  { %v654_v41 = vsel %vm629_vm1, %v651_v0, %v653_v38  ;;  %v1139_v28 = vsel %vm1114_vm2, %v1136_v56, %v1138_v22  ;;  %v2809_v26 = vadd.f32 %v2745_v6, %v2578_v62  ;;  %v2337_v54 = vrot.slane %v2136_v57, 2 }
  0xe2   :  { %v863_v37 = vadd.f32 %v654_v41, %v378_v53  ;;  %v3052_v14 = vrot.slane %v2851_v24, 1  ;;  %v1854_v59 = vsel %vm629_vm1, %v1851_v46, %v1853_v3  ;;  %v3536_v27 = vrot.slane %v3335_v9, 2 }
  0xe3   :  { %v410_v8 = vmul.f32 %v5621_v34, %v4957_v19  ;;  %v499_v0 = vmul.f32 %v4959_v20, %v331_v12  ;;  %v3293_v38 = vadd.f32 %v3131_v10, %v2809_v26  ;;  %v2338_v6 = vsel %vm1114_vm2, %v2335_v40, %v2337_v54 }
  0xe4   :  { %v1348_v56 = vadd.f32 %v1139_v28, %v863_v37  ;;  %v3053_v41 = vsel %vm629_vm1, %v3050_v4, %v3052_v14  ;;  %v3537_v46 = vsel %vm1114_vm2, %v3534_v39, %v3536_v27  ;;  %v984_v34 = vmul.f32 %v4962_v21, %v331_v12 }
  0xe5   :  { %v733_v53 = vrot.slane %v499_v0, 1  ;;  %v1547_v63 = vmul.f32 %v5841_v11, %v4967_v23  ;;  %v3777_v10 = vadd.f32 %v3615_v13, %v3293_v38  ;;  %v1700_v50 = vmul.f32 %v4980_v29, %v1468_v49 }
  0xe6   :  { %v1579_v22 = vadd.f32 %v1515_v15, %v1348_v56  ;;  %v2184_v40 = vmul.f32 %v4995_v35, %v1468_v49  ;;  %v1218_v4 = vrot.slane %v984_v34, 2  ;;  %v2746_v7 = vmul.f32 %v4997_v36, %v6066_v55 }
  0xe7   :  { %v734_v5 = vsel %vm629_vm1, %v731_v16, %v733_v53  ;;  %v2899_v39 = vmul.f32 %v5013_v42, %v2667_v48  ;;  %v3848_v27 = vadd.f32 %v5872_v25, %v3777_v10  ;;  %v1933_v13 = vrot.slane %v1700_v50, 1 }
  0xe8   :  { %v2063_v1 = vadd.f32 %v1854_v59, %v1579_v22  ;;  %v895_v62 = vadd.f32 %v734_v5, %v410_v8  ;;  %v1219_v15 = vsel %vm1114_vm2, %v1216_v52, %v1218_v4  ;;  %v2417_v57 = vrot.slane %v2184_v40, 2 }
  0xe9   :  { %v3132_v24 = vrot.slane %v2899_v39, 1  ;;  %v3383_v32 = vmul.f32 %v5031_v47, %v2667_v48  ;;  %v3912_v16 = vmax.f32 %v3848_v27, 0.0  ;;  %v1934_v3 = vsel %vm629_vm1, %v1931_v44, %v1933_v13 }
  0xea   :  { %v2547_v12 = vadd.f32 %v2338_v6, %v2063_v1  ;;  %v1380_v28 = vadd.f32 %v1219_v15, %v895_v62  ;;  %v8720_v9 = vrot.slane %v6057_v30, 2  ;;  %v8721_v26 = vrot.slane %v6072_v51, 1  ;;  %v6202_v1 = vld [vmem:[#allocation2 + $0xa8] sm:$0xff]  ;;  %v6207_v15 = vld [vmem:[#allocation2 + $0xb0] sm:$0xff] }
  0xeb   :  { %v3616_v52 = vrot.slane %v3383_v32, 2  ;;  %v379_v37 = vmul.f32 %v5757_v43, %v4957_v19  ;;  %4664 = vmatprep.mubr.f32.mxu1 %v3912_v16  ;;  %v452_v33 = vmul.f32 %v5757_v43, %v4959_v20  ;;  %v6167_v44 = vmul.f32 %v5762_v60, %v4959_v20 }
  0xec   :  { %v2418_v59 = vsel %vm1114_vm2, %v8720_v9, %v2417_v57  ;;  %v3133_v18 = vsel %vm629_vm1, %v8721_v26, %v3132_v24  ;;  %v2778_v54 = vadd.f32 %v2714_v61, %v2547_v12  ;;  %v1611_v14 = vadd.f32 %v1547_v63, %v1380_v28 }
  0xed   :  { %v8722_v30 = vrot.slane %v6090_v17, 2  ;;  %v937_v8 = vmul.f32 %v5757_v43, %v4962_v21  ;;  %v6176_v0 = vmul.f32 %v5762_v60, %v4962_v21  ;;  %v1516_v61 = vmul.f32 %v5982_v58, %v4967_v23 }
  0xee   :  { %v3262_v49 = vadd.f32 %v3053_v41, %v2778_v54  ;;  %v2095_v38 = vadd.f32 %v1934_v3, %v1611_v14  ;;  %v655_v56 = vrot.slane %v452_v33, 1  ;;  %v656_v6 = vrot.slane %v6167_v44, 1 }
  0xef   :  { %v3617_v51 = vsel %vm1114_vm2, %v8722_v30, %v3616_v52  ;;  %v1140_v48 = vrot.slane %v937_v8, 2  ;;  %v1141_v17 = vrot.slane %v6176_v0, 2  ;;  %v1653_v53 = vmul.f32 %v5982_v58, %v4980_v29  ;;  %v1471_v0 = vld [vmem:[#allocation2 + $0x250] sm:$0x3] }
  0xf0   :  { %v6186_v43 = vmul.f32 %v5987_v45, %v4980_v29  ;;  %v3746_v34 = vadd.f32 %v3537_v46, %v3262_v49  ;;  %v2579_v63 = vadd.f32 %v2418_v59, %v2095_v38  ;;  %v657_v41 = vsel %vm629_vm1, %v655_v56, %v656_v6 }
  0xf1   :  { %v2137_v10 = vmul.f32 %v5982_v58, %v4995_v35  ;;  %v864_v22 = vadd.f32 %v657_v41, %v379_v37  ;;  %v1142_v50 = vsel %vm1114_vm2, %v1140_v48, %v1141_v17  ;;  %v1855_v40 = vrot.slane %v1653_v53, 1 }
  0xf2   :  { %v1856_v5 = vrot.slane %v6186_v43, 1  ;;  %v3817_v4 = vadd.f32 %v5872_v25, %v3746_v34  ;;  %v2810_v39 = vadd.f32 %v2746_v7, %v2579_v63  ;;  %v6200_v46 = vmul.f32 %v5987_v45, %v4995_v35  ;;  %v153_v34 = vld [vmem:[%s8650_s0 + $0xa0] sm:$0xff]  ;;  %v154_v63 = vld [vmem:[%s8650_s0 + $0xa8] sm:$0xff] }
  0xf3   :  { %v2339_v27 = vrot.slane %v2137_v10, 2  ;;  %v1349_v62 = vadd.f32 %v1142_v50, %v864_v22  ;;  %v2715_v57 = vmul.f32 %v4997_v36, %v6202_v1  ;;  %v2852_v7 = vmul.f32 %v5013_v42, %v6202_v1  ;;  %219 = vst.msk [vmem:[#allocation2 + $0x109] sm:$0xff] %vm198_vm0, %v153_v34  ;;  %220 = vst.msk [vmem:[#allocation2 + $0x111] sm:$0xff] %vm198_vm0, %v154_v63  ;;  %v2670_v43 = vld [vmem:[#allocation2 + $0x268] sm:$0x3] }
  0xf4   :  { %v1857_v13 = vsel %vm629_vm1, %v1855_v40, %v1856_v5  ;;  %v3881_v24 = vmax.f32 %v3817_v4, 0.0  ;;  %v3294_v32 = vadd.f32 %v3133_v18, %v2810_v39  ;;  %v2340_v16 = vrot.slane %v6200_v46, 2 }
  0xf5   :  { %v6216_v12 = vmul.f32 %v5013_v42, %v6207_v15  ;;  %v1580_v28 = vadd.f32 %v1516_v61, %v1349_v62  ;;  %v3054_v3 = vrot.slane %v2852_v7, 1  ;;  %v3336_v9 = vmul.f32 %v5031_v47, %v6202_v1 }
  0xf6   :  { %v6222_v59 = vmul.f32 %v5031_v47, %v6207_v15  ;;  %4617 = vmatmul.mubr.f32.gmra.mxu0 %v3881_v24  ;;  %v3778_v26 = vadd.f32 %v3617_v51, %v3294_v32  ;;  %v2341_v18 = vsel %vm1114_vm2, %v2339_v27, %v2340_v16  ;;  %v411_v37 = vmul.f32 %v5823_v2, %v4957_v19  ;;  %v6268_v27 = vld [vmem:[#allocation2 + $0x258] sm:$0xff] }
  0xf7   :  { %v3055_v52 = vrot.slane %v6216_v12, 1  ;;  %v2064_v54 = vadd.f32 %v1857_v13, %v1580_v28  ;;  %v3538_v14 = vrot.slane %v3336_v9, 2  ;;  %v500_v30 = vmul.f32 %v5823_v2, %v4959_v20 }
  0xf8   :  { %v3539_v33 = vrot.slane %v6222_v59, 2  ;;  %v3849_v8 = vadd.f32 %v5872_v25, %v3778_v26  ;;  %v6239_v61 = vmul.f32 %v5841_v11, %v4959_v20  ;;  %v985_v49 = vmul.f32 %v5823_v2, %v4962_v21 }
  0xf9   :  { %v3056_v51 = vsel %vm629_vm1, %v3054_v3, %v3055_v52  ;;  %v2548_v38 = vadd.f32 %v2341_v18, %v2064_v54  ;;  %v735_v48 = vrot.slane %v500_v30, 1  ;;  %v6248_v53 = vmul.f32 %v5841_v11, %v4962_v21  ;;  %v6286_v54 = vld [vmem:[#allocation2 + $0x260] sm:$0xff] }
  0xfa   :  { %v3540_v56 = vsel %vm1114_vm2, %v3538_v14, %v3539_v33  ;;  %v3913_v41 = vmax.f32 %v3849_v8, 0.0  ;;  %v736_v2 = vrot.slane %v6239_v61, 1  ;;  %v1220_v10 = vrot.slane %v985_v49, 2  ;;  %v286_v49 = vld [vmem:[#allocation2 + $0x88] sm:$0x3] }
  0xfb   :  { %v1548_v22 = vmul.f32 %v6048_v31, %v4967_v23  ;;  %v2779_v50 = vadd.f32 %v2715_v57, %v2548_v38  ;;  %v1221_v40 = vrot.slane %v6248_v53, 2  ;;  %v1701_v4 = vmul.f32 %v6048_v31, %v4980_v29  ;;  %v185_v38 = vld [vmem:[%s8650_s0 + $0x1a0] sm:$0xff] }
  0xfc   :  { %v6266_v39 = vmul.f32 %v6066_v55, %v4980_v29  ;;  %4665 = vmatmul.mubr.f32.gmra.mxu1 %v3913_v41  ;;  %v737_v62 = vsel %vm629_vm1, %v735_v48, %v736_v2  ;;  %v2185_v13 = vmul.f32 %v6048_v31, %v4995_v35  ;;  %v6277_v57 = vmul.f32 %v6066_v55, %v4995_v35  ;;  %v186_v48 = vld [vmem:[%s8650_s0 + $0x1a8] sm:$0xff] }
  0xfd   :  { %v2747_v7 = vmul.f32 %v4997_v36, %v6268_v27  ;;  %v3263_v24 = vadd.f32 %v3056_v51, %v2779_v50  ;;  %v896_v32 = vadd.f32 %v737_v62, %v411_v37  ;;  %v1222_v28 = vsel %vm1114_vm2, %v1220_v10, %v1221_v40  ;;  %251 = vst.msk [vmem:[#allocation2 + $0x2b9] sm:$0xff] %vm198_vm0, %v185_v38 }
  0xfe   :  { %v1935_v3 = vrot.slane %v1701_v4, 1  ;;  %v1936_v9 = vrot.slane %v6266_v39, 1  ;;  %v2419_v26 = vrot.slane %v2185_v13, 2  ;;  %v8670_v18 = vrot.slane %v6277_v57, 2  ;;  %252 = vst.msk [vmem:[#allocation2 + $0x2c1] sm:$0xff] %vm198_vm0, %v186_v48 }
  0xff   :  { %v2900_v14 = vmul.f32 %v5013_v42, %v6268_v27  ;;  %v3747_v30 = vadd.f32 %v3540_v56, %v3263_v24  ;;  %v1381_v8 = vadd.f32 %v1222_v28, %v896_v32  ;;  %v6292_v37 = vmul.f32 %v5013_v42, %v6286_v54  ;;  %v1423_v13 = vld [vmem:[#allocation2 + $0xa0] sm:$0x3] }
 0x100   :  { %v3384_v51 = vmul.f32 %v5031_v47, %v6268_v27  ;;  %v1937_v56 = vsel %vm629_vm1, %v1935_v3, %v1936_v9  ;;  %v2421_v34 = vsel %vm1114_vm2, %v2419_v26, %v8670_v18  ;;  %v6310_v41 = vmul.f32 %v5031_v47, %v6286_v54  ;;  %v2622_v26 = vld [vmem:[#allocation2 + $0xb8] sm:$0x3] }
 0x101   :  { %v3134_v63 = vrot.slane %v2900_v14, 1  ;;  %v3818_v10 = vadd.f32 %v5872_v25, %v3747_v30  ;;  %v1612_v50 = vadd.f32 %v1548_v22, %v1381_v8  ;;  %v8668_v4 = vrot.slane %v6292_v37, 1 }
 0x102   :  { %v3618_v62 = vrot.slane %v3384_v51, 2  ;;  %v8669_v24 = vrot.slane %v6310_v41, 2  ;;  %v380_v32 = vmul.f32 %v5762_v60, %v4957_v19  ;;  %v454_v28 = vmul.f32 %v4959_v20, %v286_v49 }
 0x103   :  { %v939_v3 = vmul.f32 %v4962_v21, %v286_v49  ;;  %v3882_v14 = vmax.f32 %v3818_v10, 0.0  ;;  %v2096_v38 = vadd.f32 %v1937_v56, %v1612_v50  ;;  %v3136_v22 = vsel %vm629_vm1, %v3134_v63, %v8668_v4  ;;  %v334_v50 = vld [vmem:[#allocation2 + $0x238] sm:$0x3] }
 0x104   :  { %v1517_v30 = vmul.f32 %v5987_v45, %v4967_v23  ;;  %v3620_v8 = vsel %vm1114_vm2, %v3618_v62, %v8669_v24  ;;  %v658_v51 = vrot.slane %v454_v28, 1  ;;  %v1655_v48 = vmul.f32 %v4980_v29, %v1423_v13 }
 0x105   :  { %v1143_v60 = vrot.slane %v939_v3, 2  ;;  %4619 = vmatprep.mubr.f32.mxu0 %v3882_v14  ;;  %v2580_v49 = vadd.f32 %v2421_v34, %v2096_v38  ;;  %v2139_v10 = vmul.f32 %v4995_v35, %v1423_v13  ;;  %v2716_v56 = vmul.f32 %v4997_v36, %v6207_v15 }
 0x106   :  { %v2854_v63 = vmul.f32 %v5013_v42, %v2622_v26  ;;  %v659_v4 = vsel %vm629_vm1, %v656_v6, %v658_v51  ;;  %v1858_v28 = vrot.slane %v1655_v48, 1  ;;  %v3338_v3 = vmul.f32 %v5031_v47, %v2622_v26 }
 0x107   :  { %v1144_v62 = vsel %vm1114_vm2, %v1141_v17, %v1143_v60  ;;  %v2811_v34 = vadd.f32 %v2747_v7, %v2580_v49  ;;  %v865_v14 = vadd.f32 %v659_v4, %v380_v32  ;;  %v2342_v13 = vrot.slane %v2139_v10, 2 }
 0x108   :  { %v3057_v38 = vrot.slane %v2854_v63, 1  ;;  %v1859_v24 = vsel %vm629_vm1, %v1856_v5, %v1858_v28  ;;  %v3541_v18 = vrot.slane %v3338_v3, 2  ;;  %v412_v44 = vmul.f32 %v5841_v11, %v4957_v19 }
 0x109   :  { %v502_v6 = vmul.f32 %v4959_v20, %v334_v50  ;;  %v3295_v51 = vadd.f32 %v3136_v22, %v2811_v34  ;;  %v1350_v17 = vadd.f32 %v1144_v62, %v865_v14  ;;  %v2343_v7 = vsel %vm1114_vm2, %v2340_v16, %v2342_v13 }
 0x10a   :  { %v3058_v4 = vsel %vm629_vm1, %v3055_v52, %v3057_v38  ;;  %v3542_v5 = vsel %vm1114_vm2, %v3539_v33, %v3541_v18  ;;  %v987_v11 = vmul.f32 %v4962_v21, %v334_v50  ;;  %v1549_v26 = vmul.f32 %v6066_v55, %v4967_v23 }
 0x10b   :  { %v738_v32 = vrot.slane %v502_v6, 1  ;;  %v3779_v22 = vadd.f32 %v3620_v8, %v3295_v51  ;;  %v1581_v60 = vadd.f32 %v1517_v30, %v1350_v17  ;;  %v1703_v46 = vmul.f32 %v4980_v29, %v1471_v0 }
 0x10c   :  { %v2187_v16 = vmul.f32 %v4995_v35, %v1471_v0  ;;  %v1223_v52 = vrot.slane %v987_v11, 2  ;;  %v2748_v59 = vmul.f32 %v4997_v36, %v6286_v54  ;;  %v2902_v33 = vmul.f32 %v5013_v42, %v2670_v43 }
 0x10d   :  { %v739_v12 = vsel %vm629_vm1, %v736_v2, %v738_v32  ;;  %v3850_v18 = vadd.f32 %v5872_v25, %v3779_v22  ;;  %v2065_v48 = vadd.f32 %v1859_v24, %v1581_v60  ;;  %v1938_v8 = vrot.slane %v1703_v46, 1 }
 0x10e   :  { %v897_v49 = vadd.f32 %v739_v12, %v412_v44  ;;  %v1224_v30 = vsel %vm1114_vm2, %v1221_v40, %v1223_v52  ;;  %v2422_v10 = vrot.slane %v2187_v16, 2  ;;  %v3137_v63 = vrot.slane %v2902_v33, 1 }
 0x10f   :  { %v3386_v61 = vmul.f32 %v5031_v47, %v2670_v43  ;;  %v3914_v2 = vmax.f32 %v3850_v18, 0.0  ;;  %v2549_v50 = vadd.f32 %v2343_v7, %v2065_v48  ;;  %v1939_v28 = vsel %vm629_vm1, %v1936_v9, %v1938_v8  ;;  %v6422_v48 = vld [vmem:[#allocation2 + $0xc0] sm:$0xff] }
 0x110   :  { %v1382_v62 = vadd.f32 %v1224_v30, %v897_v49  ;;  %v8723_v3 = vrot.slane %v6277_v57, 2  ;;  %v8724_v34 = vrot.slane %v6292_v37, 1  ;;  %v381_v14 = vmul.f32 %v5982_v58, %v4957_v19  ;;  %v6427_v30 = vld [vmem:[#allocation2 + $0xc8] sm:$0xff] }
 0x111   :  { %v3621_v40 = vrot.slane %v3386_v61, 2  ;;  %4667 = vmatprep.mubr.f32.mxu1 %v3914_v2  ;;  %v2780_v13 = vadd.f32 %v2716_v56, %v2549_v50  ;;  %v455_v39 = vmul.f32 %v5982_v58, %v4959_v20  ;;  %v6387_v9 = vmul.f32 %v5987_v45, %v4959_v20 }
 0x112   :  { %v2423_v24 = vsel %vm1114_vm2, %v8723_v3, %v2422_v10  ;;  %v3138_v53 = vsel %vm629_vm1, %v8724_v34, %v3137_v63  ;;  %v1613_v38 = vadd.f32 %v1549_v26, %v1382_v62  ;;  %v8725_v57 = vrot.slane %v6310_v41, 2 }
 0x113   :  { %v940_v44 = vmul.f32 %v5982_v58, %v4962_v21  ;;  %v6396_v6 = vmul.f32 %v5987_v45, %v4962_v21  ;;  %v1518_v56 = vmul.f32 %v6202_v1, %v4967_v23  ;;  %v3264_v0 = vadd.f32 %v3058_v4, %v2780_v13 }
 0x114   :  { %v3622_v37 = vsel %vm1114_vm2, %v8725_v57, %v3621_v40  ;;  %v2097_v51 = vadd.f32 %v1939_v28, %v1613_v38  ;;  %v660_v17 = vrot.slane %v455_v39, 1  ;;  %v661_v7 = vrot.slane %v6387_v9, 1 }
 0x115   :  { %v1145_v43 = vrot.slane %v940_v44, 2  ;;  %v1146_v41 = vrot.slane %v6396_v6, 2  ;;  %v1656_v32 = vmul.f32 %v6202_v1, %v4980_v29  ;;  %v6406_v58 = vmul.f32 %v6207_v15, %v4980_v29  ;;  %v1474_v6 = vld [vmem:[#allocation2 + $0x268] sm:$0x3] }
 0x116   :  { %v3748_v11 = vadd.f32 %v3542_v5, %v3264_v0  ;;  %v2581_v26 = vadd.f32 %v2423_v24, %v2097_v51  ;;  %v662_v4 = vsel %vm629_vm1, %v660_v17, %v661_v7  ;;  %v2140_v22 = vmul.f32 %v6202_v1, %v4995_v35 }
 0x117   :  { %v866_v60 = vadd.f32 %v662_v4, %v381_v14  ;;  %v1147_v46 = vsel %vm1114_vm2, %v1145_v43, %v1146_v41  ;;  %v1860_v16 = vrot.slane %v1656_v32, 1  ;;  %v1861_v12 = vrot.slane %v6406_v58, 1  ;;  %v2673_v58 = vld [vmem:[#allocation2 + $0x280] sm:$0x3] }
 0x118   :  { %v3819_v52 = vadd.f32 %v5872_v25, %v3748_v11  ;;  %v2812_v33 = vadd.f32 %v2748_v59, %v2581_v26  ;;  %v6420_v5 = vmul.f32 %v6207_v15, %v4995_v35  ;;  %v2344_v18 = vrot.slane %v2140_v22, 2  ;;  %v155_v11 = vld [vmem:[%s8650_s0 + $0xb0] sm:$0xff]  ;;  %v156_v26 = vld [vmem:[%s8650_s0 + $0xb8] sm:$0xff] }
 0x119   :  { %v1351_v49 = vadd.f32 %v1147_v46, %v866_v60  ;;  %v1862_v8 = vsel %vm629_vm1, %v1860_v16, %v1861_v12  ;;  %v2717_v10 = vmul.f32 %v4997_v36, %v6422_v48  ;;  %v2855_v59 = vmul.f32 %v5013_v42, %v6422_v48  ;;  %221 = vst.msk [vmem:[#allocation2 + $0x121] sm:$0xff] %vm198_vm0, %v155_v11 }
 0x11a   :  { %v3883_v63 = vmax.f32 %v3819_v52, 0.0  ;;  %v3296_v61 = vadd.f32 %v3138_v53, %v2812_v33  ;;  %v2345_v2 = vrot.slane %v6420_v5, 2  ;;  %v6436_v50 = vmul.f32 %v5013_v42, %v6427_v30  ;;  %222 = vst.msk [vmem:[#allocation2 + $0x129] sm:$0xff] %vm198_vm0, %v156_v26 }
 0x11b   :  { %v1582_v62 = vadd.f32 %v1518_v56, %v1351_v49  ;;  %v3059_v28 = vrot.slane %v2855_v59, 1  ;;  %v3339_v3 = vmul.f32 %v5031_v47, %v6422_v48  ;;  %v6442_v24 = vmul.f32 %v5031_v47, %v6427_v30 }
 0x11c   :  { %4620 = vmatmul.mubr.f32.gmra.mxu0 %v3883_v63  ;;  %v3780_v34 = vadd.f32 %v3622_v37, %v3296_v61  ;;  %v2346_v53 = vsel %vm1114_vm2, %v2344_v18, %v2345_v2  ;;  %v3060_v40 = vrot.slane %v6436_v50, 1  ;;  %v413_v14 = vmul.f32 %v6048_v31, %v4957_v19  ;;  %v6488_v18 = vld [vmem:[#allocation2 + $0x270] sm:$0xff] }
 0x11d   :  { %v2066_v13 = vadd.f32 %v1862_v8, %v1582_v62  ;;  %v3543_v38 = vrot.slane %v3339_v3, 2  ;;  %v3544_v39 = vrot.slane %v6442_v24, 2  ;;  %v503_v57 = vmul.f32 %v6048_v31, %v4959_v20 }
 0x11e   :  { %v3851_v44 = vadd.f32 %v5872_v25, %v3780_v34  ;;  %v3061_v37 = vsel %vm629_vm1, %v3059_v28, %v3060_v40  ;;  %v6459_v56 = vmul.f32 %v6066_v55, %v4959_v20  ;;  %v988_v0 = vmul.f32 %v6048_v31, %v4962_v21 }
 0x11f   :  { %v2550_v51 = vadd.f32 %v2346_v53, %v2066_v13  ;;  %v3545_v17 = vsel %vm1114_vm2, %v3543_v38, %v3544_v39  ;;  %v740_v43 = vrot.slane %v503_v57, 1  ;;  %v6468_v32 = vmul.f32 %v6066_v55, %v4962_v21  ;;  %v6506_v13 = vld [vmem:[#allocation2 + $0x278] sm:$0xff] }
 0x120   :  { %v3915_v4 = vmax.f32 %v3851_v44, 0.0  ;;  %v741_v31 = vrot.slane %v6459_v56, 1  ;;  %v1225_v22 = vrot.slane %v988_v0, 2  ;;  %v1550_v60 = vmul.f32 %v6268_v27, %v4967_v23  ;;  %v289_v0 = vld [vmem:[#allocation2 + $0xa0] sm:$0x3] }
 0x121   :  { %v2781_v46 = vadd.f32 %v2717_v10, %v2550_v51  ;;  %v1226_v16 = vrot.slane %v6468_v32, 2  ;;  %v1704_v52 = vmul.f32 %v6268_v27, %v4980_v29  ;;  %v6486_v33 = vmul.f32 %v6286_v54, %v4980_v29  ;;  %v187_v51 = vld [vmem:[%s8650_s0 + $0x1b0] sm:$0xff] }
 0x122   :  { %4668 = vmatmul.mubr.f32.gmra.mxu1 %v3915_v4  ;;  %v742_v49 = vsel %vm629_vm1, %v740_v43, %v741_v31  ;;  %v2188_v8 = vmul.f32 %v6268_v27, %v4995_v35  ;;  %v6497_v10 = vmul.f32 %v6286_v54, %v4995_v35  ;;  %v2749_v59 = vmul.f32 %v4997_v36, %v6488_v18  ;;  %v188_v43 = vld [vmem:[%s8650_s0 + $0x1b8] sm:$0xff] }
 0x123   :  { %v3265_v63 = vadd.f32 %v3061_v37, %v2781_v46  ;;  %v898_v61 = vadd.f32 %v742_v49, %v413_v14  ;;  %v1227_v62 = vsel %vm1114_vm2, %v1225_v22, %v1226_v16  ;;  %v1940_v28 = vrot.slane %v1704_v52, 1  ;;  %253 = vst.msk [vmem:[#allocation2 + $0x2d1] sm:$0xff] %vm198_vm0, %v187_v51  ;;  %254 = vst.msk [vmem:[#allocation2 + $0x2d9] sm:$0xff] %vm198_vm0, %v188_v43 }
 0x124   :  { %v1941_v3 = vrot.slane %v6486_v33, 1  ;;  %v2424_v34 = vrot.slane %v2188_v8, 2  ;;  %v2425_v53 = vrot.slane %v6497_v10, 2  ;;  %v2903_v38 = vmul.f32 %v5013_v42, %v6488_v18  ;;  %v1426_v8 = vld [vmem:[#allocation2 + $0xb8] sm:$0x3] }
 0x125   :  { %v3749_v57 = vadd.f32 %v3545_v17, %v3265_v63  ;;  %v1383_v44 = vadd.f32 %v1227_v62, %v898_v61  ;;  %v6512_v14 = vmul.f32 %v5013_v42, %v6506_v13  ;;  %v3387_v37 = vmul.f32 %v5031_v47, %v6488_v18 }
 0x126   :  { %v1942_v17 = vsel %vm629_vm1, %v1940_v28, %v1941_v3  ;;  %v2426_v11 = vsel %vm1114_vm2, %v2424_v34, %v2425_v53  ;;  %v3139_v26 = vrot.slane %v2903_v38, 1  ;;  %v6530_v4 = vmul.f32 %v5031_v47, %v6506_v13  ;;  %v2625_v34 = vld [vmem:[#allocation2 + $0xd0] sm:$0x3] }
 0x127   :  { %v3820_v22 = vadd.f32 %v5872_v25, %v3749_v57  ;;  %v1614_v46 = vadd.f32 %v1550_v60, %v1383_v44  ;;  %v8672_v52 = vrot.slane %v6512_v14, 1  ;;  %v3623_v49 = vrot.slane %v3387_v37, 2 }
 0x128   :  { %v8671_v63 = vrot.slane %v6530_v4, 2  ;;  %v382_v61 = vmul.f32 %v5987_v45, %v4957_v19  ;;  %v457_v62 = vmul.f32 %v4959_v20, %v289_v0  ;;  %v942_v28 = vmul.f32 %v4962_v21, %v289_v0 }
 0x129   :  { %v3884_v38 = vmax.f32 %v3820_v22, 0.0  ;;  %v2098_v51 = vadd.f32 %v1942_v17, %v1614_v46  ;;  %v3141_v25 = vsel %vm629_vm1, %v3139_v26, %v8672_v52  ;;  %v1519_v60 = vmul.f32 %v6207_v15, %v4967_v23  ;;  %v337_v22 = vld [vmem:[#allocation2 + $0x250] sm:$0x3] }
 0x12a   :  { %v3625_v57 = vsel %vm1114_vm2, %v3623_v49, %v8671_v63  ;;  %v663_v44 = vrot.slane %v457_v62, 1  ;;  %v1148_v45 = vrot.slane %v942_v28, 2  ;;  %v1658_v37 = vmul.f32 %v4980_v29, %v1426_v8 }
 0x12b   :  { %4622 = vmatprep.mubr.f32.mxu0 %v3884_v38  ;;  %v2582_v0 = vadd.f32 %v2426_v11, %v2098_v51  ;;  %v2142_v43 = vmul.f32 %v4995_v35, %v1426_v8  ;;  %v2718_v17 = vmul.f32 %v4997_v36, %v6427_v30  ;;  %v2857_v26 = vmul.f32 %v5013_v42, %v2625_v34 }
 0x12c   :  { %v664_v46 = vsel %vm629_vm1, %v661_v7, %v663_v44  ;;  %v1149_v49 = vsel %vm1114_vm2, %v1146_v41, %v1148_v45  ;;  %v1863_v62 = vrot.slane %v1658_v37, 1  ;;  %v3341_v28 = vmul.f32 %v5031_v47, %v2625_v34 }
 0x12d   :  { %v2813_v11 = vadd.f32 %v2749_v59, %v2582_v0  ;;  %v867_v38 = vadd.f32 %v664_v46, %v382_v61  ;;  %v2347_v8 = vrot.slane %v2142_v43, 2  ;;  %v3062_v51 = vrot.slane %v2857_v26, 1 }
 0x12e   :  { %v1864_v63 = vsel %vm629_vm1, %v1861_v12, %v1863_v62  ;;  %v3546_v52 = vrot.slane %v3341_v28, 2  ;;  %v414_v9 = vmul.f32 %v6066_v55, %v4957_v19  ;;  %v505_v7 = vmul.f32 %v4959_v20, %v337_v22 }
 0x12f   :  { %v3297_v44 = vadd.f32 %v3141_v25, %v2813_v11  ;;  %v1352_v41 = vadd.f32 %v1149_v49, %v867_v38  ;;  %v2348_v59 = vsel %vm1114_vm2, %v2345_v2, %v2347_v8  ;;  %v3063_v61 = vsel %vm629_vm1, %v3060_v40, %v3062_v51 }
 0x130   :  { %v3547_v12 = vsel %vm1114_vm2, %v3544_v39, %v3546_v52  ;;  %v743_v34 = vrot.slane %v505_v7, 1  ;;  %v990_v55 = vmul.f32 %v4962_v21, %v337_v22  ;;  %v1551_v25 = vmul.f32 %v6286_v54, %v4967_v23  ;;  %v6590_v52 = vld [vmem:[%s8652_s2] ss:$0 sm:$0xff] }
 0x131   :  { %v3781_v45 = vadd.f32 %v3625_v57, %v3297_v44  ;;  %v1583_v37 = vadd.f32 %v1519_v60, %v1352_v41  ;;  %v1706_v5 = vmul.f32 %v4980_v29, %v1474_v6  ;;  %v2190_v2 = vmul.f32 %v4995_v35, %v1474_v6 }
 0x132   :  { %v744_v50 = vsel %vm629_vm1, %v741_v31, %v743_v34  ;;  %v1228_v40 = vrot.slane %v990_v55, 2  ;;  %v2750_v24 = vmul.f32 %v4997_v36, %v6506_v13  ;;  %v2905_v39 = vmul.f32 %v5013_v42, %v2673_v58 }
 0x133   :  { %v3852_v60 = vadd.f32 %v6590_v52, %v3781_v45  ;;  %v2067_v57 = vadd.f32 %v1864_v63, %v1583_v37  ;;  %v899_v0 = vadd.f32 %v744_v50, %v414_v9  ;;  %v1943_v43 = vrot.slane %v1706_v5, 1 }
 0x134   :  { %v1229_v56 = vsel %vm1114_vm2, %v1226_v16, %v1228_v40  ;;  %v2427_v31 = vrot.slane %v2190_v2, 2  ;;  %v3142_v26 = vrot.slane %v2905_v39, 1  ;;  %v3389_v22 = vmul.f32 %v5031_v47, %v2673_v58 }
 0x135   :  { %v3916_v46 = vmax.f32 %v3852_v60, 0.0  ;;  %v2551_v49 = vadd.f32 %v2348_v59, %v2067_v57  ;;  %v1384_v62 = vadd.f32 %v1229_v56, %v899_v0  ;;  %v1944_v28 = vsel %vm629_vm1, %v1941_v3, %v1943_v43  ;;  %v6647_v60 = vld [vmem:[#allocation2 + $0xd8] sm:$0xff]  ;;  %v6652_v43 = vld [vmem:[#allocation2 + $0xe0] sm:$0xff] }
 0x136   :  { %v2428_v63 = vsel %vm1114_vm2, %v2425_v53, %v2427_v31  ;;  %v8726_v11 = vrot.slane %v6512_v14, 1  ;;  %v3626_v16 = vrot.slane %v3389_v22, 2  ;;  %v383_v38 = vmul.f32 %v6202_v1, %v4957_v19 }
 0x137   :  { %4670 = vmatprep.mubr.f32.mxu1 %v3916_v46  ;;  %v2782_v8 = vadd.f32 %v2718_v17, %v2551_v49  ;;  %v1615_v51 = vadd.f32 %v1551_v25, %v1384_v62  ;;  %v458_v33 = vmul.f32 %v6202_v1, %v4959_v20  ;;  %v6612_v3 = vmul.f32 %v6207_v15, %v4959_v20 }
 0x138   :  { %v3143_v32 = vsel %vm629_vm1, %v8726_v11, %v3142_v26  ;;  %v8727_v10 = vrot.slane %v6530_v4, 2  ;;  %v943_v14 = vmul.f32 %v6202_v1, %v4962_v21  ;;  %v6621_v9 = vmul.f32 %v6207_v15, %v4962_v21 }
 0x139   :  { %v1520_v17 = vmul.f32 %v6422_v48, %v4967_v23  ;;  %v3266_v7 = vadd.f32 %v3063_v61, %v2782_v8  ;;  %v2099_v6 = vadd.f32 %v1944_v28, %v1615_v51  ;;  %v665_v44 = vrot.slane %v458_v33, 1 }
 0x13a   :  { %v3627_v53 = vsel %vm1114_vm2, %v8727_v10, %v3626_v16  ;;  %v666_v41 = vrot.slane %v6612_v3, 1  ;;  %v1150_v59 = vrot.slane %v943_v14, 2  ;;  %v1151_v4 = vrot.slane %v6621_v9, 2  ;;  %v1477_v9 = vld [vmem:[#allocation2 + $0x280] sm:$0x3] }
 0x13b   :  { %v1659_v58 = vmul.f32 %v6422_v48, %v4980_v29  ;;  %v6631_v1 = vmul.f32 %v6427_v30, %v4980_v29  ;;  %v3750_v34 = vadd.f32 %v3547_v12, %v3266_v7  ;;  %v2583_v55 = vadd.f32 %v2428_v63, %v2099_v6 }
 0x13c   :  { %v667_v61 = vsel %vm629_vm1, %v665_v44, %v666_v41  ;;  %v2143_v25 = vmul.f32 %v6422_v48, %v4995_v35  ;;  %v1152_v37 = vsel %vm1114_vm2, %v1150_v59, %v1151_v4  ;;  %v6645_v12 = vmul.f32 %v6427_v30, %v4995_v35 }
 0x13d   :  { %v868_v45 = vadd.f32 %v667_v61, %v383_v38  ;;  %v1865_v5 = vrot.slane %v1659_v58, 1  ;;  %v1866_v2 = vrot.slane %v6631_v1, 1  ;;  %v3821_v50 = vadd.f32 %v6590_v52, %v3750_v34  ;;  %v157_v34 = vld [vmem:[%s8650_s0 + $0xc0] sm:$0xff]  ;;  %v2676_v1 = vld [vmem:[#allocation2 + $0x298] sm:$0x3] }
 0x13e   :  { %v2814_v40 = vadd.f32 %v2750_v24, %v2583_v55  ;;  %v2349_v39 = vrot.slane %v2143_v25, 2  ;;  %v2719_v56 = vmul.f32 %v4997_v36, %v6647_v60  ;;  %v2858_v24 = vmul.f32 %v5013_v42, %v6647_v60  ;;  %v158_v55 = vld [vmem:[%s8650_s0 + $0xc8] sm:$0xff]  ;;  %223 = vst.msk [vmem:[#allocation2 + $0x139] sm:$0xff] %vm198_vm0, %v157_v34 }
 0x13f   :  { %v1353_v57 = vadd.f32 %v1152_v37, %v868_v45  ;;  %v1867_v0 = vsel %vm629_vm1, %v1865_v5, %v1866_v2  ;;  %v3885_v31 = vmax.f32 %v3821_v50, 0.0  ;;  %v2350_v22 = vrot.slane %v6645_v12, 2  ;;  %224 = vst.msk [vmem:[#allocation2 + $0x141] sm:$0xff] %vm198_vm0, %v158_v55 }
 0x140   :  { %v3298_v26 = vadd.f32 %v3143_v32, %v2814_v40  ;;  %v6661_v46 = vmul.f32 %v5013_v42, %v6652_v43  ;;  %v3064_v62 = vrot.slane %v2858_v24, 1  ;;  %v3342_v28 = vmul.f32 %v5031_v47, %v6647_v60 }
 0x141   :  { %v1584_v49 = vadd.f32 %v1520_v17, %v1353_v57  ;;  %v6667_v63 = vmul.f32 %v5031_v47, %v6652_v43  ;;  %4623 = vmatmul.mubr.f32.gmra.mxu0 %v3885_v31  ;;  %v2351_v32 = vsel %vm1114_vm2, %v2349_v39, %v2350_v22  ;;  %v415_v38 = vmul.f32 %v6268_v27, %v4957_v19  ;;  %v6713_v39 = vld [vmem:[#allocation2 + $0x288] sm:$0xff] }
 0x142   :  { %v3782_v11 = vadd.f32 %v3627_v53, %v3298_v26  ;;  %v3065_v16 = vrot.slane %v6661_v46, 1  ;;  %v3548_v51 = vrot.slane %v3342_v28, 2  ;;  %v506_v10 = vmul.f32 %v6268_v27, %v4959_v20 }
 0x143   :  { %v2068_v8 = vadd.f32 %v1867_v0, %v1584_v49  ;;  %v3549_v33 = vrot.slane %v6667_v63, 2  ;;  %v6684_v17 = vmul.f32 %v6286_v54, %v4959_v20  ;;  %v991_v7 = vmul.f32 %v6268_v27, %v4962_v21 }
 0x144   :  { %v3853_v14 = vadd.f32 %v6590_v52, %v3782_v11  ;;  %v3066_v53 = vsel %vm629_vm1, %v3064_v62, %v3065_v16  ;;  %v745_v59 = vrot.slane %v506_v10, 1  ;;  %v6693_v58 = vmul.f32 %v6286_v54, %v4962_v21 }
 0x145   :  { %v2552_v6 = vadd.f32 %v2351_v32, %v2068_v8  ;;  %v3550_v44 = vsel %vm1114_vm2, %v3548_v51, %v3549_v33  ;;  %v746_v27 = vrot.slane %v6684_v17, 1  ;;  %v1230_v25 = vrot.slane %v991_v7, 2  ;;  %v6731_v8 = vld [vmem:[#allocation2 + $0x290] sm:$0xff]  ;;  %v292_v7 = vld [vmem:[#allocation2 + $0xb8] sm:$0x3] }
 0x146   :  { %v3917_v61 = vmax.f32 %v3853_v14, 0.0  ;;  %v1552_v45 = vmul.f32 %v6488_v18, %v4967_v23  ;;  %v1231_v5 = vrot.slane %v6693_v58, 2  ;;  %v1707_v50 = vmul.f32 %v6488_v18, %v4980_v29 }
 0x147   :  { %v2783_v37 = vadd.f32 %v2719_v56, %v2552_v6  ;;  %v6711_v40 = vmul.f32 %v6506_v13, %v4980_v29  ;;  %v747_v57 = vsel %vm629_vm1, %v745_v59, %v746_v27  ;;  %v2191_v0 = vmul.f32 %v6488_v18, %v4995_v35  ;;  %v189_v6 = vld [vmem:[%s8650_s0 + $0x1c0] sm:$0xff]  ;;  %v190_v59 = vld [vmem:[%s8650_s0 + $0x1c8] sm:$0xff] }
 0x148   :  { %4671 = vmatmul.mubr.f32.gmra.mxu1 %v3917_v61  ;;  %v6722_v56 = vmul.f32 %v6506_v13, %v4995_v35  ;;  %v2751_v24 = vmul.f32 %v4997_v36, %v6713_v39  ;;  %v900_v26 = vadd.f32 %v747_v57, %v415_v38  ;;  %v1232_v49 = vsel %vm1114_vm2, %v1230_v25, %v1231_v5 }
 0x149   :  { %v3267_v31 = vadd.f32 %v3066_v53, %v2783_v37  ;;  %v1945_v62 = vrot.slane %v1707_v50, 1  ;;  %v1946_v28 = vrot.slane %v6711_v40, 1  ;;  %v2429_v11 = vrot.slane %v2191_v0, 2  ;;  %255 = vst.msk [vmem:[#allocation2 + $0x2e9] sm:$0xff] %vm198_vm0, %v189_v6  ;;  %256 = vst.msk [vmem:[#allocation2 + $0x2f1] sm:$0xff] %vm198_vm0, %v190_v59 }
 0x14a   :  { %v8675_v32 = vrot.slane %v6722_v56, 2  ;;  %v2906_v51 = vmul.f32 %v5013_v42, %v6713_v39  ;;  %v1385_v14 = vadd.f32 %v1232_v49, %v900_v26  ;;  %v6737_v38 = vmul.f32 %v5013_v42, %v6731_v8  ;;  %v1429_v0 = vld [vmem:[#allocation2 + $0xd0] sm:$0x3] }
 0x14b   :  { %v3751_v10 = vadd.f32 %v3550_v44, %v3267_v31  ;;  %v3390_v53 = vmul.f32 %v5031_v47, %v6713_v39  ;;  %v1947_v44 = vsel %vm629_vm1, %v1945_v62, %v1946_v28  ;;  %v6755_v61 = vmul.f32 %v5031_v47, %v6731_v8 }
 0x14c   :  { %v2431_v34 = vsel %vm1114_vm2, %v2429_v11, %v8675_v32  ;;  %v3144_v55 = vrot.slane %v2906_v51, 1  ;;  %v1616_v37 = vadd.f32 %v1552_v45, %v1385_v14  ;;  %v8673_v50 = vrot.slane %v6737_v38, 1  ;;  %v2628_v11 = vld [vmem:[#allocation2 + $0xe8] sm:$0x3] }
 0x14d   :  { %v3822_v25 = vadd.f32 %v6590_v52, %v3751_v10  ;;  %v3628_v57 = vrot.slane %v3390_v53, 2  ;;  %v8674_v31 = vrot.slane %v6755_v61, 2  ;;  %v384_v26 = vmul.f32 %v6207_v15, %v4957_v19 }
 0x14e   :  { %v460_v49 = vmul.f32 %v4959_v20, %v292_v7  ;;  %v945_v62 = vmul.f32 %v4962_v21, %v292_v7  ;;  %v2100_v6 = vadd.f32 %v1947_v44, %v1616_v37  ;;  %v3146_v45 = vsel %vm629_vm1, %v3144_v55, %v8673_v50  ;;  %v340_v37 = vld [vmem:[#allocation2 + $0x268] sm:$0x3] }
 0x14f   :  { %v3886_v51 = vmax.f32 %v3822_v25, 0.0  ;;  %v1521_v10 = vmul.f32 %v6427_v30, %v4967_v23  ;;  %v3630_v14 = vsel %vm1114_vm2, %v3628_v57, %v8674_v31  ;;  %v1661_v59 = vmul.f32 %v4980_v29, %v1429_v0 }
 0x150   :  { %v668_v53 = vrot.slane %v460_v49, 1  ;;  %v1153_v15 = vrot.slane %v945_v62, 2  ;;  %v2584_v7 = vadd.f32 %v2431_v34, %v2100_v6  ;;  %v2145_v25 = vmul.f32 %v4995_v35, %v1429_v0 }
 0x151   :  { %4625 = vmatprep.mubr.f32.mxu0 %v3886_v51  ;;  %v2720_v44 = vmul.f32 %v4997_v36, %v6652_v43  ;;  %v2860_v55 = vmul.f32 %v5013_v42, %v2628_v11  ;;  %v1868_v49 = vrot.slane %v1661_v59, 1  ;;  %v3344_v62 = vmul.f32 %v5031_v47, %v2628_v11 }
 0x152   :  { %v669_v50 = vsel %vm629_vm1, %v666_v41, %v668_v53  ;;  %v1154_v57 = vsel %vm1114_vm2, %v1151_v4, %v1153_v15  ;;  %v2815_v34 = vadd.f32 %v2751_v24, %v2584_v7  ;;  %v2352_v0 = vrot.slane %v2145_v25, 2 }
 0x153   :  { %v869_v51 = vadd.f32 %v669_v50, %v384_v26  ;;  %v3067_v6 = vrot.slane %v2860_v55, 1  ;;  %v1869_v31 = vsel %vm629_vm1, %v1866_v2, %v1868_v49  ;;  %v3551_v32 = vrot.slane %v3344_v62, 2 }
 0x154   :  { %v416_v3 = vmul.f32 %v6286_v54, %v4957_v19  ;;  %v508_v41 = vmul.f32 %v4959_v20, %v340_v37  ;;  %v3299_v53 = vadd.f32 %v3146_v45, %v2815_v34  ;;  %v2353_v24 = vsel %vm1114_vm2, %v2350_v22, %v2352_v0 }
 0x155   :  { %v1354_v4 = vadd.f32 %v1154_v57, %v869_v51  ;;  %v3068_v50 = vsel %vm629_vm1, %v3065_v16, %v3067_v6  ;;  %v3552_v2 = vsel %vm1114_vm2, %v3549_v33, %v3551_v32  ;;  %v993_v54 = vmul.f32 %v4962_v21, %v340_v37 }
 0x156   :  { %v748_v26 = vrot.slane %v508_v41, 1  ;;  %v1553_v11 = vmul.f32 %v6506_v13, %v4967_v23  ;;  %v3783_v45 = vadd.f32 %v3630_v14, %v3299_v53  ;;  %v1709_v12 = vmul.f32 %v4980_v29, %v1477_v9 }
 0x157   :  { %v1585_v15 = vadd.f32 %v1521_v10, %v1354_v4  ;;  %v2193_v22 = vmul.f32 %v4995_v35, %v1477_v9  ;;  %v1233_v16 = vrot.slane %v993_v54, 2  ;;  %v2752_v63 = vmul.f32 %v4997_v36, %v6731_v8 }
 0x158   :  { %v749_v46 = vsel %vm629_vm1, %v746_v27, %v748_v26  ;;  %v2908_v33 = vmul.f32 %v5013_v42, %v2676_v1  ;;  %v3854_v32 = vadd.f32 %v6590_v52, %v3783_v45  ;;  %v1948_v14 = vrot.slane %v1709_v12, 1 }
 0x159   :  { %v2069_v59 = vadd.f32 %v1869_v31, %v1585_v15  ;;  %v901_v7 = vadd.f32 %v749_v46, %v416_v3  ;;  %v1234_v10 = vsel %vm1114_vm2, %v1231_v5, %v1233_v16  ;;  %v2432_v25 = vrot.slane %v2193_v22, 2 }
 0x15a   :  { %v3147_v55 = vrot.slane %v2908_v33, 1  ;;  %v3392_v17 = vmul.f32 %v5031_v47, %v2676_v1  ;;  %v3918_v27 = vmax.f32 %v3854_v32, 0.0  ;;  %v1949_v49 = vsel %vm629_vm1, %v1946_v28, %v1948_v14 }
 0x15b   :  { %v2553_v37 = vadd.f32 %v2353_v24, %v2069_v59  ;;  %v1386_v57 = vadd.f32 %v1234_v10, %v901_v7  ;;  %v8728_v62 = vrot.slane %v6722_v56, 2  ;;  %v8729_v34 = vrot.slane %v6737_v38, 1  ;;  %v6867_v59 = vld [vmem:[#allocation2 + $0xf0] sm:$0xff]  ;;  %v6872_v10 = vld [vmem:[#allocation2 + $0xf8] sm:$0xff] }
 0x15c   :  { %v3631_v5 = vrot.slane %v3392_v17, 2  ;;  %v385_v51 = vmul.f32 %v6422_v48, %v4957_v19  ;;  %4673 = vmatprep.mubr.f32.mxu1 %v3918_v27  ;;  %v461_v40 = vmul.f32 %v6422_v48, %v4959_v20  ;;  %v6832_v28 = vmul.f32 %v6427_v30, %v4959_v20 }
 0x15d   :  { %v2433_v31 = vsel %vm1114_vm2, %v8728_v62, %v2432_v25  ;;  %v3148_v58 = vsel %vm629_vm1, %v8729_v34, %v3147_v55  ;;  %v2784_v0 = vadd.f32 %v2720_v44, %v2553_v37  ;;  %v1617_v6 = vadd.f32 %v1553_v11, %v1386_v57 }
 0x15e   :  { %v8730_v56 = vrot.slane %v6755_v61, 2  ;;  %v946_v3 = vmul.f32 %v6422_v48, %v4962_v21  ;;  %v6841_v41 = vmul.f32 %v6427_v30, %v4962_v21  ;;  %v1522_v44 = vmul.f32 %v6647_v60, %v4967_v23 }
 0x15f   :  { %v3268_v9 = vadd.f32 %v3068_v50, %v2784_v0  ;;  %v2101_v53 = vadd.f32 %v1949_v49, %v1617_v6  ;;  %v670_v4 = vrot.slane %v461_v40, 1  ;;  %v671_v24 = vrot.slane %v6832_v28, 1 }
 0x160   :  { %v3632_v38 = vsel %vm1114_vm2, %v8730_v56, %v3631_v5  ;;  %v1155_v1 = vrot.slane %v946_v3, 2  ;;  %v1156_v61 = vrot.slane %v6841_v41, 2  ;;  %v1662_v26 = vmul.f32 %v6647_v60, %v4980_v29  ;;  %v1480_v41 = vld [vmem:[#allocation2 + $0x298] sm:$0x3] }
 0x161   :  { %v6851_v48 = vmul.f32 %v6652_v43, %v4980_v29  ;;  %v3752_v54 = vadd.f32 %v3552_v2, %v3268_v9  ;;  %v2585_v11 = vadd.f32 %v2433_v31, %v2101_v53  ;;  %v672_v50 = vsel %vm629_vm1, %v670_v4, %v671_v24 }
 0x162   :  { %v2146_v45 = vmul.f32 %v6647_v60, %v4995_v35  ;;  %v870_v15 = vadd.f32 %v672_v50, %v385_v51  ;;  %v1157_v12 = vsel %vm1114_vm2, %v1155_v1, %v1156_v61  ;;  %v1870_v22 = vrot.slane %v1662_v26, 1 }
 0x163   :  { %v1871_v46 = vrot.slane %v6851_v48, 1  ;;  %v3823_v16 = vadd.f32 %v6590_v52, %v3752_v54  ;;  %v2816_v33 = vadd.f32 %v2752_v63, %v2585_v11  ;;  %v6865_v2 = vmul.f32 %v6652_v43, %v4995_v35  ;;  %v159_v54 = vld [vmem:[%s8650_s0 + $0xd0] sm:$0xff]  ;;  %v160_v11 = vld [vmem:[%s8650_s0 + $0xd8] sm:$0xff] }
 0x164   :  { %v2354_v32 = vrot.slane %v2146_v45, 2  ;;  %v1355_v7 = vadd.f32 %v1157_v12, %v870_v15  ;;  %v2721_v25 = vmul.f32 %v4997_v36, %v6867_v59  ;;  %v2861_v63 = vmul.f32 %v5013_v42, %v6867_v59  ;;  %225 = vst.msk [vmem:[#allocation2 + $0x151] sm:$0xff] %vm198_vm0, %v159_v54  ;;  %226 = vst.msk [vmem:[#allocation2 + $0x159] sm:$0xff] %vm198_vm0, %v160_v11  ;;  %v2679_v48 = vld [vmem:[#allocation2 + $0x2b0] sm:$0x3] }
 0x165   :  { %v1872_v14 = vsel %vm629_vm1, %v1870_v22, %v1871_v46  ;;  %v3887_v55 = vmax.f32 %v3823_v16, 0.0  ;;  %v3300_v17 = vadd.f32 %v3148_v58, %v2816_v33  ;;  %v2355_v27 = vrot.slane %v6865_v2, 2 }
 0x166   :  { %v6881_v37 = vmul.f32 %v5013_v42, %v6872_v10  ;;  %v1586_v57 = vadd.f32 %v1522_v44, %v1355_v7  ;;  %v3069_v49 = vrot.slane %v2861_v63, 1  ;;  %v3345_v62 = vmul.f32 %v5031_v47, %v6867_v59 }
 0x167   :  { %v6887_v31 = vmul.f32 %v5031_v47, %v6872_v10  ;;  %4626 = vmatmul.mubr.f32.gmra.mxu0 %v3887_v55  ;;  %v3784_v34 = vadd.f32 %v3632_v38, %v3300_v17  ;;  %v2356_v58 = vsel %vm1114_vm2, %v2354_v32, %v2355_v27  ;;  %v417_v51 = vmul.f32 %v6488_v18, %v4957_v19  ;;  %v6933_v32 = vld [vmem:[#allocation2 + $0x2a0] sm:$0xff] }
 0x168   :  { %v3070_v5 = vrot.slane %v6881_v37, 1  ;;  %v2070_v0 = vadd.f32 %v1872_v14, %v1586_v57  ;;  %v3553_v6 = vrot.slane %v3345_v62, 2  ;;  %v509_v56 = vmul.f32 %v6488_v18, %v4959_v20 }
 0x169   :  { %v3554_v40 = vrot.slane %v6887_v31, 2  ;;  %v3855_v3 = vadd.f32 %v6590_v52, %v3784_v34  ;;  %v6904_v44 = vmul.f32 %v6506_v13, %v4959_v20  ;;  %v994_v9 = vmul.f32 %v6488_v18, %v4962_v21 }
 0x16a   :  { %v3071_v38 = vsel %vm629_vm1, %v3069_v49, %v3070_v5  ;;  %v2554_v53 = vadd.f32 %v2356_v58, %v2070_v0  ;;  %v750_v1 = vrot.slane %v509_v56, 1  ;;  %v6913_v26 = vmul.f32 %v6506_v13, %v4962_v21  ;;  %v6951_v0 = vld [vmem:[#allocation2 + $0x2a8] sm:$0xff] }
 0x16b   :  { %v3555_v4 = vsel %vm1114_vm2, %v3553_v6, %v3554_v40  ;;  %v3919_v50 = vmax.f32 %v3855_v3, 0.0  ;;  %v751_v18 = vrot.slane %v6904_v44, 1  ;;  %v1235_v45 = vrot.slane %v994_v9, 2  ;;  %v295_v9 = vld [vmem:[#allocation2 + $0xd0] sm:$0x3] }
 0x16c   :  { %v1554_v15 = vmul.f32 %v6713_v39, %v4967_v23  ;;  %v2785_v12 = vadd.f32 %v2721_v25, %v2554_v53  ;;  %v1236_v22 = vrot.slane %v6913_v26, 2  ;;  %v1710_v16 = vmul.f32 %v6713_v39, %v4980_v29  ;;  %v191_v53 = vld [vmem:[%s8650_s0 + $0x1d0] sm:$0xff] }
 0x16d   :  { %v6931_v33 = vmul.f32 %v6731_v8, %v4980_v29  ;;  %4674 = vmatmul.mubr.f32.gmra.mxu1 %v3919_v50  ;;  %v752_v7 = vsel %vm629_vm1, %v750_v1, %v751_v18  ;;  %v2194_v14 = vmul.f32 %v6713_v39, %v4995_v35  ;;  %v6942_v25 = vmul.f32 %v6731_v8, %v4995_v35  ;;  %v192_v1 = vld [vmem:[%s8650_s0 + $0x1d8] sm:$0xff] }
 0x16e   :  { %v2753_v63 = vmul.f32 %v4997_v36, %v6933_v32  ;;  %v3269_v55 = vadd.f32 %v3071_v38, %v2785_v12  ;;  %v902_v17 = vadd.f32 %v752_v7, %v417_v51  ;;  %v1237_v57 = vsel %vm1114_vm2, %v1235_v45, %v1236_v22  ;;  %257 = vst.msk [vmem:[#allocation2 + $0x301] sm:$0xff] %vm198_vm0, %v191_v53 }
 0x16f   :  { %v1950_v49 = vrot.slane %v1710_v16, 1  ;;  %v1951_v62 = vrot.slane %v6931_v33, 1  ;;  %v2434_v34 = vrot.slane %v2194_v14, 2  ;;  %v8678_v58 = vrot.slane %v6942_v25, 2  ;;  %258 = vst.msk [vmem:[#allocation2 + $0x309] sm:$0xff] %vm198_vm0, %v192_v1 }
 0x170   :  { %v2909_v6 = vmul.f32 %v5013_v42, %v6933_v32  ;;  %v3753_v56 = vadd.f32 %v3555_v4, %v3269_v55  ;;  %v1387_v3 = vadd.f32 %v1237_v57, %v902_v17  ;;  %v6957_v51 = vmul.f32 %v5013_v42, %v6951_v0  ;;  %v1432_v14 = vld [vmem:[#allocation2 + $0xe8] sm:$0x3] }
 0x171   :  { %v3393_v38 = vmul.f32 %v5031_v47, %v6933_v32  ;;  %v1952_v4 = vsel %vm629_vm1, %v1950_v49, %v1951_v62  ;;  %v2436_v54 = vsel %vm1114_vm2, %v2434_v34, %v8678_v58  ;;  %v6975_v50 = vmul.f32 %v5031_v47, %v6951_v0  ;;  %v2631_v34 = vld [vmem:[#allocation2 + $0x100] sm:$0x3] }
 0x172   :  { %v3149_v11 = vrot.slane %v2909_v6, 1  ;;  %v3824_v45 = vadd.f32 %v6590_v52, %v3753_v56  ;;  %v1618_v12 = vadd.f32 %v1554_v15, %v1387_v3  ;;  %v8676_v16 = vrot.slane %v6957_v51, 1 }
 0x173   :  { %v3633_v7 = vrot.slane %v3393_v38, 2  ;;  %v8677_v55 = vrot.slane %v6975_v50, 2  ;;  %v386_v17 = vmul.f32 %v6427_v30, %v4957_v19  ;;  %v463_v57 = vmul.f32 %v4959_v20, %v295_v9 }
 0x174   :  { %v948_v49 = vmul.f32 %v4962_v21, %v295_v9  ;;  %v3888_v6 = vmax.f32 %v3824_v45, 0.0  ;;  %v2102_v53 = vadd.f32 %v1952_v4, %v1618_v12  ;;  %v3151_v15 = vsel %vm629_vm1, %v3149_v11, %v8676_v16  ;;  %v343_v12 = vld [vmem:[#allocation2 + $0x280] sm:$0x3] }
 0x175   :  { %v1523_v56 = vmul.f32 %v6652_v43, %v4967_v23  ;;  %v3635_v3 = vsel %vm1114_vm2, %v3633_v7, %v8677_v55  ;;  %v673_v38 = vrot.slane %v463_v57, 1  ;;  %v1664_v1 = vmul.f32 %v4980_v29, %v1432_v14 }
 0x176   :  { %v1158_v30 = vrot.slane %v948_v49, 2  ;;  %4628 = vmatprep.mubr.f32.mxu0 %v3888_v6  ;;  %v2586_v9 = vadd.f32 %v2436_v54, %v2102_v53  ;;  %v2148_v45 = vmul.f32 %v4995_v35, %v1432_v14  ;;  %v2722_v4 = vmul.f32 %v4997_v36, %v6872_v10 }
 0x177   :  { %v2863_v11 = vmul.f32 %v5013_v42, %v2631_v34  ;;  %v674_v16 = vsel %vm629_vm1, %v671_v24, %v673_v38  ;;  %v1873_v57 = vrot.slane %v1664_v1, 1  ;;  %v3347_v49 = vmul.f32 %v5031_v47, %v2631_v34 }
 0x178   :  { %v1159_v7 = vsel %vm1114_vm2, %v1156_v61, %v1158_v30  ;;  %v2817_v54 = vadd.f32 %v2753_v63, %v2586_v9  ;;  %v871_v6 = vadd.f32 %v674_v16, %v386_v17  ;;  %v2357_v14 = vrot.slane %v2148_v45, 2 }
 0x179   :  { %v3072_v53 = vrot.slane %v2863_v11, 1  ;;  %v1874_v55 = vsel %vm629_vm1, %v1871_v46, %v1873_v57  ;;  %v3556_v58 = vrot.slane %v3347_v49, 2  ;;  %v418_v28 = vmul.f32 %v6506_v13, %v4957_v19 }
 0x17a   :  { %v511_v24 = vmul.f32 %v4959_v20, %v343_v12  ;;  %v3301_v38 = vadd.f32 %v3151_v15, %v2817_v54  ;;  %v1356_v61 = vadd.f32 %v1159_v7, %v871_v6  ;;  %v2358_v63 = vsel %vm1114_vm2, %v2355_v27, %v2357_v14 }
 0x17b   :  { %v3073_v16 = vsel %vm629_vm1, %v3070_v5, %v3072_v53  ;;  %v3557_v46 = vsel %vm1114_vm2, %v3554_v40, %v3556_v58  ;;  %v996_v13 = vmul.f32 %v4962_v21, %v343_v12  ;;  %v1555_v34 = vmul.f32 %v6731_v8, %v4967_v23 }
 0x17c   :  { %v753_v17 = vrot.slane %v511_v24, 1  ;;  %v3785_v15 = vadd.f32 %v3635_v3, %v3301_v38  ;;  %v1587_v30 = vadd.f32 %v1523_v56, %v1356_v61  ;;  %v1712_v2 = vmul.f32 %v4980_v29, %v1480_v41 }
 0x17d   :  { %v2196_v27 = vmul.f32 %v4995_v35, %v1480_v41  ;;  %v1238_v5 = vrot.slane %v996_v13, 2  ;;  %v2754_v31 = vmul.f32 %v4997_v36, %v6951_v0  ;;  %v2911_v40 = vmul.f32 %v5013_v42, %v2679_v48 }
 0x17e   :  { %v754_v37 = vsel %vm629_vm1, %v751_v18, %v753_v17  ;;  %v3856_v58 = vadd.f32 %v6590_v52, %v3785_v15  ;;  %v2071_v1 = vadd.f32 %v1874_v55, %v1587_v30  ;;  %v1953_v3 = vrot.slane %v1712_v2, 1 }
 0x17f   :  { %v903_v9 = vadd.f32 %v754_v37, %v418_v28  ;;  %v1239_v56 = vsel %vm1114_vm2, %v1236_v22, %v1238_v5  ;;  %v2437_v45 = vrot.slane %v2196_v27, 2  ;;  %v3152_v11 = vrot.slane %v2911_v40, 1 }
 0x180   :  { %v3395_v44 = vmul.f32 %v5031_v47, %v2679_v48  ;;  %v3920_v18 = vmax.f32 %v3856_v58, 0.0  ;;  %v2555_v12 = vadd.f32 %v2358_v63, %v2071_v1  ;;  %v1954_v57 = vsel %vm629_vm1, %v1951_v62, %v1953_v3  ;;  %v7087_v1 = vld [vmem:[#allocation2 + $0x108] sm:$0xff] }
 0x181   :  { %v1388_v7 = vadd.f32 %v1239_v56, %v903_v9  ;;  %v8731_v49 = vrot.slane %v6942_v25, 2  ;;  %v8732_v54 = vrot.slane %v6957_v51, 1  ;;  %v387_v6 = vmul.f32 %v6647_v60, %v4957_v19  ;;  %v7092_v56 = vld [vmem:[#allocation2 + $0x110] sm:$0xff] }
 0x182   :  { %v3636_v22 = vrot.slane %v3395_v44, 2  ;;  %4676 = vmatprep.mubr.f32.mxu1 %v3920_v18  ;;  %v2786_v14 = vadd.f32 %v2722_v4, %v2555_v12  ;;  %v464_v33 = vmul.f32 %v6647_v60, %v4959_v20  ;;  %v7052_v62 = vmul.f32 %v6652_v43, %v4959_v20 }
 0x183   :  { %v2438_v55 = vsel %vm1114_vm2, %v8731_v49, %v2437_v45  ;;  %v3153_v26 = vsel %vm629_vm1, %v8732_v54, %v3152_v11  ;;  %v1619_v53 = vadd.f32 %v1555_v34, %v1388_v7  ;;  %v8733_v25 = vrot.slane %v6975_v50, 2 }
 0x184   :  { %v949_v28 = vmul.f32 %v6647_v60, %v4962_v21  ;;  %v7061_v24 = vmul.f32 %v6652_v43, %v4962_v21  ;;  %v1524_v4 = vmul.f32 %v6867_v59, %v4967_v23  ;;  %v3270_v41 = vadd.f32 %v3073_v16, %v2786_v14 }
 0x185   :  { %v3637_v51 = vsel %vm1114_vm2, %v8733_v25, %v3636_v22  ;;  %v2103_v38 = vadd.f32 %v1954_v57, %v1619_v53  ;;  %v675_v61 = vrot.slane %v464_v33, 1  ;;  %v676_v63 = vrot.slane %v7052_v62, 1 }
 0x186   :  { %v1160_v48 = vrot.slane %v949_v28, 2  ;;  %v1161_v50 = vrot.slane %v7061_v24, 2  ;;  %v1665_v17 = vmul.f32 %v6867_v59, %v4980_v29  ;;  %v7071_v60 = vmul.f32 %v6872_v10, %v4980_v29  ;;  %v1483_v24 = vld [vmem:[#allocation2 + $0x2b0] sm:$0x3] }
 0x187   :  { %v3754_v13 = vadd.f32 %v3557_v46, %v3270_v41  ;;  %v2587_v34 = vadd.f32 %v2438_v55, %v2103_v38  ;;  %v677_v16 = vsel %vm629_vm1, %v675_v61, %v676_v63  ;;  %v2149_v15 = vmul.f32 %v6867_v59, %v4995_v35 }
 0x188   :  { %v872_v30 = vadd.f32 %v677_v16, %v387_v6  ;;  %v1162_v2 = vsel %vm1114_vm2, %v1160_v48, %v1161_v50  ;;  %v1875_v27 = vrot.slane %v1665_v17, 1  ;;  %v1876_v37 = vrot.slane %v7071_v60, 1  ;;  %v2682_v60 = vld [vmem:[#allocation2 + $0x2c8] sm:$0x3] }
 0x189   :  { %v3825_v5 = vadd.f32 %v6590_v52, %v3754_v13  ;;  %v2818_v40 = vadd.f32 %v2754_v31, %v2587_v34  ;;  %v7085_v46 = vmul.f32 %v6872_v10, %v4995_v35  ;;  %v2359_v58 = vrot.slane %v2149_v15, 2  ;;  %v161_v13 = vld [vmem:[%s8650_s0 + $0xe0] sm:$0xff]  ;;  %v162_v34 = vld [vmem:[%s8650_s0 + $0xe8] sm:$0xff] }
 0x18a   :  { %v1357_v9 = vadd.f32 %v1162_v2, %v872_v30  ;;  %v1877_v3 = vsel %vm629_vm1, %v1875_v27, %v1876_v37  ;;  %v2723_v45 = vmul.f32 %v4997_v36, %v7087_v1  ;;  %v2864_v31 = vmul.f32 %v5013_v42, %v7087_v1  ;;  %227 = vst.msk [vmem:[#allocation2 + $0x169] sm:$0xff] %vm198_vm0, %v161_v13 }
 0x18b   :  { %v3889_v11 = vmax.f32 %v3825_v5, 0.0  ;;  %v3302_v44 = vadd.f32 %v3153_v26, %v2818_v40  ;;  %v2360_v18 = vrot.slane %v7085_v46, 2  ;;  %v7101_v12 = vmul.f32 %v5013_v42, %v7092_v56  ;;  %228 = vst.msk [vmem:[#allocation2 + $0x171] sm:$0xff] %vm198_vm0, %v162_v34 }
 0x18c   :  { %v1588_v7 = vadd.f32 %v1524_v4, %v1357_v9  ;;  %v3074_v57 = vrot.slane %v2864_v31, 1  ;;  %v3348_v49 = vmul.f32 %v5031_v47, %v7087_v1  ;;  %v7107_v55 = vmul.f32 %v5031_v47, %v7092_v56 }
 0x18d   :  { %4629 = vmatmul.mubr.f32.gmra.mxu0 %v3889_v11  ;;  %v3786_v54 = vadd.f32 %v3637_v51, %v3302_v44  ;;  %v2361_v26 = vsel %vm1114_vm2, %v2359_v58, %v2360_v18  ;;  %v3075_v22 = vrot.slane %v7101_v12, 1  ;;  %v419_v6 = vmul.f32 %v6713_v39, %v4957_v19  ;;  %v7153_v58 = vld [vmem:[#allocation2 + $0x2b8] sm:$0xff] }
 0x18e   :  { %v2072_v14 = vadd.f32 %v1877_v3, %v1588_v7  ;;  %v3558_v53 = vrot.slane %v3348_v49, 2  ;;  %v3559_v33 = vrot.slane %v7107_v55, 2  ;;  %v512_v25 = vmul.f32 %v6713_v39, %v4959_v20 }
 0x18f   :  { %v3857_v28 = vadd.f32 %v6590_v52, %v3786_v54  ;;  %v3076_v51 = vsel %vm629_vm1, %v3074_v57, %v3075_v22  ;;  %v7124_v4 = vmul.f32 %v6731_v8, %v4959_v20  ;;  %v997_v41 = vmul.f32 %v6713_v39, %v4962_v21 }
 0x190   :  { %v2556_v38 = vadd.f32 %v2361_v26, %v2072_v14  ;;  %v3560_v61 = vsel %vm1114_vm2, %v3558_v53, %v3559_v33  ;;  %v755_v48 = vrot.slane %v512_v25, 1  ;;  %v7133_v17 = vmul.f32 %v6731_v8, %v4962_v21  ;;  %v7171_v14 = vld [vmem:[#allocation2 + $0x2c0] sm:$0xff] }
 0x191   :  { %v3921_v16 = vmax.f32 %v3857_v28, 0.0  ;;  %v756_v39 = vrot.slane %v7124_v4, 1  ;;  %v1240_v15 = vrot.slane %v997_v41, 2  ;;  %v1556_v30 = vmul.f32 %v6933_v32, %v4967_v23  ;;  %v298_v41 = vld [vmem:[#allocation2 + $0xe8] sm:$0x3] }
 0x192   :  { %v2787_v2 = vadd.f32 %v2723_v45, %v2556_v38  ;;  %v1241_v27 = vrot.slane %v7133_v17, 2  ;;  %v1713_v5 = vmul.f32 %v6933_v32, %v4980_v29  ;;  %v7151_v40 = vmul.f32 %v6951_v0, %v4980_v29  ;;  %v193_v38 = vld [vmem:[%s8650_s0 + $0x1e0] sm:$0xff] }
 0x193   :  { %4677 = vmatmul.mubr.f32.gmra.mxu1 %v3921_v16  ;;  %v757_v9 = vsel %vm629_vm1, %v755_v48, %v756_v39  ;;  %v2197_v3 = vmul.f32 %v6933_v32, %v4995_v35  ;;  %v7162_v45 = vmul.f32 %v6951_v0, %v4995_v35  ;;  %v2755_v31 = vmul.f32 %v4997_v36, %v7153_v58  ;;  %v194_v48 = vld [vmem:[%s8650_s0 + $0x1e8] sm:$0xff] }
 0x194   :  { %v3271_v11 = vadd.f32 %v3076_v51, %v2787_v2  ;;  %v904_v44 = vadd.f32 %v757_v9, %v419_v6  ;;  %v1242_v7 = vsel %vm1114_vm2, %v1240_v15, %v1241_v27  ;;  %v1955_v57 = vrot.slane %v1713_v5, 1  ;;  %259 = vst.msk [vmem:[#allocation2 + $0x319] sm:$0xff] %vm198_vm0, %v193_v38  ;;  %260 = vst.msk [vmem:[#allocation2 + $0x321] sm:$0xff] %vm198_vm0, %v194_v48 }
 0x195   :  { %v1956_v49 = vrot.slane %v7151_v40, 1  ;;  %v2439_v54 = vrot.slane %v2197_v3, 2  ;;  %v8681_v26 = vrot.slane %v7162_v45, 2  ;;  %v2912_v53 = vmul.f32 %v5013_v42, %v7153_v58  ;;  %v1435_v3 = vld [vmem:[#allocation2 + $0x100] sm:$0x3] }
 0x196   :  { %v3755_v25 = vadd.f32 %v3560_v61, %v3271_v11  ;;  %v1389_v28 = vadd.f32 %v1242_v7, %v904_v44  ;;  %v7177_v6 = vmul.f32 %v5013_v42, %v7171_v14  ;;  %v3396_v51 = vmul.f32 %v5031_v47, %v7153_v58 }
 0x197   :  { %v1957_v61 = vsel %vm629_vm1, %v1955_v57, %v1956_v49  ;;  %v2441_v13 = vsel %vm1114_vm2, %v2439_v54, %v8681_v26  ;;  %v3154_v34 = vrot.slane %v2912_v53, 1  ;;  %v7195_v16 = vmul.f32 %v5031_v47, %v7171_v14  ;;  %v2634_v54 = vld [vmem:[#allocation2 + $0x118] sm:$0x3] }
 0x198   :  { %v3826_v15 = vadd.f32 %v6590_v52, %v3755_v25  ;;  %v1620_v2 = vadd.f32 %v1556_v30, %v1389_v28  ;;  %v8679_v5 = vrot.slane %v7177_v6, 1  ;;  %v3638_v9 = vrot.slane %v3396_v51, 2 }
 0x199   :  { %v8680_v11 = vrot.slane %v7195_v16, 2  ;;  %v388_v44 = vmul.f32 %v6652_v43, %v4957_v19  ;;  %v466_v7 = vmul.f32 %v4959_v20, %v298_v41  ;;  %v951_v57 = vmul.f32 %v4962_v21, %v298_v41 }
 0x19a   :  { %v3890_v53 = vmax.f32 %v3826_v15, 0.0  ;;  %v2104_v38 = vadd.f32 %v1957_v61, %v1620_v2  ;;  %v3156_v30 = vsel %vm629_vm1, %v3154_v34, %v8679_v5  ;;  %v1525_v25 = vmul.f32 %v6872_v10, %v4967_v23  ;;  %v346_v2 = vld [vmem:[#allocation2 + $0x298] sm:$0x3] }
 0x19b   :  { %v3640_v28 = vsel %vm1114_vm2, %v3638_v9, %v8680_v11  ;;  %v678_v51 = vrot.slane %v466_v7, 1  ;;  %v1163_v43 = vrot.slane %v951_v57, 2  ;;  %v1667_v48 = vmul.f32 %v4980_v29, %v1435_v3 }
 0x19c   :  { %4631 = vmatprep.mubr.f32.mxu0 %v3890_v53  ;;  %v2588_v41 = vadd.f32 %v2441_v13, %v2104_v38  ;;  %v2151_v15 = vmul.f32 %v4995_v35, %v1435_v3  ;;  %v2724_v61 = vmul.f32 %v4997_v36, %v7092_v56  ;;  %v2866_v34 = vmul.f32 %v5013_v42, %v2634_v54 }
 0x19d   :  { %v679_v5 = vsel %vm629_vm1, %v676_v63, %v678_v51  ;;  %v1164_v9 = vsel %vm1114_vm2, %v1161_v50, %v1163_v43  ;;  %v1878_v7 = vrot.slane %v1667_v48, 1  ;;  %v3350_v57 = vmul.f32 %v5031_v47, %v2634_v54 }
 0x19e   :  { %v2819_v13 = vadd.f32 %v2755_v31, %v2588_v41  ;;  %v873_v53 = vadd.f32 %v679_v5, %v388_v44  ;;  %v2362_v3 = vrot.slane %v2151_v15, 2  ;;  %v3077_v38 = vrot.slane %v2866_v34, 1 }
 0x19f   :  { %v1879_v11 = vsel %vm629_vm1, %v1876_v37, %v1878_v7  ;;  %v3561_v26 = vrot.slane %v3350_v57, 2  ;;  %v420_v62 = vmul.f32 %v6731_v8, %v4957_v19  ;;  %v514_v63 = vmul.f32 %v4959_v20, %v346_v2 }
 0x1a0   :  { %v3303_v51 = vadd.f32 %v3156_v30, %v2819_v13  ;;  %v1358_v50 = vadd.f32 %v1164_v9, %v873_v53  ;;  %v2363_v31 = vsel %vm1114_vm2, %v2360_v18, %v2362_v3  ;;  %v3078_v5 = vsel %vm629_vm1, %v3075_v22, %v3077_v38 }
 0x1a1   :  { %v3562_v37 = vsel %vm1114_vm2, %v3559_v33, %v3561_v26  ;;  %v758_v44 = vrot.slane %v514_v63, 1  ;;  %v999_v8 = vmul.f32 %v4962_v21, %v346_v2  ;;  %v1557_v54 = vmul.f32 %v6951_v0, %v4967_v23 }
 0x1a2   :  { %v3787_v30 = vadd.f32 %v3640_v28, %v3303_v51  ;;  %v1589_v43 = vadd.f32 %v1525_v25, %v1358_v50  ;;  %v1715_v46 = vmul.f32 %v4980_v29, %v1483_v24  ;;  %v2199_v18 = vmul.f32 %v4995_v35, %v1483_v24 }
 0x1a3   :  { %v759_v12 = vsel %vm629_vm1, %v756_v39, %v758_v44  ;;  %v1243_v22 = vrot.slane %v999_v8, 2  ;;  %v2756_v55 = vmul.f32 %v4997_v36, %v7171_v14  ;;  %v2914_v33 = vmul.f32 %v5013_v42, %v2682_v60 }
 0x1a4   :  { %v3858_v26 = vadd.f32 %v6590_v52, %v3787_v30  ;;  %v2073_v48 = vadd.f32 %v1879_v11, %v1589_v43  ;;  %v905_v41 = vadd.f32 %v759_v12, %v420_v62  ;;  %v1958_v28 = vrot.slane %v1715_v46, 1 }
 0x1a5   :  { %v1244_v25 = vsel %vm1114_vm2, %v1241_v27, %v1243_v22  ;;  %v2442_v15 = vrot.slane %v2199_v18, 2  ;;  %v3157_v34 = vrot.slane %v2914_v33, 1  ;;  %v3398_v4 = vmul.f32 %v5031_v47, %v2682_v60 }
 0x1a6   :  { %v3922_v39 = vmax.f32 %v3858_v26, 0.0  ;;  %v2557_v2 = vadd.f32 %v2363_v31, %v2073_v48  ;;  %v1390_v9 = vadd.f32 %v1244_v25, %v905_v41  ;;  %v1959_v7 = vsel %vm629_vm1, %v1956_v49, %v1958_v28  ;;  %v7312_v48 = vld [vmem:[#allocation2 + $0x120] sm:$0xff]  ;;  %v7317_v25 = vld [vmem:[#allocation2 + $0x128] sm:$0xff] }
 0x1a7   :  { %v8734_v52 = vrot.slane %v7162_v45, 2  ;;  %v8735_v57 = vrot.slane %v7177_v6, 1  ;;  %v3641_v27 = vrot.slane %v3398_v4, 2  ;;  %v389_v13 = vmul.f32 %v6867_v59, %v4957_v19 }
 0x1a8   :  { %4679 = vmatprep.mubr.f32.mxu1 %v3922_v39  ;;  %v2788_v53 = vadd.f32 %v2724_v61, %v2557_v2  ;;  %v1621_v3 = vadd.f32 %v1557_v54, %v1390_v9  ;;  %v467_v40 = vmul.f32 %v6867_v59, %v4959_v20  ;;  %v7272_v49 = vmul.f32 %v6872_v10, %v4959_v20 }
 0x1a9   :  { %v2443_v11 = vsel %vm1114_vm2, %v8734_v52, %v2442_v15  ;;  %v3158_v17 = vsel %vm629_vm1, %v8735_v57, %v3157_v34  ;;  %v8736_v45 = vrot.slane %v7195_v16, 2  ;;  %v952_v38 = vmul.f32 %v6867_v59, %v4962_v21 }
 0x1aa   :  { %v7281_v62 = vmul.f32 %v6872_v10, %v4962_v21  ;;  %v1526_v61 = vmul.f32 %v7087_v1, %v4967_v23  ;;  %v3272_v63 = vadd.f32 %v3078_v5, %v2788_v53  ;;  %v2105_v24 = vadd.f32 %v1959_v7, %v1621_v3 }
 0x1ab   :  { %v3642_v6 = vsel %vm1114_vm2, %v8736_v45, %v3641_v27  ;;  %v680_v51 = vrot.slane %v467_v40, 1  ;;  %v681_v50 = vrot.slane %v7272_v49, 1  ;;  %v1165_v31 = vrot.slane %v952_v38, 2 }
 0x1ac   :  { %v1166_v16 = vrot.slane %v7281_v62, 2  ;;  %v1668_v60 = vmul.f32 %v7087_v1, %v4980_v29  ;;  %v7291_v59 = vmul.f32 %v7092_v56, %v4980_v29  ;;  %v3756_v44 = vadd.f32 %v3562_v37, %v3272_v63  ;;  %v7305_v37 = vld [vmem:[%s8652_s2] ss:$0 sm:$0xff]  ;;  %v1486_v62 = vld [vmem:[#allocation2 + $0x2c8] sm:$0x3] }
 0x1ad   :  { %v2589_v8 = vadd.f32 %v2443_v11, %v2105_v24  ;;  %v682_v5 = vsel %vm629_vm1, %v680_v51, %v681_v50  ;;  %v2152_v54 = vmul.f32 %v7087_v1, %v4995_v35  ;;  %v7310_v33 = vmul.f32 %v7092_v56, %v4995_v35 }
 0x1ae   :  { %v874_v30 = vadd.f32 %v682_v5, %v389_v13  ;;  %v1167_v43 = vsel %vm1114_vm2, %v1165_v31, %v1166_v16  ;;  %v1880_v46 = vrot.slane %v1668_v60, 1  ;;  %v1881_v18 = vrot.slane %v7291_v59, 1  ;;  %v2685_v59 = vld [vmem:[#allocation2 + $0x2e0] sm:$0x3] }
 0x1af   :  { %v3827_v12 = vadd.f32 %v7305_v37, %v3756_v44  ;;  %v2820_v22 = vadd.f32 %v2756_v55, %v2589_v8  ;;  %v2364_v26 = vrot.slane %v2152_v54, 2  ;;  %v2725_v15 = vmul.f32 %v4997_v36, %v7312_v48 }
 0x1b0   :  { %v1359_v41 = vadd.f32 %v1167_v43, %v874_v30  ;;  %v1882_v28 = vsel %vm629_vm1, %v1880_v46, %v1881_v18  ;;  %v2867_v55 = vmul.f32 %v5013_v42, %v7312_v48  ;;  %v2365_v39 = vrot.slane %v7310_v33, 2 }
 0x1b1   :  { %v3891_v34 = vmax.f32 %v3827_v12, 0.0  ;;  %v3304_v4 = vadd.f32 %v3158_v17, %v2820_v22  ;;  %v7326_v2 = vmul.f32 %v5013_v42, %v7317_v25  ;;  %v3351_v52 = vmul.f32 %v5031_v47, %v7312_v48  ;;  %v7370_v12 = vld [vmem:[#allocation2 + $0x2d0] sm:$0xff] }
 0x1b2   :  { %v1590_v9 = vadd.f32 %v1526_v61, %v1359_v41  ;;  %v3079_v7 = vrot.slane %v2867_v55, 1  ;;  %v7332_v11 = vmul.f32 %v5031_v47, %v7317_v25  ;;  %v2366_v17 = vsel %vm1114_vm2, %v2364_v26, %v2365_v39  ;;  %v163_v22 = vld [vmem:[%s8650_s0 + $0xf0] sm:$0xff]  ;;  %v164_v26 = vld [vmem:[%s8650_s0 + $0xf8] sm:$0xff] }
 0x1b3   :  { %4632 = vmatmul.mubr.f32.gmra.mxu0 %v3891_v34  ;;  %v3788_v57 = vadd.f32 %v3642_v6, %v3304_v4  ;;  %v3080_v27 = vrot.slane %v7326_v2, 1  ;;  %v421_v13 = vmul.f32 %v6933_v32, %v4957_v19  ;;  %v3563_v3 = vrot.slane %v3351_v52, 2  ;;  %229 = vst.msk [vmem:[#allocation2 + $0x181] sm:$0xff] %vm198_vm0, %v163_v22  ;;  %230 = vst.msk [vmem:[#allocation2 + $0x189] sm:$0xff] %vm198_vm0, %v164_v26  ;;  %v1438_v26 = vld [vmem:[#allocation2 + $0x118] sm:$0x3] }
 0x1b4   :  { %v2074_v53 = vadd.f32 %v1882_v28, %v1590_v9  ;;  %v3564_v40 = vrot.slane %v7332_v11, 2  ;;  %v515_v45 = vmul.f32 %v6933_v32, %v4959_v20  ;;  %v7349_v61 = vmul.f32 %v6951_v0, %v4959_v20 }
 0x1b5   :  { %v3859_v38 = vadd.f32 %v7305_v37, %v3788_v57  ;;  %v3081_v6 = vsel %vm629_vm1, %v3079_v7, %v3080_v27  ;;  %v1000_v63 = vmul.f32 %v6933_v32, %v4962_v21  ;;  %v7358_v60 = vmul.f32 %v6951_v0, %v4962_v21 }
 0x1b6   :  { %v2558_v24 = vadd.f32 %v2366_v17, %v2074_v53  ;;  %v3565_v51 = vsel %vm1114_vm2, %v3563_v3, %v3564_v40  ;;  %v760_v31 = vrot.slane %v515_v45, 1  ;;  %v761_v8 = vrot.slane %v7349_v61, 1  ;;  %v7396_v53 = vld [vmem:[#allocation2 + $0x2d8] sm:$0xff] }
 0x1b7   :  { %v3923_v44 = vmax.f32 %v3859_v38, 0.0  ;;  %v1245_v5 = vrot.slane %v1000_v63, 2  ;;  %v1558_v54 = vmul.f32 %v7153_v58, %v4967_v23  ;;  %v1246_v32 = vrot.slane %v7358_v60, 2  ;;  %v301_v63 = vld [vmem:[#allocation2 + $0x100] sm:$0x3] }
 0x1b8   :  { %v2789_v30 = vadd.f32 %v2725_v15, %v2558_v24  ;;  %v1716_v43 = vmul.f32 %v7153_v58, %v4980_v29  ;;  %v7368_v46 = vmul.f32 %v7171_v14, %v4980_v29  ;;  %v762_v41 = vsel %vm629_vm1, %v760_v31, %v761_v8 }
 0x1b9   :  { %4680 = vmatmul.mubr.f32.gmra.mxu1 %v3923_v44  ;;  %v2200_v28 = vmul.f32 %v7153_v58, %v4995_v35  ;;  %v7385_v15 = vmul.f32 %v7171_v14, %v4995_v35  ;;  %v2757_v55 = vmul.f32 %v4997_v36, %v7370_v12  ;;  %v906_v4 = vadd.f32 %v762_v41, %v421_v13  ;;  %v195_v41 = vld [vmem:[%s8650_s0 + $0x1f0] sm:$0xff] }
 0x1ba   :  { %v3273_v34 = vadd.f32 %v3081_v6, %v2789_v30  ;;  %v1247_v9 = vsel %vm1114_vm2, %v1245_v5, %v1246_v32  ;;  %v1960_v7 = vrot.slane %v1716_v43, 1  ;;  %v1961_v52 = vrot.slane %v7368_v46, 1  ;;  %261 = vst.msk [vmem:[#allocation2 + $0x331] sm:$0xff] %vm198_vm0, %v195_v41 }
 0x1bb   :  { %v2444_v57 = vrot.slane %v2200_v28, 2  ;;  %v8682_v17 = vrot.slane %v7385_v15, 2  ;;  %v2915_v3 = vmul.f32 %v5013_v42, %v7370_v12  ;;  %v1391_v38 = vadd.f32 %v1247_v9, %v906_v4  ;;  %v196_v28 = vld [vmem:[%s8650_s0 + $0x1f8] sm:$0xff] }
 0x1bc   :  { %v3757_v45 = vadd.f32 %v3565_v51, %v3273_v34  ;;  %v7402_v13 = vmul.f32 %v5013_v42, %v7396_v53  ;;  %v3399_v6 = vmul.f32 %v5031_v47, %v7370_v12  ;;  %v1962_v24 = vsel %vm629_vm1, %v1960_v7, %v1961_v52  ;;  %v2637_v7 = vld [vmem:[#allocation2 + $0x130] sm:$0x3]  ;;  %262 = vst.msk [vmem:[#allocation2 + $0x339] sm:$0xff] %vm198_vm0, %v196_v28 }
 0x1bd   :  { %v2446_v31 = vsel %vm1114_vm2, %v2444_v57, %v8682_v17  ;;  %v3159_v44 = vrot.slane %v2915_v3, 1  ;;  %v7414_v51 = vmul.f32 %v5031_v47, %v7396_v53  ;;  %v1622_v30 = vadd.f32 %v1558_v54, %v1391_v38 }
 0x1be   :  { %v3828_v5 = vadd.f32 %v7305_v37, %v3757_v45  ;;  %v8684_v43 = vrot.slane %v7402_v13, 1  ;;  %v3643_v22 = vrot.slane %v3399_v6, 2  ;;  %v390_v4 = vmul.f32 %v6872_v10, %v4957_v19 }
 0x1bf   :  { %v8683_v34 = vrot.slane %v7414_v51, 2  ;;  %v469_v9 = vmul.f32 %v4959_v20, %v301_v63  ;;  %v954_v54 = vmul.f32 %v4962_v21, %v301_v63  ;;  %v2106_v3 = vadd.f32 %v1962_v24, %v1622_v30  ;;  %v349_v30 = vld [vmem:[#allocation2 + $0x2b0] sm:$0x3] }
 0x1c0   :  { %v3892_v57 = vmax.f32 %v3828_v5, 0.0  ;;  %v3161_v45 = vsel %vm629_vm1, %v3159_v44, %v8684_v43  ;;  %v1527_v38 = vmul.f32 %v7092_v56, %v4967_v23  ;;  %v1670_v17 = vmul.f32 %v4980_v29, %v1438_v26 }
 0x1c1   :  { %v3645_v10 = vsel %vm1114_vm2, %v3643_v22, %v8683_v34  ;;  %v683_v6 = vrot.slane %v469_v9, 1  ;;  %v1168_v63 = vrot.slane %v954_v54, 2  ;;  %v2590_v41 = vadd.f32 %v2446_v31, %v2106_v3 }
 0x1c2   :  { %4634 = vmatprep.mubr.f32.mxu0 %v3892_v57  ;;  %v2154_v5 = vmul.f32 %v4995_v35, %v1438_v26  ;;  %v2726_v24 = vmul.f32 %v4997_v36, %v7317_v25  ;;  %v2869_v44 = vmul.f32 %v5013_v42, %v2637_v7  ;;  %v1883_v9 = vrot.slane %v1670_v17, 1 }
 0x1c3   :  { %v684_v28 = vsel %vm629_vm1, %v681_v50, %v683_v6  ;;  %v1169_v22 = vsel %vm1114_vm2, %v1166_v16, %v1168_v63  ;;  %v3353_v54 = vmul.f32 %v5031_v47, %v2637_v7  ;;  %v2821_v31 = vadd.f32 %v2757_v55, %v2590_v41 }
 0x1c4   :  { %v875_v57 = vadd.f32 %v684_v28, %v390_v4  ;;  %v2367_v26 = vrot.slane %v2154_v5, 2  ;;  %v3082_v3 = vrot.slane %v2869_v44, 1  ;;  %v1884_v34 = vsel %vm629_vm1, %v1881_v18, %v1883_v9 }
 0x1c5   :  { %v3566_v43 = vrot.slane %v3353_v54, 2  ;;  %v422_v49 = vmul.f32 %v6951_v0, %v4957_v19  ;;  %v517_v50 = vmul.f32 %v4959_v20, %v349_v30  ;;  %v3305_v6 = vadd.f32 %v3161_v45, %v2821_v31 }
 0x1c6   :  { %v1360_v16 = vadd.f32 %v1169_v22, %v875_v57  ;;  %v2368_v55 = vsel %vm1114_vm2, %v2365_v39, %v2367_v26  ;;  %v3083_v17 = vsel %vm629_vm1, %v3080_v27, %v3082_v3  ;;  %v1002_v0 = vmul.f32 %v4962_v21, %v349_v30 }
 0x1c7   :  { %v3567_v18 = vsel %vm1114_vm2, %v3564_v40, %v3566_v43  ;;  %v763_v4 = vrot.slane %v517_v50, 1  ;;  %v1559_v7 = vmul.f32 %v7171_v14, %v4967_v23  ;;  %v3789_v45 = vadd.f32 %v3645_v10, %v3305_v6 }
 0x1c8   :  { %v1591_v63 = vadd.f32 %v1527_v38, %v1360_v16  ;;  %v1718_v33 = vmul.f32 %v4980_v29, %v1486_v62  ;;  %v2202_v39 = vmul.f32 %v4995_v35, %v1486_v62  ;;  %v1248_v27 = vrot.slane %v1002_v0, 2 }
 0x1c9   :  { %v764_v2 = vsel %vm629_vm1, %v761_v8, %v763_v4  ;;  %v2758_v11 = vmul.f32 %v4997_v36, %v7396_v53  ;;  %v2917_v40 = vmul.f32 %v5013_v42, %v2685_v59  ;;  %v3860_v43 = vadd.f32 %v7305_v37, %v3789_v45 }
 0x1ca   :  { %v2075_v41 = vadd.f32 %v1884_v34, %v1591_v63  ;;  %v907_v5 = vadd.f32 %v764_v2, %v422_v49  ;;  %v1963_v10 = vrot.slane %v1718_v33, 1  ;;  %v1249_v38 = vsel %vm1114_vm2, %v1246_v32, %v1248_v27 }
 0x1cb   :  { %v2447_v44 = vrot.slane %v2202_v39, 2  ;;  %v3162_v30 = vrot.slane %v2917_v40, 1  ;;  %v3401_v61 = vmul.f32 %v5031_v47, %v2685_v59  ;;  %v3924_v8 = vmax.f32 %v3860_v43, 0.0 }
 0x1cc   :  { %v2559_v28 = vadd.f32 %v2368_v55, %v2075_v41  ;;  %v1392_v22 = vadd.f32 %v1249_v38, %v907_v5  ;;  %v1964_v9 = vsel %vm629_vm1, %v1961_v52, %v1963_v10  ;;  %v8737_v54 = vrot.slane %v7385_v15, 2  ;;  %v7532_v41 = vld [vmem:[#allocation2 + $0x138] sm:$0xff]  ;;  %v7537_v38 = vld [vmem:[#allocation2 + $0x140] sm:$0xff] }
 0x1cd   :  { %v8738_v31 = vrot.slane %v7402_v13, 1  ;;  %v3646_v32 = vrot.slane %v3401_v61, 2  ;;  %v391_v57 = vmul.f32 %v7087_v1, %v4957_v19  ;;  %4682 = vmatprep.mubr.f32.mxu1 %v3924_v8  ;;  %v470_v46 = vmul.f32 %v7087_v1, %v4959_v20 }
 0x1ce   :  { %v2448_v34 = vsel %vm1114_vm2, %v8737_v54, %v2447_v44  ;;  %v2790_v26 = vadd.f32 %v2726_v24, %v2559_v28  ;;  %v1623_v3 = vadd.f32 %v1559_v7, %v1392_v22  ;;  %v7497_v52 = vmul.f32 %v7092_v56, %v4959_v20 }
 0x1cf   :  { %v3163_v60 = vsel %vm629_vm1, %v8738_v31, %v3162_v30  ;;  %v8739_v15 = vrot.slane %v7414_v51, 2  ;;  %v955_v49 = vmul.f32 %v7087_v1, %v4962_v21  ;;  %v7506_v50 = vmul.f32 %v7092_v56, %v4962_v21 }
 0x1d0   :  { %v1528_v24 = vmul.f32 %v7312_v48, %v4967_v23  ;;  %v3274_v62 = vadd.f32 %v3083_v17, %v2790_v26  ;;  %v2107_v6 = vadd.f32 %v1964_v9, %v1623_v3  ;;  %v685_v16 = vrot.slane %v470_v46, 1 }
 0x1d1   :  { %v3647_v13 = vsel %vm1114_vm2, %v8739_v15, %v3646_v32  ;;  %v686_v55 = vrot.slane %v7497_v52, 1  ;;  %v1170_v59 = vrot.slane %v955_v49, 2  ;;  %v1171_v51 = vrot.slane %v7506_v50, 2  ;;  %v1489_v50 = vld [vmem:[#allocation2 + $0x2e0] sm:$0x3] }
 0x1d2   :  { %v1671_v4 = vmul.f32 %v7312_v48, %v4980_v29  ;;  %v7516_v1 = vmul.f32 %v7317_v25, %v4980_v29  ;;  %v3758_v0 = vadd.f32 %v3567_v18, %v3274_v62  ;;  %v2591_v7 = vadd.f32 %v2448_v34, %v2107_v6 }
 0x1d3   :  { %v687_v17 = vsel %vm629_vm1, %v685_v16, %v686_v55  ;;  %v2155_v45 = vmul.f32 %v7312_v48, %v4995_v35  ;;  %v1172_v33 = vsel %vm1114_vm2, %v1170_v59, %v1171_v51  ;;  %v7530_v18 = vmul.f32 %v7317_v25, %v4995_v35 }
 0x1d4   :  { %v876_v63 = vadd.f32 %v687_v17, %v391_v57  ;;  %v1885_v39 = vrot.slane %v1671_v4, 1  ;;  %v1886_v2 = vrot.slane %v7516_v1, 1  ;;  %v3829_v27 = vadd.f32 %v7305_v37, %v3758_v0  ;;  %v2688_v1 = vld [vmem:[#allocation2 + $0x2f8] sm:$0x3] }
 0x1d5   :  { %v2822_v40 = vadd.f32 %v2758_v11, %v2591_v7  ;;  %v2369_v43 = vrot.slane %v2155_v45, 2  ;;  %v2727_v44 = vmul.f32 %v4997_v36, %v7532_v41  ;;  %v2870_v11 = vmul.f32 %v5013_v42, %v7532_v41 }
 0x1d6   :  { %v1361_v5 = vadd.f32 %v1172_v33, %v876_v63  ;;  %v1887_v10 = vsel %vm629_vm1, %v1885_v39, %v1886_v2  ;;  %v3893_v30 = vmax.f32 %v3829_v27, 0.0  ;;  %v2370_v8 = vrot.slane %v7530_v18, 2  ;;  %v7590_v27 = vld [vmem:[#allocation2 + $0x2e8] sm:$0xff] }
 0x1d7   :  { %v3306_v61 = vadd.f32 %v3163_v60, %v2822_v40  ;;  %v7546_v28 = vmul.f32 %v5013_v42, %v7537_v38  ;;  %v3084_v9 = vrot.slane %v2870_v11, 1  ;;  %v3354_v54 = vmul.f32 %v5031_v47, %v7532_v41 }
 0x1d8   :  { %v1592_v22 = vadd.f32 %v1528_v24, %v1361_v5  ;;  %v7552_v34 = vmul.f32 %v5031_v47, %v7537_v38  ;;  %4635 = vmatmul.mubr.f32.gmra.mxu0 %v3893_v30  ;;  %v2371_v60 = vsel %vm1114_vm2, %v2369_v43, %v2370_v8  ;;  %v423_v57 = vmul.f32 %v7153_v58, %v4957_v19 }
 0x1d9   :  { %v3790_v31 = vadd.f32 %v3647_v13, %v3306_v61  ;;  %v3085_v32 = vrot.slane %v7546_v28, 1  ;;  %v3568_v3 = vrot.slane %v3354_v54, 2  ;;  %v518_v15 = vmul.f32 %v7153_v58, %v4959_v20 }
 0x1da   :  { %v2076_v26 = vadd.f32 %v1887_v10, %v1592_v22  ;;  %v3569_v46 = vrot.slane %v7552_v34, 2  ;;  %v7569_v24 = vmul.f32 %v7171_v14, %v4959_v20  ;;  %v1003_v62 = vmul.f32 %v7153_v58, %v4962_v21 }
 0x1db   :  { %v3861_v49 = vadd.f32 %v7305_v37, %v3790_v31  ;;  %v3086_v13 = vsel %vm629_vm1, %v3084_v9, %v3085_v32  ;;  %v765_v59 = vrot.slane %v518_v15, 1  ;;  %v7578_v4 = vmul.f32 %v7171_v14, %v4962_v21  ;;  %v7608_v31 = vld [vmem:[#allocation2 + $0x2f0] sm:$0xff] }
 0x1dc   :  { %v2560_v6 = vadd.f32 %v2371_v60, %v2076_v26  ;;  %v3570_v16 = vsel %vm1114_vm2, %v3568_v3, %v3569_v46  ;;  %v766_v7 = vrot.slane %v7569_v24, 1  ;;  %v1250_v17 = vrot.slane %v1003_v62, 2 }
 0x1dd   :  { %v3925_v0 = vmax.f32 %v3861_v49, 0.0  ;;  %v1560_v45 = vmul.f32 %v7370_v12, %v4967_v23  ;;  %v1251_v58 = vrot.slane %v7578_v4, 2  ;;  %v1719_v33 = vmul.f32 %v7370_v12, %v4980_v29  ;;  %v304_v49 = vld [vmem:[#allocation2 + $0x118] sm:$0x3] }
 0x1de   :  { %v2791_v63 = vadd.f32 %v2727_v44, %v2560_v6  ;;  %v7588_v39 = vmul.f32 %v7396_v53, %v4980_v29  ;;  %v767_v40 = vsel %vm629_vm1, %v765_v59, %v766_v7  ;;  %v2203_v43 = vmul.f32 %v7370_v12, %v4995_v35 }
 0x1df   :  { %4683 = vmatmul.mubr.f32.gmra.mxu1 %v3925_v0  ;;  %v7599_v5 = vmul.f32 %v7396_v53, %v4995_v35  ;;  %v2759_v10 = vmul.f32 %v4997_v36, %v7590_v27  ;;  %v908_v11 = vadd.f32 %v767_v40, %v423_v57  ;;  %v1252_v30 = vsel %vm1114_vm2, %v1250_v17, %v1251_v58 }
 0x1e0   :  { %v3275_v44 = vadd.f32 %v3086_v13, %v2791_v63  ;;  %v1965_v61 = vrot.slane %v1719_v33, 1  ;;  %v1966_v22 = vrot.slane %v7588_v39, 1  ;;  %v2449_v9 = vrot.slane %v2203_v43, 2  ;;  %v1441_v33 = vld [vmem:[#allocation2 + $0x130] sm:$0x3] }
 0x1e1   :  { %v8687_v54 = vrot.slane %v7599_v5, 2  ;;  %v2918_v60 = vmul.f32 %v5013_v42, %v7590_v27  ;;  %v1393_v3 = vadd.f32 %v1252_v30, %v908_v11  ;;  %v7614_v57 = vmul.f32 %v5013_v42, %v7608_v31  ;;  %v2640_v30 = vld [vmem:[#allocation2 + $0x148] sm:$0x3] }
 0x1e2   :  { %v3759_v26 = vadd.f32 %v3570_v16, %v3275_v44  ;;  %v3402_v15 = vmul.f32 %v5031_v47, %v7590_v27  ;;  %v1967_v13 = vsel %vm629_vm1, %v1965_v61, %v1966_v22  ;;  %v7626_v16 = vmul.f32 %v5031_v47, %v7608_v31 }
 0x1e3   :  { %v2451_v62 = vsel %vm1114_vm2, %v2449_v9, %v8687_v54  ;;  %v3164_v6 = vrot.slane %v2918_v60, 1  ;;  %v1624_v0 = vadd.f32 %v1560_v45, %v1393_v3  ;;  %v8685_v17 = vrot.slane %v7614_v57, 1 }
 0x1e4   :  { %v3830_v59 = vadd.f32 %v7305_v37, %v3759_v26  ;;  %v3648_v63 = vrot.slane %v3402_v15, 2  ;;  %v8686_v40 = vrot.slane %v7626_v16, 2  ;;  %v392_v43 = vmul.f32 %v7092_v56, %v4957_v19 }
 0x1e5   :  { %v472_v44 = vmul.f32 %v4959_v20, %v304_v49  ;;  %v957_v11 = vmul.f32 %v4962_v21, %v304_v49  ;;  %v2108_v9 = vadd.f32 %v1967_v13, %v1624_v0  ;;  %v3166_v45 = vsel %vm629_vm1, %v3164_v6, %v8685_v17  ;;  %v352_v0 = vld [vmem:[#allocation2 + $0x2c8] sm:$0x3] }
 0x1e6   :  { %v3894_v61 = vmax.f32 %v3830_v59, 0.0  ;;  %v1529_v60 = vmul.f32 %v7317_v25, %v4967_v23  ;;  %v3650_v26 = vsel %vm1114_vm2, %v3648_v63, %v8686_v40  ;;  %v1673_v15 = vmul.f32 %v4980_v29, %v1441_v33 }
 0x1e7   :  { %v688_v3 = vrot.slane %v472_v44, 1  ;;  %v1173_v56 = vrot.slane %v957_v11, 2  ;;  %v2592_v49 = vadd.f32 %v2451_v62, %v2108_v9  ;;  %v2157_v59 = vmul.f32 %v4995_v35, %v1441_v33 }
 0x1e8   :  { %4637 = vmatprep.mubr.f32.mxu0 %v3894_v61  ;;  %v2728_v13 = vmul.f32 %v4997_v36, %v7537_v38  ;;  %v2872_v6 = vmul.f32 %v5013_v42, %v2640_v30  ;;  %v1888_v44 = vrot.slane %v1673_v15, 1  ;;  %v3356_v11 = vmul.f32 %v5031_v47, %v2640_v30 }
 0x1e9   :  { %v689_v17 = vsel %vm629_vm1, %v686_v55, %v688_v3  ;;  %v1174_v63 = vsel %vm1114_vm2, %v1171_v51, %v1173_v56  ;;  %v2823_v62 = vadd.f32 %v2759_v10, %v2592_v49  ;;  %v2372_v33 = vrot.slane %v2157_v59, 2 }
 0x1ea   :  { %v877_v61 = vadd.f32 %v689_v17, %v392_v43  ;;  %v3087_v9 = vrot.slane %v2872_v6, 1  ;;  %v1889_v40 = vsel %vm629_vm1, %v1886_v2, %v1888_v44  ;;  %v3571_v54 = vrot.slane %v3356_v11, 2 }
 0x1eb   :  { %v424_v52 = vmul.f32 %v7171_v14, %v4957_v19  ;;  %v520_v55 = vmul.f32 %v4959_v20, %v352_v0  ;;  %v3307_v3 = vadd.f32 %v3166_v45, %v2823_v62  ;;  %v2373_v10 = vsel %vm1114_vm2, %v2370_v8, %v2372_v33 }
 0x1ec   :  { %v1362_v51 = vadd.f32 %v1174_v63, %v877_v61  ;;  %v3088_v17 = vsel %vm629_vm1, %v3085_v32, %v3087_v9  ;;  %v3572_v2 = vsel %vm1114_vm2, %v3569_v46, %v3571_v54  ;;  %v1005_v14 = vmul.f32 %v4962_v21, %v352_v0 }
 0x1ed   :  { %v768_v43 = vrot.slane %v520_v55, 1  ;;  %v1561_v30 = vmul.f32 %v7396_v53, %v4967_v23  ;;  %v3791_v45 = vadd.f32 %v3650_v26, %v3307_v3  ;;  %v1721_v18 = vmul.f32 %v4980_v29, %v1489_v50 }
 0x1ee   :  { %v1593_v56 = vadd.f32 %v1529_v60, %v1362_v51  ;;  %v2205_v8 = vmul.f32 %v4995_v35, %v1489_v50  ;;  %v1253_v32 = vrot.slane %v1005_v14, 2  ;;  %v2760_v34 = vmul.f32 %v4997_v36, %v7608_v31 }
 0x1ef   :  { %v769_v28 = vsel %vm629_vm1, %v766_v7, %v768_v43  ;;  %v2920_v46 = vmul.f32 %v5013_v42, %v2688_v1  ;;  %v3862_v54 = vadd.f32 %v7305_v37, %v3791_v45  ;;  %v1968_v26 = vrot.slane %v1721_v18, 1 }
 0x1f0   :  { %v2077_v15 = vadd.f32 %v1889_v40, %v1593_v56  ;;  %v909_v49 = vadd.f32 %v769_v28, %v424_v52  ;;  %v1254_v60 = vsel %vm1114_vm2, %v1251_v58, %v1253_v32  ;;  %v2452_v59 = vrot.slane %v2205_v8, 2 }
 0x1f1   :  { %v3167_v6 = vrot.slane %v2920_v46, 1  ;;  %v3404_v24 = vmul.f32 %v5031_v47, %v2688_v1  ;;  %v3926_v7 = vmax.f32 %v3862_v54, 0.0  ;;  %v1969_v44 = vsel %vm629_vm1, %v1966_v22, %v1968_v26 }
 0x1f2   :  { %v2561_v0 = vadd.f32 %v2373_v10, %v2077_v15  ;;  %v1394_v63 = vadd.f32 %v1254_v60, %v909_v49  ;;  %v8740_v11 = vrot.slane %v7599_v5, 2  ;;  %v8741_v62 = vrot.slane %v7614_v57, 1  ;;  %v7736_v15 = vld [vmem:[#allocation2 + $0x150] sm:$0xff]  ;;  %v7741_v60 = vld [vmem:[#allocation2 + $0x158] sm:$0xff] }
 0x1f3   :  { %v3651_v58 = vrot.slane %v3404_v24, 2  ;;  %v393_v61 = vmul.f32 %v7312_v48, %v4957_v19  ;;  %4685 = vmatprep.mubr.f32.mxu1 %v3926_v7  ;;  %v473_v39 = vmul.f32 %v7312_v48, %v4959_v20  ;;  %v7701_v22 = vmul.f32 %v7317_v25, %v4959_v20 }
 0x1f4   :  { %v2453_v40 = vsel %vm1114_vm2, %v8740_v11, %v2452_v59  ;;  %v3168_v4 = vsel %vm629_vm1, %v8741_v62, %v3167_v6  ;;  %v2792_v33 = vadd.f32 %v2728_v13, %v2561_v0  ;;  %v1625_v9 = vadd.f32 %v1561_v30, %v1394_v63 }
 0x1f5   :  { %v8742_v5 = vrot.slane %v7626_v16, 2  ;;  %v958_v52 = vmul.f32 %v7312_v48, %v4962_v21  ;;  %v7710_v55 = vmul.f32 %v7317_v25, %v4962_v21  ;;  %v1530_v13 = vmul.f32 %v7532_v41, %v4967_v23 }
 0x1f6   :  { %v3276_v50 = vadd.f32 %v3088_v17, %v2792_v33  ;;  %v2109_v3 = vadd.f32 %v1969_v44, %v1625_v9  ;;  %v690_v51 = vrot.slane %v473_v39, 1  ;;  %v691_v10 = vrot.slane %v7701_v22, 1 }
 0x1f7   :  { %v3652_v57 = vsel %vm1114_vm2, %v8742_v5, %v3651_v58  ;;  %v1175_v1 = vrot.slane %v958_v52, 2  ;;  %v1176_v16 = vrot.slane %v7710_v55, 2  ;;  %v1674_v43 = vmul.f32 %v7532_v41, %v4980_v29  ;;  %v1492_v55 = vld [vmem:[#allocation2 + $0x2f8] sm:$0x3] }
 0x1f8   :  { %v7720_v48 = vmul.f32 %v7537_v38, %v4980_v29  ;;  %v3760_v14 = vadd.f32 %v3572_v2, %v3276_v50  ;;  %v2593_v30 = vadd.f32 %v2453_v40, %v2109_v3  ;;  %v692_v17 = vsel %vm629_vm1, %v690_v51, %v691_v10 }
 0x1f9   :  { %v2158_v45 = vmul.f32 %v7532_v41, %v4995_v35  ;;  %v878_v56 = vadd.f32 %v692_v17, %v393_v61  ;;  %v1177_v18 = vsel %vm1114_vm2, %v1175_v1, %v1176_v16  ;;  %v1890_v8 = vrot.slane %v1674_v43, 1 }
 0x1fa   :  { %v1891_v28 = vrot.slane %v7720_v48, 1  ;;  %v3831_v32 = vadd.f32 %v7305_v37, %v3760_v14  ;;  %v2824_v46 = vadd.f32 %v2760_v34, %v2593_v30  ;;  %v7734_v2 = vmul.f32 %v7537_v38, %v4995_v35  ;;  %v2691_v48 = vld [vmem:[#allocation2 + $0x310] sm:$0x3] }
 0x1fb   :  { %v2374_v54 = vrot.slane %v2158_v45, 2  ;;  %v1363_v49 = vadd.f32 %v1177_v18, %v878_v56  ;;  %v2729_v59 = vmul.f32 %v4997_v36, %v7736_v15  ;;  %v2873_v34 = vmul.f32 %v5013_v42, %v7736_v15 }
 0x1fc   :  { %v1892_v26 = vsel %vm629_vm1, %v1890_v8, %v1891_v28  ;;  %v3895_v6 = vmax.f32 %v3831_v32, 0.0  ;;  %v3308_v24 = vadd.f32 %v3168_v4, %v2824_v46  ;;  %v2375_v7 = vrot.slane %v7734_v2, 2  ;;  %v7794_v32 = vld [vmem:[#allocation2 + $0x300] sm:$0xff] }
 0x1fd   :  { %v7750_v0 = vmul.f32 %v5013_v42, %v7741_v60  ;;  %v1594_v63 = vadd.f32 %v1530_v13, %v1363_v49  ;;  %v3089_v44 = vrot.slane %v2873_v34, 1  ;;  %v3357_v11 = vmul.f32 %v5031_v47, %v7736_v15 }
 0x1fe   :  { %v7756_v40 = vmul.f32 %v5031_v47, %v7741_v60  ;;  %4638 = vmatmul.mubr.f32.gmra.mxu0 %v3895_v6  ;;  %v3792_v62 = vadd.f32 %v3652_v57, %v3308_v24  ;;  %v2376_v4 = vsel %vm1114_vm2, %v2374_v54, %v2375_v7  ;;  %v425_v61 = vmul.f32 %v7370_v12, %v4957_v19 }
 0x1ff   :  { %v3090_v58 = vrot.slane %v7750_v0, 1  ;;  %v2078_v33 = vadd.f32 %v1892_v26, %v1594_v63  ;;  %v3573_v9 = vrot.slane %v3357_v11, 2  ;;  %v521_v5 = vmul.f32 %v7370_v12, %v4959_v20 }
 0x200   :  { %v3574_v39 = vrot.slane %v7756_v40, 2  ;;  %v3863_v52 = vadd.f32 %v7305_v37, %v3792_v62  ;;  %v7773_v13 = vmul.f32 %v7396_v53, %v4959_v20  ;;  %v1006_v50 = vmul.f32 %v7370_v12, %v4962_v21  ;;  %v7812_v62 = vld [vmem:[#allocation2 + $0x308] sm:$0xff] }
 0x201   :  { %v3091_v57 = vsel %vm629_vm1, %v3089_v44, %v3090_v58  ;;  %v2562_v3 = vadd.f32 %v2376_v4, %v2078_v33  ;;  %v770_v1 = vrot.slane %v521_v5, 1  ;;  %v7782_v43 = vmul.f32 %v7396_v53, %v4962_v21 }
 0x202   :  { %v3575_v51 = vsel %vm1114_vm2, %v3573_v9, %v3574_v39  ;;  %v3927_v14 = vmax.f32 %v3863_v52, 0.0  ;;  %v771_v30 = vrot.slane %v7773_v13, 1  ;;  %v1255_v17 = vrot.slane %v1006_v50, 2  ;;  %v307_v52 = vld [vmem:[#allocation2 + $0x130] sm:$0x3] }
 0x203   :  { %v1562_v45 = vmul.f32 %v7590_v27, %v4967_v23  ;;  %v2793_v56 = vadd.f32 %v2729_v59, %v2562_v3  ;;  %v1256_v12 = vrot.slane %v7782_v43, 2  ;;  %v1722_v18 = vmul.f32 %v7590_v27, %v4980_v29 }
 0x204   :  { %v7792_v8 = vmul.f32 %v7608_v31, %v4980_v29  ;;  %4686 = vmatmul.mubr.f32.gmra.mxu1 %v3927_v14  ;;  %v772_v46 = vsel %vm629_vm1, %v770_v1, %v771_v30  ;;  %v2206_v54 = vmul.f32 %v7590_v27, %v4995_v35  ;;  %v7803_v49 = vmul.f32 %v7608_v31, %v4995_v35 }
 0x205   :  { %v2761_v26 = vmul.f32 %v4997_v36, %v7794_v32  ;;  %v3277_v59 = vadd.f32 %v3091_v57, %v2793_v56  ;;  %v910_v34 = vadd.f32 %v772_v46, %v425_v61  ;;  %v1257_v6 = vsel %vm1114_vm2, %v1255_v17, %v1256_v12 }
 0x206   :  { %v1970_v24 = vrot.slane %v1722_v18, 1  ;;  %v1971_v63 = vrot.slane %v7792_v8, 1  ;;  %v2454_v44 = vrot.slane %v2206_v54, 2  ;;  %v8690_v11 = vrot.slane %v7803_v49, 2  ;;  %v1444_v18 = vld [vmem:[#allocation2 + $0x148] sm:$0x3] }
 0x207   :  { %v2921_v4 = vmul.f32 %v5013_v42, %v7794_v32  ;;  %v3761_v33 = vadd.f32 %v3575_v51, %v3277_v59  ;;  %v1395_v9 = vadd.f32 %v1257_v6, %v910_v34  ;;  %v7818_v61 = vmul.f32 %v5013_v42, %v7812_v62  ;;  %v2643_v6 = vld [vmem:[#allocation2 + $0x160] sm:$0x3] }
 0x208   :  { %v3405_v5 = vmul.f32 %v5031_v47, %v7794_v32  ;;  %v1972_v57 = vsel %vm629_vm1, %v1970_v24, %v1971_v63  ;;  %v2456_v50 = vsel %vm1114_vm2, %v2454_v44, %v8690_v11  ;;  %v7830_v51 = vmul.f32 %v5031_v47, %v7812_v62 }
 0x209   :  { %v3169_v3 = vrot.slane %v2921_v4, 1  ;;  %v3832_v1 = vadd.f32 %v7305_v37, %v3761_v33  ;;  %v1626_v14 = vadd.f32 %v1562_v45, %v1395_v9  ;;  %v8688_v17 = vrot.slane %v7818_v61, 1 }
 0x20a   :  { %v3653_v56 = vrot.slane %v3405_v5, 2  ;;  %v8689_v46 = vrot.slane %v7830_v51, 2  ;;  %v394_v54 = vmul.f32 %v7317_v25, %v4957_v19  ;;  %v475_v59 = vmul.f32 %v4959_v20, %v307_v52 }
 0x20b   :  { %v960_v34 = vmul.f32 %v4962_v21, %v307_v52  ;;  %v3896_v24 = vmax.f32 %v3832_v1, 0.0  ;;  %v2110_v44 = vadd.f32 %v1972_v57, %v1626_v14  ;;  %v3171_v45 = vsel %vm629_vm1, %v3169_v3, %v8688_v17  ;;  %v355_v14 = vld [vmem:[#allocation2 + $0x2e0] sm:$0x3] }
 0x20c   :  { %v1531_v4 = vmul.f32 %v7537_v38, %v4967_v23  ;;  %v3655_v33 = vsel %vm1114_vm2, %v3653_v56, %v8689_v46  ;;  %v693_v9 = vrot.slane %v475_v59, 1  ;;  %v1676_v5 = vmul.f32 %v4980_v29, %v1444_v18 }
 0x20d   :  { %v1178_v25 = vrot.slane %v960_v34, 2  ;;  %4640 = vmatprep.mubr.f32.mxu0 %v3896_v24  ;;  %v2594_v52 = vadd.f32 %v2456_v50, %v2110_v44  ;;  %v2160_v1 = vmul.f32 %v4995_v35, %v1444_v18  ;;  %v2730_v57 = vmul.f32 %v4997_v36, %v7741_v60 }
 0x20e   :  { %v2875_v3 = vmul.f32 %v5013_v42, %v2643_v6  ;;  %v694_v17 = vsel %vm629_vm1, %v691_v10, %v693_v9  ;;  %v1893_v59 = vrot.slane %v1676_v5, 1  ;;  %v3359_v34 = vmul.f32 %v5031_v47, %v2643_v6 }
 0x20f   :  { %v1179_v56 = vsel %vm1114_vm2, %v1176_v16, %v1178_v25  ;;  %v2825_v50 = vadd.f32 %v2761_v26, %v2594_v52  ;;  %v879_v24 = vadd.f32 %v694_v17, %v394_v54  ;;  %v2377_v18 = vrot.slane %v2160_v1, 2 }
 0x210   :  { %v3092_v44 = vrot.slane %v2875_v3, 1  ;;  %v1894_v46 = vsel %vm629_vm1, %v1891_v28, %v1893_v59  ;;  %v3576_v11 = vrot.slane %v3359_v34, 2  ;;  %v426_v22 = vmul.f32 %v7396_v53, %v4957_v19 }
 0x211   :  { %v523_v10 = vmul.f32 %v4959_v20, %v355_v14  ;;  %v3309_v9 = vadd.f32 %v3171_v45, %v2825_v50  ;;  %v1364_v16 = vadd.f32 %v1179_v56, %v879_v24  ;;  %v2378_v26 = vsel %vm1114_vm2, %v2375_v7, %v2377_v18 }
 0x212   :  { %v3093_v17 = vsel %vm629_vm1, %v3090_v58, %v3092_v44  ;;  %v3577_v28 = vsel %vm1114_vm2, %v3574_v39, %v3576_v11  ;;  %v1008_v53 = vmul.f32 %v4962_v21, %v355_v14  ;;  %v1563_v6 = vmul.f32 %v7608_v31, %v4967_v23 }
 0x213   :  { %v773_v54 = vrot.slane %v523_v10, 1  ;;  %v3793_v45 = vadd.f32 %v3655_v33, %v3309_v9  ;;  %v1595_v25 = vadd.f32 %v1531_v4, %v1364_v16  ;;  %v1724_v2 = vmul.f32 %v4980_v29, %v1492_v55 }
 0x214   :  { %v2208_v7 = vmul.f32 %v4995_v35, %v1492_v55  ;;  %v1258_v58 = vrot.slane %v1008_v53, 2  ;;  %v2762_v40 = vmul.f32 %v4997_v36, %v7812_v62  ;;  %v2923_v39 = vmul.f32 %v5013_v42, %v2691_v48 }
 0x215   :  { %v774_v0 = vsel %vm629_vm1, %v771_v30, %v773_v54  ;;  %v3864_v11 = vadd.f32 %v7305_v37, %v3793_v45  ;;  %v2079_v5 = vadd.f32 %v1894_v46, %v1595_v25  ;;  %v1973_v33 = vrot.slane %v1724_v2, 1 }
 0x216   :  { %v911_v52 = vadd.f32 %v774_v0, %v426_v22  ;;  %v1259_v4 = vsel %vm1114_vm2, %v1256_v12, %v1258_v58  ;;  %v2457_v1 = vrot.slane %v2208_v7, 2  ;;  %v3172_v3 = vrot.slane %v2923_v39, 1 }
 0x217   :  { %v3407_v13 = vmul.f32 %v5031_v47, %v2691_v48  ;;  %v3928_v30 = vmax.f32 %v3864_v11, 0.0  ;;  %v2563_v14 = vadd.f32 %v2378_v26, %v2079_v5  ;;  %v1974_v59 = vsel %vm629_vm1, %v1971_v63, %v1973_v33  ;;  %v7940_v5 = vld [vmem:[#allocation2 + $0x168] sm:$0xff] }
 0x218   :  { %v1396_v56 = vadd.f32 %v1259_v4, %v911_v52  ;;  %v8743_v34 = vrot.slane %v7803_v49, 2  ;;  %v8744_v50 = vrot.slane %v7818_v61, 1  ;;  %v395_v24 = vmul.f32 %v7532_v41, %v4957_v19  ;;  %v7945_v4 = vld [vmem:[#allocation2 + $0x170] sm:$0xff] }
 0x219   :  { %v3656_v12 = vrot.slane %v3407_v13, 2  ;;  %4688 = vmatprep.mubr.f32.mxu1 %v3928_v30  ;;  %v2794_v18 = vadd.f32 %v2730_v57, %v2563_v14  ;;  %v476_v8 = vmul.f32 %v7532_v41, %v4959_v20  ;;  %v7905_v63 = vmul.f32 %v7537_v38, %v4959_v20 }
 0x21a   :  { %v2458_v46 = vsel %vm1114_vm2, %v8743_v34, %v2457_v1  ;;  %v3173_v43 = vsel %vm629_vm1, %v8744_v50, %v3172_v3  ;;  %v1627_v44 = vadd.f32 %v1563_v6, %v1396_v56  ;;  %v8745_v49 = vrot.slane %v7830_v51, 2 }
 0x21b   :  { %v961_v22 = vmul.f32 %v7532_v41, %v4962_v21  ;;  %v7914_v10 = vmul.f32 %v7537_v38, %v4962_v21  ;;  %v1532_v57 = vmul.f32 %v7736_v15, %v4967_v23  ;;  %v3278_v55 = vadd.f32 %v3093_v17, %v2794_v18 }
 0x21c   :  { %v3657_v61 = vsel %vm1114_vm2, %v8745_v49, %v3656_v12  ;;  %v2111_v9 = vadd.f32 %v1974_v59, %v1627_v44  ;;  %v695_v16 = vrot.slane %v476_v8, 1  ;;  %v696_v26 = vrot.slane %v7905_v63, 1  ;;  %v7974_v49 = vld [vmem:[%s8652_s2] ss:$0 sm:$0xff] }
 0x21d   :  { %v1180_v48 = vrot.slane %v961_v22, 2  ;;  %v1181_v51 = vrot.slane %v7914_v10, 2  ;;  %v1677_v54 = vmul.f32 %v7736_v15, %v4980_v29  ;;  %v7924_v41 = vmul.f32 %v7741_v60, %v4980_v29  ;;  %v1495_v10 = vld [vmem:[#allocation2 + $0x310] sm:$0x3] }
 0x21e   :  { %v3762_v53 = vadd.f32 %v3577_v28, %v3278_v55  ;;  %v2595_v6 = vadd.f32 %v2458_v46, %v2111_v9  ;;  %v697_v17 = vsel %vm629_vm1, %v695_v16, %v696_v26  ;;  %v2161_v45 = vmul.f32 %v7736_v15, %v4995_v35 }
 0x21f   :  { %v880_v25 = vadd.f32 %v697_v17, %v395_v24  ;;  %v1182_v2 = vsel %vm1114_vm2, %v1180_v48, %v1181_v51  ;;  %v1895_v7 = vrot.slane %v1677_v54, 1  ;;  %v1896_v0 = vrot.slane %v7924_v41, 1  ;;  %v2694_v41 = vld [vmem:[#allocation2 + $0x328] sm:$0x3] }
 0x220   :  { %v3833_v58 = vadd.f32 %v7305_v37, %v3762_v53  ;;  %v2826_v39 = vadd.f32 %v2762_v40, %v2595_v6  ;;  %v7938_v28 = vmul.f32 %v7741_v60, %v4995_v35  ;;  %v2379_v11 = vrot.slane %v2161_v45, 2 }
 0x221   :  { %v1365_v52 = vadd.f32 %v1182_v2, %v880_v25  ;;  %v1897_v33 = vsel %vm629_vm1, %v1895_v7, %v1896_v0  ;;  %v2731_v1 = vmul.f32 %v4997_v36, %v7940_v5  ;;  %v2876_v37 = vmul.f32 %v5013_v42, %v7940_v5 }
 0x222   :  { %v3897_v40 = vmax.f32 %v3833_v58, 0.0  ;;  %v3310_v3 = vadd.f32 %v3173_v43, %v2826_v39  ;;  %v2380_v13 = vrot.slane %v7938_v28, 2  ;;  %v7954_v30 = vmul.f32 %v5013_v42, %v7945_v4  ;;  %v8003_v58 = vld [vmem:[#allocation2 + $0x318] sm:$0xff] }
 0x223   :  { %v1596_v14 = vadd.f32 %v1532_v57, %v1365_v52  ;;  %v3094_v56 = vrot.slane %v2876_v37, 1  ;;  %v3360_v59 = vmul.f32 %v5031_v47, %v7940_v5  ;;  %v7960_v34 = vmul.f32 %v5031_v47, %v7945_v4 }
 0x224   :  { %4641 = vmatmul.mubr.f32.gmra.mxu0 %v3897_v40  ;;  %v3794_v46 = vadd.f32 %v3657_v61, %v3310_v3  ;;  %v2381_v50 = vsel %vm1114_vm2, %v2379_v11, %v2380_v13  ;;  %v3095_v43 = vrot.slane %v7954_v30, 1  ;;  %v427_v12 = vmul.f32 %v7590_v27, %v4957_v19 }
 0x225   :  { %v2080_v24 = vadd.f32 %v1897_v33, %v1596_v14  ;;  %v3578_v18 = vrot.slane %v3360_v59, 2  ;;  %v3579_v44 = vrot.slane %v7960_v34, 2  ;;  %v524_v8 = vmul.f32 %v7590_v27, %v4959_v20 }
 0x226   :  { %v3865_v61 = vadd.f32 %v7974_v49, %v3794_v46  ;;  %v3096_v22 = vsel %vm629_vm1, %v3094_v56, %v3095_v43  ;;  %v7982_v57 = vmul.f32 %v7608_v31, %v4959_v20  ;;  %v1009_v55 = vmul.f32 %v7590_v27, %v4962_v21  ;;  %v8021_v46 = vld [vmem:[#allocation2 + $0x320] sm:$0xff] }
 0x227   :  { %v2564_v9 = vadd.f32 %v2381_v50, %v2080_v24  ;;  %v3580_v16 = vsel %vm1114_vm2, %v3578_v18, %v3579_v44  ;;  %v775_v48 = vrot.slane %v524_v8, 1  ;;  %v7991_v54 = vmul.f32 %v7608_v31, %v4962_v21 }
 0x228   :  { %v3929_v53 = vmax.f32 %v3865_v61, 0.0  ;;  %v776_v6 = vrot.slane %v7982_v57, 1  ;;  %v1260_v17 = vrot.slane %v1009_v55, 2  ;;  %v1564_v45 = vmul.f32 %v7794_v32, %v4967_v23  ;;  %v310_v61 = vld [vmem:[#allocation2 + $0x148] sm:$0x3] }
 0x229   :  { %v2795_v25 = vadd.f32 %v2731_v1, %v2564_v9  ;;  %v1261_v27 = vrot.slane %v7991_v54, 2  ;;  %v1725_v2 = vmul.f32 %v7794_v32, %v4980_v29  ;;  %v8001_v7 = vmul.f32 %v7812_v62, %v4980_v29 }
 0x22a   :  { %4689 = vmatmul.mubr.f32.gmra.mxu1 %v3929_v53  ;;  %v777_v39 = vsel %vm629_vm1, %v775_v48, %v776_v6  ;;  %v2209_v11 = vmul.f32 %v7794_v32, %v4995_v35  ;;  %v8012_v52 = vmul.f32 %v7812_v62, %v4995_v35  ;;  %v2763_v33 = vmul.f32 %v4997_v36, %v8003_v58 }
 0x22b   :  { %v3279_v1 = vadd.f32 %v3096_v22, %v2795_v25  ;;  %v912_v37 = vadd.f32 %v777_v39, %v427_v12  ;;  %v1262_v40 = vsel %vm1114_vm2, %v1260_v17, %v1261_v27  ;;  %v1975_v3 = vrot.slane %v1725_v2, 1  ;;  %v1447_v2 = vld [vmem:[#allocation2 + $0x160] sm:$0x3] }
 0x22c   :  { %v1976_v14 = vrot.slane %v8001_v7, 1  ;;  %v2459_v56 = vrot.slane %v2209_v11, 2  ;;  %v8693_v59 = vrot.slane %v8012_v52, 2  ;;  %v2924_v50 = vmul.f32 %v5013_v42, %v8003_v58 }
 0x22d   :  { %v3763_v24 = vadd.f32 %v3580_v16, %v3279_v1  ;;  %v1397_v18 = vadd.f32 %v1262_v40, %v912_v37  ;;  %v8027_v12 = vmul.f32 %v5013_v42, %v8021_v46  ;;  %v3408_v8 = vmul.f32 %v5031_v47, %v8003_v58  ;;  %v2646_v40 = vld [vmem:[#allocation2 + $0x178] sm:$0x3] }
 0x22e   :  { %v1977_v22 = vsel %vm629_vm1, %v1975_v3, %v1976_v14  ;;  %v2461_v55 = vsel %vm1114_vm2, %v2459_v56, %v8693_v59  ;;  %v3174_v9 = vrot.slane %v2924_v50, 1  ;;  %v8039_v16 = vmul.f32 %v5031_v47, %v8021_v46 }
 0x22f   :  { %v3834_v48 = vadd.f32 %v7974_v49, %v3763_v24  ;;  %v1628_v53 = vadd.f32 %v1564_v45, %v1397_v18  ;;  %v8691_v17 = vrot.slane %v8027_v12, 1  ;;  %v3658_v25 = vrot.slane %v3408_v8, 2 }
 0x230   :  { %v8692_v39 = vrot.slane %v8039_v16, 2  ;;  %v396_v11 = vmul.f32 %v7537_v38, %v4957_v19  ;;  %v478_v1 = vmul.f32 %v4959_v20, %v310_v61  ;;  %v963_v37 = vmul.f32 %v4962_v21, %v310_v61 }
 0x231   :  { %v3898_v3 = vmax.f32 %v3834_v48, 0.0  ;;  %v2112_v56 = vadd.f32 %v1977_v22, %v1628_v53  ;;  %v3176_v45 = vsel %vm629_vm1, %v3174_v9, %v8691_v17  ;;  %v1533_v50 = vmul.f32 %v7741_v60, %v4967_v23  ;;  %v358_v53 = vld [vmem:[#allocation2 + $0x2f8] sm:$0x3] }
 0x232   :  { %v3660_v24 = vsel %vm1114_vm2, %v3658_v25, %v8692_v39  ;;  %v698_v18 = vrot.slane %v478_v1, 1  ;;  %v1183_v38 = vrot.slane %v963_v37, 2  ;;  %v1679_v8 = vmul.f32 %v4980_v29, %v1447_v2 }
 0x233   :  { %4643 = vmatprep.mubr.f32.mxu0 %v3898_v3  ;;  %v2596_v61 = vadd.f32 %v2461_v55, %v2112_v56  ;;  %v2163_v48 = vmul.f32 %v4995_v35, %v1447_v2  ;;  %v2732_v22 = vmul.f32 %v4997_v36, %v7945_v4  ;;  %v2878_v9 = vmul.f32 %v5013_v42, %v2646_v40 }
 0x234   :  { %v699_v17 = vsel %vm629_vm1, %v696_v26, %v698_v18  ;;  %v1184_v25 = vsel %vm1114_vm2, %v1181_v51, %v1183_v38  ;;  %v1898_v1 = vrot.slane %v1679_v8, 1  ;;  %v3362_v37 = vmul.f32 %v5031_v47, %v2646_v40 }
 0x235   :  { %v2827_v55 = vadd.f32 %v2763_v33, %v2596_v61  ;;  %v881_v3 = vadd.f32 %v699_v17, %v396_v11  ;;  %v2382_v2 = vrot.slane %v2163_v48, 2  ;;  %v3097_v56 = vrot.slane %v2878_v9, 1 }
 0x236   :  { %v1899_v39 = vsel %vm629_vm1, %v1896_v0, %v1898_v1  ;;  %v3581_v59 = vrot.slane %v3362_v37, 2  ;;  %v428_v63 = vmul.f32 %v7608_v31, %v4957_v19  ;;  %v526_v26 = vmul.f32 %v4959_v20, %v358_v53 }
 0x237   :  { %v3311_v18 = vadd.f32 %v3176_v45, %v2827_v55  ;;  %v1366_v51 = vadd.f32 %v1184_v25, %v881_v3  ;;  %v2383_v33 = vsel %vm1114_vm2, %v2380_v13, %v2382_v2  ;;  %v3098_v17 = vsel %vm629_vm1, %v3095_v43, %v3097_v56 }
 0x238   :  { %v3582_v0 = vsel %vm1114_vm2, %v3579_v44, %v3581_v59  ;;  %v778_v11 = vrot.slane %v526_v26, 1  ;;  %v1011_v31 = vmul.f32 %v4962_v21, %v358_v53  ;;  %v1565_v40 = vmul.f32 %v7812_v62, %v4967_v23 }
 0x239   :  { %v3795_v45 = vadd.f32 %v3660_v24, %v3311_v18  ;;  %v1597_v38 = vadd.f32 %v1533_v50, %v1366_v51  ;;  %v1727_v28 = vmul.f32 %v4980_v29, %v1495_v10  ;;  %v2211_v13 = vmul.f32 %v4995_v35, %v1495_v10 }
 0x23a   :  { %v779_v30 = vsel %vm629_vm1, %v776_v6, %v778_v11  ;;  %v1263_v43 = vrot.slane %v1011_v31, 2  ;;  %v2764_v34 = vmul.f32 %v4997_v36, %v8021_v46  ;;  %v2926_v44 = vmul.f32 %v5013_v42, %v2694_v41 }
 0x23b   :  { %v3866_v59 = vadd.f32 %v7974_v49, %v3795_v45  ;;  %v2081_v8 = vadd.f32 %v1899_v39, %v1597_v38  ;;  %v913_v61 = vadd.f32 %v779_v30, %v428_v63  ;;  %v1978_v24 = vrot.slane %v1727_v28, 1 }
 0x23c   :  { %v1264_v50 = vsel %vm1114_vm2, %v1261_v27, %v1263_v43  ;;  %v2462_v48 = vrot.slane %v2211_v13, 2  ;;  %v3177_v9 = vrot.slane %v2926_v44, 1  ;;  %v3410_v57 = vmul.f32 %v5031_v47, %v2694_v41 }
 0x23d   :  { %v3930_v6 = vmax.f32 %v3866_v59, 0.0  ;;  %v2565_v53 = vadd.f32 %v2383_v33, %v2081_v8  ;;  %v1398_v25 = vadd.f32 %v1264_v50, %v913_v61  ;;  %v1979_v1 = vsel %vm629_vm1, %v1976_v14, %v1978_v24  ;;  %v8149_v8 = vld [vmem:[#allocation2 + $0x180] sm:$0xff]  ;;  %v8154_v50 = vld [vmem:[#allocation2 + $0x188] sm:$0xff] }
 0x23e   :  { %v8746_v37 = vrot.slane %v8012_v52, 2  ;;  %v8747_v55 = vrot.slane %v8027_v12, 1  ;;  %v3661_v27 = vrot.slane %v3410_v57, 2  ;;  %v397_v3 = vmul.f32 %v7736_v15, %v4957_v19 }
 0x23f   :  { %4691 = vmatprep.mubr.f32.mxu1 %v3930_v6  ;;  %v2796_v2 = vadd.f32 %v2732_v22, %v2565_v53  ;;  %v1629_v56 = vadd.f32 %v1565_v40, %v1398_v25  ;;  %v479_v7 = vmul.f32 %v7736_v15, %v4959_v20  ;;  %v8114_v14 = vmul.f32 %v7741_v60, %v4959_v20 }
 0x240   :  { %v2463_v39 = vsel %vm1114_vm2, %v8746_v37, %v2462_v48  ;;  %v3178_v54 = vsel %vm629_vm1, %v8747_v55, %v3177_v9  ;;  %v8748_v52 = vrot.slane %v8039_v16, 2  ;;  %v964_v63 = vmul.f32 %v7736_v15, %v4962_v21 }
 0x241   :  { %v8123_v26 = vmul.f32 %v7741_v60, %v4962_v21  ;;  %v1534_v22 = vmul.f32 %v7940_v5, %v4967_v23  ;;  %v3280_v10 = vadd.f32 %v3098_v17, %v2796_v2  ;;  %v2113_v18 = vadd.f32 %v1979_v1, %v1629_v56 }
 0x242   :  { %v3662_v12 = vsel %vm1114_vm2, %v8748_v52, %v3661_v27  ;;  %v700_v51 = vrot.slane %v479_v7, 1  ;;  %v701_v33 = vrot.slane %v8114_v14, 1  ;;  %v1185_v41 = vrot.slane %v964_v63, 2  ;;  %v8180_v63 = vpop.f32.mrf.mxu0 }
 0x243   :  { %v1186_v16 = vrot.slane %v8123_v26, 2  ;;  %v1680_v11 = vmul.f32 %v7940_v5, %v4980_v29  ;;  %v8133_v15 = vmul.f32 %v7945_v4, %v4980_v29  ;;  %v3764_v31 = vadd.f32 %v3582_v0, %v3280_v10 }
 0x244   :  { %v2597_v40 = vadd.f32 %v2463_v39, %v2113_v18  ;;  %v702_v17 = vsel %vm629_vm1, %v700_v51, %v701_v33  ;;  %v2164_v45 = vmul.f32 %v7940_v5, %v4995_v35  ;;  %v8147_v0 = vmul.f32 %v7945_v4, %v4995_v35 }
 0x245   :  { %v882_v38 = vadd.f32 %v702_v17, %v397_v3  ;;  %v1187_v28 = vsel %vm1114_vm2, %v1185_v41, %v1186_v16  ;;  %v1900_v13 = vrot.slane %v1680_v11, 1  ;;  %v8703_v30 = vrot.slane %v8133_v15, 1 }
 0x246   :  { %v3835_v43 = vadd.f32 %v7974_v49, %v3764_v31  ;;  %v2828_v44 = vadd.f32 %v2764_v34, %v2597_v40  ;;  %v2384_v59 = vrot.slane %v2164_v45, 2  ;;  %v2733_v48 = vmul.f32 %v4997_v36, %v8149_v8  ;;  %v8199_v40 = vpop.f32.mrf.mxu1 }
 0x247   :  { %v1367_v61 = vadd.f32 %v1187_v28, %v882_v38  ;;  %v1902_v24 = vsel %vm629_vm1, %v1900_v13, %v8703_v30  ;;  %v2879_v34 = vmul.f32 %v5013_v42, %v8149_v8  ;;  %v8701_v6 = vrot.slane %v8147_v0, 2 }
 0x248   :  { %v3899_v9 = vmax.f32 %v3835_v43, 0.0  ;;  %v3312_v57 = vadd.f32 %v3178_v54, %v2828_v44  ;;  %v8163_v53 = vmul.f32 %v5013_v42, %v8154_v50  ;;  %v3363_v37 = vmul.f32 %v5031_v47, %v8149_v8 }
 0x249   :  { %v1598_v25 = vadd.f32 %v1534_v22, %v1367_v61  ;;  %v3099_v1 = vrot.slane %v2879_v34, 1  ;;  %v8169_v39 = vmul.f32 %v5031_v47, %v8154_v50  ;;  %v2386_v54 = vsel %vm1114_vm2, %v2384_v59, %v8701_v6  ;;  %v8211_v59 = vld [vmem:[#allocation2 + $0x330] sm:$0xff]  ;;  %v8213_v61 = vpop.f32.mrf.mxu0 }
 0x24a   :  { %4644 = vmatmul.mubr.f32.gmra.mxu0 %v3899_v9  ;;  %v3796_v55 = vadd.f32 %v3662_v12, %v3312_v57  ;;  %v8699_v27 = vrot.slane %v8163_v53, 1  ;;  %v429_v3 = vmul.f32 %v7794_v32, %v4957_v19  ;;  %v3583_v56 = vrot.slane %v3363_v37, 2 }
 0x24b   :  { %v2082_v2 = vadd.f32 %v1902_v24, %v1598_v25  ;;  %v8698_v7 = vrot.slane %v8169_v39, 2  ;;  %v527_v52 = vmul.f32 %v7794_v32, %v4959_v20  ;;  %v8188_v10 = vmul.f32 %v7812_v62, %v4959_v20 }
 0x24c   :  { %v3867_v12 = vadd.f32 %v7974_v49, %v3796_v55  ;;  %v3101_v22 = vsel %vm629_vm1, %v3099_v1, %v8699_v27  ;;  %v1012_v18 = vmul.f32 %v7794_v32, %v4962_v21  ;;  %v8197_v31 = vmul.f32 %v7812_v62, %v4962_v21  ;;  %v8229_v55 = vpop.f32.mrf.mxu1 }
 0x24d   :  { %v2566_v51 = vadd.f32 %v2386_v54, %v2082_v2  ;;  %v3585_v41 = vsel %vm1114_vm2, %v3583_v56, %v8698_v7  ;;  %v780_v11 = vrot.slane %v527_v52, 1  ;;  %v8697_v45 = vrot.slane %v8188_v10, 1  ;;  %v8233_v52 = vld [vmem:[#allocation2 + $0x338] sm:$0xff] }
 0x24e   :  { %v3931_v17 = vmax.f32 %v3867_v12, 0.0  ;;  %v1265_v38 = vrot.slane %v1012_v18, 2  ;;  %v1566_v28 = vmul.f32 %v8003_v58, %v4967_v23  ;;  %v8694_v13 = vrot.slane %v8197_v31, 2 }
 0x24f   :  { %v2797_v32 = vadd.f32 %v2733_v48, %v2566_v51  ;;  %v1728_v43 = vmul.f32 %v8003_v58, %v4980_v29  ;;  %v8209_v44 = vmul.f32 %v8021_v46, %v4980_v29  ;;  %v782_v24 = vsel %vm629_vm1, %v780_v11, %v8697_v45  ;;  %v313_v11 = vld [vmem:[#allocation2 + $0x160] sm:$0x3] }
 0x250   :  { %4692 = vmatmul.mubr.f32.gmra.mxu1 %v3931_v17  ;;  %v2212_v48 = vmul.f32 %v8003_v58, %v4995_v35  ;;  %v8222_v34 = vmul.f32 %v8021_v46, %v4995_v35  ;;  %v2765_v9 = vmul.f32 %v4997_v36, %v8211_v59  ;;  %v914_v25 = vadd.f32 %v782_v24, %v429_v3  ;;  %v8243_v17 = vpop.f32.mrf.mxu0 }
 0x251   :  { %v3281_v57 = vadd.f32 %v3101_v22, %v2797_v32  ;;  %v1267_v1 = vsel %vm1114_vm2, %v1265_v38, %v8694_v13  ;;  %v1980_v37 = vrot.slane %v1728_v43, 1  ;;  %v8695_v54 = vrot.slane %v8209_v44, 1  ;;  %v8257_v13 = vpop.f32.mrf.mxu1 }
 0x252   :  { %v2464_v2 = vrot.slane %v2212_v48, 2  ;;  %v8696_v56 = vrot.slane %v8222_v34, 2  ;;  %v2927_v12 = vmul.f32 %v5013_v42, %v8211_v59  ;;  %v1399_v22 = vadd.f32 %v1267_v1, %v914_v25  ;;  %v1450_v1 = vld [vmem:[#allocation2 + $0x178] sm:$0x3] }
 0x253   :  { %v3765_v18 = vadd.f32 %v3585_v41, %v3281_v57  ;;  %v8239_v3 = vmul.f32 %v5013_v42, %v8233_v52  ;;  %v3411_v51 = vmul.f32 %v5031_v47, %v8211_v59  ;;  %v1982_v38 = vsel %vm629_vm1, %v1980_v37, %v8695_v54  ;;  %v8279_v6 = vpop.f32.mrf.mxu1 }
 0x254   :  { %v2466_v32 = vsel %vm1114_vm2, %v2464_v2, %v8696_v56  ;;  %v3179_v41 = vrot.slane %v2927_v12, 1  ;;  %v8253_v43 = vmul.f32 %v5031_v47, %v8233_v52  ;;  %v1630_v48 = vadd.f32 %v1566_v28, %v1399_v22  ;;  %v2649_v56 = vld [vmem:[#allocation2 + $0x190] sm:$0x3]  ;;  %v8269_v22 = vpop.f32.mrf.mxu0  ;;  %8750 = vst [vmem:[#allocation7_spill] sm:$0xff] %v8279_v6 }
 0x255   :  { %v3836_v24 = vadd.f32 %v7974_v49, %v3765_v18  ;;  %v8700_v57 = vrot.slane %v8239_v3, 1  ;;  %v3663_v25 = vrot.slane %v3411_v51, 2  ;;  %v398_v54 = vmul.f32 %v7741_v60, %v4957_v19  ;;  %8749 = vst [vmem:[#allocation6_spill] sm:$0xff] %v8269_v22 }
 0x256   :  { %v8702_v37 = vrot.slane %v8253_v43, 2  ;;  %v481_v2 = vmul.f32 %v4959_v20, %v313_v11  ;;  %v966_v12 = vmul.f32 %v4962_v21, %v313_v11  ;;  %v2114_v7 = vadd.f32 %v1982_v38, %v1630_v48  ;;  %v8288_v30 = vpop.f32.mrf.mxu0 }
 0x257   :  { %v3900_v45 = vmax.f32 %v3836_v24, 0.0  ;;  %v3181_v28 = vsel %vm629_vm1, %v3179_v41, %v8700_v57  ;;  %v1535_v18 = vmul.f32 %v7945_v4, %v4967_v23  ;;  %v1682_v11 = vmul.f32 %v4980_v29, %v1450_v1  ;;  %v361_v57 = vld [vmem:[#allocation2 + $0x310] sm:$0x3] }
 0x258   :  { %v3665_v60 = vsel %vm1114_vm2, %v3663_v25, %v8702_v37  ;;  %v703_v51 = vrot.slane %v481_v2, 1  ;;  %v1188_v27 = vrot.slane %v966_v12, 2  ;;  %v2598_v24 = vadd.f32 %v2466_v32, %v2114_v7 }
 0x259   :  { %4646 = vmatprep.mubr.f32.mxu0 %v3900_v45  ;;  %v2166_v38 = vmul.f32 %v4995_v35, %v1450_v1  ;;  %v2734_v41 = vmul.f32 %v4997_v36, %v8154_v50  ;;  %v2881_v48 = vmul.f32 %v5013_v42, %v2649_v56  ;;  %v1903_v45 = vrot.slane %v1682_v11, 1 }
 0x25a   :  { %v704_v25 = vsel %vm629_vm1, %v701_v33, %v703_v51  ;;  %v1189_v2 = vsel %vm1114_vm2, %v1186_v16, %v1188_v27  ;;  %v3365_v7 = vmul.f32 %v5031_v47, %v2649_v56  ;;  %v2829_v32 = vadd.f32 %v2765_v9, %v2598_v24  ;;  %v1498_v16 = vld [vmem:[#allocation2 + $0x328] sm:$0x3]  ;;  %v8302_v24 = vpop.f32.mrf.mxu1 }
 0x25b   :  { %v883_v1 = vadd.f32 %v704_v25, %v398_v54  ;;  %v2387_v12 = vrot.slane %v2166_v38, 2  ;;  %v3102_v37 = vrot.slane %v2881_v48, 1  ;;  %v8751_v22 = vrot.slane %v8133_v15, 1  ;;  %v2697_v15 = vld [vmem:[#allocation2 + $0x340] sm:$0x3] }
 0x25c   :  { %v3586_v14 = vrot.slane %v3365_v7, 2  ;;  %v430_v33 = vmul.f32 %v7812_v62, %v4957_v19  ;;  %v529_v26 = vmul.f32 %v4959_v20, %v361_v57  ;;  %v3313_v27 = vadd.f32 %v3181_v28, %v2829_v32 }
 0x25d   :  { %v1904_v6 = vsel %vm629_vm1, %v8751_v22, %v1903_v45  ;;  %v1368_v51 = vadd.f32 %v1189_v2, %v883_v1  ;;  %v8752_v9 = vrot.slane %v8147_v0, 2  ;;  %v8753_v56 = vrot.slane %v8163_v53, 1 }
 0x25e   :  { %v8754_v22 = vrot.slane %v8169_v39, 2  ;;  %v783_v38 = vrot.slane %v529_v26, 1  ;;  %v1014_v48 = vmul.f32 %v4962_v21, %v361_v57  ;;  %v1567_v28 = vmul.f32 %v8021_v46, %v4967_v23 }
 0x25f   :  { %v2388_v54 = vsel %vm1114_vm2, %v8752_v9, %v2387_v12  ;;  %v3103_v11 = vsel %vm629_vm1, %v8753_v56, %v3102_v37  ;;  %v3797_v0 = vadd.f32 %v3665_v60, %v3313_v27  ;;  %v1599_v25 = vadd.f32 %v1535_v18, %v1368_v51  ;;  %v8312_v37 = vpop.f32.mrf.mxu0 }
 0x260   :  { %v3587_v62 = vsel %vm1114_vm2, %v8754_v22, %v3586_v14  ;;  %v1730_v2 = vmul.f32 %v4980_v29, %v1498_v16  ;;  %v2214_v53 = vmul.f32 %v4995_v35, %v1498_v16  ;;  %v8755_v45 = vrot.slane %v8188_v10, 1  ;;  %v8321_v14 = vpop.f32.mrf.mxu1 }
 0x261   :  { %v1268_v7 = vrot.slane %v1014_v48, 2  ;;  %v2766_v32 = vmul.f32 %v4997_v36, %v8233_v52  ;;  %v2929_v57 = vmul.f32 %v5013_v42, %v2697_v15  ;;  %v3868_v1 = vadd.f32 %v7974_v49, %v3797_v0 }
 0x262   :  { %v784_v39 = vsel %vm629_vm1, %v8755_v45, %v783_v38  ;;  %v2083_v60 = vadd.f32 %v1904_v6, %v1599_v25  ;;  %v1983_v12 = vrot.slane %v1730_v2, 1  ;;  %v8756_v26 = vrot.slane %v8197_v31, 2  ;;  %v8330_v6 = vpop.f32.mrf.mxu0 }
 0x263   :  { %v915_v18 = vadd.f32 %v784_v39, %v430_v33  ;;  %v2467_v10 = vrot.slane %v2214_v53, 2  ;;  %v3182_v27 = vrot.slane %v2929_v57, 1  ;;  %v3413_v51 = vmul.f32 %v5031_v47, %v2697_v15 }
 0x264   :  { %v1269_v16 = vsel %vm1114_vm2, %v8756_v26, %v1268_v7  ;;  %v3932_v9 = vmax.f32 %v3868_v1, 0.0  ;;  %v2567_v56 = vadd.f32 %v2388_v54, %v2083_v60  ;;  %v8757_v38 = vrot.slane %v8209_v44, 1 }
 0x265   :  { %v1400_v22 = vadd.f32 %v1269_v16, %v915_v18  ;;  %v8758_v33 = vrot.slane %v8222_v34, 2  ;;  %v8759_v31 = vrot.slane %v8239_v3, 1  ;;  %v3666_v2 = vrot.slane %v3413_v51, 2  ;;  %v8346_v34 = vpop.f32.mrf.mxu1 }
 0x266   :  { %v1984_v48 = vsel %vm629_vm1, %v8757_v38, %v1983_v12  ;;  %v399_v15 = vmul.f32 %v7940_v5, %v4957_v19  ;;  %4694 = vmatprep.mubr.f32.mxu1 %v3932_v9  ;;  %v2798_v54 = vadd.f32 %v2734_v41, %v2567_v56  ;;  %v482_v44 = vmul.f32 %v7940_v5, %v4959_v20  ;;  %v8360_v12 = vpop.f32.mrf.mxu0 }
 0x267   :  { %v2468_v0 = vsel %vm1114_vm2, %v8758_v33, %v2467_v10  ;;  %v3183_v25 = vsel %vm629_vm1, %v8759_v31, %v3182_v27  ;;  %v1631_v53 = vadd.f32 %v1567_v28, %v1400_v22  ;;  %v8344_v45 = vmul.f32 %v7945_v4, %v4959_v20  ;;  %v8374_v9 = vpop.f32.mrf.mxu1 }
 0x268   :  { %v8760_v3 = vrot.slane %v8253_v43, 2  ;;  %v967_v7 = vmul.f32 %v7940_v5, %v4962_v21  ;;  %v8355_v41 = vmul.f32 %v7945_v4, %v4962_v21  ;;  %v1536_v28 = vmul.f32 %v8149_v8, %v4967_v23 }
 0x269   :  { %v3282_v57 = vadd.f32 %v3103_v11, %v2798_v54  ;;  %v2115_v1 = vadd.f32 %v1984_v48, %v1631_v53  ;;  %v705_v60 = vrot.slane %v482_v44, 1  ;;  %v8709_v18 = vrot.slane %v8344_v45, 1  ;;  %v4740_v54 = vld [vmem:[#allocation2] sm:$0xff] }
 0x26a   :  { %v3667_v39 = vsel %vm1114_vm2, %v8760_v3, %v3666_v2  ;;  %v1190_v43 = vrot.slane %v967_v7, 2  ;;  %v8708_v26 = vrot.slane %v8355_v41, 2  ;;  %v1683_v5 = vmul.f32 %v8149_v8, %v4980_v29  ;;  %v8385_v2 = vpop.f32.mrf.mxu0 }
 0x26b   :  { %v8367_v16 = vmul.f32 %v8154_v50, %v4980_v29  ;;  %v3766_v10 = vadd.f32 %v3587_v62, %v3282_v57  ;;  %v2599_v27 = vadd.f32 %v2468_v0, %v2115_v1  ;;  %v707_v11 = vsel %vm629_vm1, %v705_v60, %v8709_v18  ;;  %v8396_v1 = vpop.f32.mrf.mxu1 }
 0x26c   :  { %v2167_v51 = vmul.f32 %v8149_v8, %v4995_v35  ;;  %v884_v56 = vadd.f32 %v707_v11, %v399_v15  ;;  %v1192_v22 = vsel %vm1114_vm2, %v1190_v43, %v8708_v26  ;;  %v1905_v38 = vrot.slane %v1683_v5, 1 }
 0x26d   :  { %v8707_v48 = vrot.slane %v8367_v16, 1  ;;  %v3837_v62 = vadd.f32 %v7974_v49, %v3766_v10  ;;  %v2830_v33 = vadd.f32 %v2766_v32, %v2599_v27  ;;  %v8383_v0 = vmul.f32 %v8154_v50, %v4995_v35 }
 0x26e   :  { %v2389_v31 = vrot.slane %v2167_v51, 2  ;;  %v1369_v8 = vadd.f32 %v1192_v22, %v884_v56  ;;  %v8391_v53 = vmul.f32 %v4740_v54, %v4997_v36  ;;  %v2882_v44 = vmul.f32 %v4740_v54, %v5013_v42 }
 0x26f   :  { %v1907_v15 = vsel %vm629_vm1, %v1905_v38, %v8707_v48  ;;  %v3901_v3 = vmax.f32 %v3837_v62, 0.0  ;;  %v3314_v32 = vadd.f32 %v3183_v25, %v2830_v33  ;;  %v8705_v7 = vrot.slane %v8383_v0, 2  ;;  %v8423_v33 = vpop.f32.mrf.mxu1 }
 0x270   :  { %v3366_v57 = vmul.f32 %v4740_v54, %v5031_v47  ;;  %v1600_v60 = vadd.f32 %v1536_v28, %v1369_v8  ;;  %v8398_v43 = vrot.slane %v2882_v44, 1  ;;  %v431_v5 = vmul.f32 %v8003_v58, %v4957_v19  ;;  %v8413_v28 = vpop.f32.mrf.mxu0  ;;  %8762 = vst [vmem:[#allocation9_spill] sm:$0xff] %v8423_v33 }
 0x271   :  { %v530_v36 = vmul.f32 %v8003_v58, %v4959_v20  ;;  %4647 = vmatmul.mubr.f32.gmra.mxu0 %v3901_v3  ;;  %v3798_v10 = vadd.f32 %v3667_v39, %v3314_v32  ;;  %v2391_v25 = vsel %vm1114_vm2, %v2389_v31, %v8705_v7  ;;  %v8411_v11 = vmul.f32 %v8021_v46, %v4959_v20  ;;  %v2652_v7 = vld [vmem:[#allocation2 + $0x1a8] sm:$0x3] }
 0x272   :  { %v8407_v27 = vrot.slane %v3366_v57, 2  ;;  %8761 = vst [vmem:[#allocation8_spill] sm:$0xff] %v8413_v28  ;;  %v2084_v51 = vadd.f32 %v1907_v15, %v1600_v60  ;;  %v1015_v22 = vmul.f32 %v8003_v58, %v4962_v21  ;;  %v8421_v62 = vmul.f32 %v8021_v46, %v4962_v21  ;;  %v316_v57 = vld [vmem:[#allocation2 + $0x178] sm:$0x3]  ;;  %v8437_v60 = vpop.f32.mrf.mxu0 }
 0x273   :  { %v785_v56 = vrot.slane %v530_v36, 1  ;;  %v3869_v38 = vadd.f32 %v7974_v49, %v3798_v10  ;;  %v8704_v39 = vrot.slane %v8411_v11, 1  ;;  %v1568_v54 = vmul.f32 %v8211_v59, %v4967_v23  ;;  %8763 = vst [vmem:[#allocation10_spill] sm:$0xff] %v8437_v60 }
 0x274   :  { %v2568_v31 = vadd.f32 %v2391_v25, %v2084_v51  ;;  %v1270_v8 = vrot.slane %v1015_v22, 2  ;;  %v1731_v15 = vmul.f32 %v8211_v59, %v4980_v29  ;;  %v8706_v3 = vrot.slane %v8421_v62, 2  ;;  %v8463_v26 = vpop.f32.mrf.mxu0 }
 0x275   :  { %v3933_v44 = vmax.f32 %v3869_v38, 0.0  ;;  %v787_v58 = vsel %vm629_vm1, %v785_v56, %v8704_v39  ;;  %v8435_v32 = vmul.f32 %v8233_v52, %v4980_v29  ;;  %v2215_v51 = vmul.f32 %v8211_v59, %v4995_v35  ;;  %8765 = vst [vmem:[#allocation12_spill] sm:$0xff] %v8463_v26 }
 0x276   :  { %v2799_v36 = vadd.f32 %v8391_v53, %v2568_v31  ;;  %v916_v10 = vadd.f32 %v787_v58, %v431_v5  ;;  %v1985_v25 = vrot.slane %v1731_v15, 1  ;;  %v1272_v56 = vsel %vm1114_vm2, %v1270_v8, %v8706_v3  ;;  %v1453_v31 = vld [vmem:[#allocation2 + $0x190] sm:$0x3]  ;;  %v8452_v5 = vpop.f32.mrf.mxu1  ;;  %v8479_v33 = vpop.f32.mrf.mxu0 }
 0x277   :  { %4695 = vmatmul.mubr.f32.gmra.mxu1 %v3933_v44  ;;  %v8710_v22 = vrot.slane %v8435_v32, 1  ;;  %v8448_v38 = vmul.f32 %v8233_v52, %v4995_v35  ;;  %v400_v39 = vmul.f32 %v7945_v4, %v4957_v19  ;;  %8764 = vst [vmem:[#allocation11_spill] sm:$0xff] %v8452_v5  ;;  %v2469_v44 = vrot.slane %v2215_v51, 2 }
 0x278   :  { %v3283_v15 = vadd.f32 %v8398_v43, %v2799_v36  ;;  %v1401_v59 = vadd.f32 %v1272_v56, %v916_v10  ;;  %v484_v58 = vmul.f32 %v4959_v20, %v316_v57  ;;  %v969_v48 = vmul.f32 %v4962_v21, %v316_v57 }
 0x279   :  { %v1987_v8 = vsel %vm629_vm1, %v1985_v25, %v8710_v22  ;;  %v2470_v3 = vrot.slane %v8448_v38, 2  ;;  %v1537_v4 = vmul.f32 %v8154_v50, %v4967_v23  ;;  %v1685_v56 = vmul.f32 %v4980_v29, %v1453_v31  ;;  %v8470_v22 = vpop.f32.mrf.mxu1 }
 0x27a   :  { %v3767_v36 = vadd.f32 %v8407_v27, %v3283_v15  ;;  %v1632_v10 = vadd.f32 %v1568_v54, %v1401_v59  ;;  %v708_v51 = vrot.slane %v484_v58, 1  ;;  %v1193_v5 = vrot.slane %v969_v48, 2  ;;  %8766 = vst [vmem:[#allocation13_spill] sm:$0xff] %v8470_v22 }
 0x27b   :  { %v2471_v18 = vsel %vm1114_vm2, %v2469_v44, %v2470_v3  ;;  %v2169_v25 = vmul.f32 %v4995_v35, %v1453_v31  ;;  %v2884_v38 = vmul.f32 %v5013_v42, %v2652_v7  ;;  %v8767_v26 = vrot.slane %v8344_v45, 1  ;;  %v364_v31 = vld [vmem:[#allocation2 + $0x328] sm:$0x3] }
 0x27c   :  { %v3838_v57 = vadd.f32 %v7974_v49, %v3767_v36  ;;  %v2116_v50 = vadd.f32 %v1987_v8, %v1632_v10  ;;  %v1908_v54 = vrot.slane %v1685_v56, 1  ;;  %v8768_v58 = vrot.slane %v8355_v41, 2  ;;  %v8492_v56 = vpop.f32.mrf.mxu1 }
 0x27d   :  { %v709_v15 = vsel %vm629_vm1, %v8767_v26, %v708_v51  ;;  %v2392_v48 = vrot.slane %v2169_v25, 2  ;;  %v3107_v60 = vrot.slane %v2884_v38, 1  ;;  %v8769_v36 = vrot.slane %v8367_v16, 1  ;;  %v1501_v26 = vld [vmem:[#allocation2 + $0x340] sm:$0x3] }
 0x27e   :  { %v885_v59 = vadd.f32 %v709_v15, %v400_v39  ;;  %v1194_v44 = vsel %vm1114_vm2, %v8768_v58, %v1193_v5  ;;  %v3902_v28 = vmax.f32 %v3838_v57, 0.0  ;;  %v2600_v22 = vadd.f32 %v2471_v18, %v2116_v50  ;;  %v2700_v38 = vld [vmem:[#allocation2 + $0x358] sm:$0x3] }
 0x27f   :  { %v1909_v8 = vsel %vm629_vm1, %v8769_v36, %v1908_v54  ;;  %v3368_v45 = vmul.f32 %v5031_v47, %v2652_v7  ;;  %v8770_v39 = vrot.slane %v8383_v0, 2  ;;  %v3108_v5 = vsel %vm629_vm1, %v8398_v43, %v3107_v60 }
 0x280   :  { %v1370_v10 = vadd.f32 %v1194_v44, %v885_v59  ;;  %v432_v51 = vmul.f32 %v8021_v46, %v4957_v19  ;;  %4649 = vmatprep.mubr.f32.mxu0 %v3902_v28  ;;  %v2831_v18 = vadd.f32 %v8391_v53, %v2600_v22  ;;  %v532_v7 = vmul.f32 %v4959_v20, %v364_v31  ;;  %v8501_v19 = vpop.f32.mrf.mxu0 }
 0x281   :  { %v2393_v41 = vsel %vm1114_vm2, %v8770_v39, %v2392_v48  ;;  %v3591_v16 = vrot.slane %v3368_v45, 2  ;;  %v1017_v25 = vmul.f32 %v4962_v21, %v364_v31  ;;  %v1569_v57 = vmul.f32 %v8233_v52, %v4967_v23  ;;  %v8510_v23 = vld [vmem:[%s8654_s4] ss:$0 sm:$0xff] }
 0x282   :  { %v1601_v0 = vadd.f32 %v1537_v4, %v1370_v10  ;;  %v1733_v60 = vmul.f32 %v4980_v29, %v1501_v26  ;;  %v2217_v50 = vmul.f32 %v4995_v35, %v1501_v26  ;;  %v3315_v46 = vadd.f32 %v8398_v43, %v2831_v18  ;;  %v8512_v29 = vpop.f32.mrf.mxu1  ;;  %v8526_v26 = vpop.f32.mrf.mxu0 }
 0x283   :  { %v3592_v28 = vsel %vm1114_vm2, %v8407_v27, %v3591_v16  ;;  %v788_v22 = vrot.slane %v532_v7, 1  ;;  %v1273_v20 = vrot.slane %v1017_v25, 2  ;;  %v2932_v4 = vmul.f32 %v5013_v42, %v2700_v38 }
 0x284   :  { %v2085_v15 = vadd.f32 %v1909_v8, %v1601_v0  ;;  %v1988_v21 = vrot.slane %v1733_v60, 1  ;;  %v2472_v54 = vrot.slane %v2217_v50, 2  ;;  %v3799_v35 = vadd.f32 %v8407_v27, %v3315_v46  ;;  %v8542_v50 = vpop.f32.mrf.mxu0  ;;  %v8774_v46 = vld [vmem:[#allocation6_spill] sm:$0xff] }
 0x285   :  { %v8771_v52 = vrot.slane %v8411_v11, 1  ;;  %v8772_v58 = vrot.slane %v8421_v62, 2  ;;  %v3416_v48 = vmul.f32 %v5031_v47, %v2700_v38  ;;  %v8773_v36 = vrot.slane %v8435_v32, 1 }
 0x286   :  { %v2569_v42 = vadd.f32 %v2393_v41, %v2085_v15  ;;  %v2473_v45 = vsel %vm1114_vm2, %v2470_v3, %v2472_v54  ;;  %v3870_v11 = vadd.f32 %v7974_v49, %v3799_v35  ;;  %v3187_v10 = vrot.slane %v2932_v4, 1 }
 0x287   :  { %v789_v59 = vsel %vm629_vm1, %v8771_v52, %v788_v22  ;;  %v1274_v44 = vsel %vm1114_vm2, %v8772_v58, %v1273_v20  ;;  %v1989_v8 = vsel %vm629_vm1, %v8773_v36, %v1988_v21  ;;  %v3671_v39 = vrot.slane %v3416_v48, 2  ;;  %v8775_v22 = vld [vmem:[#allocation7_spill] sm:$0xff] }
 0x288   :  { %v917_v31 = vadd.f32 %v789_v59, %v432_v51  ;;  %v4031_v62 = vadd.f32 %v8180_v63, %v8510_v23  ;;  %v2800_v18 = vadd.f32 %v8391_v53, %v2569_v42  ;;  %v4191_v41 = vadd.f32 %v8199_v40, %v8510_v23  ;;  %v8536_v51 = vpop.f32.mrf.mxu1  ;;  %v8559_v59 = vpop.f32.mrf.mxu0 }
 0x289   :  { %v4026_v32 = vadd.f32 %v8510_v23, %v8213_v61  ;;  %v3934_v3 = vmax.f32 %v3870_v11, 0.0  ;;  %v3188_v16 = vsel %vm629_vm1, %v8398_v43, %v3187_v10  ;;  %v3672_v7 = vsel %vm1114_vm2, %v8407_v27, %v3671_v39 }
 0x28a   :  { %v1402_v47 = vadd.f32 %v1274_v44, %v917_v31  ;;  %v4345_v25 = vmax.f32 %v4031_v62, 0.0  ;;  %v3284_v63 = vadd.f32 %v3108_v5, %v2800_v18  ;;  %v4377_v0 = vmax.f32 %v4191_v41, 0.0  ;;  %v4105_v39 = vpop.f32.mrf.mxu0  ;;  %v8776_v62 = vld [vmem:[#allocation8_spill] sm:$0xff] }
 0x28b   :  { %v4344_v60 = vmax.f32 %v4026_v32, 0.0  ;;  %4697 = vmatprep.mubr.f32.mxu1 %v3934_v3  ;;  %v4186_v40 = vadd.f32 %v8510_v23, %v8229_v55  ;;  %v4041_v61 = vadd.f32 %v8243_v17, %v8510_v23  ;;  %v4201_v43 = vadd.f32 %v8257_v13, %v8510_v23  ;;  %v8556_v55 = vpop.f32.mrf.mxu1  ;;  %v8778_v3 = vld [vmem:[#allocation10_spill] sm:$0xff] }
 0x28c   :  { %v1633_v38 = vadd.f32 %v1569_v57, %v1402_v47  ;;  %4409 = vst [vmem:[#allocation3 + $0x8] sm:$0xff] %v4345_v25  ;;  %v4036_v27 = vadd.f32 %v8510_v23, %v8774_v46  ;;  %v3768_v5 = vadd.f32 %v3592_v28, %v3284_v63  ;;  %4441 = vst [vmem:[#allocation3 + $0x108] sm:$0xff] %v4377_v0  ;;  %v8777_v47 = vld [vmem:[#allocation9_spill] sm:$0xff]  ;;  %v8779_v25 = vld [vmem:[#allocation11_spill] sm:$0xff] }
 0x28d   :  { %4408 = vst [vmem:[#allocation3] sm:$0xff] %v4344_v60  ;;  %v4196_v20 = vadd.f32 %v8510_v23, %v8775_v22  ;;  %v4051_v15 = vadd.f32 %v8288_v30, %v8510_v23  ;;  %v4376_v21 = vmax.f32 %v4186_v40, 0.0  ;;  %v4347_v17 = vmax.f32 %v4041_v61, 0.0  ;;  %v8574_v36 = vpop.f32.mrf.mxu1  ;;  %v4741_v40 = vld [vmem:[%s8652_s2] ss:$0 sm:$0xff]  ;;  %v8780_v46 = vld [vmem:[#allocation12_spill] sm:$0xff] }
 0x28e   :  { %v2117_v57 = vadd.f32 %v1989_v8, %v1633_v38  ;;  %v4379_v54 = vmax.f32 %v4201_v43, 0.0  ;;  %v4346_v4 = vmax.f32 %v4036_v27, 0.0  ;;  %v3839_v13 = vadd.f32 %v7974_v49, %v3768_v5  ;;  %v4633_v5 = vpop.f32.mrf.mxu0  ;;  %s4765_s2 = smov [#allocation3]  }
 0x28f   :  { %v4378_v52 = vmax.f32 %v4196_v20, 0.0  ;;  %v4349_v28 = vmax.f32 %v4051_v15, 0.0  ;;  %4440 = vst [vmem:[#allocation3 + $0x100] sm:$0xff] %v4376_v21  ;;  %4411 = vst [vmem:[#allocation3 + $0x18] sm:$0xff] %v4347_v17  ;;  %v4211_v30 = vadd.f32 %v8302_v24, %v8510_v23  ;;  %v4046_v58 = vadd.f32 %v8510_v23, %v8312_v37  ;;  %s4477_s11 = sshll.u32 %s4765_s2, 4  ;;  %s4478_s11 = int_to_ptr.vmem [resolvable:$true] %s4477_s11 }
 0x290   :  { %v2601_v35 = vadd.f32 %v2473_v45, %v2117_v57  ;;  %4443 = vst [vmem:[#allocation3 + $0x118] sm:$0xff] %v4379_v54  ;;  %4410 = vst [vmem:[#allocation3 + $0x10] sm:$0xff] %v4346_v4  ;;  %v4206_v44 = vadd.f32 %v8510_v23, %v8321_v14  ;;  %v4061_v49 = vadd.f32 %v8330_v6, %v8510_v23  ;;  %v3903_v48 = vmax.f32 %v3839_v13, 0.0  ;;  %v8781_v57 = vld [vmem:[#allocation13_spill] sm:$0xff]  ;;  %s4742_s12 = scalar_lea.vmem %s4478_s11, 8192  ;;  %p4747_p1 = scmp.lt.s32.totalorder %s4478_s11, %s4478_s11 }
 0x291   :  { %4442 = vst [vmem:[#allocation3 + $0x110] sm:$0xff] %v4378_v52  ;;  %4413 = vst [vmem:[#allocation3 + $0x28] sm:$0xff] %v4349_v28  ;;  %v4221_v31 = vadd.f32 %v8346_v34, %v8510_v23  ;;  %v4056_v24 = vadd.f32 %v8510_v23, %v8360_v12  ;;  %v4381_v37 = vmax.f32 %v4211_v30, 0.0  ;;  %v4348_v8 = vmax.f32 %v4046_v58, 0.0  ;;  %p4743_p0 = scmp.ne.s32.totalorder %s4478_s11, %s4742_s12  ;;  %p4748_p2 = scmp.lt.s32.totalorder %s4742_s12, %s4742_s12 }
 0x292   :  { %v2832_v42 = vadd.f32 %v8391_v53, %v2601_v35  ;;  %v4380_v45 = vmax.f32 %v4206_v44, 0.0  ;;  %v4351_v14 = vmax.f32 %v4061_v49, 0.0  ;;  %4650 = vmatmul.mubr.f32.gmra.mxu0 %v3903_v48  ;;  %v4216_v53 = vadd.f32 %v8510_v23, %v8374_v9  ;;  %v4115_v49 = vpop.f32.mrf.mxu0 }
 0x293   :  { %v4383_v6 = vmax.f32 %v4221_v31, 0.0  ;;  %v4350_v10 = vmax.f32 %v4056_v24, 0.0  ;;  %4445 = vst [vmem:[#allocation3 + $0x128] sm:$0xff] %v4381_v37  ;;  %4412 = vst [vmem:[#allocation3 + $0x20] sm:$0xff] %v4348_v8  ;;  %v4071_v34 = vadd.f32 %v8385_v2, %v8510_v23  ;;  %v4231_v12 = vadd.f32 %v8396_v1, %v8510_v23  ;;  %v4265_v2 = vpop.f32.mrf.mxu1  ;;  %p4749_p3 = por %p4748_p2, %p4747_p1 }
 0x294   :  { %v3316_v11 = vadd.f32 %v3188_v16, %v2832_v42  ;;  %4444 = vst [vmem:[#allocation3 + $0x120] sm:$0xff] %v4380_v45  ;;  %4415 = vst [vmem:[#allocation3 + $0x38] sm:$0xff] %v4351_v14  ;;  %v4066_v18 = vadd.f32 %v8510_v23, %v8776_v62  ;;  %v4226_v41 = vadd.f32 %v8510_v23, %v8777_v47  ;;  %v4382_v9 = vmax.f32 %v4216_v53, 0.0 }
 0x295   :  { %4447 = vst [vmem:[#allocation3 + $0x138] sm:$0xff] %v4383_v6  ;;  %4414 = vst [vmem:[#allocation3 + $0x30] sm:$0xff] %v4350_v10  ;;  %v4081_v16 = vadd.f32 %v8778_v3, %v8510_v23  ;;  %v4241_v63 = vadd.f32 %v8779_v25, %v8510_v23  ;;  %v4353_v38 = vmax.f32 %v4071_v34, 0.0  ;;  %v4385_v0 = vmax.f32 %v4231_v12, 0.0  ;;  %v4681_v35 = vpop.f32.mrf.mxu1  ;;  %p4750_p4 = pnand %p4749_p3, %p4743_p0 }
 0x296   :  { %v3800_v32 = vadd.f32 %v3672_v7, %v3316_v11  ;;  %v4352_v1 = vmax.f32 %v4066_v18, 0.0  ;;  %v4384_v60 = vmax.f32 %v4226_v41, 0.0  ;;  %4446 = vst [vmem:[#allocation3 + $0x130] sm:$0xff] %v4382_v9  ;;  %v4076_v27 = vadd.f32 %v8510_v23, %v8780_v46 }
 0x297   :  { %v4355_v7 = vmax.f32 %v4081_v16, 0.0  ;;  %v4387_v43 = vmax.f32 %v4241_v63, 0.0  ;;  %4417 = vst [vmem:[#allocation3 + $0x48] sm:$0xff] %v4353_v38  ;;  %4449 = vst [vmem:[#allocation3 + $0x148] sm:$0xff] %v4385_v0  ;;  %v4236_v22 = vadd.f32 %v8510_v23, %v8781_v57  ;;  %v4091_v20 = vadd.f32 %v8479_v33, %v8510_v23  ;;  %v4275_v37 = vpop.f32.mrf.mxu1 }
 0x298   :  { %v3871_v61 = vadd.f32 %v4741_v40, %v3800_v32  ;;  %4416 = vst [vmem:[#allocation3 + $0x40] sm:$0xff] %v4352_v1  ;;  %4448 = vst [vmem:[#allocation3 + $0x140] sm:$0xff] %v4384_v60  ;;  %v4251_v15 = vadd.f32 %v8492_v56, %v8510_v23  ;;  %v4086_v21 = vadd.f32 %v8510_v23, %v8501_v19  ;;  %v4354_v54 = vmax.f32 %v4076_v27, 0.0  ;;  %v4636_v10 = vpop.f32.mrf.mxu0 }
 0x299   :  { %4419 = vst [vmem:[#allocation3 + $0x58] sm:$0xff] %v4355_v7  ;;  %4451 = vst [vmem:[#allocation3 + $0x158] sm:$0xff] %v4387_v43  ;;  %v4246_v4 = vadd.f32 %v8510_v23, %v8512_v29  ;;  %v4101_v13 = vadd.f32 %v8526_v26, %v8510_v23  ;;  %v4386_v52 = vmax.f32 %v4236_v22, 0.0  ;;  %v4357_v28 = vmax.f32 %v4091_v20, 0.0 }
 0x29a   :  { %v3935_v17 = vmax.f32 %v3871_v61, 0.0  ;;  %v4389_v33 = vmax.f32 %v4251_v15, 0.0  ;;  %v4356_v30 = vmax.f32 %v4086_v21, 0.0  ;;  %4418 = vst [vmem:[#allocation3 + $0x50] sm:$0xff] %v4354_v54  ;;  %v4261_v19 = vadd.f32 %v8536_v51, %v8510_v23  ;;  %v4125_v62 = vpop.f32.mrf.mxu0 }
 0x29b   :  { %v4388_v56 = vmax.f32 %v4246_v4, 0.0  ;;  %v4359_v58 = vmax.f32 %v4101_v13, 0.0  ;;  %v4096_v44 = vadd.f32 %v8510_v23, %v8542_v50  ;;  %4450 = vst [vmem:[#allocation3 + $0x150] sm:$0xff] %v4386_v52  ;;  %4421 = vst [vmem:[#allocation3 + $0x68] sm:$0xff] %v4357_v28  ;;  %v4256_v29 = vadd.f32 %v8510_v23, %v8556_v55 }
 0x29c   :  { %4698 = vmatmul.mubr.f32.gmra.mxu1 %v3935_v17  ;;  %4453 = vst [vmem:[#allocation3 + $0x168] sm:$0xff] %v4389_v33  ;;  %4420 = vst [vmem:[#allocation3 + $0x60] sm:$0xff] %v4356_v30  ;;  %v4111_v26 = vadd.f32 %v8559_v59, %v8510_v23  ;;  %v4271_v48 = vadd.f32 %v8574_v36, %v8510_v23  ;;  %v4106_v42 = vadd.f32 %v8510_v23, %v4105_v39 }
 0x29d   :  { %4452 = vst [vmem:[#allocation3 + $0x160] sm:$0xff] %v4388_v56  ;;  %4423 = vst [vmem:[#allocation3 + $0x78] sm:$0xff] %v4359_v58  ;;  %v4391_v51 = vmax.f32 %v4261_v19, 0.0  ;;  %v4358_v50 = vmax.f32 %v4096_v44, 0.0  ;;  %v4266_v31 = vadd.f32 %v8510_v23, %v4265_v2  ;;  %v4121_v24 = vadd.f32 %v4633_v5, %v8510_v23 }
 0x29e   :  { %v4390_v8 = vmax.f32 %v4256_v29, 0.0  ;;  %v4361_v45 = vmax.f32 %v4111_v26, 0.0  ;;  %v4393_v55 = vmax.f32 %v4271_v48, 0.0  ;;  %v4360_v14 = vmax.f32 %v4106_v42, 0.0 }
 0x29f   :  { %4455 = vst [vmem:[#allocation3 + $0x178] sm:$0xff] %v4391_v51  ;;  %4422 = vst [vmem:[#allocation3 + $0x70] sm:$0xff] %v4358_v50  ;;  %v4392_v59 = vmax.f32 %v4266_v31, 0.0  ;;  %v4363_v11 = vmax.f32 %v4121_v24, 0.0  ;;  %v4281_v36 = vadd.f32 %v4681_v35, %v8510_v23  ;;  %v4116_v6 = vadd.f32 %v8510_v23, %v4115_v49  ;;  %v4684_v9 = vpop.f32.mrf.mxu1 }
 0x2a0   :  { %4454 = vst [vmem:[#allocation3 + $0x170] sm:$0xff] %v4390_v8  ;;  %4425 = vst [vmem:[#allocation3 + $0x88] sm:$0xff] %v4361_v45  ;;  %v4276_v53 = vadd.f32 %v8510_v23, %v4275_v37  ;;  %v4131_v39 = vadd.f32 %v4636_v10, %v8510_v23  ;;  %v4126_v41 = vadd.f32 %v8510_v23, %v4125_v62 }
 0x2a1   :  { %4457 = vst [vmem:[#allocation3 + $0x188] sm:$0xff] %v4393_v55  ;;  %4424 = vst [vmem:[#allocation3 + $0x80] sm:$0xff] %v4360_v14  ;;  %v4395_v34 = vmax.f32 %v4281_v36, 0.0  ;;  %v4362_v12 = vmax.f32 %v4116_v6, 0.0  ;;  %v4291_v3 = vadd.f32 %v4684_v9, %v8510_v23  ;;  %v4285_v16 = vpop.f32.mrf.mxu1 }
 0x2a2   :  { %4456 = vst [vmem:[#allocation3 + $0x180] sm:$0xff] %v4392_v59  ;;  %4427 = vst [vmem:[#allocation3 + $0x98] sm:$0xff] %v4363_v11  ;;  %v4394_v18 = vmax.f32 %v4276_v53, 0.0  ;;  %v4365_v47 = vmax.f32 %v4131_v39, 0.0  ;;  %v4364_v32 = vmax.f32 %v4126_v41, 0.0  ;;  %v4286_v63 = vadd.f32 %v8510_v23, %v4285_v16 }
 0x2a3   :  { %4459 = vst [vmem:[#allocation3 + $0x198] sm:$0xff] %v4395_v34  ;;  %4426 = vst [vmem:[#allocation3 + $0x90] sm:$0xff] %v4362_v12  ;;  %v4397_v25 = vmax.f32 %v4291_v3, 0.0 }
 0x2a4   :  { %4458 = vst [vmem:[#allocation3 + $0x190] sm:$0xff] %v4394_v18  ;;  %4429 = vst [vmem:[#allocation3 + $0xa8] sm:$0xff] %v4365_v47  ;;  %v4396_v2 = vmax.f32 %v4286_v63, 0.0 }
 0x2a5   :  { %4428 = vst [vmem:[#allocation3 + $0xa0] sm:$0xff] %v4364_v32  ;;  %4461 = vst [vmem:[#allocation3 + $0x1a8] sm:$0xff] %v4397_v25 }
 0x2a6   :  { %4460 = vst [vmem:[#allocation3 + $0x1a0] sm:$0xff] %v4396_v2 }
 0x2be   :  { %v4639_v38 = vpop.f32.mrf.mxu0 }
 0x2bf   :  { %v4141_v0 = vadd.f32 %v4639_v38, %v8510_v23 }
 0x2c0   :  { %v4135_v1 = vpop.f32.mrf.mxu0 }
 0x2c1   :  { %v4367_v60 = vmax.f32 %v4141_v0, 0.0  ;;  %v4136_v40 = vadd.f32 %v8510_v23, %v4135_v1 }
 0x2c3   :  { %4431 = vst [vmem:[#allocation3 + $0xb8] sm:$0xff] %v4367_v60  ;;  %v4366_v61 = vmax.f32 %v4136_v40, 0.0 }
 0x2c4   :  { %v4687_v7 = vpop.f32.mrf.mxu1 }
 0x2c5   :  { %v4301_v43 = vadd.f32 %v4687_v7, %v8510_v23  ;;  %4430 = vst [vmem:[#allocation3 + $0xb0] sm:$0xff] %v4366_v61 }
 0x2c6   :  { %v4295_v46 = vpop.f32.mrf.mxu1 }
 0x2c7   :  { %v4399_v27 = vmax.f32 %v4301_v43, 0.0  ;;  %v4296_v5 = vadd.f32 %v8510_v23, %v4295_v46 }
 0x2c9   :  { %4463 = vst [vmem:[#allocation3 + $0x1b8] sm:$0xff] %v4399_v27  ;;  %v4398_v57 = vmax.f32 %v4296_v5, 0.0 }
 0x2cb   :  { %4462 = vst [vmem:[#allocation3 + $0x1b0] sm:$0xff] %v4398_v57 }
 0x2e4   :  { %v4642_v22 = vpop.f32.mrf.mxu0 }
 0x2e5   :  { %v4151_v20 = vadd.f32 %v4642_v22, %v8510_v23 }
 0x2e6   :  { %v4145_v15 = vpop.f32.mrf.mxu0 }
 0x2e7   :  { %v4369_v21 = vmax.f32 %v4151_v20, 0.0  ;;  %v4146_v17 = vadd.f32 %v8510_v23, %v4145_v15 }
 0x2e9   :  { %4433 = vst [vmem:[#allocation3 + $0xc8] sm:$0xff] %v4369_v21  ;;  %v4368_v54 = vmax.f32 %v4146_v17, 0.0 }
 0x2ea   :  { %v4690_v4 = vpop.f32.mrf.mxu1 }
 0x2eb   :  { %v4311_v13 = vadd.f32 %v4690_v4, %v8510_v23  ;;  %4432 = vst [vmem:[#allocation3 + $0xc0] sm:$0xff] %v4368_v54 }
 0x2ec   :  { %v4305_v35 = vpop.f32.mrf.mxu1 }
 0x2ed   :  { %v4401_v52 = vmax.f32 %v4311_v13, 0.0  ;;  %v4306_v28 = vadd.f32 %v8510_v23, %v4305_v35 }
 0x2ef   :  { %4465 = vst [vmem:[#allocation3 + $0x1c8] sm:$0xff] %v4401_v52  ;;  %v4400_v33 = vmax.f32 %v4306_v28, 0.0 }
 0x2f1   :  { %4464 = vst [vmem:[#allocation3 + $0x1c0] sm:$0xff] %v4400_v33 }
 0x30a   :  { %v4645_v30 = vpop.f32.mrf.mxu0 }
 0x30b   :  { %v4161_v56 = vadd.f32 %v4645_v30, %v8510_v23 }
 0x30c   :  { %v4155_v58 = vpop.f32.mrf.mxu0 }
 0x30d   :  { %v4371_v19 = vmax.f32 %v4161_v56, 0.0  ;;  %v4156_v44 = vadd.f32 %v8510_v23, %v4155_v58 }
 0x30f   :  { %4435 = vst [vmem:[#allocation3 + $0xd8] sm:$0xff] %v4371_v19  ;;  %v4370_v49 = vmax.f32 %v4156_v44, 0.0 }
 0x310   :  { %v4693_v29 = vpop.f32.mrf.mxu1 }
 0x311   :  { %v4321_v26 = vadd.f32 %v4693_v29, %v8510_v23  ;;  %4434 = vst [vmem:[#allocation3 + $0xd0] sm:$0xff] %v4370_v49 }
 0x312   :  { %v4315_v48 = vpop.f32.mrf.mxu1 }
 0x313   :  { %v4403_v42 = vmax.f32 %v4321_v26, 0.0  ;;  %v4316_v51 = vadd.f32 %v8510_v23, %v4315_v48 }
 0x315   :  { %4467 = vst [vmem:[#allocation3 + $0x1d8] sm:$0xff] %v4403_v42  ;;  %v4402_v50 = vmax.f32 %v4316_v51, 0.0 }
 0x317   :  { %4466 = vst [vmem:[#allocation3 + $0x1d0] sm:$0xff] %v4402_v50 }
 0x331   :  { %v4648_v31 = vpop.f32.mrf.mxu0 }
 0x332   :  { %v4171_v24 = vadd.f32 %v4648_v31, %v8510_v23 }
 0x333   :  { %v4165_v37 = vpop.f32.mrf.mxu0 }
 0x334   :  { %v4373_v8 = vmax.f32 %v4171_v24, 0.0  ;;  %v4166_v45 = vadd.f32 %v8510_v23, %v4165_v37 }
 0x336   :  { %4437 = vst [vmem:[#allocation3 + $0xe8] sm:$0xff] %v4373_v8  ;;  %v4372_v55 = vmax.f32 %v4166_v45, 0.0 }
 0x337   :  { %v4696_v14 = vpop.f32.mrf.mxu1 }
 0x338   :  { %v4331_v59 = vadd.f32 %v4696_v14, %v8510_v23  ;;  %4436 = vst [vmem:[#allocation3 + $0xe0] sm:$0xff] %v4372_v55 }
 0x339   :  { %v4325_v11 = vpop.f32.mrf.mxu1 }
 0x33a   :  { %v4405_v36 = vmax.f32 %v4331_v59, 0.0  ;;  %v4326_v6 = vadd.f32 %v8510_v23, %v4325_v11 }
 0x33c   :  { %4469 = vst [vmem:[#allocation3 + $0x1e8] sm:$0xff] %v4405_v36  ;;  %v4404_v10 = vmax.f32 %v4326_v6, 0.0 }
 0x33e   :  { %4468 = vst [vmem:[#allocation3 + $0x1e0] sm:$0xff] %v4404_v10 }
 0x352   :  { %v4651_v53 = vpop.f32.mrf.mxu0 }
 0x353   :  { %v4181_v39 = vadd.f32 %v4651_v53, %v8510_v23 }
 0x354   :  { %v4175_v34 = vpop.f32.mrf.mxu0 }
 0x355   :  { %v4375_v12 = vmax.f32 %v4181_v39, 0.0  ;;  %v4176_v62 = vadd.f32 %v8510_v23, %v4175_v34 }
 0x357   :  { %4439 = vst [vmem:[#allocation3 + $0xf8] sm:$0xff] %v4375_v12  ;;  %v4374_v18 = vmax.f32 %v4176_v62, 0.0 }
 0x359   :  { %4438 = vst [vmem:[#allocation3 + $0xf0] sm:$0xff] %v4374_v18 }
 0x35c   :  { %v4699_v47 = vpop.f32.mrf.mxu1 }
 0x35d   :  { %v4341_v41 = vadd.f32 %v4699_v47, %v8510_v23 }
 0x35e   :  { %v4335_v32 = vpop.f32.mrf.mxu1 }
 0x35f   :  { %v4407_v9 = vmax.f32 %v4341_v41, 0.0  ;;  %v4336_v3 = vadd.f32 %v8510_v23, %v4335_v32 }
 0x361   :  { %4471 = vst [vmem:[#allocation3 + $0x1f8] sm:$0xff] %v4407_v9  ;;  %v4406_v16 = vmax.f32 %v4336_v3, 0.0 }
 0x363   :  { %4470 = vst [vmem:[#allocation3 + $0x1f0] sm:$0xff] %v4406_v16 }
 0x364   :  { %4753 = shalt.err (!%p4750_p4)
}
 0x365   :  { %s4766_s13 = smov 128   ;;  %s4767_s14 = smov 8  }
 0x366   :  { %4483 = dma.vmem_to_hbm [thread:$0]  %s4478_s11, 8192, %s8655_s5, [#allocation4], %s4766_s13, %s4766_s13, %s4767_s14  }
 0x367   :  { %4762 = dma.done.wait [#allocation4], 8192  }
 0x368   :  { %4763 = vsyncadd [#allocation4], 4294959104 }
 0x369   :  { %4487 = vsyncpa [#allocation4], 1 }

</bundles_post_ra>
